<compile_context>
chip_gen: v7x
topology: tpu7x:2x2x1
jax: 0.10.0
libtpu: 0.0.40
codegen_flags: <defaults>
</compile_context>

<pallas_src>
import jax
import jax.numpy as jnp
import numpy as np
from jax.experimental import pallas as pl
from jax.experimental.pallas import tpu as pltpu

EMBED_DIM = 256  # hard-coded in the PyTorch module


# ----------------------------- kernel helpers ------------------------------

def _conv1d_relu(x, w_ref, b_ref):
    """Valid 1D conv + bias + ReLU.  x: (T_in, Cin) f32, w_ref: (K, Cin, Cout)
    bf16, b_ref: (1, Cout) f32.  K shifted bf16 matmuls with f32 accumulation
    on the MXU."""
    k_size = w_ref.shape[0]
    t_out = x.shape[0] - k_size + 1
    acc = jnp.dot(x[0:t_out, :].astype(jnp.bfloat16), w_ref[0],
                  preferred_element_type=jnp.float32)
    for k in range(1, k_size):  # static, unrolled taps
        acc = acc + jnp.dot(x[k:k + t_out, :].astype(jnp.bfloat16), w_ref[k],
                            preferred_element_type=jnp.float32)
    return jnp.maximum(acc + b_ref[...], 0.0)


def _maxpool3(x, sel_ref):
    """Non-overlapping MaxPool1d(kernel=3, stride=3) along the time axis.
    x: (T, C) f32; sel_ref: (3, P, T) bf16 precomputed one-hot row selectors
    (sel[j, i, 3*i + j] = 1).  Three exact-selection MXU matmuls + elementwise
    max; no in-kernel mask construction, no strided slices/reshapes."""
    xb = x.astype(jnp.bfloat16)
    m = jnp.dot(sel_ref[0], xb, preferred_element_type=jnp.float32)
    m = jnp.maximum(m, jnp.dot(sel_ref[1], xb, preferred_element_type=jnp.float32))
    m = jnp.maximum(m, jnp.dot(sel_ref[2], xb, preferred_element_type=jnp.float32))
    return m


# --------------------------------- kernel ----------------------------------

def charcnn_kernel(x_ref,
                   w1, b1, w2, b2, w3, b3, w4, b4, w5, b5, w6, b6,
                   sel1, sel2,
                   fw1, fb1, fw2, fb2, fw3, fb3,
                   out_ref):
    tb = x_ref.shape[0]                                 # samples per grid step
    feats = []
    for s in range(tb):                                 # static, unrolled
        x = x_ref[s]                                    # (L, EMBED_DIM) f32
        h = _maxpool3(_conv1d_relu(x, w1, b1), sel1)    # conv1 + relu + pool3
        h = _maxpool3(_conv1d_relu(h, w2, b2), sel2)    # conv2 + relu + pool3
        h = _conv1d_relu(h, w3, b3)                     # conv3 + relu
        h = _conv1d_relu(h, w4, b4)                     # conv4 + relu
        h = _conv1d_relu(h, w5, b5)                     # conv5 + relu
        h = _conv1d_relu(h, w6, b6)                     # conv6 + relu -> (3..5, C)
        # final MaxPool1d(3) with pooled length 1 == max over the first 3 rows
        feats.append(jnp.max(h[0:3, :], axis=0, keepdims=True))   # (1, C)

    f = jnp.concatenate(feats, axis=0)                  # (TB, C) == view(B, -1)

    # Batched FC layers: one matmul per layer for all TB samples.
    h = jnp.maximum(jnp.dot(f.astype(jnp.bfloat16), fw1[...],
                            preferred_element_type=jnp.float32) + fb1[...], 0.0)
    h = jnp.maximum(jnp.dot(h.astype(jnp.bfloat16), fw2[...],
                            preferred_element_type=jnp.float32) + fb2[...], 0.0)
    out = jnp.dot(h.astype(jnp.bfloat16), fw3[...],
                  preferred_element_type=jnp.float32) + fb3[...]
    out_ref[...] = out                                  # (TB, 128) lane-dense store


# -------------------------------- wrapper ----------------------------------

def _pool_selectors(p, t):
    """(3, p, t) one-hot stride-3 row selectors for MaxPool1d(3)."""
    sel = np.zeros((3, p, t), np.float32)
    rows = np.arange(p)
    for j in range(3):
        sel[j, rows, 3 * rows + j] = 1.0
    return jnp.asarray(sel, dtype=jnp.bfloat16)         # exact 0/1 in bf16


def charcnn_forward(x_emb, params, block_batch=8):
    """x_emb: (B, L, EMBED_DIM) f32 (embedding lookup done in plain JAX)."""
    (w1, b1, w2, b2, w3, b3, w4, b4, w5, b5, w6, b6,
     fw1, fb1, fw2, fb2, fw3, fb3) = params
    batch, seq_len, emb = x_emb.shape
    n_conv = w1.shape[2]
    n_classes = fw3.shape[1]

    # Length bookkeeping through the conv/pool chain (PyTorch semantics).
    l1 = seq_len - 7 + 1; p1 = l1 // 3
    l2 = p1 - 7 + 1;      p2 = l2 // 3
    l6 = ((p2 - 3 + 1) - 2 - 2) - 3 + 1
    p6 = l6 // 3
    assert p6 == 1 and fw1.shape[0] == n_conv, (
        "fc1 = Linear(n_conv_filters, ...) requires the flattened conv output "
        "to be exactly n_conv_filters (final pooled length == 1); "
        "input_length=123 satisfies this.")

    # bf16 weights (MXU-native), f32 biases; fc3 padded to a lane-dense width.
    n_out_pad = max(128, ((n_classes + 127) // 128) * 128)
    bf = lambda a: a.astype(jnp.bfloat16)
    fw3_pad = jnp.zeros((fw3.shape[0], n_out_pad), jnp.float32).at[:, :n_classes].set(fw3)
    fb3_pad = jnp.zeros((1, n_out_pad), jnp.float32).at[:, :n_classes].set(fb3)

    sel1 = _pool_selectors(p1, l1)
    sel2 = _pool_selectors(p2, l2)

    kernel_params = (bf(w1), b1, bf(w2), b2, bf(w3), b3, bf(w4), b4,
                     bf(w5), b5, bf(w6), b6, sel1, sel2,
                     bf(fw1), fb1, bf(fw2), fb2, bf(fw3_pad), fb3_pad)

    # Multi-sample blocking: TB samples per grid step.
    if batch <= block_batch:
        tb, padded = batch, batch
    else:
        tb = block_batch
        padded = ((batch + tb - 1) // tb) * tb
    if padded != batch:
        x_emb = jnp.concatenate(
            [x_emb, jnp.zeros((padded - batch, seq_len, emb), x_emb.dtype)], axis=0)

    def const_spec(arr):
        nd = arr.ndim
        return pl.BlockSpec(arr.shape, lambda b, _n=nd: (0,) * _n)

    in_specs = [pl.BlockSpec((tb, seq_len, emb), lambda b: (b, 0, 0))]
    in_specs += [const_spec(p) for p in kernel_params]
    out_spec = pl.BlockSpec((tb, n_out_pad), lambda b: (b, 0))

    out = pl.pallas_call(
        charcnn_kernel,
        out_shape=jax.ShapeDtypeStruct((padded, n_out_pad), jnp.float32),
        grid_spec=pltpu.PrefetchScalarGridSpec(
            num_scalar_prefetch=0,
            grid=(padded // tb,),
            in_specs=in_specs,
            out_specs=out_spec),
        compiler_params=pltpu.CompilerParams(
            dimension_semantics=("parallel",),        # v7x: shard blocks over 2 TCs
            vmem_limit_bytes=32 * 1024 * 1024),
    )(x_emb, *kernel_params)
    return out[:batch, :n_classes]


# ----------------------- pure-JAX reference (PyTorch semantics) ------------

def reference_forward(x_emb, params):
    (w1, b1, w2, b2, w3, b3, w4, b4, w5, b5, w6, b6,
     fw1, fb1, fw2, fb2, fw3, fb3) = params
    hi = jax.lax.Precision.HIGHEST
    x = jnp.transpose(x_emb, (0, 2, 1))                # NCW, like PyTorch

    def conv_block(x, w_kio, b, pool):
        w = jnp.transpose(w_kio, (2, 1, 0))            # (Cout, Cin, K)
        y = jax.lax.conv_general_dilated(
            x, w, window_strides=(1,), padding='VALID',
            dimension_numbers=('NCH', 'OIH', 'NCH'), precision=hi)
        y = jnp.maximum(y + b[0][None, :, None], 0.0)
        if pool:
            bsz, ch, t = y.shape
            p = t // 3
            y = y[:, :, :3 * p].reshape(bsz, ch, p, 3).max(axis=-1)
        return y

    x = conv_block(x, w1, b1, True)
    x = conv_block(x, w2, b2, True)
    x = conv_block(x, w3, b3, False)
    x = conv_block(x, w4, b4, False)
    x = conv_block(x, w5, b5, False)
    x = conv_block(x, w6, b6, True)
    x = x.reshape(x.shape[0], -1)                      # (B, C) since T == 1
    x = jnp.maximum(jnp.dot(x, fw1, precision=hi) + fb1[0], 0.0)
    x = jnp.maximum(jnp.dot(x, fw2, precision=hi) + fb2[0], 0.0)
    return jnp.dot(x, fw3, precision=hi) + fb3[0]


# ---------------------------------- main ------------------------------------

if __name__ == "__main__":
    batch = 2
    input_length = 123        # smallest length giving final pooled length == 1
    input_dim = 68
    n_conv = 128              # n_conv_filters (reduced for a small demo)
    n_fc = 256                # n_fc_neurons   (reduced for a small demo)
    n_classes = 2
    std = 0.05                # module's _create_weights std

    key = jax.random.PRNGKey(0)
    ks = jax.random.split(key, 24)

    def normal(k, shape, s=std):
        return (s * jax.random.normal(k, shape)).astype(jnp.float32)

    # TODO(synk): nn.Embedding gather is data-dependent; kept as plain-JAX glue.
    emb_table = jax.random.normal(ks[0], (input_dim, EMBED_DIM), jnp.float32)

    def conv_params(kw, kb, k_size, cin, cout):
        return normal(kw, (k_size, cin, cout)), normal(kb, (1, cout))

    w1, b1 = conv_params(ks[1], ks[2], 7, EMBED_DIM, n_conv)
    w2, b2 = conv_params(ks[3], ks[4], 7, n_conv, n_conv)
    w3, b3 = conv_params(ks[5], ks[6], 3, n_conv, n_conv)
    w4, b4 = conv_params(ks[7], ks[8], 3, n_conv, n_conv)
    w5, b5 = conv_params(ks[9], ks[10], 3, n_conv, n_conv)
    w6, b6 = conv_params(ks[11], ks[12], 3, n_conv, n_conv)
    fw1, fb1 = normal(ks[13], (n_conv, n_fc)), normal(ks[14], (1, n_fc))
    fw2, fb2 = normal(ks[15], (n_fc, n_fc)), normal(ks[16], (1, n_fc))
    fw3, fb3 = normal(ks[17], (n_fc, n_classes)), normal(ks[18], (1, n_classes))

    params = (w1, b1, w2, b2, w3, b3, w4, b4, w5, b5, w6, b6,
              fw1, fb1, fw2, fb2, fw3, fb3)

    tokens = jax.random.randint(ks[19], (batch, input_length), 0, input_dim)
    x_emb = emb_table[tokens]   # nn.Embedding lookup (plain-JAX glue gather)

    out = jax.block_until_ready(charcnn_forward(x_emb, params))

    ref = reference_forward(x_emb, params)
    assert out.shape == (batch, n_classes), out.shape
    assert jnp.all(jnp.isfinite(out))
    assert jnp.allclose(out, ref, atol=5e-2, rtol=5e-2), (out, ref)
    print("KERNEL_OK")
</pallas_src>

<mosaic_0001>
module attributes {stable_mosaic.version = 11 : i64} {
  func.func @charcnn_kernel(%arg0: i32, %arg1: memref<2x123x256xf32, #tpu.memory_space<vmem>>, %arg2: memref<7x256x128xbf16, #tpu.memory_space<vmem>>, %arg3: memref<1x128xf32, #tpu.memory_space<vmem>>, %arg4: memref<7x128x128xbf16, #tpu.memory_space<vmem>>, %arg5: memref<1x128xf32, #tpu.memory_space<vmem>>, %arg6: memref<3x128x128xbf16, #tpu.memory_space<vmem>>, %arg7: memref<1x128xf32, #tpu.memory_space<vmem>>, %arg8: memref<3x128x128xbf16, #tpu.memory_space<vmem>>, %arg9: memref<1x128xf32, #tpu.memory_space<vmem>>, %arg10: memref<3x128x128xbf16, #tpu.memory_space<vmem>>, %arg11: memref<1x128xf32, #tpu.memory_space<vmem>>, %arg12: memref<3x128x128xbf16, #tpu.memory_space<vmem>>, %arg13: memref<1x128xf32, #tpu.memory_space<vmem>>, %arg14: memref<3x39x117xbf16, #tpu.memory_space<vmem>>, %arg15: memref<3x11x33xbf16, #tpu.memory_space<vmem>>, %arg16: memref<128x256xbf16, #tpu.memory_space<vmem>>, %arg17: memref<1x256xf32, #tpu.memory_space<vmem>>, %arg18: memref<256x256xbf16, #tpu.memory_space<vmem>>, %arg19: memref<1x256xf32, #tpu.memory_space<vmem>>, %arg20: memref<256x128xbf16, #tpu.memory_space<vmem>>, %arg21: memref<1x128xf32, #tpu.memory_space<vmem>>, %arg22: memref<2x128xf32, #tpu.memory_space<vmem>>) attributes {dimension_semantics = [#tpu.dimension_semantics<parallel>], iteration_bounds = array<i64: 1>, scalar_prefetch = 0 : i64, scratch_operands = 0 : i64, tpu.core_type = #tpu.core_type<tc>, window_params = [{transform_indices = @transform_0, window_bounds = array<i64: 2, 123, 256>}, {pipeline_mode = #tpu.pipeline_mode<synchronous>, transform_indices = @transform_1, window_bounds = array<i64: 7, 256, 128>}, {pipeline_mode = #tpu.pipeline_mode<synchronous>, transform_indices = @transform_2, window_bounds = array<i64: 1, 128>}, {pipeline_mode = #tpu.pipeline_mode<synchronous>, transform_indices = @transform_3, window_bounds = array<i64: 7, 128, 128>}, {pipeline_mode = #tpu.pipeline_mode<synchronous>, transform_indices = @transform_4, window_bounds = array<i64: 1, 128>}, {pipeline_mode = #tpu.pipeline_mode<synchronous>, transform_indices = @transform_5, window_bounds = array<i64: 3, 128, 128>}, {pipeline_mode = #tpu.pipeline_mode<synchronous>, transform_indices = @transform_6, window_bounds = array<i64: 1, 128>}, {pipeline_mode = #tpu.pipeline_mode<synchronous>, transform_indices = @transform_7, window_bounds = array<i64: 3, 128, 128>}, {pipeline_mode = #tpu.pipeline_mode<synchronous>, transform_indices = @transform_8, window_bounds = array<i64: 1, 128>}, {pipeline_mode = #tpu.pipeline_mode<synchronous>, transform_indices = @transform_9, window_bounds = array<i64: 3, 128, 128>}, {pipeline_mode = #tpu.pipeline_mode<synchronous>, transform_indices = @transform_10, window_bounds = array<i64: 1, 128>}, {pipeline_mode = #tpu.pipeline_mode<synchronous>, transform_indices = @transform_11, window_bounds = array<i64: 3, 128, 128>}, {pipeline_mode = #tpu.pipeline_mode<synchronous>, transform_indices = @transform_12, window_bounds = array<i64: 1, 128>}, {pipeline_mode = #tpu.pipeline_mode<synchronous>, transform_indices = @transform_13, window_bounds = array<i64: 3, 39, 117>}, {pipeline_mode = #tpu.pipeline_mode<synchronous>, transform_indices = @transform_14, window_bounds = array<i64: 3, 11, 33>}, {pipeline_mode = #tpu.pipeline_mode<synchronous>, transform_indices = @transform_15, window_bounds = array<i64: 128, 256>}, {pipeline_mode = #tpu.pipeline_mode<synchronous>, transform_indices = @transform_16, window_bounds = array<i64: 1, 256>}, {pipeline_mode = #tpu.pipeline_mode<synchronous>, transform_indices = @transform_17, window_bounds = array<i64: 256, 256>}, {pipeline_mode = #tpu.pipeline_mode<synchronous>, transform_indices = @transform_18, window_bounds = array<i64: 1, 256>}, {pipeline_mode = #tpu.pipeline_mode<synchronous>, transform_indices = @transform_19, window_bounds = array<i64: 256, 128>}, {pipeline_mode = #tpu.pipeline_mode<synchronous>, transform_indices = @transform_20, window_bounds = array<i64: 1, 128>}, {transform_indices = @transform_21, window_bounds = array<i64: 2, 128>}]} {
    %c0 = arith.constant 0 : index
    %c0_0 = arith.constant 0 : index
    %c0_1 = arith.constant 0 : index
    %0 = vector.load %arg1[%c0, %c0_0, %c0_1] : memref<2x123x256xf32, #tpu.memory_space<vmem>>, vector<1x123x256xf32>
    %1 = vector.shape_cast %0 : vector<1x123x256xf32> to vector<123x256xf32>
    %2 = vector.extract_strided_slice %1 {offsets = [0, 0], sizes = [117, 256], strides = [1, 1]} : vector<123x256xf32> to vector<117x256xf32>
    %3 = arith.truncf %2 : vector<117x256xf32> to vector<117x256xbf16>
    %c0_2 = arith.constant 0 : index
    %c0_3 = arith.constant 0 : index
    %c0_4 = arith.constant 0 : index
    %4 = vector.load %arg2[%c0_2, %c0_3, %c0_4] : memref<7x256x128xbf16, #tpu.memory_space<vmem>>, vector<1x256x128xbf16>
    %5 = vector.shape_cast %4 : vector<1x256x128xbf16> to vector<256x128xbf16>
    %cst = arith.constant dense<0.000000e+00> : vector<117x128xf32>
    %6 = tpu.matmul %3, %5, %cst {dimension_numbers = #tpu.dot_dimension_numbers<[1], [0], [0], [1], [0, 0, 1, 1], [], []>} : vector<117x256xbf16>, vector<256x128xbf16>, vector<117x128xf32> -> vector<117x128xf32>
    %7 = vector.extract_strided_slice %1 {offsets = [1, 0], sizes = [117, 256], strides = [1, 1]} : vector<123x256xf32> to vector<117x256xf32>
    %8 = arith.truncf %7 : vector<117x256xf32> to vector<117x256xbf16>
    %c1 = arith.constant 1 : index
    %c0_5 = arith.constant 0 : index
    %c0_6 = arith.constant 0 : index
    %9 = vector.load %arg2[%c1, %c0_5, %c0_6] : memref<7x256x128xbf16, #tpu.memory_space<vmem>>, vector<1x256x128xbf16>
    %10 = vector.shape_cast %9 : vector<1x256x128xbf16> to vector<256x128xbf16>
    %cst_7 = arith.constant dense<0.000000e+00> : vector<117x128xf32>
    %11 = tpu.matmul %8, %10, %cst_7 {dimension_numbers = #tpu.dot_dimension_numbers<[1], [0], [0], [1], [0, 0, 1, 1], [], []>} : vector<117x256xbf16>, vector<256x128xbf16>, vector<117x128xf32> -> vector<117x128xf32>
    %12 = arith.addf %6, %11 : vector<117x128xf32>
    %13 = vector.extract_strided_slice %1 {offsets = [2, 0], sizes = [117, 256], strides = [1, 1]} : vector<123x256xf32> to vector<117x256xf32>
    %14 = arith.truncf %13 : vector<117x256xf32> to vector<117x256xbf16>
    %c2 = arith.constant 2 : index
    %c0_8 = arith.constant 0 : index
    %c0_9 = arith.constant 0 : index
    %15 = vector.load %arg2[%c2, %c0_8, %c0_9] : memref<7x256x128xbf16, #tpu.memory_space<vmem>>, vector<1x256x128xbf16>
    %16 = vector.shape_cast %15 : vector<1x256x128xbf16> to vector<256x128xbf16>
    %cst_10 = arith.constant dense<0.000000e+00> : vector<117x128xf32>
    %17 = tpu.matmul %14, %16, %cst_10 {dimension_numbers = #tpu.dot_dimension_numbers<[1], [0], [0], [1], [0, 0, 1, 1], [], []>} : vector<117x256xbf16>, vector<256x128xbf16>, vector<117x128xf32> -> vector<117x128xf32>
    %18 = arith.addf %12, %17 : vector<117x128xf32>
    %19 = vector.extract_strided_slice %1 {offsets = [3, 0], sizes = [117, 256], strides = [1, 1]} : vector<123x256xf32> to vector<117x256xf32>
    %20 = arith.truncf %19 : vector<117x256xf32> to vector<117x256xbf16>
    %c3 = arith.constant 3 : index
    %c0_11 = arith.constant 0 : index
    %c0_12 = arith.constant 0 : index
    %21 = vector.load %arg2[%c3, %c0_11, %c0_12] : memref<7x256x128xbf16, #tpu.memory_space<vmem>>, vector<1x256x128xbf16>
    %22 = vector.shape_cast %21 : vector<1x256x128xbf16> to vector<256x128xbf16>
    %cst_13 = arith.constant dense<0.000000e+00> : vector<117x128xf32>
    %23 = tpu.matmul %20, %22, %cst_13 {dimension_numbers = #tpu.dot_dimension_numbers<[1], [0], [0], [1], [0, 0, 1, 1], [], []>} : vector<117x256xbf16>, vector<256x128xbf16>, vector<117x128xf32> -> vector<117x128xf32>
    %24 = arith.addf %18, %23 : vector<117x128xf32>
    %25 = vector.extract_strided_slice %1 {offsets = [4, 0], sizes = [117, 256], strides = [1, 1]} : vector<123x256xf32> to vector<117x256xf32>
    %26 = arith.truncf %25 : vector<117x256xf32> to vector<117x256xbf16>
    %c4 = arith.constant 4 : index
    %c0_14 = arith.constant 0 : index
    %c0_15 = arith.constant 0 : index
    %27 = vector.load %arg2[%c4, %c0_14, %c0_15] : memref<7x256x128xbf16, #tpu.memory_space<vmem>>, vector<1x256x128xbf16>
    %28 = vector.shape_cast %27 : vector<1x256x128xbf16> to vector<256x128xbf16>
    %cst_16 = arith.constant dense<0.000000e+00> : vector<117x128xf32>
    %29 = tpu.matmul %26, %28, %cst_16 {dimension_numbers = #tpu.dot_dimension_numbers<[1], [0], [0], [1], [0, 0, 1, 1], [], []>} : vector<117x256xbf16>, vector<256x128xbf16>, vector<117x128xf32> -> vector<117x128xf32>
    %30 = arith.addf %24, %29 : vector<117x128xf32>
    %31 = vector.extract_strided_slice %1 {offsets = [5, 0], sizes = [117, 256], strides = [1, 1]} : vector<123x256xf32> to vector<117x256xf32>
    %32 = arith.truncf %31 : vector<117x256xf32> to vector<117x256xbf16>
    %c5 = arith.constant 5 : index
    %c0_17 = arith.constant 0 : index
    %c0_18 = arith.constant 0 : index
    %33 = vector.load %arg2[%c5, %c0_17, %c0_18] : memref<7x256x128xbf16, #tpu.memory_space<vmem>>, vector<1x256x128xbf16>
    %34 = vector.shape_cast %33 : vector<1x256x128xbf16> to vector<256x128xbf16>
    %cst_19 = arith.constant dense<0.000000e+00> : vector<117x128xf32>
    %35 = tpu.matmul %32, %34, %cst_19 {dimension_numbers = #tpu.dot_dimension_numbers<[1], [0], [0], [1], [0, 0, 1, 1], [], []>} : vector<117x256xbf16>, vector<256x128xbf16>, vector<117x128xf32> -> vector<117x128xf32>
    %36 = arith.addf %30, %35 : vector<117x128xf32>
    %37 = vector.extract_strided_slice %1 {offsets = [6, 0], sizes = [117, 256], strides = [1, 1]} : vector<123x256xf32> to vector<117x256xf32>
    %38 = arith.truncf %37 : vector<117x256xf32> to vector<117x256xbf16>
    %c6 = arith.constant 6 : index
    %c0_20 = arith.constant 0 : index
    %c0_21 = arith.constant 0 : index
    %39 = vector.load %arg2[%c6, %c0_20, %c0_21] : memref<7x256x128xbf16, #tpu.memory_space<vmem>>, vector<1x256x128xbf16>
    %40 = vector.shape_cast %39 : vector<1x256x128xbf16> to vector<256x128xbf16>
    %cst_22 = arith.constant dense<0.000000e+00> : vector<117x128xf32>
    %41 = tpu.matmul %38, %40, %cst_22 {dimension_numbers = #tpu.dot_dimension_numbers<[1], [0], [0], [1], [0, 0, 1, 1], [], []>} : vector<117x256xbf16>, vector<256x128xbf16>, vector<117x128xf32> -> vector<117x128xf32>
    %42 = arith.addf %36, %41 : vector<117x128xf32>
    %c0_23 = arith.constant 0 : index
    %c0_24 = arith.constant 0 : index
    %43 = vector.load %arg3[%c0_23, %c0_24] : memref<1x128xf32, #tpu.memory_space<vmem>>, vector<1x128xf32>
    %44 = vector.broadcast %43 : vector<1x128xf32> to vector<117x128xf32>
    %45 = arith.addf %42, %44 : vector<117x128xf32>
    %cst_25 = arith.constant 0.000000e+00 : f32
    %46 = vector.broadcast %cst_25 : f32 to vector<117x128xf32>
    %47 = arith.maximumf %45, %46 : vector<117x128xf32>
    %48 = arith.truncf %47 : vector<117x128xf32> to vector<117x128xbf16>
    %c0_26 = arith.constant 0 : index
    %c0_27 = arith.constant 0 : index
    %c0_28 = arith.constant 0 : index
    %49 = vector.load %arg14[%c0_26, %c0_27, %c0_28] : memref<3x39x117xbf16, #tpu.memory_space<vmem>>, vector<1x39x117xbf16>
    %50 = vector.shape_cast %49 : vector<1x39x117xbf16> to vector<39x117xbf16>
    %cst_29 = arith.constant dense<0.000000e+00> : vector<39x128xf32>
    %51 = tpu.matmul %50, %48, %cst_29 {dimension_numbers = #tpu.dot_dimension_numbers<[1], [0], [0], [1], [0, 0, 1, 1], [], []>} : vector<39x117xbf16>, vector<117x128xbf16>, vector<39x128xf32> -> vector<39x128xf32>
    %c1_30 = arith.constant 1 : index
    %c0_31 = arith.constant 0 : index
    %c0_32 = arith.constant 0 : index
    %52 = vector.load %arg14[%c1_30, %c0_31, %c0_32] : memref<3x39x117xbf16, #tpu.memory_space<vmem>>, vector<1x39x117xbf16>
    %53 = vector.shape_cast %52 : vector<1x39x117xbf16> to vector<39x117xbf16>
    %cst_33 = arith.constant dense<0.000000e+00> : vector<39x128xf32>
    %54 = tpu.matmul %53, %48, %cst_33 {dimension_numbers = #tpu.dot_dimension_numbers<[1], [0], [0], [1], [0, 0, 1, 1], [], []>} : vector<39x117xbf16>, vector<117x128xbf16>, vector<39x128xf32> -> vector<39x128xf32>
    %55 = arith.maximumf %51, %54 : vector<39x128xf32>
    %c2_34 = arith.constant 2 : index
    %c0_35 = arith.constant 0 : index
    %c0_36 = arith.constant 0 : index
    %56 = vector.load %arg14[%c2_34, %c0_35, %c0_36] : memref<3x39x117xbf16, #tpu.memory_space<vmem>>, vector<1x39x117xbf16>
    %57 = vector.shape_cast %56 : vector<1x39x117xbf16> to vector<39x117xbf16>
    %cst_37 = arith.constant dense<0.000000e+00> : vector<39x128xf32>
    %58 = tpu.matmul %57, %48, %cst_37 {dimension_numbers = #tpu.dot_dimension_numbers<[1], [0], [0], [1], [0, 0, 1, 1], [], []>} : vector<39x117xbf16>, vector<117x128xbf16>, vector<39x128xf32> -> vector<39x128xf32>
    %59 = arith.maximumf %55, %58 : vector<39x128xf32>
    %60 = vector.extract_strided_slice %59 {offsets = [0, 0], sizes = [33, 128], strides = [1, 1]} : vector<39x128xf32> to vector<33x128xf32>
    %61 = arith.truncf %60 : vector<33x128xf32> to vector<33x128xbf16>
    %c0_38 = arith.constant 0 : index
    %c0_39 = arith.constant 0 : index
    %c0_40 = arith.constant 0 : index
    %62 = vector.load %arg4[%c0_38, %c0_39, %c0_40] : memref<7x128x128xbf16, #tpu.memory_space<vmem>>, vector<1x128x128xbf16>
    %63 = vector.shape_cast %62 : vector<1x128x128xbf16> to vector<128x128xbf16>
    %cst_41 = arith.constant dense<0.000000e+00> : vector<33x128xf32>
    %64 = tpu.matmul %61, %63, %cst_41 {dimension_numbers = #tpu.dot_dimension_numbers<[1], [0], [0], [1], [0, 0, 1, 1], [], []>} : vector<33x128xbf16>, vector<128x128xbf16>, vector<33x128xf32> -> vector<33x128xf32>
    %65 = vector.extract_strided_slice %59 {offsets = [1, 0], sizes = [33, 128], strides = [1, 1]} : vector<39x128xf32> to vector<33x128xf32>
    %66 = arith.truncf %65 : vector<33x128xf32> to vector<33x128xbf16>
    %c1_42 = arith.constant 1 : index
    %c0_43 = arith.constant 0 : index
    %c0_44 = arith.constant 0 : index
    %67 = vector.load %arg4[%c1_42, %c0_43, %c0_44] : memref<7x128x128xbf16, #tpu.memory_space<vmem>>, vector<1x128x128xbf16>
    %68 = vector.shape_cast %67 : vector<1x128x128xbf16> to vector<128x128xbf16>
    %cst_45 = arith.constant dense<0.000000e+00> : vector<33x128xf32>
    %69 = tpu.matmul %66, %68, %cst_45 {dimension_numbers = #tpu.dot_dimension_numbers<[1], [0], [0], [1], [0, 0, 1, 1], [], []>} : vector<33x128xbf16>, vector<128x128xbf16>, vector<33x128xf32> -> vector<33x128xf32>
    %70 = arith.addf %64, %69 : vector<33x128xf32>
    %71 = vector.extract_strided_slice %59 {offsets = [2, 0], sizes = [33, 128], strides = [1, 1]} : vector<39x128xf32> to vector<33x128xf32>
    %72 = arith.truncf %71 : vector<33x128xf32> to vector<33x128xbf16>
    %c2_46 = arith.constant 2 : index
    %c0_47 = arith.constant 0 : index
    %c0_48 = arith.constant 0 : index
    %73 = vector.load %arg4[%c2_46, %c0_47, %c0_48] : memref<7x128x128xbf16, #tpu.memory_space<vmem>>, vector<1x128x128xbf16>
    %74 = vector.shape_cast %73 : vector<1x128x128xbf16> to vector<128x128xbf16>
    %cst_49 = arith.constant dense<0.000000e+00> : vector<33x128xf32>
    %75 = tpu.matmul %72, %74, %cst_49 {dimension_numbers = #tpu.dot_dimension_numbers<[1], [0], [0], [1], [0, 0, 1, 1], [], []>} : vector<33x128xbf16>, vector<128x128xbf16>, vector<33x128xf32> -> vector<33x128xf32>
    %76 = arith.addf %70, %75 : vector<33x128xf32>
    %77 = vector.extract_strided_slice %59 {offsets = [3, 0], sizes = [33, 128], strides = [1, 1]} : vector<39x128xf32> to vector<33x128xf32>
    %78 = arith.truncf %77 : vector<33x128xf32> to vector<33x128xbf16>
    %c3_50 = arith.constant 3 : index
    %c0_51 = arith.constant 0 : index
    %c0_52 = arith.constant 0 : index
    %79 = vector.load %arg4[%c3_50, %c0_51, %c0_52] : memref<7x128x128xbf16, #tpu.memory_space<vmem>>, vector<1x128x128xbf16>
    %80 = vector.shape_cast %79 : vector<1x128x128xbf16> to vector<128x128xbf16>
    %cst_53 = arith.constant dense<0.000000e+00> : vector<33x128xf32>
    %81 = tpu.matmul %78, %80, %cst_53 {dimension_numbers = #tpu.dot_dimension_numbers<[1], [0], [0], [1], [0, 0, 1, 1], [], []>} : vector<33x128xbf16>, vector<128x128xbf16>, vector<33x128xf32> -> vector<33x128xf32>
    %82 = arith.addf %76, %81 : vector<33x128xf32>
    %83 = vector.extract_strided_slice %59 {offsets = [4, 0], sizes = [33, 128], strides = [1, 1]} : vector<39x128xf32> to vector<33x128xf32>
    %84 = arith.truncf %83 : vector<33x128xf32> to vector<33x128xbf16>
    %c4_54 = arith.constant 4 : index
    %c0_55 = arith.constant 0 : index
    %c0_56 = arith.constant 0 : index
    %85 = vector.load %arg4[%c4_54, %c0_55, %c0_56] : memref<7x128x128xbf16, #tpu.memory_space<vmem>>, vector<1x128x128xbf16>
    %86 = vector.shape_cast %85 : vector<1x128x128xbf16> to vector<128x128xbf16>
    %cst_57 = arith.constant dense<0.000000e+00> : vector<33x128xf32>
    %87 = tpu.matmul %84, %86, %cst_57 {dimension_numbers = #tpu.dot_dimension_numbers<[1], [0], [0], [1], [0, 0, 1, 1], [], []>} : vector<33x128xbf16>, vector<128x128xbf16>, vector<33x128xf32> -> vector<33x128xf32>
    %88 = arith.addf %82, %87 : vector<33x128xf32>
    %89 = vector.extract_strided_slice %59 {offsets = [5, 0], sizes = [33, 128], strides = [1, 1]} : vector<39x128xf32> to vector<33x128xf32>
    %90 = arith.truncf %89 : vector<33x128xf32> to vector<33x128xbf16>
    %c5_58 = arith.constant 5 : index
    %c0_59 = arith.constant 0 : index
    %c0_60 = arith.constant 0 : index
    %91 = vector.load %arg4[%c5_58, %c0_59, %c0_60] : memref<7x128x128xbf16, #tpu.memory_space<vmem>>, vector<1x128x128xbf16>
    %92 = vector.shape_cast %91 : vector<1x128x128xbf16> to vector<128x128xbf16>
    %cst_61 = arith.constant dense<0.000000e+00> : vector<33x128xf32>
    %93 = tpu.matmul %90, %92, %cst_61 {dimension_numbers = #tpu.dot_dimension_numbers<[1], [0], [0], [1], [0, 0, 1, 1], [], []>} : vector<33x128xbf16>, vector<128x128xbf16>, vector<33x128xf32> -> vector<33x128xf32>
    %94 = arith.addf %88, %93 : vector<33x128xf32>
    %95 = vector.extract_strided_slice %59 {offsets = [6, 0], sizes = [33, 128], strides = [1, 1]} : vector<39x128xf32> to vector<33x128xf32>
    %96 = arith.truncf %95 : vector<33x128xf32> to vector<33x128xbf16>
    %c6_62 = arith.constant 6 : index
    %c0_63 = arith.constant 0 : index
    %c0_64 = arith.constant 0 : index
    %97 = vector.load %arg4[%c6_62, %c0_63, %c0_64] : memref<7x128x128xbf16, #tpu.memory_space<vmem>>, vector<1x128x128xbf16>
    %98 = vector.shape_cast %97 : vector<1x128x128xbf16> to vector<128x128xbf16>
    %cst_65 = arith.constant dense<0.000000e+00> : vector<33x128xf32>
    %99 = tpu.matmul %96, %98, %cst_65 {dimension_numbers = #tpu.dot_dimension_numbers<[1], [0], [0], [1], [0, 0, 1, 1], [], []>} : vector<33x128xbf16>, vector<128x128xbf16>, vector<33x128xf32> -> vector<33x128xf32>
    %100 = arith.addf %94, %99 : vector<33x128xf32>
    %c0_66 = arith.constant 0 : index
    %c0_67 = arith.constant 0 : index
    %101 = vector.load %arg5[%c0_66, %c0_67] : memref<1x128xf32, #tpu.memory_space<vmem>>, vector<1x128xf32>
    %102 = vector.broadcast %101 : vector<1x128xf32> to vector<33x128xf32>
    %103 = arith.addf %100, %102 : vector<33x128xf32>
    %cst_68 = arith.constant 0.000000e+00 : f32
    %104 = vector.broadcast %cst_68 : f32 to vector<33x128xf32>
    %105 = arith.maximumf %103, %104 : vector<33x128xf32>
    %106 = arith.truncf %105 : vector<33x128xf32> to vector<33x128xbf16>
    %c0_69 = arith.constant 0 : index
    %c0_70 = arith.constant 0 : index
    %c0_71 = arith.constant 0 : index
    %107 = vector.load %arg15[%c0_69, %c0_70, %c0_71] : memref<3x11x33xbf16, #tpu.memory_space<vmem>>, vector<1x11x33xbf16>
    %108 = vector.shape_cast %107 : vector<1x11x33xbf16> to vector<11x33xbf16>
    %cst_72 = arith.constant dense<0.000000e+00> : vector<11x128xf32>
    %109 = tpu.matmul %108, %106, %cst_72 {dimension_numbers = #tpu.dot_dimension_numbers<[1], [0], [0], [1], [0, 0, 1, 1], [], []>} : vector<11x33xbf16>, vector<33x128xbf16>, vector<11x128xf32> -> vector<11x128xf32>
    %c1_73 = arith.constant 1 : index
    %c0_74 = arith.constant 0 : index
    %c0_75 = arith.constant 0 : index
    %110 = vector.load %arg15[%c1_73, %c0_74, %c0_75] : memref<3x11x33xbf16, #tpu.memory_space<vmem>>, vector<1x11x33xbf16>
    %111 = vector.shape_cast %110 : vector<1x11x33xbf16> to vector<11x33xbf16>
    %cst_76 = arith.constant dense<0.000000e+00> : vector<11x128xf32>
    %112 = tpu.matmul %111, %106, %cst_76 {dimension_numbers = #tpu.dot_dimension_numbers<[1], [0], [0], [1], [0, 0, 1, 1], [], []>} : vector<11x33xbf16>, vector<33x128xbf16>, vector<11x128xf32> -> vector<11x128xf32>
    %113 = arith.maximumf %109, %112 : vector<11x128xf32>
    %c2_77 = arith.constant 2 : index
    %c0_78 = arith.constant 0 : index
    %c0_79 = arith.constant 0 : index
    %114 = vector.load %arg15[%c2_77, %c0_78, %c0_79] : memref<3x11x33xbf16, #tpu.memory_space<vmem>>, vector<1x11x33xbf16>
    %115 = vector.shape_cast %114 : vector<1x11x33xbf16> to vector<11x33xbf16>
    %cst_80 = arith.constant dense<0.000000e+00> : vector<11x128xf32>
    %116 = tpu.matmul %115, %106, %cst_80 {dimension_numbers = #tpu.dot_dimension_numbers<[1], [0], [0], [1], [0, 0, 1, 1], [], []>} : vector<11x33xbf16>, vector<33x128xbf16>, vector<11x128xf32> -> vector<11x128xf32>
    %117 = arith.maximumf %113, %116 : vector<11x128xf32>
    %118 = vector.extract_strided_slice %117 {offsets = [0, 0], sizes = [9, 128], strides = [1, 1]} : vector<11x128xf32> to vector<9x128xf32>
    %119 = arith.truncf %118 : vector<9x128xf32> to vector<9x128xbf16>
    %c0_81 = arith.constant 0 : index
    %c0_82 = arith.constant 0 : index
    %c0_83 = arith.constant 0 : index
    %120 = vector.load %arg6[%c0_81, %c0_82, %c0_83] : memref<3x128x128xbf16, #tpu.memory_space<vmem>>, vector<1x128x128xbf16>
    %121 = vector.shape_cast %120 : vector<1x128x128xbf16> to vector<128x128xbf16>
    %cst_84 = arith.constant dense<0.000000e+00> : vector<9x128xf32>
    %122 = tpu.matmul %119, %121, %cst_84 {dimension_numbers = #tpu.dot_dimension_numbers<[1], [0], [0], [1], [0, 0, 1, 1], [], []>} : vector<9x128xbf16>, vector<128x128xbf16>, vector<9x128xf32> -> vector<9x128xf32>
    %123 = vector.extract_strided_slice %117 {offsets = [1, 0], sizes = [9, 128], strides = [1, 1]} : vector<11x128xf32> to vector<9x128xf32>
    %124 = arith.truncf %123 : vector<9x128xf32> to vector<9x128xbf16>
    %c1_85 = arith.constant 1 : index
    %c0_86 = arith.constant 0 : index
    %c0_87 = arith.constant 0 : index
    %125 = vector.load %arg6[%c1_85, %c0_86, %c0_87] : memref<3x128x128xbf16, #tpu.memory_space<vmem>>, vector<1x128x128xbf16>
    %126 = vector.shape_cast %125 : vector<1x128x128xbf16> to vector<128x128xbf16>
    %cst_88 = arith.constant dense<0.000000e+00> : vector<9x128xf32>
    %127 = tpu.matmul %124, %126, %cst_88 {dimension_numbers = #tpu.dot_dimension_numbers<[1], [0], [0], [1], [0, 0, 1, 1], [], []>} : vector<9x128xbf16>, vector<128x128xbf16>, vector<9x128xf32> -> vector<9x128xf32>
    %128 = arith.addf %122, %127 : vector<9x128xf32>
    %129 = vector.extract_strided_slice %117 {offsets = [2, 0], sizes = [9, 128], strides = [1, 1]} : vector<11x128xf32> to vector<9x128xf32>
    %130 = arith.truncf %129 : vector<9x128xf32> to vector<9x128xbf16>
    %c2_89 = arith.constant 2 : index
    %c0_90 = arith.constant 0 : index
    %c0_91 = arith.constant 0 : index
    %131 = vector.load %arg6[%c2_89, %c0_90, %c0_91] : memref<3x128x128xbf16, #tpu.memory_space<vmem>>, vector<1x128x128xbf16>
    %132 = vector.shape_cast %131 : vector<1x128x128xbf16> to vector<128x128xbf16>
    %cst_92 = arith.constant dense<0.000000e+00> : vector<9x128xf32>
    %133 = tpu.matmul %130, %132, %cst_92 {dimension_numbers = #tpu.dot_dimension_numbers<[1], [0], [0], [1], [0, 0, 1, 1], [], []>} : vector<9x128xbf16>, vector<128x128xbf16>, vector<9x128xf32> -> vector<9x128xf32>
    %134 = arith.addf %128, %133 : vector<9x128xf32>
    %c0_93 = arith.constant 0 : index
    %c0_94 = arith.constant 0 : index
    %135 = vector.load %arg7[%c0_93, %c0_94] : memref<1x128xf32, #tpu.memory_space<vmem>>, vector<1x128xf32>
    %136 = vector.broadcast %135 : vector<1x128xf32> to vector<9x128xf32>
    %137 = arith.addf %134, %136 : vector<9x128xf32>
    %cst_95 = arith.constant 0.000000e+00 : f32
    %138 = vector.broadcast %cst_95 : f32 to vector<9x128xf32>
    %139 = arith.maximumf %137, %138 : vector<9x128xf32>
    %140 = vector.extract_strided_slice %139 {offsets = [0, 0], sizes = [7, 128], strides = [1, 1]} : vector<9x128xf32> to vector<7x128xf32>
    %141 = arith.truncf %140 : vector<7x128xf32> to vector<7x128xbf16>
    %c0_96 = arith.constant 0 : index
    %c0_97 = arith.constant 0 : index
    %c0_98 = arith.constant 0 : index
    %142 = vector.load %arg8[%c0_96, %c0_97, %c0_98] : memref<3x128x128xbf16, #tpu.memory_space<vmem>>, vector<1x128x128xbf16>
    %143 = vector.shape_cast %142 : vector<1x128x128xbf16> to vector<128x128xbf16>
    %cst_99 = arith.constant dense<0.000000e+00> : vector<7x128xf32>
    %144 = tpu.matmul %141, %143, %cst_99 {dimension_numbers = #tpu.dot_dimension_numbers<[1], [0], [0], [1], [0, 0, 1, 1], [], []>} : vector<7x128xbf16>, vector<128x128xbf16>, vector<7x128xf32> -> vector<7x128xf32>
    %145 = vector.extract_strided_slice %139 {offsets = [1, 0], sizes = [7, 128], strides = [1, 1]} : vector<9x128xf32> to vector<7x128xf32>
    %146 = arith.truncf %145 : vector<7x128xf32> to vector<7x128xbf16>
    %c1_100 = arith.constant 1 : index
    %c0_101 = arith.constant 0 : index
    %c0_102 = arith.constant 0 : index
    %147 = vector.load %arg8[%c1_100, %c0_101, %c0_102] : memref<3x128x128xbf16, #tpu.memory_space<vmem>>, vector<1x128x128xbf16>
    %148 = vector.shape_cast %147 : vector<1x128x128xbf16> to vector<128x128xbf16>
    %cst_103 = arith.constant dense<0.000000e+00> : vector<7x128xf32>
    %149 = tpu.matmul %146, %148, %cst_103 {dimension_numbers = #tpu.dot_dimension_numbers<[1], [0], [0], [1], [0, 0, 1, 1], [], []>} : vector<7x128xbf16>, vector<128x128xbf16>, vector<7x128xf32> -> vector<7x128xf32>
    %150 = arith.addf %144, %149 : vector<7x128xf32>
    %151 = vector.extract_strided_slice %139 {offsets = [2, 0], sizes = [7, 128], strides = [1, 1]} : vector<9x128xf32> to vector<7x128xf32>
    %152 = arith.truncf %151 : vector<7x128xf32> to vector<7x128xbf16>
    %c2_104 = arith.constant 2 : index
    %c0_105 = arith.constant 0 : index
    %c0_106 = arith.constant 0 : index
    %153 = vector.load %arg8[%c2_104, %c0_105, %c0_106] : memref<3x128x128xbf16, #tpu.memory_space<vmem>>, vector<1x128x128xbf16>
    %154 = vector.shape_cast %153 : vector<1x128x128xbf16> to vector<128x128xbf16>
    %cst_107 = arith.constant dense<0.000000e+00> : vector<7x128xf32>
    %155 = tpu.matmul %152, %154, %cst_107 {dimension_numbers = #tpu.dot_dimension_numbers<[1], [0], [0], [1], [0, 0, 1, 1], [], []>} : vector<7x128xbf16>, vector<128x128xbf16>, vector<7x128xf32> -> vector<7x128xf32>
    %156 = arith.addf %150, %155 : vector<7x128xf32>
    %c0_108 = arith.constant 0 : index
    %c0_109 = arith.constant 0 : index
    %157 = vector.load %arg9[%c0_108, %c0_109] : memref<1x128xf32, #tpu.memory_space<vmem>>, vector<1x128xf32>
    %158 = vector.broadcast %157 : vector<1x128xf32> to vector<7x128xf32>
    %159 = arith.addf %156, %158 : vector<7x128xf32>
    %cst_110 = arith.constant 0.000000e+00 : f32
    %160 = vector.broadcast %cst_110 : f32 to vector<7x128xf32>
    %161 = arith.maximumf %159, %160 : vector<7x128xf32>
    %162 = vector.extract_strided_slice %161 {offsets = [0, 0], sizes = [5, 128], strides = [1, 1]} : vector<7x128xf32> to vector<5x128xf32>
    %163 = arith.truncf %162 : vector<5x128xf32> to vector<5x128xbf16>
    %c0_111 = arith.constant 0 : index
    %c0_112 = arith.constant 0 : index
    %c0_113 = arith.constant 0 : index
    %164 = vector.load %arg10[%c0_111, %c0_112, %c0_113] : memref<3x128x128xbf16, #tpu.memory_space<vmem>>, vector<1x128x128xbf16>
    %165 = vector.shape_cast %164 : vector<1x128x128xbf16> to vector<128x128xbf16>
    %cst_114 = arith.constant dense<0.000000e+00> : vector<5x128xf32>
    %166 = tpu.matmul %163, %165, %cst_114 {dimension_numbers = #tpu.dot_dimension_numbers<[1], [0], [0], [1], [0, 0, 1, 1], [], []>} : vector<5x128xbf16>, vector<128x128xbf16>, vector<5x128xf32> -> vector<5x128xf32>
    %167 = vector.extract_strided_slice %161 {offsets = [1, 0], sizes = [5, 128], strides = [1, 1]} : vector<7x128xf32> to vector<5x128xf32>
    %168 = arith.truncf %167 : vector<5x128xf32> to vector<5x128xbf16>
    %c1_115 = arith.constant 1 : index
    %c0_116 = arith.constant 0 : index
    %c0_117 = arith.constant 0 : index
    %169 = vector.load %arg10[%c1_115, %c0_116, %c0_117] : memref<3x128x128xbf16, #tpu.memory_space<vmem>>, vector<1x128x128xbf16>
    %170 = vector.shape_cast %169 : vector<1x128x128xbf16> to vector<128x128xbf16>
    %cst_118 = arith.constant dense<0.000000e+00> : vector<5x128xf32>
    %171 = tpu.matmul %168, %170, %cst_118 {dimension_numbers = #tpu.dot_dimension_numbers<[1], [0], [0], [1], [0, 0, 1, 1], [], []>} : vector<5x128xbf16>, vector<128x128xbf16>, vector<5x128xf32> -> vector<5x128xf32>
    %172 = arith.addf %166, %171 : vector<5x128xf32>
    %173 = vector.extract_strided_slice %161 {offsets = [2, 0], sizes = [5, 128], strides = [1, 1]} : vector<7x128xf32> to vector<5x128xf32>
    %174 = arith.truncf %173 : vector<5x128xf32> to vector<5x128xbf16>
    %c2_119 = arith.constant 2 : index
    %c0_120 = arith.constant 0 : index
    %c0_121 = arith.constant 0 : index
    %175 = vector.load %arg10[%c2_119, %c0_120, %c0_121] : memref<3x128x128xbf16, #tpu.memory_space<vmem>>, vector<1x128x128xbf16>
    %176 = vector.shape_cast %175 : vector<1x128x128xbf16> to vector<128x128xbf16>
    %cst_122 = arith.constant dense<0.000000e+00> : vector<5x128xf32>
    %177 = tpu.matmul %174, %176, %cst_122 {dimension_numbers = #tpu.dot_dimension_numbers<[1], [0], [0], [1], [0, 0, 1, 1], [], []>} : vector<5x128xbf16>, vector<128x128xbf16>, vector<5x128xf32> -> vector<5x128xf32>
    %178 = arith.addf %172, %177 : vector<5x128xf32>
    %c0_123 = arith.constant 0 : index
    %c0_124 = arith.constant 0 : index
    %179 = vector.load %arg11[%c0_123, %c0_124] : memref<1x128xf32, #tpu.memory_space<vmem>>, vector<1x128xf32>
    %180 = vector.broadcast %179 : vector<1x128xf32> to vector<5x128xf32>
    %181 = arith.addf %178, %180 : vector<5x128xf32>
    %cst_125 = arith.constant 0.000000e+00 : f32
    %182 = vector.broadcast %cst_125 : f32 to vector<5x128xf32>
    %183 = arith.maximumf %181, %182 : vector<5x128xf32>
    %184 = vector.extract_strided_slice %183 {offsets = [0, 0], sizes = [3, 128], strides = [1, 1]} : vector<5x128xf32> to vector<3x128xf32>
    %185 = arith.truncf %184 : vector<3x128xf32> to vector<3x128xbf16>
    %c0_126 = arith.constant 0 : index
    %c0_127 = arith.constant 0 : index
    %c0_128 = arith.constant 0 : index
    %186 = vector.load %arg12[%c0_126, %c0_127, %c0_128] : memref<3x128x128xbf16, #tpu.memory_space<vmem>>, vector<1x128x128xbf16>
    %187 = vector.shape_cast %186 : vector<1x128x128xbf16> to vector<128x128xbf16>
    %cst_129 = arith.constant dense<0.000000e+00> : vector<3x128xf32>
    %188 = tpu.matmul %185, %187, %cst_129 {dimension_numbers = #tpu.dot_dimension_numbers<[1], [0], [0], [1], [0, 0, 1, 1], [], []>} : vector<3x128xbf16>, vector<128x128xbf16>, vector<3x128xf32> -> vector<3x128xf32>
    %189 = vector.extract_strided_slice %183 {offsets = [1, 0], sizes = [3, 128], strides = [1, 1]} : vector<5x128xf32> to vector<3x128xf32>
    %190 = arith.truncf %189 : vector<3x128xf32> to vector<3x128xbf16>
    %c1_130 = arith.constant 1 : index
    %c0_131 = arith.constant 0 : index
    %c0_132 = arith.constant 0 : index
    %191 = vector.load %arg12[%c1_130, %c0_131, %c0_132] : memref<3x128x128xbf16, #tpu.memory_space<vmem>>, vector<1x128x128xbf16>
    %192 = vector.shape_cast %191 : vector<1x128x128xbf16> to vector<128x128xbf16>
    %cst_133 = arith.constant dense<0.000000e+00> : vector<3x128xf32>
    %193 = tpu.matmul %190, %192, %cst_133 {dimension_numbers = #tpu.dot_dimension_numbers<[1], [0], [0], [1], [0, 0, 1, 1], [], []>} : vector<3x128xbf16>, vector<128x128xbf16>, vector<3x128xf32> -> vector<3x128xf32>
    %194 = arith.addf %188, %193 : vector<3x128xf32>
    %195 = vector.extract_strided_slice %183 {offsets = [2, 0], sizes = [3, 128], strides = [1, 1]} : vector<5x128xf32> to vector<3x128xf32>
    %196 = arith.truncf %195 : vector<3x128xf32> to vector<3x128xbf16>
    %c2_134 = arith.constant 2 : index
    %c0_135 = arith.constant 0 : index
    %c0_136 = arith.constant 0 : index
    %197 = vector.load %arg12[%c2_134, %c0_135, %c0_136] : memref<3x128x128xbf16, #tpu.memory_space<vmem>>, vector<1x128x128xbf16>
    %198 = vector.shape_cast %197 : vector<1x128x128xbf16> to vector<128x128xbf16>
    %cst_137 = arith.constant dense<0.000000e+00> : vector<3x128xf32>
    %199 = tpu.matmul %196, %198, %cst_137 {dimension_numbers = #tpu.dot_dimension_numbers<[1], [0], [0], [1], [0, 0, 1, 1], [], []>} : vector<3x128xbf16>, vector<128x128xbf16>, vector<3x128xf32> -> vector<3x128xf32>
    %200 = arith.addf %194, %199 : vector<3x128xf32>
    %c0_138 = arith.constant 0 : index
    %c0_139 = arith.constant 0 : index
    %201 = vector.load %arg13[%c0_138, %c0_139] : memref<1x128xf32, #tpu.memory_space<vmem>>, vector<1x128xf32>
    %202 = vector.broadcast %201 : vector<1x128xf32> to vector<3x128xf32>
    %203 = arith.addf %200, %202 : vector<3x128xf32>
    %cst_140 = arith.constant 0.000000e+00 : f32
    %204 = vector.broadcast %cst_140 : f32 to vector<3x128xf32>
    %205 = arith.maximumf %203, %204 : vector<3x128xf32>
    %cst_141 = arith.constant dense<0xFF800000> : vector<128xf32>
    %206 = vector.multi_reduction <maximumf>, %205, %cst_141 [0] : vector<3x128xf32> to vector<128xf32>
    %207 = vector.shape_cast %206 : vector<128xf32> to vector<1x128xf32>
    %c1_142 = arith.constant 1 : index
    %c0_143 = arith.constant 0 : index
    %c0_144 = arith.constant 0 : index
    %208 = vector.load %arg1[%c1_142, %c0_143, %c0_144] : memref<2x123x256xf32, #tpu.memory_space<vmem>>, vector<1x123x256xf32>
    %209 = vector.shape_cast %208 : vector<1x123x256xf32> to vector<123x256xf32>
    %210 = vector.extract_strided_slice %209 {offsets = [0, 0], sizes = [117, 256], strides = [1, 1]} : vector<123x256xf32> to vector<117x256xf32>
    %211 = arith.truncf %210 : vector<117x256xf32> to vector<117x256xbf16>
    %c0_145 = arith.constant 0 : index
    %c0_146 = arith.constant 0 : index
    %c0_147 = arith.constant 0 : index
    %212 = vector.load %arg2[%c0_145, %c0_146, %c0_147] : memref<7x256x128xbf16, #tpu.memory_space<vmem>>, vector<1x256x128xbf16>
    %213 = vector.shape_cast %212 : vector<1x256x128xbf16> to vector<256x128xbf16>
    %cst_148 = arith.constant dense<0.000000e+00> : vector<117x128xf32>
    %214 = tpu.matmul %211, %213, %cst_148 {dimension_numbers = #tpu.dot_dimension_numbers<[1], [0], [0], [1], [0, 0, 1, 1], [], []>} : vector<117x256xbf16>, vector<256x128xbf16>, vector<117x128xf32> -> vector<117x128xf32>
    %215 = vector.extract_strided_slice %209 {offsets = [1, 0], sizes = [117, 256], strides = [1, 1]} : vector<123x256xf32> to vector<117x256xf32>
    %216 = arith.truncf %215 : vector<117x256xf32> to vector<117x256xbf16>
    %c1_149 = arith.constant 1 : index
    %c0_150 = arith.constant 0 : index
    %c0_151 = arith.constant 0 : index
    %217 = vector.load %arg2[%c1_149, %c0_150, %c0_151] : memref<7x256x128xbf16, #tpu.memory_space<vmem>>, vector<1x256x128xbf16>
    %218 = vector.shape_cast %217 : vector<1x256x128xbf16> to vector<256x128xbf16>
    %cst_152 = arith.constant dense<0.000000e+00> : vector<117x128xf32>
    %219 = tpu.matmul %216, %218, %cst_152 {dimension_numbers = #tpu.dot_dimension_numbers<[1], [0], [0], [1], [0, 0, 1, 1], [], []>} : vector<117x256xbf16>, vector<256x128xbf16>, vector<117x128xf32> -> vector<117x128xf32>
    %220 = arith.addf %214, %219 : vector<117x128xf32>
    %221 = vector.extract_strided_slice %209 {offsets = [2, 0], sizes = [117, 256], strides = [1, 1]} : vector<123x256xf32> to vector<117x256xf32>
    %222 = arith.truncf %221 : vector<117x256xf32> to vector<117x256xbf16>
    %c2_153 = arith.constant 2 : index
    %c0_154 = arith.constant 0 : index
    %c0_155 = arith.constant 0 : index
    %223 = vector.load %arg2[%c2_153, %c0_154, %c0_155] : memref<7x256x128xbf16, #tpu.memory_space<vmem>>, vector<1x256x128xbf16>
    %224 = vector.shape_cast %223 : vector<1x256x128xbf16> to vector<256x128xbf16>
    %cst_156 = arith.constant dense<0.000000e+00> : vector<117x128xf32>
    %225 = tpu.matmul %222, %224, %cst_156 {dimension_numbers = #tpu.dot_dimension_numbers<[1], [0], [0], [1], [0, 0, 1, 1], [], []>} : vector<117x256xbf16>, vector<256x128xbf16>, vector<117x128xf32> -> vector<117x128xf32>
    %226 = arith.addf %220, %225 : vector<117x128xf32>
    %227 = vector.extract_strided_slice %209 {offsets = [3, 0], sizes = [117, 256], strides = [1, 1]} : vector<123x256xf32> to vector<117x256xf32>
    %228 = arith.truncf %227 : vector<117x256xf32> to vector<117x256xbf16>
    %c3_157 = arith.constant 3 : index
    %c0_158 = arith.constant 0 : index
    %c0_159 = arith.constant 0 : index
    %229 = vector.load %arg2[%c3_157, %c0_158, %c0_159] : memref<7x256x128xbf16, #tpu.memory_space<vmem>>, vector<1x256x128xbf16>
    %230 = vector.shape_cast %229 : vector<1x256x128xbf16> to vector<256x128xbf16>
    %cst_160 = arith.constant dense<0.000000e+00> : vector<117x128xf32>
    %231 = tpu.matmul %228, %230, %cst_160 {dimension_numbers = #tpu.dot_dimension_numbers<[1], [0], [0], [1], [0, 0, 1, 1], [], []>} : vector<117x256xbf16>, vector<256x128xbf16>, vector<117x128xf32> -> vector<117x128xf32>
    %232 = arith.addf %226, %231 : vector<117x128xf32>
    %233 = vector.extract_strided_slice %209 {offsets = [4, 0], sizes = [117, 256], strides = [1, 1]} : vector<123x256xf32> to vector<117x256xf32>
    %234 = arith.truncf %233 : vector<117x256xf32> to vector<117x256xbf16>
    %c4_161 = arith.constant 4 : index
    %c0_162 = arith.constant 0 : index
    %c0_163 = arith.constant 0 : index
    %235 = vector.load %arg2[%c4_161, %c0_162, %c0_163] : memref<7x256x128xbf16, #tpu.memory_space<vmem>>, vector<1x256x128xbf16>
    %236 = vector.shape_cast %235 : vector<1x256x128xbf16> to vector<256x128xbf16>
    %cst_164 = arith.constant dense<0.000000e+00> : vector<117x128xf32>
    %237 = tpu.matmul %234, %236, %cst_164 {dimension_numbers = #tpu.dot_dimension_numbers<[1], [0], [0], [1], [0, 0, 1, 1], [], []>} : vector<117x256xbf16>, vector<256x128xbf16>, vector<117x128xf32> -> vector<117x128xf32>
    %238 = arith.addf %232, %237 : vector<117x128xf32>
    %239 = vector.extract_strided_slice %209 {offsets = [5, 0], sizes = [117, 256], strides = [1, 1]} : vector<123x256xf32> to vector<117x256xf32>
    %240 = arith.truncf %239 : vector<117x256xf32> to vector<117x256xbf16>
    %c5_165 = arith.constant 5 : index
    %c0_166 = arith.constant 0 : index
    %c0_167 = arith.constant 0 : index
    %241 = vector.load %arg2[%c5_165, %c0_166, %c0_167] : memref<7x256x128xbf16, #tpu.memory_space<vmem>>, vector<1x256x128xbf16>
    %242 = vector.shape_cast %241 : vector<1x256x128xbf16> to vector<256x128xbf16>
    %cst_168 = arith.constant dense<0.000000e+00> : vector<117x128xf32>
    %243 = tpu.matmul %240, %242, %cst_168 {dimension_numbers = #tpu.dot_dimension_numbers<[1], [0], [0], [1], [0, 0, 1, 1], [], []>} : vector<117x256xbf16>, vector<256x128xbf16>, vector<117x128xf32> -> vector<117x128xf32>
    %244 = arith.addf %238, %243 : vector<117x128xf32>
    %245 = vector.extract_strided_slice %209 {offsets = [6, 0], sizes = [117, 256], strides = [1, 1]} : vector<123x256xf32> to vector<117x256xf32>
    %246 = arith.truncf %245 : vector<117x256xf32> to vector<117x256xbf16>
    %c6_169 = arith.constant 6 : index
    %c0_170 = arith.constant 0 : index
    %c0_171 = arith.constant 0 : index
    %247 = vector.load %arg2[%c6_169, %c0_170, %c0_171] : memref<7x256x128xbf16, #tpu.memory_space<vmem>>, vector<1x256x128xbf16>
    %248 = vector.shape_cast %247 : vector<1x256x128xbf16> to vector<256x128xbf16>
    %cst_172 = arith.constant dense<0.000000e+00> : vector<117x128xf32>
    %249 = tpu.matmul %246, %248, %cst_172 {dimension_numbers = #tpu.dot_dimension_numbers<[1], [0], [0], [1], [0, 0, 1, 1], [], []>} : vector<117x256xbf16>, vector<256x128xbf16>, vector<117x128xf32> -> vector<117x128xf32>
    %250 = arith.addf %244, %249 : vector<117x128xf32>
    %c0_173 = arith.constant 0 : index
    %c0_174 = arith.constant 0 : index
    %251 = vector.load %arg3[%c0_173, %c0_174] : memref<1x128xf32, #tpu.memory_space<vmem>>, vector<1x128xf32>
    %252 = vector.broadcast %251 : vector<1x128xf32> to vector<117x128xf32>
    %253 = arith.addf %250, %252 : vector<117x128xf32>
    %cst_175 = arith.constant 0.000000e+00 : f32
    %254 = vector.broadcast %cst_175 : f32 to vector<117x128xf32>
    %255 = arith.maximumf %253, %254 : vector<117x128xf32>
    %256 = arith.truncf %255 : vector<117x128xf32> to vector<117x128xbf16>
    %c0_176 = arith.constant 0 : index
    %c0_177 = arith.constant 0 : index
    %c0_178 = arith.constant 0 : index
    %257 = vector.load %arg14[%c0_176, %c0_177, %c0_178] : memref<3x39x117xbf16, #tpu.memory_space<vmem>>, vector<1x39x117xbf16>
    %258 = vector.shape_cast %257 : vector<1x39x117xbf16> to vector<39x117xbf16>
    %cst_179 = arith.constant dense<0.000000e+00> : vector<39x128xf32>
    %259 = tpu.matmul %258, %256, %cst_179 {dimension_numbers = #tpu.dot_dimension_numbers<[1], [0], [0], [1], [0, 0, 1, 1], [], []>} : vector<39x117xbf16>, vector<117x128xbf16>, vector<39x128xf32> -> vector<39x128xf32>
    %c1_180 = arith.constant 1 : index
    %c0_181 = arith.constant 0 : index
    %c0_182 = arith.constant 0 : index
    %260 = vector.load %arg14[%c1_180, %c0_181, %c0_182] : memref<3x39x117xbf16, #tpu.memory_space<vmem>>, vector<1x39x117xbf16>
    %261 = vector.shape_cast %260 : vector<1x39x117xbf16> to vector<39x117xbf16>
    %cst_183 = arith.constant dense<0.000000e+00> : vector<39x128xf32>
    %262 = tpu.matmul %261, %256, %cst_183 {dimension_numbers = #tpu.dot_dimension_numbers<[1], [0], [0], [1], [0, 0, 1, 1], [], []>} : vector<39x117xbf16>, vector<117x128xbf16>, vector<39x128xf32> -> vector<39x128xf32>
    %263 = arith.maximumf %259, %262 : vector<39x128xf32>
    %c2_184 = arith.constant 2 : index
    %c0_185 = arith.constant 0 : index
    %c0_186 = arith.constant 0 : index
    %264 = vector.load %arg14[%c2_184, %c0_185, %c0_186] : memref<3x39x117xbf16, #tpu.memory_space<vmem>>, vector<1x39x117xbf16>
    %265 = vector.shape_cast %264 : vector<1x39x117xbf16> to vector<39x117xbf16>
    %cst_187 = arith.constant dense<0.000000e+00> : vector<39x128xf32>
    %266 = tpu.matmul %265, %256, %cst_187 {dimension_numbers = #tpu.dot_dimension_numbers<[1], [0], [0], [1], [0, 0, 1, 1], [], []>} : vector<39x117xbf16>, vector<117x128xbf16>, vector<39x128xf32> -> vector<39x128xf32>
    %267 = arith.maximumf %263, %266 : vector<39x128xf32>
    %268 = vector.extract_strided_slice %267 {offsets = [0, 0], sizes = [33, 128], strides = [1, 1]} : vector<39x128xf32> to vector<33x128xf32>
    %269 = arith.truncf %268 : vector<33x128xf32> to vector<33x128xbf16>
    %c0_188 = arith.constant 0 : index
    %c0_189 = arith.constant 0 : index
    %c0_190 = arith.constant 0 : index
    %270 = vector.load %arg4[%c0_188, %c0_189, %c0_190] : memref<7x128x128xbf16, #tpu.memory_space<vmem>>, vector<1x128x128xbf16>
    %271 = vector.shape_cast %270 : vector<1x128x128xbf16> to vector<128x128xbf16>
    %cst_191 = arith.constant dense<0.000000e+00> : vector<33x128xf32>
    %272 = tpu.matmul %269, %271, %cst_191 {dimension_numbers = #tpu.dot_dimension_numbers<[1], [0], [0], [1], [0, 0, 1, 1], [], []>} : vector<33x128xbf16>, vector<128x128xbf16>, vector<33x128xf32> -> vector<33x128xf32>
    %273 = vector.extract_strided_slice %267 {offsets = [1, 0], sizes = [33, 128], strides = [1, 1]} : vector<39x128xf32> to vector<33x128xf32>
    %274 = arith.truncf %273 : vector<33x128xf32> to vector<33x128xbf16>
    %c1_192 = arith.constant 1 : index
    %c0_193 = arith.constant 0 : index
    %c0_194 = arith.constant 0 : index
    %275 = vector.load %arg4[%c1_192, %c0_193, %c0_194] : memref<7x128x128xbf16, #tpu.memory_space<vmem>>, vector<1x128x128xbf16>
    %276 = vector.shape_cast %275 : vector<1x128x128xbf16> to vector<128x128xbf16>
    %cst_195 = arith.constant dense<0.000000e+00> : vector<33x128xf32>
    %277 = tpu.matmul %274, %276, %cst_195 {dimension_numbers = #tpu.dot_dimension_numbers<[1], [0], [0], [1], [0, 0, 1, 1], [], []>} : vector<33x128xbf16>, vector<128x128xbf16>, vector<33x128xf32> -> vector<33x128xf32>
    %278 = arith.addf %272, %277 : vector<33x128xf32>
    %279 = vector.extract_strided_slice %267 {offsets = [2, 0], sizes = [33, 128], strides = [1, 1]} : vector<39x128xf32> to vector<33x128xf32>
    %280 = arith.truncf %279 : vector<33x128xf32> to vector<33x128xbf16>
    %c2_196 = arith.constant 2 : index
    %c0_197 = arith.constant 0 : index
    %c0_198 = arith.constant 0 : index
    %281 = vector.load %arg4[%c2_196, %c0_197, %c0_198] : memref<7x128x128xbf16, #tpu.memory_space<vmem>>, vector<1x128x128xbf16>
    %282 = vector.shape_cast %281 : vector<1x128x128xbf16> to vector<128x128xbf16>
    %cst_199 = arith.constant dense<0.000000e+00> : vector<33x128xf32>
    %283 = tpu.matmul %280, %282, %cst_199 {dimension_numbers = #tpu.dot_dimension_numbers<[1], [0], [0], [1], [0, 0, 1, 1], [], []>} : vector<33x128xbf16>, vector<128x128xbf16>, vector<33x128xf32> -> vector<33x128xf32>
    %284 = arith.addf %278, %283 : vector<33x128xf32>
    %285 = vector.extract_strided_slice %267 {offsets = [3, 0], sizes = [33, 128], strides = [1, 1]} : vector<39x128xf32> to vector<33x128xf32>
    %286 = arith.truncf %285 : vector<33x128xf32> to vector<33x128xbf16>
    %c3_200 = arith.constant 3 : index
    %c0_201 = arith.constant 0 : index
    %c0_202 = arith.constant 0 : index
    %287 = vector.load %arg4[%c3_200, %c0_201, %c0_202] : memref<7x128x128xbf16, #tpu.memory_space<vmem>>, vector<1x128x128xbf16>
    %288 = vector.shape_cast %287 : vector<1x128x128xbf16> to vector<128x128xbf16>
    %cst_203 = arith.constant dense<0.000000e+00> : vector<33x128xf32>
    %289 = tpu.matmul %286, %288, %cst_203 {dimension_numbers = #tpu.dot_dimension_numbers<[1], [0], [0], [1], [0, 0, 1, 1], [], []>} : vector<33x128xbf16>, vector<128x128xbf16>, vector<33x128xf32> -> vector<33x128xf32>
    %290 = arith.addf %284, %289 : vector<33x128xf32>
    %291 = vector.extract_strided_slice %267 {offsets = [4, 0], sizes = [33, 128], strides = [1, 1]} : vector<39x128xf32> to vector<33x128xf32>
    %292 = arith.truncf %291 : vector<33x128xf32> to vector<33x128xbf16>
    %c4_204 = arith.constant 4 : index
    %c0_205 = arith.constant 0 : index
    %c0_206 = arith.constant 0 : index
    %293 = vector.load %arg4[%c4_204, %c0_205, %c0_206] : memref<7x128x128xbf16, #tpu.memory_space<vmem>>, vector<1x128x128xbf16>
    %294 = vector.shape_cast %293 : vector<1x128x128xbf16> to vector<128x128xbf16>
    %cst_207 = arith.constant dense<0.000000e+00> : vector<33x128xf32>
    %295 = tpu.matmul %292, %294, %cst_207 {dimension_numbers = #tpu.dot_dimension_numbers<[1], [0], [0], [1], [0, 0, 1, 1], [], []>} : vector<33x128xbf16>, vector<128x128xbf16>, vector<33x128xf32> -> vector<33x128xf32>
    %296 = arith.addf %290, %295 : vector<33x128xf32>
    %297 = vector.extract_strided_slice %267 {offsets = [5, 0], sizes = [33, 128], strides = [1, 1]} : vector<39x128xf32> to vector<33x128xf32>
    %298 = arith.truncf %297 : vector<33x128xf32> to vector<33x128xbf16>
    %c5_208 = arith.constant 5 : index
    %c0_209 = arith.constant 0 : index
    %c0_210 = arith.constant 0 : index
    %299 = vector.load %arg4[%c5_208, %c0_209, %c0_210] : memref<7x128x128xbf16, #tpu.memory_space<vmem>>, vector<1x128x128xbf16>
    %300 = vector.shape_cast %299 : vector<1x128x128xbf16> to vector<128x128xbf16>
    %cst_211 = arith.constant dense<0.000000e+00> : vector<33x128xf32>
    %301 = tpu.matmul %298, %300, %cst_211 {dimension_numbers = #tpu.dot_dimension_numbers<[1], [0], [0], [1], [0, 0, 1, 1], [], []>} : vector<33x128xbf16>, vector<128x128xbf16>, vector<33x128xf32> -> vector<33x128xf32>
    %302 = arith.addf %296, %301 : vector<33x128xf32>
    %303 = vector.extract_strided_slice %267 {offsets = [6, 0], sizes = [33, 128], strides = [1, 1]} : vector<39x128xf32> to vector<33x128xf32>
    %304 = arith.truncf %303 : vector<33x128xf32> to vector<33x128xbf16>
    %c6_212 = arith.constant 6 : index
    %c0_213 = arith.constant 0 : index
    %c0_214 = arith.constant 0 : index
    %305 = vector.load %arg4[%c6_212, %c0_213, %c0_214] : memref<7x128x128xbf16, #tpu.memory_space<vmem>>, vector<1x128x128xbf16>
    %306 = vector.shape_cast %305 : vector<1x128x128xbf16> to vector<128x128xbf16>
    %cst_215 = arith.constant dense<0.000000e+00> : vector<33x128xf32>
    %307 = tpu.matmul %304, %306, %cst_215 {dimension_numbers = #tpu.dot_dimension_numbers<[1], [0], [0], [1], [0, 0, 1, 1], [], []>} : vector<33x128xbf16>, vector<128x128xbf16>, vector<33x128xf32> -> vector<33x128xf32>
    %308 = arith.addf %302, %307 : vector<33x128xf32>
    %c0_216 = arith.constant 0 : index
    %c0_217 = arith.constant 0 : index
    %309 = vector.load %arg5[%c0_216, %c0_217] : memref<1x128xf32, #tpu.memory_space<vmem>>, vector<1x128xf32>
    %310 = vector.broadcast %309 : vector<1x128xf32> to vector<33x128xf32>
    %311 = arith.addf %308, %310 : vector<33x128xf32>
    %cst_218 = arith.constant 0.000000e+00 : f32
    %312 = vector.broadcast %cst_218 : f32 to vector<33x128xf32>
    %313 = arith.maximumf %311, %312 : vector<33x128xf32>
    %314 = arith.truncf %313 : vector<33x128xf32> to vector<33x128xbf16>
    %c0_219 = arith.constant 0 : index
    %c0_220 = arith.constant 0 : index
    %c0_221 = arith.constant 0 : index
    %315 = vector.load %arg15[%c0_219, %c0_220, %c0_221] : memref<3x11x33xbf16, #tpu.memory_space<vmem>>, vector<1x11x33xbf16>
    %316 = vector.shape_cast %315 : vector<1x11x33xbf16> to vector<11x33xbf16>
    %cst_222 = arith.constant dense<0.000000e+00> : vector<11x128xf32>
    %317 = tpu.matmul %316, %314, %cst_222 {dimension_numbers = #tpu.dot_dimension_numbers<[1], [0], [0], [1], [0, 0, 1, 1], [], []>} : vector<11x33xbf16>, vector<33x128xbf16>, vector<11x128xf32> -> vector<11x128xf32>
    %c1_223 = arith.constant 1 : index
    %c0_224 = arith.constant 0 : index
    %c0_225 = arith.constant 0 : index
    %318 = vector.load %arg15[%c1_223, %c0_224, %c0_225] : memref<3x11x33xbf16, #tpu.memory_space<vmem>>, vector<1x11x33xbf16>
    %319 = vector.shape_cast %318 : vector<1x11x33xbf16> to vector<11x33xbf16>
    %cst_226 = arith.constant dense<0.000000e+00> : vector<11x128xf32>
    %320 = tpu.matmul %319, %314, %cst_226 {dimension_numbers = #tpu.dot_dimension_numbers<[1], [0], [0], [1], [0, 0, 1, 1], [], []>} : vector<11x33xbf16>, vector<33x128xbf16>, vector<11x128xf32> -> vector<11x128xf32>
    %321 = arith.maximumf %317, %320 : vector<11x128xf32>
    %c2_227 = arith.constant 2 : index
    %c0_228 = arith.constant 0 : index
    %c0_229 = arith.constant 0 : index
    %322 = vector.load %arg15[%c2_227, %c0_228, %c0_229] : memref<3x11x33xbf16, #tpu.memory_space<vmem>>, vector<1x11x33xbf16>
    %323 = vector.shape_cast %322 : vector<1x11x33xbf16> to vector<11x33xbf16>
    %cst_230 = arith.constant dense<0.000000e+00> : vector<11x128xf32>
    %324 = tpu.matmul %323, %314, %cst_230 {dimension_numbers = #tpu.dot_dimension_numbers<[1], [0], [0], [1], [0, 0, 1, 1], [], []>} : vector<11x33xbf16>, vector<33x128xbf16>, vector<11x128xf32> -> vector<11x128xf32>
    %325 = arith.maximumf %321, %324 : vector<11x128xf32>
    %326 = vector.extract_strided_slice %325 {offsets = [0, 0], sizes = [9, 128], strides = [1, 1]} : vector<11x128xf32> to vector<9x128xf32>
    %327 = arith.truncf %326 : vector<9x128xf32> to vector<9x128xbf16>
    %c0_231 = arith.constant 0 : index
    %c0_232 = arith.constant 0 : index
    %c0_233 = arith.constant 0 : index
    %328 = vector.load %arg6[%c0_231, %c0_232, %c0_233] : memref<3x128x128xbf16, #tpu.memory_space<vmem>>, vector<1x128x128xbf16>
    %329 = vector.shape_cast %328 : vector<1x128x128xbf16> to vector<128x128xbf16>
    %cst_234 = arith.constant dense<0.000000e+00> : vector<9x128xf32>
    %330 = tpu.matmul %327, %329, %cst_234 {dimension_numbers = #tpu.dot_dimension_numbers<[1], [0], [0], [1], [0, 0, 1, 1], [], []>} : vector<9x128xbf16>, vector<128x128xbf16>, vector<9x128xf32> -> vector<9x128xf32>
    %331 = vector.extract_strided_slice %325 {offsets = [1, 0], sizes = [9, 128], strides = [1, 1]} : vector<11x128xf32> to vector<9x128xf32>
    %332 = arith.truncf %331 : vector<9x128xf32> to vector<9x128xbf16>
    %c1_235 = arith.constant 1 : index
    %c0_236 = arith.constant 0 : index
    %c0_237 = arith.constant 0 : index
    %333 = vector.load %arg6[%c1_235, %c0_236, %c0_237] : memref<3x128x128xbf16, #tpu.memory_space<vmem>>, vector<1x128x128xbf16>
    %334 = vector.shape_cast %333 : vector<1x128x128xbf16> to vector<128x128xbf16>
    %cst_238 = arith.constant dense<0.000000e+00> : vector<9x128xf32>
    %335 = tpu.matmul %332, %334, %cst_238 {dimension_numbers = #tpu.dot_dimension_numbers<[1], [0], [0], [1], [0, 0, 1, 1], [], []>} : vector<9x128xbf16>, vector<128x128xbf16>, vector<9x128xf32> -> vector<9x128xf32>
    %336 = arith.addf %330, %335 : vector<9x128xf32>
    %337 = vector.extract_strided_slice %325 {offsets = [2, 0], sizes = [9, 128], strides = [1, 1]} : vector<11x128xf32> to vector<9x128xf32>
    %338 = arith.truncf %337 : vector<9x128xf32> to vector<9x128xbf16>
    %c2_239 = arith.constant 2 : index
    %c0_240 = arith.constant 0 : index
    %c0_241 = arith.constant 0 : index
    %339 = vector.load %arg6[%c2_239, %c0_240, %c0_241] : memref<3x128x128xbf16, #tpu.memory_space<vmem>>, vector<1x128x128xbf16>
    %340 = vector.shape_cast %339 : vector<1x128x128xbf16> to vector<128x128xbf16>
    %cst_242 = arith.constant dense<0.000000e+00> : vector<9x128xf32>
    %341 = tpu.matmul %338, %340, %cst_242 {dimension_numbers = #tpu.dot_dimension_numbers<[1], [0], [0], [1], [0, 0, 1, 1], [], []>} : vector<9x128xbf16>, vector<128x128xbf16>, vector<9x128xf32> -> vector<9x128xf32>
    %342 = arith.addf %336, %341 : vector<9x128xf32>
    %c0_243 = arith.constant 0 : index
    %c0_244 = arith.constant 0 : index
    %343 = vector.load %arg7[%c0_243, %c0_244] : memref<1x128xf32, #tpu.memory_space<vmem>>, vector<1x128xf32>
    %344 = vector.broadcast %343 : vector<1x128xf32> to vector<9x128xf32>
    %345 = arith.addf %342, %344 : vector<9x128xf32>
    %cst_245 = arith.constant 0.000000e+00 : f32
    %346 = vector.broadcast %cst_245 : f32 to vector<9x128xf32>
    %347 = arith.maximumf %345, %346 : vector<9x128xf32>
    %348 = vector.extract_strided_slice %347 {offsets = [0, 0], sizes = [7, 128], strides = [1, 1]} : vector<9x128xf32> to vector<7x128xf32>
    %349 = arith.truncf %348 : vector<7x128xf32> to vector<7x128xbf16>
    %c0_246 = arith.constant 0 : index
    %c0_247 = arith.constant 0 : index
    %c0_248 = arith.constant 0 : index
    %350 = vector.load %arg8[%c0_246, %c0_247, %c0_248] : memref<3x128x128xbf16, #tpu.memory_space<vmem>>, vector<1x128x128xbf16>
    %351 = vector.shape_cast %350 : vector<1x128x128xbf16> to vector<128x128xbf16>
    %cst_249 = arith.constant dense<0.000000e+00> : vector<7x128xf32>
    %352 = tpu.matmul %349, %351, %cst_249 {dimension_numbers = #tpu.dot_dimension_numbers<[1], [0], [0], [1], [0, 0, 1, 1], [], []>} : vector<7x128xbf16>, vector<128x128xbf16>, vector<7x128xf32> -> vector<7x128xf32>
    %353 = vector.extract_strided_slice %347 {offsets = [1, 0], sizes = [7, 128], strides = [1, 1]} : vector<9x128xf32> to vector<7x128xf32>
    %354 = arith.truncf %353 : vector<7x128xf32> to vector<7x128xbf16>
    %c1_250 = arith.constant 1 : index
    %c0_251 = arith.constant 0 : index
    %c0_252 = arith.constant 0 : index
    %355 = vector.load %arg8[%c1_250, %c0_251, %c0_252] : memref<3x128x128xbf16, #tpu.memory_space<vmem>>, vector<1x128x128xbf16>
    %356 = vector.shape_cast %355 : vector<1x128x128xbf16> to vector<128x128xbf16>
    %cst_253 = arith.constant dense<0.000000e+00> : vector<7x128xf32>
    %357 = tpu.matmul %354, %356, %cst_253 {dimension_numbers = #tpu.dot_dimension_numbers<[1], [0], [0], [1], [0, 0, 1, 1], [], []>} : vector<7x128xbf16>, vector<128x128xbf16>, vector<7x128xf32> -> vector<7x128xf32>
    %358 = arith.addf %352, %357 : vector<7x128xf32>
    %359 = vector.extract_strided_slice %347 {offsets = [2, 0], sizes = [7, 128], strides = [1, 1]} : vector<9x128xf32> to vector<7x128xf32>
    %360 = arith.truncf %359 : vector<7x128xf32> to vector<7x128xbf16>
    %c2_254 = arith.constant 2 : index
    %c0_255 = arith.constant 0 : index
    %c0_256 = arith.constant 0 : index
    %361 = vector.load %arg8[%c2_254, %c0_255, %c0_256] : memref<3x128x128xbf16, #tpu.memory_space<vmem>>, vector<1x128x128xbf16>
    %362 = vector.shape_cast %361 : vector<1x128x128xbf16> to vector<128x128xbf16>
    %cst_257 = arith.constant dense<0.000000e+00> : vector<7x128xf32>
    %363 = tpu.matmul %360, %362, %cst_257 {dimension_numbers = #tpu.dot_dimension_numbers<[1], [0], [0], [1], [0, 0, 1, 1], [], []>} : vector<7x128xbf16>, vector<128x128xbf16>, vector<7x128xf32> -> vector<7x128xf32>
    %364 = arith.addf %358, %363 : vector<7x128xf32>
    %c0_258 = arith.constant 0 : index
    %c0_259 = arith.constant 0 : index
    %365 = vector.load %arg9[%c0_258, %c0_259] : memref<1x128xf32, #tpu.memory_space<vmem>>, vector<1x128xf32>
    %366 = vector.broadcast %365 : vector<1x128xf32> to vector<7x128xf32>
    %367 = arith.addf %364, %366 : vector<7x128xf32>
    %cst_260 = arith.constant 0.000000e+00 : f32
    %368 = vector.broadcast %cst_260 : f32 to vector<7x128xf32>
    %369 = arith.maximumf %367, %368 : vector<7x128xf32>
    %370 = vector.extract_strided_slice %369 {offsets = [0, 0], sizes = [5, 128], strides = [1, 1]} : vector<7x128xf32> to vector<5x128xf32>
    %371 = arith.truncf %370 : vector<5x128xf32> to vector<5x128xbf16>
    %c0_261 = arith.constant 0 : index
    %c0_262 = arith.constant 0 : index
    %c0_263 = arith.constant 0 : index
    %372 = vector.load %arg10[%c0_261, %c0_262, %c0_263] : memref<3x128x128xbf16, #tpu.memory_space<vmem>>, vector<1x128x128xbf16>
    %373 = vector.shape_cast %372 : vector<1x128x128xbf16> to vector<128x128xbf16>
    %cst_264 = arith.constant dense<0.000000e+00> : vector<5x128xf32>
    %374 = tpu.matmul %371, %373, %cst_264 {dimension_numbers = #tpu.dot_dimension_numbers<[1], [0], [0], [1], [0, 0, 1, 1], [], []>} : vector<5x128xbf16>, vector<128x128xbf16>, vector<5x128xf32> -> vector<5x128xf32>
    %375 = vector.extract_strided_slice %369 {offsets = [1, 0], sizes = [5, 128], strides = [1, 1]} : vector<7x128xf32> to vector<5x128xf32>
    %376 = arith.truncf %375 : vector<5x128xf32> to vector<5x128xbf16>
    %c1_265 = arith.constant 1 : index
    %c0_266 = arith.constant 0 : index
    %c0_267 = arith.constant 0 : index
    %377 = vector.load %arg10[%c1_265, %c0_266, %c0_267] : memref<3x128x128xbf16, #tpu.memory_space<vmem>>, vector<1x128x128xbf16>
    %378 = vector.shape_cast %377 : vector<1x128x128xbf16> to vector<128x128xbf16>
    %cst_268 = arith.constant dense<0.000000e+00> : vector<5x128xf32>
    %379 = tpu.matmul %376, %378, %cst_268 {dimension_numbers = #tpu.dot_dimension_numbers<[1], [0], [0], [1], [0, 0, 1, 1], [], []>} : vector<5x128xbf16>, vector<128x128xbf16>, vector<5x128xf32> -> vector<5x128xf32>
    %380 = arith.addf %374, %379 : vector<5x128xf32>
    %381 = vector.extract_strided_slice %369 {offsets = [2, 0], sizes = [5, 128], strides = [1, 1]} : vector<7x128xf32> to vector<5x128xf32>
    %382 = arith.truncf %381 : vector<5x128xf32> to vector<5x128xbf16>
    %c2_269 = arith.constant 2 : index
    %c0_270 = arith.constant 0 : index
    %c0_271 = arith.constant 0 : index
    %383 = vector.load %arg10[%c2_269, %c0_270, %c0_271] : memref<3x128x128xbf16, #tpu.memory_space<vmem>>, vector<1x128x128xbf16>
    %384 = vector.shape_cast %383 : vector<1x128x128xbf16> to vector<128x128xbf16>
    %cst_272 = arith.constant dense<0.000000e+00> : vector<5x128xf32>
    %385 = tpu.matmul %382, %384, %cst_272 {dimension_numbers = #tpu.dot_dimension_numbers<[1], [0], [0], [1], [0, 0, 1, 1], [], []>} : vector<5x128xbf16>, vector<128x128xbf16>, vector<5x128xf32> -> vector<5x128xf32>
    %386 = arith.addf %380, %385 : vector<5x128xf32>
    %c0_273 = arith.constant 0 : index
    %c0_274 = arith.constant 0 : index
    %387 = vector.load %arg11[%c0_273, %c0_274] : memref<1x128xf32, #tpu.memory_space<vmem>>, vector<1x128xf32>
    %388 = vector.broadcast %387 : vector<1x128xf32> to vector<5x128xf32>
    %389 = arith.addf %386, %388 : vector<5x128xf32>
    %cst_275 = arith.constant 0.000000e+00 : f32
    %390 = vector.broadcast %cst_275 : f32 to vector<5x128xf32>
    %391 = arith.maximumf %389, %390 : vector<5x128xf32>
    %392 = vector.extract_strided_slice %391 {offsets = [0, 0], sizes = [3, 128], strides = [1, 1]} : vector<5x128xf32> to vector<3x128xf32>
    %393 = arith.truncf %392 : vector<3x128xf32> to vector<3x128xbf16>
    %c0_276 = arith.constant 0 : index
    %c0_277 = arith.constant 0 : index
    %c0_278 = arith.constant 0 : index
    %394 = vector.load %arg12[%c0_276, %c0_277, %c0_278] : memref<3x128x128xbf16, #tpu.memory_space<vmem>>, vector<1x128x128xbf16>
    %395 = vector.shape_cast %394 : vector<1x128x128xbf16> to vector<128x128xbf16>
    %cst_279 = arith.constant dense<0.000000e+00> : vector<3x128xf32>
    %396 = tpu.matmul %393, %395, %cst_279 {dimension_numbers = #tpu.dot_dimension_numbers<[1], [0], [0], [1], [0, 0, 1, 1], [], []>} : vector<3x128xbf16>, vector<128x128xbf16>, vector<3x128xf32> -> vector<3x128xf32>
    %397 = vector.extract_strided_slice %391 {offsets = [1, 0], sizes = [3, 128], strides = [1, 1]} : vector<5x128xf32> to vector<3x128xf32>
    %398 = arith.truncf %397 : vector<3x128xf32> to vector<3x128xbf16>
    %c1_280 = arith.constant 1 : index
    %c0_281 = arith.constant 0 : index
    %c0_282 = arith.constant 0 : index
    %399 = vector.load %arg12[%c1_280, %c0_281, %c0_282] : memref<3x128x128xbf16, #tpu.memory_space<vmem>>, vector<1x128x128xbf16>
    %400 = vector.shape_cast %399 : vector<1x128x128xbf16> to vector<128x128xbf16>
    %cst_283 = arith.constant dense<0.000000e+00> : vector<3x128xf32>
    %401 = tpu.matmul %398, %400, %cst_283 {dimension_numbers = #tpu.dot_dimension_numbers<[1], [0], [0], [1], [0, 0, 1, 1], [], []>} : vector<3x128xbf16>, vector<128x128xbf16>, vector<3x128xf32> -> vector<3x128xf32>
    %402 = arith.addf %396, %401 : vector<3x128xf32>
    %403 = vector.extract_strided_slice %391 {offsets = [2, 0], sizes = [3, 128], strides = [1, 1]} : vector<5x128xf32> to vector<3x128xf32>
    %404 = arith.truncf %403 : vector<3x128xf32> to vector<3x128xbf16>
    %c2_284 = arith.constant 2 : index
    %c0_285 = arith.constant 0 : index
    %c0_286 = arith.constant 0 : index
    %405 = vector.load %arg12[%c2_284, %c0_285, %c0_286] : memref<3x128x128xbf16, #tpu.memory_space<vmem>>, vector<1x128x128xbf16>
    %406 = vector.shape_cast %405 : vector<1x128x128xbf16> to vector<128x128xbf16>
    %cst_287 = arith.constant dense<0.000000e+00> : vector<3x128xf32>
    %407 = tpu.matmul %404, %406, %cst_287 {dimension_numbers = #tpu.dot_dimension_numbers<[1], [0], [0], [1], [0, 0, 1, 1], [], []>} : vector<3x128xbf16>, vector<128x128xbf16>, vector<3x128xf32> -> vector<3x128xf32>
    %408 = arith.addf %402, %407 : vector<3x128xf32>
    %c0_288 = arith.constant 0 : index
    %c0_289 = arith.constant 0 : index
    %409 = vector.load %arg13[%c0_288, %c0_289] : memref<1x128xf32, #tpu.memory_space<vmem>>, vector<1x128xf32>
    %410 = vector.broadcast %409 : vector<1x128xf32> to vector<3x128xf32>
    %411 = arith.addf %408, %410 : vector<3x128xf32>
    %cst_290 = arith.constant 0.000000e+00 : f32
    %412 = vector.broadcast %cst_290 : f32 to vector<3x128xf32>
    %413 = arith.maximumf %411, %412 : vector<3x128xf32>
    %cst_291 = arith.constant dense<0xFF800000> : vector<128xf32>
    %414 = vector.multi_reduction <maximumf>, %413, %cst_291 [0] : vector<3x128xf32> to vector<128xf32>
    %415 = vector.shape_cast %414 : vector<128xf32> to vector<1x128xf32>
    %416 = tpu.concatenate %207, %415 in 0 : vector<1x128xf32>, vector<1x128xf32> -> vector<2x128xf32>
    %417 = arith.truncf %416 : vector<2x128xf32> to vector<2x128xbf16>
    %c0_292 = arith.constant 0 : index
    %c0_293 = arith.constant 0 : index
    %418 = vector.load %arg16[%c0_292, %c0_293] : memref<128x256xbf16, #tpu.memory_space<vmem>>, vector<128x256xbf16>
    %cst_294 = arith.constant dense<0.000000e+00> : vector<2x256xf32>
    %419 = tpu.matmul %417, %418, %cst_294 {dimension_numbers = #tpu.dot_dimension_numbers<[1], [0], [0], [1], [0, 0, 1, 1], [], []>} : vector<2x128xbf16>, vector<128x256xbf16>, vector<2x256xf32> -> vector<2x256xf32>
    %c0_295 = arith.constant 0 : index
    %c0_296 = arith.constant 0 : index
    %420 = vector.load %arg17[%c0_295, %c0_296] : memref<1x256xf32, #tpu.memory_space<vmem>>, vector<1x256xf32>
    %421 = vector.broadcast %420 : vector<1x256xf32> to vector<2x256xf32>
    %422 = arith.addf %419, %421 : vector<2x256xf32>
    %cst_297 = arith.constant 0.000000e+00 : f32
    %423 = vector.broadcast %cst_297 : f32 to vector<2x256xf32>
    %424 = arith.maximumf %422, %423 : vector<2x256xf32>
    %425 = arith.truncf %424 : vector<2x256xf32> to vector<2x256xbf16>
    %c0_298 = arith.constant 0 : index
    %c0_299 = arith.constant 0 : index
    %426 = vector.load %arg18[%c0_298, %c0_299] : memref<256x256xbf16, #tpu.memory_space<vmem>>, vector<256x256xbf16>
    %cst_300 = arith.constant dense<0.000000e+00> : vector<2x256xf32>
    %427 = tpu.matmul %425, %426, %cst_300 {dimension_numbers = #tpu.dot_dimension_numbers<[1], [0], [0], [1], [0, 0, 1, 1], [], []>} : vector<2x256xbf16>, vector<256x256xbf16>, vector<2x256xf32> -> vector<2x256xf32>
    %c0_301 = arith.constant 0 : index
    %c0_302 = arith.constant 0 : index
    %428 = vector.load %arg19[%c0_301, %c0_302] : memref<1x256xf32, #tpu.memory_space<vmem>>, vector<1x256xf32>
    %429 = vector.broadcast %428 : vector<1x256xf32> to vector<2x256xf32>
    %430 = arith.addf %427, %429 : vector<2x256xf32>
    %cst_303 = arith.constant 0.000000e+00 : f32
    %431 = vector.broadcast %cst_303 : f32 to vector<2x256xf32>
    %432 = arith.maximumf %430, %431 : vector<2x256xf32>
    %433 = arith.truncf %432 : vector<2x256xf32> to vector<2x256xbf16>
    %c0_304 = arith.constant 0 : index
    %c0_305 = arith.constant 0 : index
    %434 = vector.load %arg20[%c0_304, %c0_305] : memref<256x128xbf16, #tpu.memory_space<vmem>>, vector<256x128xbf16>
    %cst_306 = arith.constant dense<0.000000e+00> : vector<2x128xf32>
    %435 = tpu.matmul %433, %434, %cst_306 {dimension_numbers = #tpu.dot_dimension_numbers<[1], [0], [0], [1], [0, 0, 1, 1], [], []>} : vector<2x256xbf16>, vector<256x128xbf16>, vector<2x128xf32> -> vector<2x128xf32>
    %c0_307 = arith.constant 0 : index
    %c0_308 = arith.constant 0 : index
    %436 = vector.load %arg21[%c0_307, %c0_308] : memref<1x128xf32, #tpu.memory_space<vmem>>, vector<1x128xf32>
    %437 = vector.broadcast %436 : vector<1x128xf32> to vector<2x128xf32>
    %438 = arith.addf %435, %437 : vector<2x128xf32>
    %c0_309 = arith.constant 0 : index
    %c0_310 = arith.constant 0 : index
    %439 = vector.load %arg22[%c0_309, %c0_310] : memref<2x128xf32, #tpu.memory_space<vmem>>, vector<2x128xf32>
    tpu.vector_store %arg22[%c0_309, %c0_310], %438 {strides = array<i32>} : memref<2x128xf32, #tpu.memory_space<vmem>>, vector<2x128xf32>,
    return
  }
  func.func @transform_0(%arg0: i32) -> (i32, i32, i32) {
    %c0_i32 = arith.constant 0 : i32
    %c0_i32_0 = arith.constant 0 : i32
    %c0_i32_1 = arith.constant 0 : i32
    return %arg0, %c0_i32, %c0_i32_0 : i32, i32, i32
  }
  func.func @transform_1(%arg0: i32) -> (i32, i32, i32) {
    %c0_i32 = arith.constant 0 : i32
    %c0_i32_0 = arith.constant 0 : i32
    %c0_i32_1 = arith.constant 0 : i32
    %c0_i32_2 = arith.constant 0 : i32
    return %c0_i32, %c0_i32_0, %c0_i32_1 : i32, i32, i32
  }
  func.func @transform_2(%arg0: i32) -> (i32, i32) {
    %c0_i32 = arith.constant 0 : i32
    %c0_i32_0 = arith.constant 0 : i32
    %c0_i32_1 = arith.constant 0 : i32
    return %c0_i32, %c0_i32_0 : i32, i32
  }
  func.func @transform_3(%arg0: i32) -> (i32, i32, i32) {
    %c0_i32 = arith.constant 0 : i32
    %c0_i32_0 = arith.constant 0 : i32
    %c0_i32_1 = arith.constant 0 : i32
    %c0_i32_2 = arith.constant 0 : i32
    return %c0_i32, %c0_i32_0, %c0_i32_1 : i32, i32, i32
  }
  func.func @transform_4(%arg0: i32) -> (i32, i32) {
    %c0_i32 = arith.constant 0 : i32
    %c0_i32_0 = arith.constant 0 : i32
    %c0_i32_1 = arith.constant 0 : i32
    return %c0_i32, %c0_i32_0 : i32, i32
  }
  func.func @transform_5(%arg0: i32) -> (i32, i32, i32) {
    %c0_i32 = arith.constant 0 : i32
    %c0_i32_0 = arith.constant 0 : i32
    %c0_i32_1 = arith.constant 0 : i32
    %c0_i32_2 = arith.constant 0 : i32
    return %c0_i32, %c0_i32_0, %c0_i32_1 : i32, i32, i32
  }
  func.func @transform_6(%arg0: i32) -> (i32, i32) {
    %c0_i32 = arith.constant 0 : i32
    %c0_i32_0 = arith.constant 0 : i32
    %c0_i32_1 = arith.constant 0 : i32
    return %c0_i32, %c0_i32_0 : i32, i32
  }
  func.func @transform_7(%arg0: i32) -> (i32, i32, i32) {
    %c0_i32 = arith.constant 0 : i32
    %c0_i32_0 = arith.constant 0 : i32
    %c0_i32_1 = arith.constant 0 : i32
    %c0_i32_2 = arith.constant 0 : i32
    return %c0_i32, %c0_i32_0, %c0_i32_1 : i32, i32, i32
  }
  func.func @transform_8(%arg0: i32) -> (i32, i32) {
    %c0_i32 = arith.constant 0 : i32
    %c0_i32_0 = arith.constant 0 : i32
    %c0_i32_1 = arith.constant 0 : i32
    return %c0_i32, %c0_i32_0 : i32, i32
  }
  func.func @transform_9(%arg0: i32) -> (i32, i32, i32) {
    %c0_i32 = arith.constant 0 : i32
    %c0_i32_0 = arith.constant 0 : i32
    %c0_i32_1 = arith.constant 0 : i32
    %c0_i32_2 = arith.constant 0 : i32
    return %c0_i32, %c0_i32_0, %c0_i32_1 : i32, i32, i32
  }
  func.func @transform_10(%arg0: i32) -> (i32, i32) {
    %c0_i32 = arith.constant 0 : i32
    %c0_i32_0 = arith.constant 0 : i32
    %c0_i32_1 = arith.constant 0 : i32
    return %c0_i32, %c0_i32_0 : i32, i32
  }
  func.func @transform_11(%arg0: i32) -> (i32, i32, i32) {
    %c0_i32 = arith.constant 0 : i32
    %c0_i32_0 = arith.constant 0 : i32
    %c0_i32_1 = arith.constant 0 : i32
    %c0_i32_2 = arith.constant 0 : i32
    return %c0_i32, %c0_i32_0, %c0_i32_1 : i32, i32, i32
  }
  func.func @transform_12(%arg0: i32) -> (i32, i32) {
    %c0_i32 = arith.constant 0 : i32
    %c0_i32_0 = arith.constant 0 : i32
    %c0_i32_1 = arith.constant 0 : i32
    return %c0_i32, %c0_i32_0 : i32, i32
  }
  func.func @transform_13(%arg0: i32) -> (i32, i32, i32) {
    %c0_i32 = arith.constant 0 : i32
    %c0_i32_0 = arith.constant 0 : i32
    %c0_i32_1 = arith.constant 0 : i32
    %c0_i32_2 = arith.constant 0 : i32
    return %c0_i32, %c0_i32_0, %c0_i32_1 : i32, i32, i32
  }
  func.func @transform_14(%arg0: i32) -> (i32, i32, i32) {
    %c0_i32 = arith.constant 0 : i32
    %c0_i32_0 = arith.constant 0 : i32
    %c0_i32_1 = arith.constant 0 : i32
    %c0_i32_2 = arith.constant 0 : i32
    return %c0_i32, %c0_i32_0, %c0_i32_1 : i32, i32, i32
  }
  func.func @transform_15(%arg0: i32) -> (i32, i32) {
    %c0_i32 = arith.constant 0 : i32
    %c0_i32_0 = arith.constant 0 : i32
    %c0_i32_1 = arith.constant 0 : i32
    return %c0_i32, %c0_i32_0 : i32, i32
  }
  func.func @transform_16(%arg0: i32) -> (i32, i32) {
    %c0_i32 = arith.constant 0 : i32
    %c0_i32_0 = arith.constant 0 : i32
    %c0_i32_1 = arith.constant 0 : i32
    return %c0_i32, %c0_i32_0 : i32, i32
  }
  func.func @transform_17(%arg0: i32) -> (i32, i32) {
    %c0_i32 = arith.constant 0 : i32
    %c0_i32_0 = arith.constant 0 : i32
    %c0_i32_1 = arith.constant 0 : i32
    return %c0_i32, %c0_i32_0 : i32, i32
  }
  func.func @transform_18(%arg0: i32) -> (i32, i32) {
    %c0_i32 = arith.constant 0 : i32
    %c0_i32_0 = arith.constant 0 : i32
    %c0_i32_1 = arith.constant 0 : i32
    return %c0_i32, %c0_i32_0 : i32, i32
  }
  func.func @transform_19(%arg0: i32) -> (i32, i32) {
    %c0_i32 = arith.constant 0 : i32
    %c0_i32_0 = arith.constant 0 : i32
    %c0_i32_1 = arith.constant 0 : i32
    return %c0_i32, %c0_i32_0 : i32, i32
  }
  func.func @transform_20(%arg0: i32) -> (i32, i32) {
    %c0_i32 = arith.constant 0 : i32
    %c0_i32_0 = arith.constant 0 : i32
    %c0_i32_1 = arith.constant 0 : i32
    return %c0_i32, %c0_i32_0 : i32, i32
  }
  func.func @transform_21(%arg0: i32) -> (i32, i32) {
    %c0_i32 = arith.constant 0 : i32
    %c0_i32_0 = arith.constant 0 : i32
    return %arg0, %c0_i32 : i32, i32
  }
}

</mosaic_0001>

<bundles_post_ra>
// kernel: tpu_custom_call.1
= control target key start
LH: loop header
LB: loop body
LE: loop exit
PB: predicated region body
PF: predicated region fallthrough
CT: control target
= control target key end

     0   :  { %s16035_s0 = inlined_call_operand.vmem [shape: f32[2,123,256], index: 0, kind: input, shape index: {}]   ;;  %s16036_s1 = inlined_call_operand.vmem [shape: bf16[7,256,128], index: 1, kind: input, shape index: {}]   ;;  %s16037_s2 = inlined_call_operand.hbm [shape: f32[1,128], index: 2, kind: input, shape index: {}]   ;;  %s16038_s3 = inlined_call_operand.hbm [shape: bf16[7,128,128], index: 3, kind: input, shape index: {}]   ;;  %s16039_s4 = inlined_call_operand.hbm [shape: f32[1,128], index: 4, kind: input, shape index: {}]   ;;  %s16040_s5 = inlined_call_operand.hbm [shape: bf16[3,128,128], index: 5, kind: input, shape index: {}]   ;;  %s16041_s6 = inlined_call_operand.hbm [shape: f32[1,128], index: 6, kind: input, shape index: {}]   ;;  %s16042_s7 = inlined_call_operand.hbm [shape: bf16[3,128,128], index: 7, kind: input, shape index: {}]   ;;  %s16043_s8 = inlined_call_operand.hbm [shape: f32[1,128], index: 8, kind: input, shape index: {}]   ;;  %s16044_s9 = inlined_call_operand.hbm [shape: bf16[3,128,128], index: 9, kind: input, shape index: {}]   ;;  %s16045_s10 = inlined_call_operand.hbm [shape: f32[1,128], index: 10, kind: input, shape index: {}]   ;;  %s16046_s11 = inlined_call_operand.hbm [shape: bf16[3,128,128], index: 11, kind: input, shape index: {}]   ;;  %s16047_s12 = inlined_call_operand.vmem [shape: f32[1,128], index: 12, kind: input, shape index: {}]   ;;  %s16048_s13 = inlined_call_operand.vmem [shape: bf16[3,39,117], index: 13, kind: input, shape index: {}]   ;;  %s16049_s14 = inlined_call_operand.vmem [shape: bf16[3,11,33], index: 14, kind: input, shape index: {}]   ;;  %s16050_s15 = inlined_call_operand.vmem [shape: bf16[128,256], index: 15, kind: input, shape index: {}]   ;;  %s16051_s16 = inlined_call_operand.vmem [shape: f32[1,256], index: 16, kind: input, shape index: {}]   ;;  %s16052_s17 = inlined_call_operand.hbm [shape: bf16[256,256], index: 17, kind: input, shape index: {}]   ;;  %s16053_s18 = inlined_call_operand.vmem [shape: f32[1,256], index: 18, kind: input, shape index: {}]   ;;  %s16054_s19 = inlined_call_operand.hbm [shape: bf16[256,128], index: 19, kind: input, shape index: {}]   ;;  %s16055_s20 = inlined_call_operand.vmem [shape: f32[1,128], index: 20, kind: input, shape index: {}]   ;;  %s16056_s21 = inlined_call_operand.hbm [shape: f32[2,128], index: 21, kind: output, shape index: {}]  }
   0x1   :  { %16100 = sst [smem:[#allocation43_spill]] %s16035_s0 }
   0x2   :  { %16101 = sst [smem:[#allocation44_spill]] %s16036_s1 }
   0x3   :  { %16102 = sst [smem:[#allocation45_spill]] %s16037_s2 }
   0x4   :  { %16103 = sst [smem:[#allocation46_spill]] %s16038_s3 }
   0x5   :  { %16104 = sst [smem:[#allocation47_spill]] %s16039_s4 }
   0x6   :  { %16105 = sst [smem:[#allocation48_spill]] %s16040_s5 }
   0x7   :  { %16106 = sst [smem:[#allocation49_spill]] %s16053_s18 }
   0x8   :  { %16107 = sst [smem:[#allocation50_spill]] %s16055_s20 }
   0x9   :  { %16108 = sst [smem:[#allocation51_spill]] %s16056_s21 }
   0xa   :  { %26 = vsyncpa [#allocation3], 0 }
   0xb   :  { %27 = vsyncpa [#allocation6], 0 }
   0xc   :  { %28 = vsyncpa [#allocation9], 0 }
   0xd   :  { %29 = vsyncpa [#allocation12], 0 }
   0xe   :  { %30 = vsyncpa [#allocation15], 0 }
   0xf   :  { %31 = vsyncpa [#allocation18], 0 }
  0x10   :  { %32 = vsyncpa [#allocation21], 0 }
  0x11   :  { %33 = vsyncpa [#allocation4], 0  ;;  %s12538_s2 = smov [#allocation5]   ;;  %s16109_s3 = sld [smem:[#allocation46_spill]] }
  0x12   :  { %s53_s25 = sshll.u32 %s12538_s2, 4  ;;  %s54_s25 = int_to_ptr.vmem [resolvable:$true] %s53_s25 }
  0x17   :  { %s12236_s28 = scalar_lea.hbm %s16109_s3, 7168 }
  0x18   :  { %p12237_p0 = scmp.ne.s32.totalorder %s16109_s3, %s12236_s28  ;;  %p12240_p1 = scmp.lt.u32.totalorder %s12236_s28, %s16109_s3 }
  0x1a   :  { %p12242_p2 = pnand %p12240_p1, %p12237_p0 }
  0x1c   :  { %12245 = shalt.err (!%p12242_p2)
}
  0x1d   :  { %s12246_s5 = scalar_lea.vmem %s54_s25, 7168  ;;  %p12251_p4 = scmp.lt.s32.totalorder %s54_s25, %s54_s25 }
  0x1e   :  { %p12247_p3 = scmp.ne.s32.totalorder %s54_s25, %s12246_s5  ;;  %p12252_p5 = scmp.lt.s32.totalorder %s12246_s5, %s12246_s5 }
  0x20   :  { %p12253_p6 = por %p12252_p5, %p12251_p4 }
  0x22   :  { %p12254_p7 = pnand %p12253_p6, %p12247_p3 }
  0x24   :  { %12257 = shalt.err (!%p12254_p7)
}
  0x25   :  { %s12539_s22 = smov 64   ;;  %s12540_s23 = smov 4  }
  0x26   :  { %59 = dma.hbm_to_vmem [thread:$0]  %s16109_s3, 7168, %s54_s25, [#allocation6], %s12539_s22, %s12539_s22, %s12540_s23  }
  0x27   :  { %s12541_s2 = smov [#allocation8]   ;;  %s12542_s27 = smov [#allocation11]  }
  0x28   :  { %s75_s26 = sshll.u32 %s12541_s2, 4  ;;  %s97_s28 = sshll.u32 %s12542_s27, 4  ;;  %s76_s26 = int_to_ptr.vmem [resolvable:$true] %s75_s26  ;;  %s98_s28 = int_to_ptr.vmem [resolvable:$true] %s97_s28 }
  0x29   :  { %s16110_s4 = sld [smem:[#allocation48_spill]] }
  0x2f   :  { %s12258_s30 = scalar_lea.hbm %s16110_s4, 3072 }
  0x30   :  { %p12259_p8 = scmp.ne.s32.totalorder %s16110_s4, %s12258_s30  ;;  %p12262_p9 = scmp.lt.u32.totalorder %s12258_s30, %s16110_s4 }
  0x32   :  { %p12264_p10 = pnand %p12262_p9, %p12259_p8 }
  0x34   :  { %12267 = shalt.err (!%p12264_p10)
}
  0x35   :  { %s12268_s25 = scalar_lea.vmem %s76_s26, 3072  ;;  %p12273_p12 = scmp.lt.s32.totalorder %s76_s26, %s76_s26 }
  0x36   :  { %p12269_p11 = scmp.ne.s32.totalorder %s76_s26, %s12268_s25  ;;  %p12274_p13 = scmp.lt.s32.totalorder %s12268_s25, %s12268_s25 }
  0x38   :  { %p12275_p0 = por %p12274_p13, %p12273_p12 }
  0x3a   :  { %p12276_p1 = pnand %p12275_p0, %p12269_p11 }
  0x3c   :  { %12279 = shalt.err (!%p12276_p1)
}
  0x3d   :  { %81 = dma.hbm_to_vmem [thread:$0]  %s16110_s4, 3072, %s76_s26, [#allocation9], %s12539_s22, %s12539_s22, %s12540_s23  }
  0x3e   :  { %s12280_s20 = scalar_lea.hbm %s16042_s7, 3072 }
  0x3f   :  { %p12281_p2 = scmp.ne.s32.totalorder %s16042_s7, %s12280_s20  ;;  %p12284_p3 = scmp.lt.u32.totalorder %s12280_s20, %s16042_s7 }
  0x41   :  { %p12286_p4 = pnand %p12284_p3, %p12281_p2 }
  0x43   :  { %12289 = shalt.err (!%p12286_p4)
}
  0x44   :  { %s12290_s0 = scalar_lea.vmem %s98_s28, 3072  ;;  %p12295_p6 = scmp.lt.s32.totalorder %s98_s28, %s98_s28 }
  0x45   :  { %p12291_p5 = scmp.ne.s32.totalorder %s98_s28, %s12290_s0  ;;  %p12296_p7 = scmp.lt.s32.totalorder %s12290_s0, %s12290_s0 }
  0x47   :  { %p12297_p8 = por %p12296_p7, %p12295_p6 }
  0x49   :  { %p12298_p9 = pnand %p12297_p8, %p12291_p5 }
  0x4b   :  { %12301 = shalt.err (!%p12298_p9)
}
  0x4c   :  { %103 = dma.hbm_to_vmem [thread:$0]  %s16042_s7, 3072, %s98_s28, [#allocation12], %s12539_s22, %s12539_s22, %s12540_s23  }
  0x4d   :  { %s12543_s30 = smov [#allocation14]   ;;  %s12544_s25 = smov [#allocation17]  }
  0x4e   :  { %s119_s5 = sshll.u32 %s12543_s30, 4  ;;  %s141_s3 = sshll.u32 %s12544_s25, 4  ;;  %s120_s5 = int_to_ptr.vmem [resolvable:$true] %s119_s5  ;;  %s142_s3 = int_to_ptr.vmem [resolvable:$true] %s141_s3 }
  0x4f   :  { %s12302_s18 = scalar_lea.hbm %s16044_s9, 3072 }
  0x50   :  { %p12303_p10 = scmp.ne.s32.totalorder %s16044_s9, %s12302_s18  ;;  %p12306_p11 = scmp.lt.u32.totalorder %s12302_s18, %s16044_s9 }
  0x52   :  { %p12308_p12 = pnand %p12306_p11, %p12303_p10 }
  0x54   :  { %12311 = shalt.err (!%p12308_p12)
}
  0x55   :  { %s12312_s7 = scalar_lea.vmem %s120_s5, 3072  ;;  %p12317_p0 = scmp.lt.s32.totalorder %s120_s5, %s120_s5 }
  0x56   :  { %p12313_p13 = scmp.ne.s32.totalorder %s120_s5, %s12312_s7  ;;  %p12318_p1 = scmp.lt.s32.totalorder %s12312_s7, %s12312_s7 }
  0x58   :  { %p12319_p2 = por %p12318_p1, %p12317_p0 }
  0x5a   :  { %p12320_p3 = pnand %p12319_p2, %p12313_p13 }
  0x5c   :  { %12323 = shalt.err (!%p12320_p3)
}
  0x5d   :  { %125 = dma.hbm_to_vmem [thread:$0]  %s16044_s9, 3072, %s120_s5, [#allocation15], %s12539_s22, %s12539_s22, %s12540_s23  }
  0x5e   :  { %s12324_s4 = scalar_lea.hbm %s16046_s11, 3072 }
  0x5f   :  { %p12325_p4 = scmp.ne.s32.totalorder %s16046_s11, %s12324_s4  ;;  %p12328_p5 = scmp.lt.u32.totalorder %s12324_s4, %s16046_s11 }
  0x61   :  { %p12330_p6 = pnand %p12328_p5, %p12325_p4 }
  0x63   :  { %12333 = shalt.err (!%p12330_p6)
}
  0x64   :  { %s12334_s18 = scalar_lea.vmem %s142_s3, 3072  ;;  %p12339_p8 = scmp.lt.s32.totalorder %s142_s3, %s142_s3 }
  0x65   :  { %p12335_p7 = scmp.ne.s32.totalorder %s142_s3, %s12334_s18  ;;  %p12340_p9 = scmp.lt.s32.totalorder %s12334_s18, %s12334_s18 }
  0x67   :  { %p12341_p10 = por %p12340_p9, %p12339_p8 }
  0x69   :  { %p12342_p11 = pnand %p12341_p10, %p12335_p7 }
  0x6b   :  { %12345 = shalt.err (!%p12342_p11)
}
  0x6c   :  { %147 = dma.hbm_to_vmem [thread:$0]  %s16046_s11, 3072, %s142_s3, [#allocation18], %s12539_s22, %s12539_s22, %s12540_s23  }
  0x6d   :  { %s12545_s20 = smov [#allocation2]   ;;  %s12546_s2 = smov [#allocation7]  }
  0x6e   :  { %s44_s24 = sshll.u32 %s12545_s20, 4  ;;  %s66_s27 = sshll.u32 %s12546_s2, 4  ;;  %s45_s24 = int_to_ptr.vmem [resolvable:$true] %s44_s24  ;;  %s67_s27 = int_to_ptr.vmem [resolvable:$true] %s66_s27 }
  0x6f   :  { %s16111_s29 = sld [smem:[#allocation45_spill]] }
  0x75   :  { %s12346_s0 = scalar_lea.hbm %s16111_s29, 16 }
  0x76   :  { %p12347_p12 = scmp.ne.s32.totalorder %s16111_s29, %s12346_s0  ;;  %p12350_p13 = scmp.lt.u32.totalorder %s12346_s0, %s16111_s29 }
  0x78   :  { %p12352_p0 = pnand %p12350_p13, %p12347_p12 }
  0x7a   :  { %12355 = shalt.err (!%p12352_p0)
}
  0x7b   :  { %s12356_s11 = scalar_lea.vmem %s45_s24, 16  ;;  %s12360_s3 = scalar_lea.vmem %s45_s24, 32 }
  0x7c   :  { %p12357_p1 = scmp.ne.s32.totalorder %s45_s24, %s12356_s11  ;;  %p12361_p2 = scmp.lt.s32.totalorder %s45_s24, %s45_s24 }
  0x7d   :  { %p12362_p3 = scmp.lt.s32.totalorder %s12360_s3, %s12356_s11 }
  0x7f   :  { %p12363_p4 = por %p12362_p3, %p12361_p2 }
  0x81   :  { %p12364_p5 = pnand %p12363_p4, %p12357_p1 }
  0x83   :  { %12367 = shalt.err (!%p12364_p5)
}
  0x84   :  { %47 = dma.hbm_to_vmem [thread:$0]  %s16111_s29, 16, %s45_s24, [#allocation3]  }
  0x85   :  { %s16112_s5 = sld [smem:[#allocation47_spill]] }
  0x8b   :  { %s12368_s20 = scalar_lea.hbm %s16112_s5, 16 }
  0x8c   :  { %p12369_p6 = scmp.ne.s32.totalorder %s16112_s5, %s12368_s20  ;;  %p12372_p7 = scmp.lt.u32.totalorder %s12368_s20, %s16112_s5 }
  0x8e   :  { %p12374_p8 = pnand %p12372_p7, %p12369_p6 }
  0x90   :  { %12377 = shalt.err (!%p12374_p8)
}
  0x91   :  { %s12378_s26 = scalar_lea.vmem %s67_s27, 16  ;;  %s12382_s4 = scalar_lea.vmem %s67_s27, 32 }
  0x92   :  { %p12379_p9 = scmp.ne.s32.totalorder %s67_s27, %s12378_s26  ;;  %p12383_p10 = scmp.lt.s32.totalorder %s67_s27, %s67_s27 }
  0x93   :  { %p12384_p11 = scmp.lt.s32.totalorder %s12382_s4, %s12378_s26 }
  0x95   :  { %p12385_p12 = por %p12384_p11, %p12383_p10 }
  0x97   :  { %p12386_p13 = pnand %p12385_p12, %p12379_p9 }
  0x99   :  { %12389 = shalt.err (!%p12386_p13)
}
  0x9a   :  { %69 = dma.hbm_to_vmem [thread:$0]  %s16112_s5, 16, %s67_s27, [#allocation6]  }
  0x9b   :  { %s12547_s30 = smov [#allocation10]   ;;  %s12548_s11 = smov [#allocation13]  }
  0x9c   :  { %s88_s25 = sshll.u32 %s12547_s30, 4  ;;  %s110_s3 = sshll.u32 %s12548_s11, 4  ;;  %s89_s25 = int_to_ptr.vmem [resolvable:$true] %s88_s25  ;;  %s111_s3 = int_to_ptr.vmem [resolvable:$true] %s110_s3 }
  0x9d   :  { %s12390_s18 = scalar_lea.hbm %s16041_s6, 16 }
  0x9e   :  { %p12391_p0 = scmp.ne.s32.totalorder %s16041_s6, %s12390_s18  ;;  %p12394_p1 = scmp.lt.u32.totalorder %s12390_s18, %s16041_s6 }
  0xa0   :  { %p12396_p2 = pnand %p12394_p1, %p12391_p0 }
  0xa2   :  { %12399 = shalt.err (!%p12396_p2)
}
  0xa3   :  { %s12400_s27 = scalar_lea.vmem %s89_s25, 16  ;;  %s12404_s5 = scalar_lea.vmem %s89_s25, 32 }
  0xa4   :  { %p12401_p3 = scmp.ne.s32.totalorder %s89_s25, %s12400_s27  ;;  %p12405_p4 = scmp.lt.s32.totalorder %s89_s25, %s89_s25 }
  0xa5   :  { %p12406_p5 = scmp.lt.s32.totalorder %s12404_s5, %s12400_s27 }
  0xa7   :  { %p12407_p6 = por %p12406_p5, %p12405_p4 }
  0xa9   :  { %p12408_p7 = pnand %p12407_p6, %p12401_p3 }
  0xab   :  { %12411 = shalt.err (!%p12408_p7)
}
  0xac   :  { %91 = dma.hbm_to_vmem [thread:$0]  %s16041_s6, 16, %s89_s25, [#allocation9]  }
  0xad   :  { %s12412_s24 = scalar_lea.hbm %s16043_s8, 16 }
  0xae   :  { %p12413_p8 = scmp.ne.s32.totalorder %s16043_s8, %s12412_s24  ;;  %p12416_p9 = scmp.lt.u32.totalorder %s12412_s24, %s16043_s8 }
  0xb0   :  { %p12418_p10 = pnand %p12416_p9, %p12413_p8 }
  0xb2   :  { %12421 = shalt.err (!%p12418_p10)
}
  0xb3   :  { %s12422_s21 = scalar_lea.vmem %s111_s3, 16  ;;  %s12426_s18 = scalar_lea.vmem %s111_s3, 32 }
  0xb4   :  { %p12423_p11 = scmp.ne.s32.totalorder %s111_s3, %s12422_s21  ;;  %p12427_p12 = scmp.lt.s32.totalorder %s111_s3, %s111_s3 }
  0xb5   :  { %p12428_p13 = scmp.lt.s32.totalorder %s12426_s18, %s12422_s21 }
  0xb7   :  { %p12429_p0 = por %p12428_p13, %p12427_p12 }
  0xb9   :  { %p12430_p1 = pnand %p12429_p0, %p12423_p11 }
  0xbb   :  { %12433 = shalt.err (!%p12430_p1)
}
  0xbc   :  { %113 = dma.hbm_to_vmem [thread:$0]  %s16043_s8, 16, %s111_s3, [#allocation12]  }
  0xbd   :  { %s12549_s9 = smov [#allocation16]   ;;  %s12550_s2 = smov [#allocation19]  }
  0xbe   :  { %s132_s20 = sshll.u32 %s12549_s9, 4  ;;  %s163_s7 = sshll.u32 %s12550_s2, 4  ;;  %s133_s20 = int_to_ptr.vmem [resolvable:$true] %s132_s20  ;;  %s164_s7 = int_to_ptr.vmem [resolvable:$true] %s163_s7 }
  0xbf   :  { %s12434_s28 = scalar_lea.hbm %s16045_s10, 16 }
  0xc0   :  { %p12435_p2 = scmp.ne.s32.totalorder %s16045_s10, %s12434_s28  ;;  %p12438_p3 = scmp.lt.u32.totalorder %s12434_s28, %s16045_s10 }
  0xc2   :  { %p12440_p4 = pnand %p12438_p3, %p12435_p2 }
  0xc4   :  { %12443 = shalt.err (!%p12440_p4)
}
  0xc5   :  { %s12444_s8 = scalar_lea.vmem %s133_s20, 16  ;;  %s12448_s3 = scalar_lea.vmem %s133_s20, 32 }
  0xc6   :  { %p12445_p5 = scmp.ne.s32.totalorder %s133_s20, %s12444_s8  ;;  %p12449_p6 = scmp.lt.s32.totalorder %s133_s20, %s133_s20 }
  0xc7   :  { %p12450_p7 = scmp.lt.s32.totalorder %s12448_s3, %s12444_s8 }
  0xc9   :  { %p12451_p8 = por %p12450_p7, %p12449_p6 }
  0xcb   :  { %p12452_p9 = pnand %p12451_p8, %p12445_p5 }
  0xcd   :  { %12455 = shalt.err (!%p12452_p9)
}
  0xce   :  { %135 = dma.hbm_to_vmem [thread:$0]  %s16045_s10, 16, %s133_s20, [#allocation15]  }
  0xcf   :  { %s12456_s21 = scalar_lea.hbm %s16052_s17, 4096 }
  0xd0   :  { %p12457_p10 = scmp.ne.s32.totalorder %s16052_s17, %s12456_s21  ;;  %p12460_p11 = scmp.lt.u32.totalorder %s12456_s21, %s16052_s17 }
  0xd2   :  { %p12462_p12 = pnand %p12460_p11, %p12457_p10 }
  0xd4   :  { %12465 = shalt.err (!%p12462_p12)
}
  0xd5   :  { %s12466_s2 = scalar_lea.vmem %s164_s7, 4096  ;;  %p12471_p0 = scmp.lt.s32.totalorder %s164_s7, %s164_s7 }
  0xd6   :  { %p12467_p13 = scmp.ne.s32.totalorder %s164_s7, %s12466_s2  ;;  %p12472_p1 = scmp.lt.s32.totalorder %s12466_s2, %s12466_s2 }
  0xd8   :  { %p12473_p2 = por %p12472_p1, %p12471_p0 }
  0xda   :  { %p12474_p3 = pnand %p12473_p2, %p12467_p13 }
  0xdc   :  { %12477 = shalt.err (!%p12474_p3)
}
  0xdd   :  { %s12551_s10 = smov 128   ;;  %s12552_s20 = smov 8  }
  0xde   :  { %169 = dma.hbm_to_vmem [thread:$0]  %s16052_s17, 4096, %s164_s7, [#allocation18], %s12551_s10, %s12551_s10, %s12552_s20  }
  0xdf   :  { %s12553_s28 = smov [#allocation20]   ;;  %s12478_s24 = scalar_lea.hbm %s16054_s19, 2048 }
  0xe0   :  { %s177_s0 = sshll.u32 %s12553_s28, 4  ;;  %p12479_p4 = scmp.ne.s32.totalorder %s16054_s19, %s12478_s24  ;;  %s178_s0 = int_to_ptr.vmem [resolvable:$true] %s177_s0 }
  0xe1   :  { %p12482_p5 = scmp.lt.u32.totalorder %s12478_s24, %s16054_s19 }
  0xe3   :  { %p12484_p6 = pnand %p12482_p5, %p12479_p4 }
  0xe5   :  { %12487 = shalt.err (!%p12484_p6)
}
  0xe6   :  { %s12488_s11 = scalar_lea.vmem %s178_s0, 2048  ;;  %p12493_p8 = scmp.lt.s32.totalorder %s178_s0, %s178_s0 }
  0xe7   :  { %p12489_p7 = scmp.ne.s32.totalorder %s178_s0, %s12488_s11  ;;  %p12494_p9 = scmp.lt.s32.totalorder %s12488_s11, %s12488_s11 }
  0xe9   :  { %p12495_p10 = por %p12494_p9, %p12493_p8 }
  0xeb   :  { %p12496_p11 = pnand %p12495_p10, %p12489_p7 }
  0xed   :  { %12499 = shalt.err (!%p12496_p11)
}
  0xee   :  { %183 = dma.hbm_to_vmem [thread:$0]  %s16054_s19, 2048, %s178_s0, [#allocation21], %s12539_s22, %s12539_s22, %s12540_s23  }
  0xef   :  { %12522 = dma.done.wait [#allocation3], 16  }
  0xf0   :  { %12523 = vsyncadd [#allocation3], 4294967280 }
  0xf1   :  { %12524 = dma.done.wait [#allocation6], 7184  }
  0xf2   :  { %12525 = vsyncadd [#allocation6], 4294960112 }
  0xf3   :  { %12526 = dma.done.wait [#allocation9], 3088  }
  0xf4   :  { %12527 = vsyncadd [#allocation9], 4294964208 }
  0xf5   :  { %12528 = dma.done.wait [#allocation12], 3088  }
  0xf6   :  { %12529 = vsyncadd [#allocation12], 4294964208 }
  0xf7   :  { %12530 = dma.done.wait [#allocation15], 3088  }
  0xf8   :  { %12531 = vsyncadd [#allocation15], 4294964208 }
  0xf9   :  { %12532 = dma.done.wait [#allocation18], 7168  }
  0xfa   :  { %12533 = vsyncadd [#allocation18], 4294960128 }
  0xfb   :  { %12534 = dma.done.wait [#allocation21], 2048  }
  0xfc   :  { %12535 = vsyncadd [#allocation21], 4294965248  ;;  %s16113_s18 = sld [smem:[#allocation44_spill]]  ;;  %s16114_s4 = sld [smem:[#allocation43_spill]]  ;;  %vm336_vm0 = vsmask.f32 7424 }
  0xfd   :  { %vm912_vm1 = vcmask 1046528   ;;  %vm1199_vm2 = vsmask.f32 6400  ;;  %vm1809_vm3 = vsmask.f32 5376  ;;  %vm1522_vm4 = vcmask 1045504  }
  0xfe   :  { %vm2138_vm5 = vcmask 1044480   ;;  %vm12555_vm6 = vmmov 0   ;;  %vm2465_vm7 = vcmask 1041408   ;;  %vm2466_vm8 = vcmask 1042432   ;;  %s16248_s7 = sld [smem:[#allocation49_spill]]  ;;  %s16249_s6 = sld [smem:[#allocation50_spill]] }
  0xff   :  { %vm2455_vm9 = vcmask 957440   ;;  %vm3691_vm10 = vcmask 1040384   ;;  %vm3687_vm11 = vcmask 269312   ;;  %s12558_s19 = smov [#allocation22]  }
 0x100   :  { %s8468_s22 = sshll.u32 %s12558_s19, 4  ;;  %s8469_s22 = int_to_ptr.vmem [resolvable:$true] %s8468_s22 }
 0x101   :  { %s12500_s23 = scalar_lea.vmem %s8469_s22, 32  ;;  %p12505_p13 = scmp.lt.s32.totalorder %s8469_s22, %s8469_s22 }
 0x102   :  { %v11591_v0 = vld [vmem:[%s16113_s18 + $0xc0] sm:$0xff]   ;;  %v11595_v4 = vld [vmem:[%s16113_s18 + $0xc8] sm:$0xff]   ;;  %v11599_v8 = vld [vmem:[%s16113_s18 + $0xd0] sm:$0xff]   ;;  %p12501_p12 = scmp.ne.s32.totalorder %s8469_s22, %s12500_s23  ;;  %p12506_p0 = scmp.lt.s32.totalorder %s12500_s23, %s12500_s23 }
 0x103   :  { %v11592_v1 = vld [vmem:[%s16113_s18 + $0x40] sm:$0xff]   ;;  %9092 = vmatprep.subr.bf16.mxu0 %v11591_v0  ;;  %v11596_v5 = vld [vmem:[%s16113_s18 + $0x48] sm:$0xff]   ;;  %v11600_v9 = vld [vmem:[%s16113_s18 + $0x50] sm:$0xff]  }
 0x104   :  { %v11593_v2 = vld [vmem:[%s16113_s18 + $0x80] sm:$0xff]   ;;  %9156 = vmatprep.subr.bf16.mxu1 %v11592_v1  ;;  %v11597_v6 = vld [vmem:[%s16113_s18 + $0x88] sm:$0xff]   ;;  %v11601_v10 = vld [vmem:[%s16113_s18 + $0x90] sm:$0xff]   ;;  %p12507_p1 = por %p12506_p0, %p12505_p13 }
 0x105   :  { %v11594_v3 = vld [vmem:[%s16113_s18] sm:$0xff]   ;;  %9093 = vmatpush3.bf16.msra.mxu0 %v11593_v2  ;;  %v11598_v7 = vld [vmem:[%s16113_s18 + $0x8] sm:$0xff]   ;;  %v11602_v11 = vld [vmem:[%s16113_s18 + $0x10] sm:$0xff]  }
 0x106   :  { %9157 = vmatpush3.bf16.msra.mxu1 %v11594_v3  ;;  %9094 = vmatprep.subr.bf16.mxu0 %v11595_v4  ;;  %v11603_v12 = vld [vmem:[%s16113_s18 + $0xd8] sm:$0xff]   ;;  %v11607_v16 = vld [vmem:[%s16113_s18 + $0xe0] sm:$0xff]   ;;  %v11611_v20 = vld [vmem:[%s16113_s18 + $0xe8] sm:$0xff]   ;;  %p12508_p2 = pnand %p12507_p1, %p12501_p12 }
 0x107   :  { %9158 = vmatprep.subr.bf16.mxu1 %v11596_v5  ;;  %v11604_v13 = vld [vmem:[%s16113_s18 + $0x58] sm:$0xff]   ;;  %v11608_v17 = vld [vmem:[%s16113_s18 + $0x60] sm:$0xff]   ;;  %v11612_v21 = vld [vmem:[%s16113_s18 + $0x68] sm:$0xff]  }
 0x108   :  { %v11605_v14 = vld [vmem:[%s16113_s18 + $0x98] sm:$0xff]   ;;  %v11609_v18 = vld [vmem:[%s16113_s18 + $0xa0] sm:$0xff]   ;;  %v11613_v22 = vld [vmem:[%s16113_s18 + $0xa8] sm:$0xff]  }
 0x109   :  { %9095 = vmatpush3.bf16.msra.mxu0 %v11597_v6  ;;  %v11606_v15 = vld [vmem:[%s16113_s18 + $0x18] sm:$0xff]   ;;  %v11610_v19 = vld [vmem:[%s16113_s18 + $0x20] sm:$0xff]   ;;  %v11614_v23 = vld [vmem:[%s16113_s18 + $0x28] sm:$0xff]  }
 0x10a   :  { %9159 = vmatpush3.bf16.msra.mxu1 %v11598_v7  ;;  %9096 = vmatprep.subr.bf16.mxu0 %v11599_v8  ;;  %v11615_v24 = vld [vmem:[%s16113_s18 + $0xf0] sm:$0xff]   ;;  %v11619_v28 = vld [vmem:[%s16113_s18 + $0xf8] sm:$0xff]   ;;  %v224_v32 = vld [vmem:[%s16114_s4 + $0x8] sm:$0xff] }
 0x10b   :  { %9160 = vmatprep.subr.bf16.mxu1 %v11600_v9  ;;  %v11616_v25 = vld [vmem:[%s16113_s18 + $0x70] sm:$0xff]   ;;  %v11620_v29 = vld [vmem:[%s16113_s18 + $0x78] sm:$0xff]   ;;  %v228_v34 = vld [vmem:[%s16114_s4 + $0x28] sm:$0xff] }
 0x10c   :  { %v11617_v26 = vld [vmem:[%s16113_s18 + $0xb0] sm:$0xff]   ;;  %v11621_v30 = vld [vmem:[%s16113_s18 + $0xb8] sm:$0xff]   ;;  %v223_v37 = vld [vmem:[%s16114_s4] sm:$0xff] }
 0x10d   :  { %9097 = vmatpush3.bf16.msra.mxu0 %v11601_v10  ;;  %v11618_v27 = vld [vmem:[%s16113_s18 + $0x30] sm:$0xff]   ;;  %v11622_v31 = vld [vmem:[%s16113_s18 + $0x38] sm:$0xff]   ;;  %v227_v40 = vld [vmem:[%s16114_s4 + $0x20] sm:$0xff] }
 0x10e   :  { %9161 = vmatpush3.bf16.msra.mxu1 %v11602_v11  ;;  %9098 = vmatprep.subr.bf16.mxu0 %v11603_v12  ;;  %v226_v33 = vld [vmem:[%s16114_s4 + $0x18] sm:$0xff]  ;;  %v225_v38 = vld [vmem:[%s16114_s4 + $0x10] sm:$0xff]  ;;  %v11623_v46 = vld [vmem:[%s16113_s18 + $0x140] sm:$0xff]  }
 0x10f   :  { %9162 = vmatprep.subr.bf16.mxu1 %v11604_v13  ;;  %v230_v35 = vld [vmem:[%s16114_s4 + $0x38] sm:$0xff]  ;;  %v12939_v36 = vpack.c.bf16 %v226_v33, %v224_v32  ;;  %v229_v41 = vld [vmem:[%s16114_s4 + $0x30] sm:$0xff]  ;;  %v12955_v42 = vpack.c.bf16 %v225_v38, %v223_v37  ;;  %v232_v50 = vld [vmem:[%s16114_s4 + $0x48] sm:$0xff] }
 0x110   :  { %v12947_v39 = vpack.c.bf16 %v230_v35, %v228_v34  ;;  %v12964_v45 = vpack.c.bf16 %v229_v41, %v227_v40  ;;  %v234_v53 = vld [vmem:[%s16114_s4 + $0x58] sm:$0xff]  ;;  %v11624_v57 = vld [vmem:[%s16113_s18 + $0x100] sm:$0xff]   ;;  %v233_v60 = vld [vmem:[%s16114_s4 + $0x50] sm:$0xff] }
 0x111   :  { %9099 = vmatpush3.bf16.msra.mxu0 %v11605_v14  ;;  %v12958_v43 = vshrl.u32 %v12939_v36, 16  ;;  %v12961_v44 = vshll.u32 %v12939_v36, 16  ;;  %799 = vmatprep.mubr.bf16.mxu1 %v12939_v36  ;;  %v12973_v48 = vshrl.u32 %v12955_v42, 16  ;;  %v12976_v49 = vshll.u32 %v12955_v42, 16  ;;  %v231_v59 = vld [vmem:[%s16114_s4 + $0x40] sm:$0xff]  ;;  %v11625_v1 = vld [vmem:[%s16113_s18 + $0x148] sm:$0xff]  }
 0x112   :  { %9163 = vmatpush3.bf16.msra.mxu1 %v11606_v15  ;;  %9100 = vmatprep.subr.bf16.mxu0 %v11607_v16  ;;  %v12970_v47 = vshll.u32 %v12947_v39, 16  ;;  %v12984_v52 = vshll.u32 %v12964_v45, 16  ;;  %v12990_v54 = vshrl.u32 %v12947_v39, 16  ;;  %v12998_v58 = vpack.c.bf16 %v234_v53, %v232_v50  ;;  %v236_v5 = vld [vmem:[%s16114_s4 + $0x68] sm:$0xff]  ;;  %v238_v8 = vld [vmem:[%s16114_s4 + $0x78] sm:$0xff]  ;;  %v235_v10 = vld [vmem:[%s16114_s4 + $0x60] sm:$0xff] }
 0x113   :  { %9164 = vmatprep.subr.bf16.mxu1 %v11608_v17  ;;  %16115 = vst [vmem:[#allocation31_spill] sm:$0xff] %v12976_v49  ;;  %v354_v51 = vrot.slane %v12961_v44, 1  ;;  %v342_v56 = vrot.slane %v12976_v49, 1  ;;  %v13007_v61 = vshrl.u32 %v12964_v45, 16  ;;  %v13011_v0 = vpack.c.bf16 %v233_v60, %v231_v59  ;;  %v237_v11 = vld [vmem:[%s16114_s4 + $0x70] sm:$0xff]  ;;  %v11629_v33 = vld [vmem:[%s16113_s18 + $0x158] sm:$0xff]  }
 0x114   :  { %16116 = vst [vmem:[#allocation32_spill] sm:$0xff] %v12984_v52  ;;  %v359_v55 = vrot.slane %v12970_v47, 1  ;;  %v347_v63 = vrot.slane %v12984_v52, 1  ;;  %v13019_v4 = vshll.u32 %v12998_v58, 16  ;;  %v13032_v9 = vshrl.u32 %v12998_v58, 16  ;;  %v241_v32 = vld [vmem:[%s16114_s4 + $0x90] sm:$0xff] }
 0x115   :  { %9101 = vmatpush3.bf16.msra.mxu0 %v11609_v18  ;;  %16117 = vst [vmem:[#allocation33_spill] sm:$0xff] %v13007_v61  ;;  %v355_v62 = vor.u32 %v354_v51, %v12958_v43  ;;  %v343_v2 = vor.u32 %v342_v56, %v12973_v48  ;;  %v13026_v7 = vshll.u32 %v13011_v0, 16  ;;  %v13042_v14 = vpack.c.bf16 %v238_v8, %v236_v5  ;;  %v11626_v18 = vld [vmem:[%s16113_s18 + $0x108] sm:$0xff]   ;;  %v246_v40 = vld [vmem:[%s16114_s4 + $0xb8] sm:$0xff]  ;;  %v11631_v41 = vld [vmem:[%s16113_s18 + $0x1c0] sm:$0xff]  }
 0x116   :  { %9165 = vmatpush3.bf16.msra.mxu1 %v11610_v19  ;;  %9102 = vmatprep.subr.bf16.mxu0 %v11611_v20  ;;  %v371_v3 = vor.u32 %v12990_v54, %v359_v55  ;;  %16118 = vst [vmem:[#allocation34_spill] sm:$0xff] %v13019_v4  ;;  %16119 = vst [vmem:[#allocation35_spill] sm:$0xff] %v13032_v9  ;;  %v375_v13 = vrot.slane %v13019_v4, 1  ;;  %v363_v15 = vor.u32 %v13007_v61, %v347_v63  ;;  %v244_v38 = vld [vmem:[%s16114_s4 + $0xa8] sm:$0xff] }
 0x117   :  { %9166 = vmatprep.subr.bf16.mxu1 %v11612_v21  ;;  %v360_v6 = vsel %vm336_vm0, %v355_v62, %v359_v55  ;;  %v348_v12 = vsel %vm336_vm0, %v343_v2, %v347_v63  ;;  %v367_v17 = vrot.slane %v13026_v7, 1  ;;  %v13052_v19 = vshll.u32 %v13042_v14, 16  ;;  %v240_v21 = vld [vmem:[%s16114_s4 + $0x88] sm:$0xff]  ;;  %v11630_v55 = vld [vmem:[%s16113_s18 + $0x118] sm:$0xff]   ;;  %v243_v62 = vld [vmem:[%s16114_s4 + $0xa0] sm:$0xff] }
 0x118   :  { %607 = vmatprep.mubr.bf16.mxu0 %v360_v6  ;;  %v376_v16 = vsel %vm336_vm0, %v371_v3, %v375_v13  ;;  %v13054_v20 = vpack.c.bf16 %v237_v11, %v235_v10  ;;  %v13091_v35 = vshrl.u32 %v13042_v14, 16  ;;  %v13119_v59 = vpack.c.bf16 %v246_v40, %v244_v38  ;;  %v11635_v60 = vld [vmem:[%s16113_s18 + $0x1c8] sm:$0xff]   ;;  %v245_v63 = vld [vmem:[%s16114_s4 + $0xb0] sm:$0xff]  ;;  %v11634_v2 = vld [vmem:[%s16113_s18 + $0x120] sm:$0xff]  }
 0x119   :  { %9103 = vmatpush3.bf16.msra.mxu0 %v11613_v22  ;;  %v242_v22 = vld [vmem:[%s16114_s4 + $0x98] sm:$0xff]  ;;  %v248_v10 = vld [vmem:[%s16114_s4 + $0xc8] sm:$0xff] }
 0x11a   :  { %9167 = vmatpush3.bf16.msra.mxu1 %v11614_v23  ;;  %9104 = vmatprep.subr.bf16.mxu0 %v11615_v24  ;;  %v387_v23 = vor.u32 %v13032_v9, %v375_v13  ;;  %v11627_v24 = vld [vmem:[%s16113_s18 + $0x150] sm:$0xff]   ;;  %v13138_v5 = vshrl.u32 %v13054_v20, 16  ;;  %v250_v11 = vld [vmem:[%s16114_s4 + $0xd8] sm:$0xff]  ;;  %v13199_v40 = vld [vmem:[%s16114_s4 + $0xe8] sm:$0xff] }
 0x11b   :  { %9168 = vmatprep.subr.bf16.mxu1 %v11616_v25  ;;  %v13066_v25 = vpack.c.bf16 %v242_v22, %v240_v21  ;;  %v11639_v21 = vld [vmem:[%s16113_s18 + $0x190] sm:$0xff]   ;;  %16124 = vst [vmem:[#allocation40_spill] sm:$0xff] %v13199_v40 }
 0x11d   :  { %9105 = vmatpush3.bf16.msra.mxu0 %v11617_v26  ;;  %16120 = vst [vmem:[#allocation36_spill] sm:$0xff] %v13066_v25  ;;  %v391_v26 = vrot.slane %v13052_v19, 1  ;;  %v13094_v37 = vshll.u32 %v13066_v25, 16  ;;  %v13144_v8 = vshrl.u32 %v13066_v25, 16 }
 0x11e   :  { %9169 = vmatpush3.bf16.msra.mxu1 %v11618_v27  ;;  %9106 = vmatprep.subr.bf16.mxu0 %v11619_v28  ;;  %v11628_v27 = vld [vmem:[%s16113_s18 + $0x110] sm:$0xff]   ;;  %v368_v28 = vsel %vm336_vm0, %v363_v15, %v367_v17  ;;  %v13157_v15 = vshll.u32 %v13119_v59, 16 }
 0x11f   :  { %9170 = vmatprep.subr.bf16.mxu1 %v11620_v29  ;;  %v13075_v29 = vshrl.u32 %v13011_v0, 16  ;;  %v392_v34 = vsel %vm336_vm0, %v387_v23, %v391_v26  ;;  %16122 = vst [vmem:[#allocation38_spill] sm:$0xff] %v13094_v37  ;;  %v403_v56 = vor.u32 %v13091_v35, %v391_v26 }
 0x121   :  { %9107 = vmatpush3.bf16.msra.mxu0 %v11621_v30  ;;  %16121 = vst [vmem:[#allocation37_spill] sm:$0xff] %v13075_v29  ;;  %v13078_v30 = vshll.u32 %v13054_v20, 16  ;;  %v379_v50 = vor.u32 %v13075_v29, %v367_v17  ;;  %v11638_v17 = vld [vmem:[%s16113_s18 + $0x168] sm:$0xff]  }
 0x122   :  { %9171 = vmatpush3.bf16.msra.mxu1 %v11622_v31  ;;  %9220 = vmatprep.subr.bf16.mxu0 %v11623_v46  ;;  %v239_v31 = vld [vmem:[%s16114_s4 + $0x80] sm:$0xff] }
 0x123   :  { %v11633_v46 = vld [vmem:[%s16113_s18 + $0x180] sm:$0xff]   ;;  %v383_v51 = vrot.slane %v13078_v30, 1  ;;  %v13111_v53 = vpack.c.bf16 %v241_v32, %v239_v31  ;;  %9284 = vmatprep.subr.bf16.mxu1 %v11631_v41  ;;  %v11641_v32 = vld [vmem:[%s16113_s18 + $0x1d8] sm:$0xff]  }
 0x124   :  { %608 = vmatmul.mubr.bf16.vlgmr.msra.gmra.mrb[0].mxu0 %v348_v12  ;;  %v11636_v12 = vld [vmem:[%s16113_s18 + $0x188] sm:$0xff]   ;;  %v247_v31 = vld [vmem:[%s16114_s4 + $0xc0] sm:$0xff]  ;;  %v11642_v41 = vld [vmem:[%s16113_s18 + $0x198] sm:$0xff]  }
 0x125   :  { %800 = vmatmul.mubr.bf16.vlgmr.msra.gmra.mrb[0].mxu1 %v12955_v42  ;;  %9221 = vmatpush3.bf16.msra.mxu0 %v11624_v57  ;;  %v407_v57 = vrot.slane %v13094_v37, 1  ;;  %v384_v3 = vsel %vm336_vm0, %v379_v50, %v383_v51  ;;  %v13141_v6 = vshll.u32 %v13111_v53, 16  ;;  %v395_v22 = vor.u32 %v13138_v5, %v383_v51  ;;  %v11643_v51 = vld [vmem:[%s16113_s18 + $0x1e0] sm:$0xff]  }
 0x126   :  { %807 = vmatprep.mubr.bf16.mxu1 %v12947_v39  ;;  %615 = vmatprep.mubr.bf16.mxu0 %v376_v16  ;;  %v11637_v16 = vld [vmem:[%s16113_s18 + $0x1d0] sm:$0xff]   ;;  %v13206_v50 = vshrl.u32 %v13119_v59, 16 }
 0x127   :  { %9222 = vmatprep.subr.bf16.mxu0 %v11625_v1  ;;  %v11632_v1 = vld [vmem:[%s16113_s18 + $0x160] sm:$0xff]   ;;  %9285 = vmatpush3.bf16.msra.mxu1 %v11633_v46  ;;  %v408_v13 = vsel %vm336_vm0, %v403_v56, %v407_v57  ;;  %v399_v23 = vrot.slane %v13141_v6, 1  ;;  %v419_v26 = vor.u32 %v13144_v8, %v407_v57  ;;  %v11644_v57 = vld [vmem:[%s16113_s18 + $0x170] sm:$0xff]  }
 0x128   :  { %9286 = vmatprep.subr.bf16.mxu1 %v11635_v60 }
 0x129   :  { %9223 = vmatpush3.bf16.msra.mxu0 %v11626_v18  ;;  %v13165_v18 = vpack.c.bf16 %v245_v63, %v243_v62  ;;  %v400_v46 = vsel %vm336_vm0, %v395_v22, %v399_v23  ;;  %v11645_v62 = vld [vmem:[%s16113_s18 + $0x1a0] sm:$0xff]   ;;  %v13225_v63 = vpack.c.bf16 %v13199_v40, %v13199_v40 }
 0x12a   :  { %9224 = vmatprep.subr.bf16.mxu0 %v11627_v24  ;;  %v11640_v24 = vld [vmem:[%s16113_s18 + $0x128] sm:$0xff]  }
 0x12b   :  { %9287 = vmatpush3.bf16.msra.mxu1 %v11636_v12  ;;  %v13194_v38 = vshll.u32 %v13165_v18, 16  ;;  %v16065_v22 = vshll.u32 %v13225_v63, 16 }
 0x12c   :  { %616 = vmatmul.mubr.bf16.gmra.mrb[4].mxu0 %v368_v28  ;;  %v13179_v28 = vpack.c.bf16 %v250_v11, %v248_v10  ;;  %9288 = vmatprep.subr.bf16.mxu1 %v11637_v16  ;;  %v11647_v10 = vld [vmem:[%s16113_s18 + $0x1e8] sm:$0xff]  }
 0x12d   :  { %808 = vmatmul.mubr.bf16.gmra.mrb[4].mxu1 %v12964_v45  ;;  %623 = vmatprep.mubr.bf16.mxu0 %v392_v34  ;;  %v13191_v34 = vshrl.u32 %v13111_v53, 16 }
 0x12e   :  { %815 = vmatprep.mubr.bf16.mxu1 %v12998_v58  ;;  %9225 = vmatpush3.bf16.msra.mxu0 %v11628_v27  ;;  %v423_v27 = vrot.slane %v13157_v15, 1  ;;  %v13213_v56 = vshll.u32 %v13179_v28, 16 }
 0x12f   :  { %9226 = vmatprep.subr.bf16.mxu0 %v11629_v33  ;;  %v249_v33 = vld [vmem:[%s16114_s4 + $0xd0] sm:$0xff]  ;;  %16123 = vst [vmem:[#allocation39_spill] sm:$0xff] %v13191_v34  ;;  %9289 = vmatpush3.bf16.msra.mxu1 %v11639_v21  ;;  %v11650_v21 = vld [vmem:[%s16113_s18 + $0x178] sm:$0xff]  }
 0x130   :  { %9290 = vmatprep.subr.bf16.mxu1 %v11641_v32  ;;  %v13218_v60 = vpack.c.bf16 %v249_v33, %v247_v31  ;;  %v435_v11 = vor.u32 %v13206_v50, %v423_v27  ;;  %v439_v12 = vrot.slane %v13213_v56, 1  ;;  %v11649_v31 = vld [vmem:[%s16113_s18 + $0x1f0] sm:$0xff]   ;;  %v11652_v32 = vld [vmem:[%s16113_s18 + $0x138] sm:$0xff]  }
 0x132   :  { %9227 = vmatpush3.bf16.msra.mxu0 %v11630_v55  ;;  %v424_v55 = vsel %vm336_vm0, %v419_v26, %v423_v27  ;;  %v13243_v16 = vshll.u32 %v13218_v60, 16  ;;  %v440_v26 = vsel %vm336_vm0, %v435_v11, %v439_v12  ;;  %v13260_v27 = vshrl.u32 %v13179_v28, 16 }
 0x133   :  { %9228 = vmatprep.subr.bf16.mxu0 %v11632_v1  ;;  %9291 = vmatpush3.bf16.msra.mxu1 %v11642_v41  ;;  %v11646_v1 = vld [vmem:[%s16113_s18 + $0x130] sm:$0xff]  }
 0x134   :  { %624 = vmatmul.mubr.bf16.gmra.mrb[8].mxu0 %v384_v3  ;;  %v415_v3 = vrot.slane %v13194_v38, 1  ;;  %9292 = vmatprep.subr.bf16.mxu1 %v11643_v51  ;;  %v11651_v41 = vld [vmem:[%s16113_s18 + $0x1b0] sm:$0xff]   ;;  %v431_v51 = vrot.slane %v13243_v16, 1 }
 0x135   :  { %816 = vmatmul.mubr.bf16.gmra.mrb[8].mxu1 %v13011_v0  ;;  %631 = vmatprep.mubr.bf16.mxu0 %v408_v13  ;;  %v13240_v13 = vshrl.u32 %v13165_v18, 16 }
 0x136   :  { %823 = vmatprep.mubr.bf16.mxu1 %v13042_v14  ;;  %9229 = vmatpush3.bf16.msra.mxu0 %v11634_v2  ;;  %v411_v2 = vor.u32 %v13191_v34, %v399_v23  ;;  %v11648_v23 = vld [vmem:[%s16113_s18 + $0x1a8] sm:$0xff]  }
 0x137   :  { %9230 = vmatprep.subr.bf16.mxu0 %v11638_v17  ;;  %v13248_v17 = vld [vmem:[%s16114_s4 + $0xe0] sm:$0xff]  ;;  %9293 = vmatpush3.bf16.msra.mxu1 %v11645_v62 }
 0x138   :  { %16125 = vst [vmem:[#allocation41_spill] sm:$0xff] %v13248_v17  ;;  %9294 = vmatprep.subr.bf16.mxu1 %v11647_v10  ;;  %v13270_v33 = vpack.c.bf16 %v13248_v17, %v13248_v17  ;;  %v11655_v62 = vld [vmem:[%s16113_s18 + $0x240] sm:$0xff]   ;;  %v11654_v10 = vld [vmem:[%s16113_s18 + $0x1b8] sm:$0xff]   ;;  %v1219_v17 = vrot.slane %v13019_v4, 2 }
 0x13a   :  { %9231 = vmatpush3.bf16.msra.mxu0 %v11640_v24  ;;  %v416_v24 = vsel %vm336_vm0, %v411_v2, %v415_v3  ;;  %v13289_v2 = vshrl.u32 %v13218_v60, 16 }
 0x13b   :  { %9232 = vmatprep.subr.bf16.mxu0 %v11644_v57  ;;  %9295 = vmatpush3.bf16.msra.mxu1 %v11648_v23  ;;  %v11653_v57 = vld [vmem:[%s16113_s18 + $0x1f8] sm:$0xff]   ;;  %v1208_v23 = vrot.slane %v12961_v44, 2 }
 0x13c   :  { %632 = vmatmul.mubr.bf16.gmra.mrb[12].mxu0 %v400_v46  ;;  %v427_v46 = vor.u32 %v13240_v13, %v415_v3  ;;  %9296 = vmatprep.subr.bf16.mxu1 %v11649_v31  ;;  %v16064_v3 = vshll.u32 %v13270_v33, 16  ;;  %v443_v31 = vor.u32 %v13289_v2, %v431_v51 }
 0x13d   :  { %824 = vmatmul.mubr.bf16.gmra.mrb[12].mxu1 %v13054_v20  ;;  %639 = vmatprep.mubr.bf16.mxu0 %v424_v55  ;;  %v455_v55 = vrot.slane %v16065_v22, 1  ;;  %v1218_v22 = vrot.slane %v13032_v9, 1 }
 0x13e   :  { %831 = vmatprep.mubr.bf16.mxu1 %v13066_v25  ;;  %9233 = vmatpush3.bf16.msra.mxu0 %v11646_v1  ;;  %v451_v1 = vor.u32 %v13260_v27, %v439_v12  ;;  %v432_v11 = vsel %vm336_vm0, %v427_v46, %v431_v51  ;;  %v11663_v46 = vld [vmem:[%s16113_s18 + $0x2c0] sm:$0xff]  }
 0x13f   :  { %9234 = vmatprep.subr.bf16.mxu0 %v11650_v21  ;;  %9297 = vmatpush3.bf16.msra.mxu1 %v11651_v41  ;;  %v1207_v21 = vrot.slane %v12958_v43, 1  ;;  %v460_v41 = vshrl.u32 %v13225_v63, 16  ;;  %v1220_v9 = vor.u32 %v1219_v17, %v1218_v22  ;;  %v1226_v22 = vrot.slane %v13091_v35, 1 }
 0x140   :  { %9298 = vmatprep.subr.bf16.mxu1 %v11653_v57  ;;  %v456_v12 = vsel %vm336_vm0, %v451_v1, %v455_v55 }
 0x141   :  { %v1209_v57 = vor.u32 %v1208_v23, %v1207_v21  ;;  %v462_v1 = vor.u32 %v460_v41, %v455_v55  ;;  %v457_v21 = vshrl.u32 %v13270_v33, 16  ;;  %v916_v23 = vrot.slane %v12939_v36, 1 }
 0x142   :  { %9235 = vmatpush3.bf16.msra.mxu0 %v11652_v32  ;;  %v447_v32 = vrot.slane %v16064_v3, 1  ;;  %v1204_v3 = vrot.slane %v12984_v52, 2  ;;  %v917_v55 = vrot.slane %v12947_v39, 1 }
 0x143   :  { %9348 = vmatprep.subr.bf16.mxu0 %v11655_v62  ;;  %9299 = vmatpush3.bf16.msra.mxu1 %v11654_v10  ;;  %v1201_v10 = vrot.slane %v12976_v49, 2  ;;  %v1215_v49 = vrot.slane %v13026_v7, 2 }
 0x144   :  { %640 = vmatmul.mubr.bf16.gmra.mrb[16].mxu0 %v416_v24  ;;  %v1210_v24 = vrot.slane %v12990_v54, 1  ;;  %9412 = vmatprep.subr.bf16.mxu1 %v11663_v46  ;;  %v448_v51 = vsel %vm336_vm0, %v443_v31, %v447_v32  ;;  %v914_v31 = vrot.slane %v12964_v45, 1  ;;  %v459_v52 = vor.u32 %v457_v21, %v447_v32  ;;  %v11667_v32 = vld [vmem:[%s16113_s18 + $0x2c8] sm:$0xff]  }
 0x145   :  { %832 = vmatmul.mubr.bf16.gmra.mrb[16].mxu1 %v13111_v53  ;;  %647 = vmatprep.mubr.bf16.mxu0 %v440_v26  ;;  %v1211_v26 = vrot.slane %v12970_v47, 2 }
 0x146   :  { %839 = vmatprep.mubr.bf16.mxu1 %v13119_v59 }
 0x147   :  { %v1212_v62 = vor.u32 %v1211_v26, %v1210_v24  ;;  %v913_v24 = vrot.slane %v12955_v42, 1  ;;  %v13323_v26 = vrot.slane %v460_v41, 1 }
 0x149   :  { %v1213_v40 = vsel %vm1199_vm2, %v1209_v57, %v1212_v62  ;;  %16126 = vst [vmem:[#allocation42_spill] sm:$0xff] %v13323_v26  ;;  %v13326_v57 = vrot.slane %v457_v21, 1  ;;  %v918_v26 = vsel %vm912_vm1, %v916_v23, %v917_v55  ;;  %v1221_v17 = vsel %vm1199_vm2, %v1212_v62, %v1220_v9  ;;  %v11658_v23 = vld [vmem:[%s16113_s18 + $0x208] sm:$0xff]  }
 0x14a   :  { %v1223_v21 = vrot.slane %v13078_v30, 2  ;;  %v1235_v62 = vrot.slane %v13094_v37, 2 }
 0x14c   :  { %648 = vmatmul.mubr.bf16.gmra.mrb[20].mxu0 %v432_v11  ;;  %v1200_v11 = vrot.slane %v12973_v48, 1 }
 0x14d   :  { %840 = vmatmul.mubr.bf16.gmra.mrb[20].mxu1 %v13165_v18  ;;  %655 = vmatprep.mubr.bf16.mxu0 %v456_v12  ;;  %v1203_v12 = vrot.slane %v13007_v61, 1  ;;  %v1214_v61 = vrot.slane %v13075_v29, 1  ;;  %v16145_v29 = vrot.slane %v13194_v38, 2 }
 0x14e   :  { %847 = vmatprep.mubr.bf16.mxu1 %v13179_v28  ;;  %v1202_v46 = vor.u32 %v1201_v10, %v1200_v11  ;;  %v11665_v11 = vld [vmem:[%s16113_s18 + $0x280] sm:$0xff]   ;;  %v1227_v10 = vrot.slane %v13052_v19, 2 }
 0x14f   :  { %v1205_v4 = vor.u32 %v1204_v3, %v1203_v12  ;;  %v1222_v12 = vrot.slane %v13138_v5, 1  ;;  %v1216_v3 = vor.u32 %v1215_v49, %v1214_v61  ;;  %v915_v49 = vsel %vm912_vm1, %v913_v24, %v914_v31 }
 0x150   :  { %v1243_v24 = vrot.slane %v13157_v15, 2 }
 0x151   :  { %v1224_v61 = vor.u32 %v1223_v21, %v1222_v12  ;;  %v11675_v12 = vld [vmem:[%s16113_s18 + $0x2e0] sm:$0xff]   ;;  %v16127_v21 = vrot.slane %v13011_v0, 1 }
 0x154   :  { %656 = vmatmul.mubr.bf16.gmra.mrb[24].mxu0 %v448_v51  ;;  %v16078_v51 = vrot.slane %v12998_v58, 1 }
 0x155   :  { %848 = vmatmul.mubr.bf16.gmra.mrb[24].mxu1 %v13218_v60  ;;  %663 = vmatprep.mubr.bf16.mxu0 %v462_v1  ;;  %v11673_v1 = vld [vmem:[%s16113_s18 + $0x2d8] sm:$0xff]  }
 0x156   :  { %855 = vmatprep.mubr.bf16.mxu1 %v13225_v63  ;;  %v922_v41 = vsel %vm912_vm1, %v917_v55, %v16078_v51 }
 0x15c   :  { %664 = vmatmul.mubr.bf16.gmra.mrb[28].mxu0 %v459_v52  ;;  %v11656_v52 = vld [vmem:[%s16113_s18 + $0x200] sm:$0xff]  }
 0x15d   :  { %856 = vmatmul.mubr.bf16.gmra.mrb[28].mxu1 %v13270_v33  ;;  %1087 = vmatprep.mubr.bf16.mxu0 %v918_v26  ;;  %v1234_v26 = vrot.slane %v13144_v8, 1 }
 0x15e   :  { %1406 = vmatprep.mubr.bf16.mxu1 %v1213_v40  ;;  %v1206_v40 = vsel %vm1199_vm2, %v1202_v46, %v1205_v4  ;;  %v11668_v46 = vld [vmem:[%s16113_s18 + $0x288] sm:$0xff]  }
 0x164   :  { %1088 = vmatmul.mubr.bf16.vlgmr.msra.gmra.mrb[32].mxu0 %v915_v49 }
 0x165   :  { %1407 = vmatmul.mubr.bf16.vlgmr.msra.gmra.mrb[32].mxu1 %v1206_v40  ;;  %v11669_v40 = vld [vmem:[%s16113_s18 + $0x2d0] sm:$0xff]   ;;  %9349 = vmatpush3.bf16.msra.mxu0 %v11656_v52  ;;  %v13401_v52 = vor.u32 %v1235_v62, %v1234_v26  ;;  %v16133_v26 = vrot.slane %v13141_v6, 2 }
 0x166   :  { %1414 = vmatprep.mubr.bf16.mxu1 %v1221_v17  ;;  %9413 = vmatpush3.bf16.msra.mxu1 %v11665_v11  ;;  %v11657_v11 = vld [vmem:[%s16113_s18 + $0x248] sm:$0xff]   ;;  %v1228_v17 = vor.u32 %v1227_v10, %v1226_v22  ;;  %v1217_v10 = vsel %vm1199_vm2, %v1205_v4, %v1216_v3  ;;  %v11660_v4 = vld [vmem:[%s16113_s18 + $0x210] sm:$0xff]   ;;  %v11677_v22 = vld [vmem:[%s16113_s18 + $0x2a0] sm:$0xff]  }
 0x167   :  { %9414 = vmatprep.subr.bf16.mxu1 %v11667_v32  ;;  %v11671_v32 = vld [vmem:[%s16113_s18 + $0x290] sm:$0xff]   ;;  %1095 = vmatprep.mubr.bf16.mxu0 %v922_v41  ;;  %v11674_v41 = vld [vmem:[%s16113_s18 + $0x298] sm:$0xff]  }
 0x168   :  { %v1229_v55 = vsel %vm1199_vm2, %v1220_v9, %v1228_v17  ;;  %9350 = vmatprep.subr.bf16.mxu0 %v11657_v11  ;;  %v11661_v9 = vld [vmem:[%s16113_s18 + $0x258] sm:$0xff]  }
 0x169   :  { %9351 = vmatpush3.bf16.msra.mxu0 %v11658_v23 }
 0x16a   :  { %9415 = vmatpush3.bf16.msra.mxu1 %v11668_v46  ;;  %v11659_v46 = vld [vmem:[%s16113_s18 + $0x250] sm:$0xff]  }
 0x16b   :  { %9416 = vmatprep.subr.bf16.mxu1 %v11669_v40  ;;  %9352 = vmatprep.subr.bf16.mxu0 %v11659_v46  ;;  %v11662_v46 = vld [vmem:[%s16113_s18 + $0x218] sm:$0xff]   ;;  %v16138_v40 = vrot.slane %v13054_v20, 1 }
 0x16d   :  { %1415 = vmatmul.mubr.bf16.gmra.mrb[36].mxu1 %v1217_v10  ;;  %v920_v10 = vsel %vm912_vm1, %v914_v31, %v16127_v21  ;;  %v16130_v31 = vshll.u32 %v13225_v63, 16  ;;  %v16131_v21 = vshll.u32 %v13270_v33, 16  ;;  %9353 = vmatpush3.bf16.msra.mxu0 %v11660_v4  ;;  %v11681_v4 = vld [vmem:[%s16113_s18 + $0x2f0] sm:$0xff]  }
 0x16e   :  { %1422 = vmatprep.mubr.bf16.mxu1 %v1229_v55  ;;  %9417 = vmatpush3.bf16.msra.mxu1 %v11671_v32  ;;  %v16128_v32 = vrot.slane %v13042_v14, 1  ;;  %v16129_v55 = vrot.slane %v12998_v58, 1 }
 0x16f   :  { %9418 = vmatprep.subr.bf16.mxu1 %v11673_v1  ;;  %v13425_v23 = vrot.slane %v16130_v31, 2  ;;  %v13429_v11 = vrot.slane %v16131_v21, 2  ;;  %1096 = vmatmul.mubr.bf16.gmra.mrb[36].mxu0 %v920_v10  ;;  %v1237_v21 = vsel %vm1199_vm2, %v1228_v17, %v13401_v52  ;;  %v11680_v10 = vld [vmem:[%s16113_s18 + $0x2a8] sm:$0xff]   ;;  %v16136_v1 = vld [vmem:[#allocation33_spill] sm:$0xff]  ;;  %v16141_v17 = vrot.slane %v13066_v25, 1 }
 0x170   :  { %v926_v62 = vsel %vm912_vm1, %v16129_v55, %v16128_v32  ;;  %v1225_v55 = vsel %vm1199_vm2, %v1216_v3, %v1224_v61  ;;  %v11664_v32 = vld [vmem:[%s16113_s18 + $0x260] sm:$0xff]   ;;  %v11679_v3 = vld [vmem:[%s16113_s18 + $0x2e8] sm:$0xff]   ;;  %9354 = vmatprep.subr.bf16.mxu0 %v11661_v9  ;;  %v11683_v9 = vld [vmem:[%s16113_s18 + $0x2b0] sm:$0xff]  }
 0x171   :  { %1103 = vmatprep.mubr.bf16.mxu0 %v926_v62  ;;  %9355 = vmatpush3.bf16.msra.mxu0 %v11662_v46  ;;  %v11672_v62 = vld [vmem:[%s16113_s18 + $0x228] sm:$0xff]  }
 0x172   :  { %9419 = vmatpush3.bf16.msra.mxu1 %v11674_v41  ;;  %v16134_v41 = vrot.slane %v13206_v50, 1  ;;  %9356 = vmatprep.subr.bf16.mxu0 %v11664_v32  ;;  %v1849_v32 = vrot.slane %v13194_v38, 3  ;;  %v1857_v38 = vrot.slane %v13243_v16, 3 }
 0x173   :  { %9420 = vmatprep.subr.bf16.mxu1 %v11675_v12  ;;  %v16132_v12 = vrot.slane %v13191_v34, 1  ;;  %v16152_v34 = vld [vmem:[#allocation40_spill] sm:$0xff] }
 0x174   :  { %v13467_v31 = vor.u32 %v1243_v24, %v16134_v41  ;;  %v16142_v41 = vrot.slane %v13042_v14, 1 }
 0x175   :  { %1423 = vmatmul.mubr.bf16.gmra.mrb[40].mxu1 %v1225_v55  ;;  %v13459_v51 = vor.u32 %v16133_v26, %v16132_v12  ;;  %v11666_v55 = vld [vmem:[%s16113_s18 + $0x220] sm:$0xff]   ;;  %v11670_v12 = vld [vmem:[%s16113_s18 + $0x268] sm:$0xff]  }
 0x176   :  { %1430 = vmatprep.mubr.bf16.mxu1 %v1237_v21  ;;  %9421 = vmatpush3.bf16.msra.mxu1 %v11677_v22  ;;  %v16139_v22 = vrot.slane %v13011_v0, 1  ;;  %v16140_v21 = vld [vmem:[#allocation35_spill] sm:$0xff]  ;;  %v930_v49 = vsel %vm912_vm1, %v16142_v41, %v16141_v17  ;;  %v16151_v41 = vrot.slane %v13213_v56, 2 }
 0x177   :  { %9422 = vmatprep.subr.bf16.mxu1 %v11679_v3  ;;  %v1233_v24 = vsel %vm1199_vm2, %v1224_v61, %v13459_v51  ;;  %v16144_v3 = vrot.slane %v13240_v13, 1  ;;  %9357 = vmatpush3.bf16.msra.mxu0 %v11666_v55  ;;  %v1856_v55 = vrot.slane %v13289_v2, 2 }
 0x178   :  { %v924_v26 = vsel %vm912_vm1, %v16139_v22, %v16138_v40  ;;  %v11685_v40 = vld [vmem:[%s16113_s18 + $0x2f8] sm:$0xff]   ;;  %v1245_v22 = vsel %vm1199_vm2, %v13401_v52, %v13467_v31  ;;  %9358 = vmatprep.subr.bf16.mxu0 %v11670_v12 }
 0x179   :  { %1104 = vmatmul.mubr.bf16.gmra.mrb[40].mxu0 %v924_v26  ;;  %v13517_v46 = vor.u32 %v16145_v29, %v16144_v3  ;;  %v11686_v52 = vld [vmem:[%s16113_s18 + $0x2b8] sm:$0xff]   ;;  %v1848_v3 = vrot.slane %v13240_v13, 2  ;;  %v11678_v26 = vld [vmem:[%s16113_s18 + $0x230] sm:$0xff]   ;;  %v16150_v13 = vrot.slane %v13260_v27, 1 }
 0x17a   :  { %9423 = vmatpush3.bf16.msra.mxu1 %v11680_v10  ;;  %v11676_v10 = vld [vmem:[%s16113_s18 + $0x270] sm:$0xff]   ;;  %1111 = vmatprep.mubr.bf16.mxu0 %v930_v49  ;;  %v254_v12 = vld [vmem:[%s16114_s4 + $0xf8] sm:$0x7]  ;;  %v16149_v49 = vmov %v16141_v17 }
 0x17b   :  { %9424 = vmatprep.subr.bf16.mxu1 %v11681_v4  ;;  %v16147_v4 = vrot.slane %v13054_v20, 1  ;;  %v1252_v61 = vor.u32 %v16151_v41, %v16150_v13  ;;  %v11682_v17 = vld [vmem:[%s16113_s18 + $0x278] sm:$0xff]   ;;  %v13561_v37 = vpack.c.bf16 %v254_v12, %v16152_v34  ;;  %9359 = vmatpush3.bf16.msra.mxu0 %v11672_v62  ;;  %v1858_v41 = vor.u32 %v1857_v38, %v1856_v55 }
 0x17c   :  { %v16154_v13 = vld [vmem:[#allocation41_spill] sm:$0xff]  ;;  %9360 = vmatprep.subr.bf16.mxu0 %v11676_v10  ;;  %v1861_v34 = vrot.slane %v13213_v56, 3  ;;  %v1541_v62 = vrot.slane %v13165_v18, 2 }
 0x17d   :  { %1431 = vmatmul.mubr.bf16.gmra.mrb[44].mxu1 %v1233_v24  ;;  %v16146_v24 = vrot.slane %v13111_v53, 1  ;;  %v1874_v12 = vshrl.u32 %v13561_v37, 16  ;;  %v1877_v25 = vshll.u32 %v13561_v37, 16  ;;  %v1253_v56 = vsel %vm1199_vm2, %v13467_v31, %v1252_v61  ;;  %v11687_v31 = vld [vmem:[%s16113_s18 + $0x340] sm:$0xff]  }
 0x17e   :  { %1438 = vmatprep.mubr.bf16.mxu1 %v1245_v22  ;;  %9425 = vmatpush3.bf16.msra.mxu1 %v11683_v9  ;;  %v16148_v22 = vrot.slane %v13119_v59, 1 }
 0x17f   :  { %v928_v29 = vsel %vm912_vm1, %v16147_v4, %v16146_v24  ;;  %9426 = vmatprep.subr.bf16.mxu1 %v11685_v40  ;;  %v253_v4 = vld [vmem:[%s16114_s4 + $0xf0] sm:$0x7]  ;;  %v13569_v24 = vor.u32 %v1849_v32, %v1848_v3  ;;  %v1860_v40 = vrot.slane %v13260_v27, 2  ;;  %v1543_v3 = vrot.slane %v13119_v59, 2  ;;  %9361 = vmatpush3.bf16.msra.mxu0 %v11678_v26 }
 0x180   :  { %v934_v9 = vsel %vm912_vm1, %v16149_v49, %v16148_v22  ;;  %v1241_v49 = vsel %vm1199_vm2, %v13459_v51, %v13517_v46  ;;  %v13572_v22 = vpack.c.bf16 %v253_v4, %v16154_v13  ;;  %v11684_v51 = vld [vmem:[%s16113_s18 + $0x238] sm:$0xff]   ;;  %v1876_v55 = vrot.slane %v1874_v12, 2  ;;  %9362 = vmatprep.subr.bf16.mxu0 %v11682_v17  ;;  %v16158_v12 = vld [vmem:[#allocation42_spill] sm:$0xff] }
 0x181   :  { %16153 = vst [vmem:[#allocation33_spill] sm:$0xff] %v13569_v24  ;;  %v13584_v32 = vsel %vm1809_vm3, %v13569_v24, %v1858_v41  ;;  %1112 = vmatmul.mubr.bf16.gmra.mrb[44].mxu0 %v928_v29  ;;  %v1879_v38 = vrot.slane %v1877_v25, 3  ;;  %v16157_v4 = vrot.slane %v13243_v16, 2  ;;  %v1852_v29 = vrot.slane %v13206_v50, 2 }
 0x182   :  { %9427 = vmatpush3.bf16.msra.mxu1 %v11686_v52  ;;  %16155 = vst [vmem:[#allocation35_spill] sm:$0xff] %v13584_v32  ;;  %v1865_v10 = vshrl.u32 %v13572_v22, 16  ;;  %v1868_v27 = vshll.u32 %v13572_v22, 16  ;;  %1119 = vmatprep.mubr.bf16.mxu0 %v934_v9  ;;  %v16156_v52 = vrot.slane %v13289_v2, 1  ;;  %v1853_v25 = vrot.slane %v13157_v15, 3 }
 0x183   :  { %v13601_v9 = vor.u32 %v1861_v34, %v1860_v40  ;;  %v13603_v2 = vor.u32 %v1879_v38, %v1876_v55  ;;  %v1547_v16 = vrot.slane %v13179_v28, 2  ;;  %v1545_v26 = vrot.slane %v13218_v60, 2  ;;  %9363 = vmatpush3.bf16.msra.mxu0 %v11684_v51 }
 0x184   :  { %v1248_v13 = vor.u32 %v16157_v4, %v16156_v52  ;;  %v1867_v32 = vrot.slane %v1865_v10, 2  ;;  %v1870_v24 = vrot.slane %v1868_v27, 3  ;;  %v1260_v10 = vor.u32 %v13425_v23, %v16158_v12  ;;  %9476 = vmatprep.subr.bf16.mxu0 %v11687_v31 }
 0x185   :  { %1439 = vmatmul.mubr.bf16.gmra.mrb[48].mxu1 %v1241_v49  ;;  %v1551_v49 = vrot.slane %v13561_v37, 2  ;;  %v1549_v27 = vrot.slane %v13572_v22, 2  ;;  %v13616_v40 = vsel %vm1809_vm3, %v13601_v9, %v13603_v2  ;;  %v16159_v34 = vrot.slane %v13165_v18, 1 }
 0x186   :  { %1446 = vmatprep.mubr.bf16.mxu1 %v1253_v56  ;;  %v13608_v17 = vor.u32 %v1870_v24, %v1867_v32  ;;  %v16160_v56 = vrot.slane %v13111_v53, 1  ;;  %v16161_v23 = vrot.slane %v13179_v28, 1  ;;  %v16162_v32 = vrot.slane %v13119_v59, 1 }
 0x187   :  { %v2142_v52 = vrot.slane %v12939_v36, 3  ;;  %v2143_v4 = vrot.slane %v12947_v39, 3  ;;  %v1249_v51 = vsel %vm1199_vm2, %v13517_v46, %v1248_v13  ;;  %v1256_v31 = vor.u32 %v13429_v11, %v13326_v57 }
 0x188   :  { %v932_v55 = vsel %vm912_vm1, %v16160_v56, %v16159_v34  ;;  %v13625_v24 = vsel %vm1809_vm3, %v1858_v41, %v13608_v17  ;;  %v938_v38 = vsel %vm912_vm1, %v16162_v32, %v16161_v23  ;;  %v2140_v34 = vrot.slane %v12964_v45, 3 }
 0x189   :  { %1120 = vmatmul.mubr.bf16.gmra.mrb[48].mxu0 %v932_v55  ;;  %v1261_v41 = vsel %vm1199_vm2, %v1252_v61, %v1260_v10  ;;  %v16163_v23 = vrot.slane %v13218_v60, 1  ;;  %v16164_v32 = vrot.slane %v13165_v18, 1  ;;  %v16165_v55 = vrot.slane %v13225_v63, 1 }
 0x18a   :  { %1127 = vmatprep.mubr.bf16.mxu0 %v938_v38  ;;  %v16166_v61 = vrot.slane %v13179_v28, 1  ;;  %v16167_v57 = vrot.slane %v12958_v43, 2  ;;  %v16168_v11 = vrot.slane %v12961_v44, 3  ;;  %v2151_v56 = vrot.slane %v13042_v14, 3 }
 0x18b   :  { %v936_v12 = vsel %vm912_vm1, %v16164_v32, %v16163_v23  ;;  %v16169_v23 = vrot.slane %v12990_v54, 2  ;;  %v16170_v32 = vrot.slane %v12970_v47, 3  ;;  %v16173_v44 = vrot.slane %v13225_v63, 1  ;;  %v16175_v54 = vld [vmem:[#allocation31_spill] sm:$0xff] }
 0x18c   :  { %v942_v38 = vsel %vm912_vm1, %v16166_v61, %v16165_v55  ;;  %v16171_v55 = vrot.slane %v13270_v33, 1  ;;  %v16174_v47 = vrot.slane %v12973_v48, 2  ;;  %v16176_v61 = vrot.slane %v16175_v54, 3 }
 0x18d   :  { %1447 = vmatmul.mubr.bf16.gmra.mrb[52].mxu1 %v1249_v51  ;;  %v1257_v51 = vsel %vm1199_vm2, %v1248_v13, %v1256_v31  ;;  %v1822_v46 = vor.u32 %v16170_v32, %v16169_v23  ;;  %v16172_v13 = vrot.slane %v13218_v60, 1  ;;  %v16180_v32 = vrot.slane %v16140_v21, 2  ;;  %v11688_v21 = vld [vmem:[%s16113_s18 + $0x300] sm:$0xff]  }
 0x18e   :  { %1454 = vmatprep.mubr.bf16.mxu1 %v1261_v41  ;;  %v1819_v41 = vor.u32 %v16168_v11, %v16167_v57  ;;  %v16178_v57 = vld [vmem:[#allocation32_spill] sm:$0xff]  ;;  %v16183_v63 = vrot.slane %v12947_v39, 2  ;;  %v16188_v54 = vrot.slane %v13026_v7, 3 }
 0x18f   :  { %v16179_v11 = vrot.slane %v16178_v57, 3  ;;  %v16191_v57 = vrot.slane %v12964_v45, 2 }
 0x190   :  { %v1823_v43 = vsel %vm1809_vm3, %v1819_v41, %v1822_v46  ;;  %v16194_v7 = vmov %v16183_v63 }
 0x191   :  { %1128 = vmatmul.mubr.bf16.gmra.mrb[52].mxu0 %v936_v12  ;;  %v940_v12 = vsel %vm912_vm1, %v16172_v13, %v16171_v55  ;;  %v16181_v55 = vld [vmem:[#allocation34_spill] sm:$0xff] }
 0x192   :  { %1135 = vmatprep.mubr.bf16.mxu0 %v942_v38  ;;  %v1812_v38 = vor.u32 %v16176_v61, %v16174_v47  ;;  %v16182_v13 = vrot.slane %v16181_v55, 3  ;;  %v16193_v55 = vrot.slane %v12998_v58, 2 }
 0x194   :  { %v1830_v41 = vor.u32 %v16182_v13, %v16180_v32  ;;  %v1532_v13 = vsel %vm1522_vm4, %v16194_v7, %v16193_v55 }
 0x195   :  { %1455 = vmatmul.mubr.bf16.gmra.mrb[56].mxu1 %v1257_v51  ;;  %v16177_v51 = vrot.slane %v16136_v1, 2 }
 0x196   :  { %1462 = vmatprep.mubr.bf16.mxu1 %v1260_v10  ;;  %v2149_v10 = vrot.slane %v13054_v20, 3  ;;  %v1831_v1 = vsel %vm1809_vm3, %v1822_v46, %v1830_v41  ;;  %v16190_v46 = vrot.slane %v13052_v19, 3 }
 0x197   :  { %v1815_v23 = vor.u32 %v16179_v11, %v16177_v51  ;;  %v16192_v11 = vrot.slane %v12955_v42, 2 }
 0x199   :  { %1136 = vmatmul.mubr.bf16.gmra.mrb[56].mxu0 %v940_v12  ;;  %v1816_v48 = vsel %vm1809_vm3, %v1812_v38, %v1815_v23  ;;  %v11689_v38 = vld [vmem:[%s16113_s18 + $0x348] sm:$0xff]   ;;  %v1525_v32 = vsel %vm1522_vm4, %v16192_v11, %v16191_v57 }
 0x19a   :  { %1143 = vmatprep.mubr.bf16.mxu0 %v16173_v44  ;;  %v16186_v44 = vld [vmem:[#allocation37_spill] sm:$0xff] }
 0x19b   :  { %v16187_v47 = vrot.slane %v16186_v44, 2 }
 0x19d   :  { %1463 = vmatmul.mubr.bf16.gmra.mrb[60].mxu1 %v1256_v31  ;;  %v16184_v31 = vrot.slane %v12939_v36, 2  ;;  %v1826_v61 = vor.u32 %v16188_v54, %v16187_v47  ;;  %v16200_v54 = vrot.slane %v13011_v0, 2  ;;  %v16220_v36 = vrot.slane %v13011_v0, 3 }
 0x19e   :  { %2026 = vmatprep.mubr.bf16.mxu1 %v1823_v43  ;;  %v16185_v43 = vrot.slane %v13270_v33, 1  ;;  %v16189_v33 = vrot.slane %v13091_v35, 2  ;;  %v11690_v35 = vld [vmem:[%s16113_s18 + $0x308] sm:$0xff]  }
 0x19f   :  { %v1528_v12 = vsel %vm1522_vm4, %v16184_v31, %v16183_v63  ;;  %v1827_v63 = vsel %vm1809_vm3, %v1815_v23, %v1826_v61  ;;  %v11691_v31 = vld [vmem:[%s16113_s18 + $0x350] sm:$0xff]   ;;  %v16196_v23 = vrot.slane %v13078_v30, 3 }
 0x1a0   :  { %v1838_v51 = vor.u32 %v16190_v46, %v16189_v33  ;;  %v16203_v33 = vmov %v16193_v55  ;;  %v16204_v55 = vld [vmem:[#allocation39_spill] sm:$0xff] }
 0x1a1   :  { %1144 = vmatmul.mubr.bf16.gmra.mrb[60].mxu0 %v16185_v43  ;;  %v11692_v43 = vld [vmem:[%s16113_s18 + $0x310] sm:$0xff]   ;;  %v16205_v7 = vrot.slane %v16204_v55, 2  ;;  %v1552_v55 = vsel %vm1522_vm4, %v1547_v16, %v1551_v49 }
 0x1a2   :  { %1697 = vmatprep.mubr.bf16.mxu0 %v1528_v12  ;;  %v1839_v19 = vsel %vm1809_vm3, %v1830_v41, %v1838_v51  ;;  %v16195_v12 = vrot.slane %v13138_v5, 2  ;;  %v16197_v41 = vrot.slane %v13144_v8, 2  ;;  %v16201_v5 = vmov %v16191_v57  ;;  %v11694_v57 = vld [vmem:[%s16113_s18 + $0x318] sm:$0xff]  }
 0x1a3   :  { %v1530_v30 = vsel %vm1522_vm4, %v16201_v5, %v16200_v54 }
 0x1a5   :  { %2027 = vmatmul.mubr.bf16.vlgmr.msra.gmra.mrb[64].mxu1 %v1816_v48  ;;  %v1834_v48 = vor.u32 %v16196_v23, %v16195_v12  ;;  %v16209_v12 = vld [vmem:[#allocation36_spill] sm:$0xff] }
 0x1a6   :  { %2034 = vmatprep.mubr.bf16.mxu1 %v1831_v1  ;;  %v16198_v1 = vld [vmem:[#allocation38_spill] sm:$0xff]  ;;  %v16210_v23 = vrot.slane %v16209_v12, 2  ;;  %v2155_v39 = vrot.slane %v16209_v12, 3 }
 0x1a7   :  { %v16199_v44 = vrot.slane %v16198_v1, 3  ;;  %v1835_v46 = vsel %vm1809_vm3, %v1826_v61, %v1834_v48  ;;  %v16206_v61 = vrot.slane %v13141_v6, 3  ;;  %v11701_v1 = vld [vmem:[%s16113_s18 + $0x378] sm:$0xff]  }
 0x1a9   :  { %1698 = vmatmul.mubr.bf16.vlgmr.msra.gmra.mrb[64].mxu0 %v1525_v32  ;;  %v1846_v47 = vor.u32 %v16199_v44, %v16197_v41  ;;  %v11695_v32 = vld [vmem:[%s16113_s18 + $0x360] sm:$0xff]   ;;  %v11699_v41 = vld [vmem:[%s16113_s18 + $0x370] sm:$0xff]   ;;  %v16212_v44 = vrot.slane %v13111_v53, 2 }
 0x1aa   :  { %9477 = vmatpush3.bf16.msra.mxu0 %v11688_v21  ;;  %1705 = vmatprep.mubr.bf16.mxu0 %v1532_v13  ;;  %v11693_v21 = vld [vmem:[%s16113_s18 + $0x358] sm:$0xff]   ;;  %v1842_v13 = vor.u32 %v16206_v61, %v16205_v7 }
 0x1ab   :  { %9478 = vmatprep.subr.bf16.mxu0 %v11689_v38  ;;  %v16202_v38 = vrot.slane %v13042_v14, 2  ;;  %v1847_v11 = vsel %vm1809_vm3, %v1838_v51, %v1846_v47  ;;  %v1854_v51 = vor.u32 %v1853_v25, %v1852_v29  ;;  %v11698_v29 = vld [vmem:[%s16113_s18 + $0x328] sm:$0xff]  }
 0x1ac   :  { %v1843_v15 = vsel %vm1809_vm3, %v1834_v48, %v1842_v13  ;;  %v11700_v48 = vld [vmem:[%s16113_s18 + $0x330] sm:$0xff]  }
 0x1ad   :  { %2035 = vmatmul.mubr.bf16.gmra.mrb[68].mxu1 %v1827_v63  ;;  %v1536_v8 = vsel %vm1522_vm4, %v16203_v33, %v16202_v38  ;;  %v11696_v63 = vld [vmem:[%s16113_s18 + $0x320] sm:$0xff]   ;;  %v1855_v25 = vsel %vm1809_vm3, %v1846_v47, %v1854_v51  ;;  %v11702_v33 = vld [vmem:[%s16113_s18 + $0x338] sm:$0xff]  }
 0x1ae   :  { %2042 = vmatprep.mubr.bf16.mxu1 %v1839_v19  ;;  %9479 = vmatpush3.bf16.msra.mxu0 %v11690_v35  ;;  %v11697_v35 = vld [vmem:[%s16113_s18 + $0x368] sm:$0xff]   ;;  %v16207_v19 = vrot.slane %v13054_v20, 2 }
 0x1af   :  { %9480 = vmatprep.subr.bf16.mxu0 %v11691_v31  ;;  %v16208_v31 = vmov %v16200_v54  ;;  %v16214_v54 = vmov %v16210_v23 }
 0x1b0   :  { %v1534_v6 = vsel %vm1522_vm4, %v16208_v31, %v16207_v19  ;;  %v16213_v47 = vmov %v16207_v19  ;;  %v1544_v5 = vsel %vm1522_vm4, %v16214_v54, %v1543_v3 }
 0x1b1   :  { %1706 = vmatmul.mubr.bf16.gmra.mrb[68].mxu0 %v1530_v30  ;;  %v16215_v30 = vld [vmem:[#allocation33_spill] sm:$0xff] }
 0x1b2   :  { %1713 = vmatprep.mubr.bf16.mxu0 %v1536_v8  ;;  %9481 = vmatpush3.bf16.msra.mxu0 %v11692_v43  ;;  %v16211_v43 = vmov %v16202_v38  ;;  %v1851_v38 = vsel %vm1809_vm3, %v1842_v13, %v16215_v30  ;;  %v1863_v8 = vsel %vm1809_vm3, %v1854_v51, %v13601_v9  ;;  %v16217_v9 = vld [vmem:[#allocation35_spill] sm:$0xff]  ;;  %v2153_v13 = vrot.slane %v13111_v53, 3 }
 0x1b3   :  { %9482 = vmatprep.subr.bf16.mxu0 %v11693_v21  ;;  %v1540_v50 = vsel %vm1522_vm4, %v16211_v43, %v16210_v23  ;;  %v1538_v21 = vsel %vm1522_vm4, %v16213_v47, %v16212_v44 }
 0x1b5   :  { %2043 = vmatmul.mubr.bf16.gmra.mrb[72].mxu1 %v1835_v46  ;;  %v16216_v46 = vmov %v16212_v44 }
 0x1b6   :  { %2050 = vmatprep.mubr.bf16.mxu1 %v1847_v11  ;;  %9483 = vmatpush3.bf16.msra.mxu0 %v11694_v57  ;;  %v1542_v57 = vsel %vm1522_vm4, %v16216_v46, %v1541_v62  ;;  %v1548_v11 = vsel %vm1522_vm4, %v1543_v3, %v1547_v16  ;;  %v1550_v3 = vsel %vm1522_vm4, %v1545_v26, %v1549_v27  ;;  %v2167_v46 = vrot.slane %v13561_v37, 3 }
 0x1b7   :  { %9484 = vmatprep.subr.bf16.mxu0 %v11695_v32  ;;  %v1546_v32 = vsel %vm1522_vm4, %v1541_v62, %v1545_v26  ;;  %v2144_v62 = vsel %vm2138_vm5, %v2142_v52, %v2143_v4  ;;  %v16219_v26 = vrot.slane %v12998_v58, 3  ;;  %v2156_v58 = vsel %vm2138_vm5, %v2151_v56, %v2155_v39 }
 0x1b9   :  { %1714 = vmatmul.mubr.bf16.gmra.mrb[72].mxu0 %v1534_v6  ;;  %v2154_v6 = vsel %vm2138_vm5, %v2149_v10, %v2153_v13 }
 0x1ba   :  { %1721 = vmatprep.mubr.bf16.mxu0 %v1540_v50  ;;  %9485 = vmatpush3.bf16.msra.mxu0 %v11696_v63  ;;  %v2159_v63 = vrot.slane %v13119_v59, 3  ;;  %v2157_v50 = vrot.slane %v13165_v18, 3 }
 0x1bb   :  { %9486 = vmatprep.subr.bf16.mxu0 %v11697_v35 }
 0x1bc   :  { %v2160_v43 = vsel %vm2138_vm5, %v2155_v39, %v2159_v63  ;;  %v2158_v18 = vsel %vm2138_vm5, %v2153_v13, %v2157_v50 }
 0x1bd   :  { %2051 = vmatmul.mubr.bf16.gmra.mrb[76].mxu1 %v1843_v15 }
 0x1be   :  { %2058 = vmatprep.mubr.bf16.mxu1 %v1855_v25  ;;  %9487 = vmatpush3.bf16.msra.mxu0 %v11698_v29  ;;  %v2163_v29 = vrot.slane %v13179_v28, 3 }
 0x1bf   :  { %9488 = vmatprep.subr.bf16.mxu0 %v11699_v41 }
 0x1c0   :  { %v2164_v28 = vsel %vm2138_vm5, %v2159_v63, %v2163_v29 }
 0x1c1   :  { %1722 = vmatmul.mubr.bf16.gmra.mrb[76].mxu0 %v1538_v21 }
 0x1c2   :  { %1729 = vmatprep.mubr.bf16.mxu0 %v1544_v5  ;;  %9489 = vmatpush3.bf16.msra.mxu0 %v11700_v48 }
 0x1c3   :  { %9490 = vmatprep.subr.bf16.mxu0 %v11701_v1 }
 0x1c5   :  { %2059 = vmatmul.mubr.bf16.gmra.mrb[80].mxu1 %v1851_v38 }
 0x1c6   :  { %2066 = vmatprep.mubr.bf16.mxu1 %v1863_v8  ;;  %9491 = vmatpush3.bf16.msra.mxu0 %v11702_v33 }
 0x1c9   :  { %1730 = vmatmul.mubr.bf16.gmra.mrb[80].mxu0 %v1542_v57 }
 0x1ca   :  { %1737 = vmatprep.mubr.bf16.mxu0 %v1548_v11 }
 0x1cd   :  { %2067 = vmatmul.mubr.bf16.gmra.mrb[84].mxu1 %v16217_v9 }
 0x1ce   :  { %2074 = vmatprep.mubr.bf16.mxu1 %v13616_v40 }
 0x1d1   :  { %1738 = vmatmul.mubr.bf16.gmra.mrb[84].mxu0 %v1546_v32 }
 0x1d2   :  { %1745 = vmatprep.mubr.bf16.mxu0 %v1552_v55 }
 0x1d5   :  { %2075 = vmatmul.mubr.bf16.gmra.mrb[88].mxu1 %v13625_v24  ;;  %v16222_v24 = vmov %v16220_v36 }
 0x1d6   :  { %2082 = vmatprep.mubr.bf16.mxu1 %v13603_v2  ;;  %v16218_v2 = vrot.slane %v12955_v42, 3  ;;  %v16221_v42 = vmov %v16219_v26  ;;  %v2150_v52 = vsel %vm2138_vm5, %v16222_v24, %v2149_v10  ;;  %v2161_v10 = vrot.slane %v13218_v60, 3 }
 0x1d8   :  { %v2141_v16 = vsel %vm2138_vm5, %v16218_v2, %v2140_v34 }
 0x1d9   :  { %1746 = vmatmul.mubr.bf16.gmra.mrb[88].mxu0 %v1550_v3 }
 0x1da   :  { %1753 = vmatprep.mubr.bf16.mxu0 %v1551_v49  ;;  %v2148_v49 = vsel %vm2138_vm5, %v2143_v4, %v16219_v26 }
 0x1dd   :  { %2083 = vmatmul.mubr.bf16.gmra.mrb[92].mxu1 %v13608_v17  ;;  %v2146_v17 = vsel %vm2138_vm5, %v2140_v34, %v16220_v36  ;;  %v2168_v36 = vsel %vm2138_vm5, %v2163_v29, %v2167_v46 }
 0x1e1   :  { %1754 = vmatmul.mubr.bf16.gmra.mrb[92].mxu0 %v1549_v27  ;;  %v2152_v27 = vsel %vm2138_vm5, %v16221_v42, %v2151_v56 }
 0x1e2   :  { %2313 = vmatprep.mubr.bf16.mxu0 %v2144_v62  ;;  %v2162_v62 = vsel %vm2138_vm5, %v2157_v50, %v2161_v10 }
 0x1e9   :  { %2314 = vmatmul.mubr.bf16.vlgmr.msra.gmra.mrb[96].mxu0 %v2141_v16 }
 0x1ea   :  { %2321 = vmatprep.mubr.bf16.mxu0 %v2148_v49 }
 0x1f1   :  { %2322 = vmatmul.mubr.bf16.gmra.mrb[100].mxu0 %v2146_v17 }
 0x1f2   :  { %2329 = vmatprep.mubr.bf16.mxu0 %v2152_v27 }
 0x1f7   :  { %v9108_v51 = vpop.f32.mrb[0].mxu0 }
 0x1f8   :  { %v9172_v40 = vpop.f32.mrb[0].mxu1  ;;  %v9109_v35 = vpop.f32.mrb[1].mxu0 }
 0x1f9   :  { %v9173_v45 = vpop.f32.mrb[1].mxu1  ;;  %2330 = vmatmul.mubr.bf16.gmra.mrb[104].mxu0 %v2150_v52  ;;  %v9110_v19 = vadd.f32 %v9109_v35, %v9108_v51  ;;  %v9111_v31 = vpop.f32.mrb[2].mxu0 }
 0x1fa   :  { %v9174_v4 = vadd.f32 %v9173_v45, %v9172_v40  ;;  %v9175_v34 = vpop.f32.mrb[2].mxu1  ;;  %2337 = vmatprep.mubr.bf16.mxu0 %v2156_v58  ;;  %v9112_v12 = vpop.f32.mrb[3].mxu0  ;;  %v2165_v40 = vrot.slane %v13572_v22, 3 }
 0x1fb   :  { %v9176_v7 = vpop.f32.mrb[3].mxu1  ;;  %v9113_v59 = vadd.f32 %v9112_v12, %v9111_v31 }
 0x1fc   :  { %v9177_v61 = vadd.f32 %v9176_v7, %v9175_v34  ;;  %v13887_v53 = vadd.f32 %v9174_v4, %v9110_v19  ;;  %v2166_v58 = vsel %vm2138_vm5, %v2161_v10, %v2165_v40 }
 0x1fe   :  { %v13890_v41 = vadd.f32 %v9177_v61, %v9113_v59 }
 0x1ff   :  { %v9114_v20 = vpop.f32.mrb[4].mxu0 }
 0x200   :  { %v9178_v0 = vpop.f32.mrb[4].mxu1  ;;  %v9115_v48 = vpop.f32.mrb[5].mxu0 }
 0x201   :  { %v9179_v14 = vpop.f32.mrb[5].mxu1  ;;  %2338 = vmatmul.mubr.bf16.gmra.mrb[108].mxu0 %v2154_v6  ;;  %v9116_v44 = vadd.f32 %v9115_v48, %v9114_v20  ;;  %v9117_v47 = vpop.f32.mrb[6].mxu0 }
 0x202   :  { %v9180_v56 = vadd.f32 %v9179_v14, %v9178_v0  ;;  %v9181_v23 = vpop.f32.mrb[6].mxu1  ;;  %2345 = vmatprep.mubr.bf16.mxu0 %v2160_v43  ;;  %v9118_v54 = vpop.f32.mrb[7].mxu0 }
 0x203   :  { %v9182_v15 = vpop.f32.mrb[7].mxu1  ;;  %v9119_v33 = vadd.f32 %v9118_v54, %v9117_v47 }
 0x204   :  { %v9183_v25 = vadd.f32 %v9182_v15, %v9181_v23  ;;  %v13895_v38 = vadd.f32 %v9180_v56, %v9116_v44 }
 0x206   :  { %v13898_v57 = vadd.f32 %v9183_v25, %v9119_v33 }
 0x207   :  { %v9120_v11 = vpop.f32.mrb[8].mxu0 }
 0x208   :  { %v9184_v1 = vpop.f32.mrb[8].mxu1  ;;  %v9121_v9 = vpop.f32.mrb[9].mxu0 }
 0x209   :  { %v9185_v21 = vpop.f32.mrb[9].mxu1  ;;  %2346 = vmatmul.mubr.bf16.gmra.mrb[112].mxu0 %v2158_v18  ;;  %v9122_v55 = vadd.f32 %v9121_v9, %v9120_v11  ;;  %v9123_v3 = vpop.f32.mrb[10].mxu0 }
 0x20a   :  { %v9186_v5 = vadd.f32 %v9185_v21, %v9184_v1  ;;  %v9187_v30 = vpop.f32.mrb[10].mxu1  ;;  %2353 = vmatprep.mubr.bf16.mxu0 %v2164_v28  ;;  %v9124_v16 = vpop.f32.mrb[11].mxu0 }
 0x20b   :  { %v9188_v8 = vpop.f32.mrb[11].mxu1  ;;  %v9125_v37 = vadd.f32 %v9124_v16, %v9123_v3 }
 0x20c   :  { %v9189_v60 = vadd.f32 %v9188_v8, %v9187_v30  ;;  %v13902_v17 = vadd.f32 %v9186_v5, %v9122_v55 }
 0x20e   :  { %v13904_v39 = vadd.f32 %v9189_v60, %v9125_v37 }
 0x20f   :  { %v9126_v24 = vpop.f32.mrb[12].mxu0 }
 0x210   :  { %v9190_v32 = vpop.f32.mrb[12].mxu1  ;;  %v9127_v52 = vpop.f32.mrb[13].mxu0 }
 0x211   :  { %v9191_v2 = vpop.f32.mrb[13].mxu1  ;;  %2354 = vmatmul.mubr.bf16.gmra.mrb[116].mxu0 %v2162_v62  ;;  %v9128_v4 = vadd.f32 %v9127_v52, %v9126_v24  ;;  %v9129_v34 = vpop.f32.mrb[14].mxu0 }
 0x212   :  { %v9192_v26 = vadd.f32 %v9191_v2, %v9190_v32  ;;  %v9193_v49 = vpop.f32.mrb[14].mxu1  ;;  %2361 = vmatprep.mubr.bf16.mxu0 %v2168_v36  ;;  %v9130_v61 = vpop.f32.mrb[15].mxu0 }
 0x213   :  { %v9194_v42 = vpop.f32.mrb[15].mxu1  ;;  %v9131_v35 = vadd.f32 %v9130_v61, %v9129_v34 }
 0x214   :  { %v9195_v27 = vadd.f32 %v9194_v42, %v9193_v49  ;;  %v13908_v51 = vadd.f32 %v9192_v26, %v9128_v4 }
 0x216   :  { %v13910_v31 = vadd.f32 %v9195_v27, %v9131_v35 }
 0x217   :  { %v9132_v22 = vpop.f32.mrb[16].mxu0 }
 0x218   :  { %v9196_v45 = vpop.f32.mrb[16].mxu1  ;;  %v9133_v6 = vpop.f32.mrb[17].mxu0 }
 0x219   :  { %v9197_v7 = vpop.f32.mrb[17].mxu1  ;;  %2362 = vmatmul.mubr.bf16.gmra.mrb[120].mxu0 %v2166_v58  ;;  %v9134_v12 = vadd.f32 %v9133_v6, %v9132_v22  ;;  %v9135_v56 = vpop.f32.mrb[18].mxu0 }
 0x21a   :  { %v9198_v13 = vadd.f32 %v9197_v7, %v9196_v45  ;;  %v9199_v63 = vpop.f32.mrb[18].mxu1  ;;  %2369 = vmatprep.mubr.bf16.mxu0 %v2167_v46  ;;  %v9136_v43 = vpop.f32.mrb[19].mxu0 }
 0x21b   :  { %v9200_v0 = vpop.f32.mrb[19].mxu1  ;;  %v9137_v29 = vadd.f32 %v9136_v43, %v9135_v56 }
 0x21c   :  { %v9201_v19 = vadd.f32 %v9200_v0, %v9199_v63  ;;  %v13912_v15 = vadd.f32 %v9198_v13, %v9134_v12 }
 0x21e   :  { %v13914_v10 = vadd.f32 %v9201_v19, %v9137_v29 }
 0x21f   :  { %v9138_v48 = vpop.f32.mrb[20].mxu0 }
 0x220   :  { %v9202_v14 = vpop.f32.mrb[20].mxu1  ;;  %v9139_v1 = vpop.f32.mrb[21].mxu0 }
 0x221   :  { %v9203_v23 = vpop.f32.mrb[21].mxu1  ;;  %2370 = vmatmul.mubr.bf16.gmra.mrb[124].mxu0 %v2165_v40  ;;  %v9140_v47 = vadd.f32 %v9139_v1, %v9138_v48  ;;  %v9141_v18 = vpop.f32.mrb[22].mxu0 }
 0x222   :  { %v9204_v50 = vadd.f32 %v9203_v23, %v9202_v14  ;;  %v9205_v59 = vpop.f32.mrb[22].mxu1  ;;  %v9142_v54 = vpop.f32.mrb[23].mxu0 }
 0x223   :  { %v9206_v25 = vpop.f32.mrb[23].mxu1  ;;  %v9143_v33 = vadd.f32 %v9142_v54, %v9141_v18 }
 0x224   :  { %v9207_v20 = vadd.f32 %v9206_v25, %v9205_v59  ;;  %v13916_v28 = vadd.f32 %v9204_v50, %v9140_v47 }
 0x226   :  { %v13918_v60 = vadd.f32 %v9207_v20, %v9143_v33 }
 0x227   :  { %v9144_v11 = vpop.f32.mrb[24].mxu0 }
 0x228   :  { %v9208_v44 = vpop.f32.mrb[24].mxu1  ;;  %v9145_v9 = vpop.f32.mrb[25].mxu0 }
 0x229   :  { %v9209_v21 = vpop.f32.mrb[25].mxu1  ;;  %v9146_v55 = vadd.f32 %v9145_v9, %v9144_v11  ;;  %v9147_v3 = vpop.f32.mrb[26].mxu0  ;;  %v16086_v11 = vmov 0.0  }
 0x22a   :  { %v9210_v5 = vadd.f32 %v9209_v21, %v9208_v44  ;;  %v9211_v30 = vpop.f32.mrb[26].mxu1  ;;  %v9148_v2 = vpop.f32.mrb[27].mxu0  ;;  %10470 = vmatprep.subr.bf16.mxu1 %v16086_v11  ;;  %10526 = vmatprep.subr.bf16.mxu0 %v16086_v11 }
 0x22b   :  { %v9212_v8 = vpop.f32.mrb[27].mxu1  ;;  %v9149_v36 = vadd.f32 %v9148_v2, %v9147_v3  ;;  %10486 = vmatprep.mubr.msk.bf16.mxu1 %vm12555_vm6, %v16086_v11  ;;  %10542 = vmatprep.mubr.msk.bf16.mxu0 %vm12555_vm6, %v16086_v11 }
 0x22c   :  { %v9213_v46 = vadd.f32 %v9212_v8, %v9211_v30  ;;  %v13920_v49 = vadd.f32 %v9210_v5, %v9146_v55 }
 0x22e   :  { %v13922_v42 = vadd.f32 %v9213_v46, %v9149_v36 }
 0x22f   :  { %v9150_v27 = vpop.f32.mrb[28].mxu0 }
 0x230   :  { %v9214_v32 = vpop.f32.mrb[28].mxu1  ;;  %v9151_v40 = vpop.f32.mrb[29].mxu0 }
 0x231   :  { %v9215_v62 = vpop.f32.mrb[29].mxu1  ;;  %v9152_v52 = vadd.f32 %v9151_v40, %v9150_v27  ;;  %v9153_v45 = vpop.f32.mrb[30].mxu0 }
 0x232   :  { %v9216_v16 = vadd.f32 %v9215_v62, %v9214_v32  ;;  %v9217_v26 = vpop.f32.mrb[30].mxu1  ;;  %v9154_v34 = vpop.f32.mrb[31].mxu0 }
 0x233   :  { %v9218_v37 = vpop.f32.mrb[31].mxu1 }
 0x234   :  { %v13924_v61 = vadd.f32 %v9216_v16, %v9152_v52 }
 0x237   :  { %v9236_v35 = vpop.f32.mrb[32].mxu0 }
 0x238   :  { %v9300_v24 = vpop.f32.mrb[32].mxu1  ;;  %v9237_v0 = vpop.f32.mrb[33].mxu0 }
 0x239   :  { %v9301_v4 = vpop.f32.mrb[33].mxu1  ;;  %v9238_v19 = vadd.f32 %v9237_v0, %v9236_v35  ;;  %v9239_v22 = vpop.f32.mrb[34].mxu0 }
 0x23a   :  { %v9302_v58 = vadd.f32 %v9301_v4, %v9300_v24  ;;  %v9303_v7 = vpop.f32.mrb[34].mxu1  ;;  %v9240_v14 = vpop.f32.mrb[35].mxu0 }
 0x23b   :  { %v9304_v13 = vpop.f32.mrb[35].mxu1  ;;  %v1151_v56 = vadd.f32 %v9238_v19, %v13887_v53  ;;  %v9241_v23 = vadd.f32 %v9240_v14, %v9239_v22 }
 0x23c   :  { %v9305_v63 = vadd.f32 %v9304_v13, %v9303_v7 }
 0x23d   :  { %v1152_v29 = vadd.f32 %v9241_v23, %v13890_v41  ;;  %v13928_v25 = vadd.f32 %v9302_v58, %v1151_v56 }
 0x23f   :  { %v13930_v48 = vadd.f32 %v9305_v63, %v1152_v29 }
 0x240   :  { %v9306_v6 = vpop.f32.mrb[36].mxu1 }
 0x241   :  { %v9307_v12 = vpop.f32.mrb[37].mxu1 }
 0x242   :  { %v9308_v43 = vadd.f32 %v9307_v12, %v9306_v6  ;;  %v9309_v50 = vpop.f32.mrb[38].mxu1  ;;  %v9242_v1 = vpop.f32.mrb[36].mxu0 }
 0x243   :  { %v9310_v59 = vpop.f32.mrb[39].mxu1  ;;  %v9243_v44 = vpop.f32.mrb[37].mxu0 }
 0x244   :  { %v9311_v20 = vadd.f32 %v9310_v59, %v9309_v50  ;;  %v9244_v47 = vadd.f32 %v9243_v44, %v9242_v1  ;;  %v9245_v18 = vpop.f32.mrb[38].mxu0 }
 0x245   :  { %v9246_v54 = vpop.f32.mrb[39].mxu0 }
 0x246   :  { %v1153_v53 = vadd.f32 %v9244_v47, %v13895_v38  ;;  %v9247_v30 = vadd.f32 %v9246_v54, %v9245_v18 }
 0x248   :  { %v9312_v21 = vpop.f32.mrb[40].mxu1  ;;  %v1154_v41 = vadd.f32 %v9247_v30, %v13898_v57  ;;  %v13936_v9 = vadd.f32 %v9308_v43, %v1153_v53 }
 0x249   :  { %v9313_v5 = vpop.f32.mrb[41].mxu1 }
 0x24a   :  { %v9314_v33 = vadd.f32 %v9313_v5, %v9312_v21  ;;  %v9315_v8 = vpop.f32.mrb[42].mxu1  ;;  %v13938_v55 = vadd.f32 %v9311_v20, %v1154_v41 }
 0x24b   :  { %v9316_v46 = vpop.f32.mrb[43].mxu1 }
 0x24c   :  { %v9317_v32 = vadd.f32 %v9316_v46, %v9315_v8  ;;  %v9248_v3 = vpop.f32.mrb[40].mxu0 }
 0x24d   :  { %v9249_v62 = vpop.f32.mrb[41].mxu0 }
 0x24e   :  { %v9250_v2 = vadd.f32 %v9249_v62, %v9248_v3  ;;  %v9251_v38 = vpop.f32.mrb[42].mxu0 }
 0x24f   :  { %v9252_v26 = vpop.f32.mrb[43].mxu0 }
 0x250   :  { %v9318_v16 = vpop.f32.mrb[44].mxu1  ;;  %v1155_v37 = vadd.f32 %v9250_v2, %v13902_v17  ;;  %v9253_v27 = vadd.f32 %v9252_v26, %v9251_v38 }
 0x251   :  { %v9319_v36 = vpop.f32.mrb[45].mxu1 }
 0x252   :  { %v9320_v40 = vadd.f32 %v9319_v36, %v9318_v16  ;;  %v9321_v24 = vpop.f32.mrb[46].mxu1  ;;  %v1156_v57 = vadd.f32 %v9253_v27, %v13904_v39  ;;  %v13942_v45 = vadd.f32 %v9314_v33, %v1155_v37 }
 0x253   :  { %v9322_v52 = vpop.f32.mrb[47].mxu1 }
 0x254   :  { %v9323_v4 = vadd.f32 %v9322_v52, %v9321_v24  ;;  %v13944_v34 = vadd.f32 %v9317_v32, %v1156_v57  ;;  %v9254_v58 = vpop.f32.mrb[44].mxu0 }
 0x255   :  { %v9255_v7 = vpop.f32.mrb[45].mxu0 }
 0x256   :  { %v9256_v13 = vadd.f32 %v9255_v7, %v9254_v58  ;;  %v9257_v63 = vpop.f32.mrb[46].mxu0 }
 0x257   :  { %v9258_v0 = vpop.f32.mrb[47].mxu0 }
 0x258   :  { %v9324_v35 = vpop.f32.mrb[48].mxu1  ;;  %v1157_v17 = vadd.f32 %v9256_v13, %v13908_v51  ;;  %v9259_v22 = vadd.f32 %v9258_v0, %v9257_v63 }
 0x259   :  { %v9325_v19 = vpop.f32.mrb[49].mxu1 }
 0x25a   :  { %v9326_v6 = vadd.f32 %v9325_v19, %v9324_v35  ;;  %v9327_v14 = vpop.f32.mrb[50].mxu1  ;;  %v1158_v39 = vadd.f32 %v9259_v22, %v13910_v31  ;;  %v13948_v56 = vadd.f32 %v9320_v40, %v1157_v17 }
 0x25b   :  { %v9328_v12 = vpop.f32.mrb[51].mxu1 }
 0x25c   :  { %v9329_v23 = vadd.f32 %v9328_v12, %v9327_v14  ;;  %v13950_v43 = vadd.f32 %v9323_v4, %v1158_v39  ;;  %v9260_v50 = vpop.f32.mrb[48].mxu0 }
 0x25d   :  { %v9261_v59 = vpop.f32.mrb[49].mxu0 }
 0x25e   :  { %v9262_v29 = vadd.f32 %v9261_v59, %v9260_v50  ;;  %v9263_v20 = vpop.f32.mrb[50].mxu0 }
 0x25f   :  { %v9264_v44 = vpop.f32.mrb[51].mxu0 }
 0x260   :  { %v9330_v1 = vpop.f32.mrb[52].mxu1  ;;  %v1159_v51 = vadd.f32 %v9262_v29, %v13912_v15  ;;  %v9265_v18 = vadd.f32 %v9264_v44, %v9263_v20 }
 0x261   :  { %v9331_v47 = vpop.f32.mrb[53].mxu1 }
 0x262   :  { %v9332_v21 = vadd.f32 %v9331_v47, %v9330_v1  ;;  %v9333_v54 = vpop.f32.mrb[54].mxu1  ;;  %v1160_v31 = vadd.f32 %v9265_v18, %v13914_v10  ;;  %v13954_v53 = vadd.f32 %v9326_v6, %v1159_v51 }
 0x263   :  { %v9334_v5 = vpop.f32.mrb[55].mxu1 }
 0x264   :  { %v9335_v30 = vadd.f32 %v9334_v5, %v9333_v54  ;;  %v13956_v33 = vadd.f32 %v9329_v23, %v1160_v31  ;;  %v9266_v8 = vpop.f32.mrb[52].mxu0 }
 0x265   :  { %v9267_v46 = vpop.f32.mrb[53].mxu0 }
 0x266   :  { %v9268_v41 = vadd.f32 %v9267_v46, %v9266_v8  ;;  %v9269_v32 = vpop.f32.mrb[54].mxu0 }
 0x267   :  { %v9270_v62 = vpop.f32.mrb[55].mxu0 }
 0x268   :  { %v9336_v3 = vpop.f32.mrb[56].mxu1  ;;  %v1161_v15 = vadd.f32 %v9268_v41, %v13916_v28  ;;  %v9271_v38 = vadd.f32 %v9270_v62, %v9269_v32 }
 0x269   :  { %v9337_v2 = vpop.f32.mrb[57].mxu1 }
 0x26a   :  { %v9338_v16 = vadd.f32 %v9337_v2, %v9336_v3  ;;  %v9339_v26 = vpop.f32.mrb[58].mxu1  ;;  %v1162_v10 = vadd.f32 %v9271_v38, %v13918_v60  ;;  %v13960_v37 = vadd.f32 %v9332_v21, %v1161_v15 }
 0x26b   :  { %v9340_v36 = vpop.f32.mrb[59].mxu1 }
 0x26c   :  { %v9341_v27 = vadd.f32 %v9340_v36, %v9339_v26  ;;  %v13962_v40 = vadd.f32 %v9335_v30, %v1162_v10  ;;  %v9272_v24 = vpop.f32.mrb[56].mxu0 }
 0x26d   :  { %v9273_v52 = vpop.f32.mrb[57].mxu0 }
 0x26e   :  { %v9274_v57 = vadd.f32 %v9273_v52, %v9272_v24  ;;  %v9275_v4 = vpop.f32.mrb[58].mxu0 }
 0x26f   :  { %v9276_v7 = vpop.f32.mrb[59].mxu0 }
 0x270   :  { %v9342_v58 = vpop.f32.mrb[60].mxu1  ;;  %v1163_v28 = vadd.f32 %v9274_v57, %v13920_v49  ;;  %v9277_v63 = vadd.f32 %v9276_v7, %v9275_v4 }
 0x271   :  { %v9343_v13 = vpop.f32.mrb[61].mxu1 }
 0x272   :  { %v9344_v35 = vadd.f32 %v9343_v13, %v9342_v58  ;;  %v9345_v0 = vpop.f32.mrb[62].mxu1  ;;  %v1164_v60 = vadd.f32 %v9277_v63, %v13922_v42  ;;  %v13966_v17 = vadd.f32 %v9338_v16, %v1163_v28 }
 0x273   :  { %v9346_v19 = vpop.f32.mrb[63].mxu1 }
 0x274   :  { %v13968_v22 = vadd.f32 %v9341_v27, %v1164_v60  ;;  %v9278_v6 = vpop.f32.mrb[60].mxu0 }
 0x275   :  { %v9279_v14 = vpop.f32.mrb[61].mxu0 }
 0x276   :  { %v9280_v12 = vadd.f32 %v9279_v14, %v9278_v6  ;;  %v9281_v39 = vpop.f32.mrb[62].mxu0 }
 0x277   :  { %v9282_v50 = vpop.f32.mrb[63].mxu0 }
 0x278   :  { %v9428_v23 = vpop.f32.mrb[64].mxu1  ;;  %v1165_v29 = vadd.f32 %v9280_v12, %v13924_v61 }
 0x279   :  { %v9429_v59 = vpop.f32.mrb[65].mxu1 }
 0x27a   :  { %v9430_v49 = vadd.f32 %v9429_v59, %v9428_v23  ;;  %v9431_v20 = vpop.f32.mrb[66].mxu1  ;;  %v13971_v44 = vadd.f32 %v9344_v35, %v1165_v29 }
 0x27b   :  { %v9432_v1 = vpop.f32.mrb[67].mxu1 }
 0x27c   :  { %v9433_v47 = vadd.f32 %v9432_v1, %v9431_v20  ;;  %v9364_v42 = vpop.f32.mrb[64].mxu0 }
 0x27d   :  { %v9365_v51 = vpop.f32.mrb[65].mxu0 }
 0x27e   :  { %v9366_v18 = vadd.f32 %v9365_v51, %v9364_v42  ;;  %v9367_v21 = vpop.f32.mrb[66].mxu0 }
 0x27f   :  { %v9368_v5 = vpop.f32.mrb[67].mxu0 }
 0x280   :  { %v9434_v54 = vpop.f32.mrb[68].mxu1  ;;  %v1761_v30 = vadd.f32 %v9366_v18, %v13928_v25  ;;  %v9369_v8 = vadd.f32 %v9368_v5, %v9367_v21 }
 0x281   :  { %v9435_v31 = vpop.f32.mrb[69].mxu1 }
 0x282   :  { %v9436_v46 = vadd.f32 %v9435_v31, %v9434_v54  ;;  %v9437_v41 = vpop.f32.mrb[70].mxu1  ;;  %v1762_v61 = vadd.f32 %v9369_v8, %v13930_v48  ;;  %v13975_v3 = vadd.f32 %v9430_v49, %v1761_v30 }
 0x283   :  { %v9438_v32 = vpop.f32.mrb[71].mxu1 }
 0x284   :  { %v9439_v62 = vadd.f32 %v9438_v32, %v9437_v41  ;;  %v13981_v2 = vadd.f32 %v9433_v47, %v1762_v61  ;;  %v9370_v15 = vpop.f32.mrb[68].mxu0 }
 0x285   :  { %v9371_v25 = vpop.f32.mrb[69].mxu0 }
 0x286   :  { %v9372_v38 = vadd.f32 %v9371_v25, %v9370_v15  ;;  %v9373_v16 = vpop.f32.mrb[70].mxu0 }
 0x287   :  { %v9374_v36 = vpop.f32.mrb[71].mxu0 }
 0x288   :  { %v9440_v26 = vpop.f32.mrb[72].mxu1  ;;  %v1763_v48 = vadd.f32 %v9372_v38, %v13936_v9  ;;  %v9375_v27 = vadd.f32 %v9374_v36, %v9373_v16 }
 0x289   :  { %v9441_v10 = vpop.f32.mrb[73].mxu1 }
 0x28a   :  { %v9442_v24 = vadd.f32 %v9441_v10, %v9440_v26  ;;  %v9443_v52 = vpop.f32.mrb[74].mxu1  ;;  %v1764_v4 = vadd.f32 %v9375_v27, %v13938_v55  ;;  %v13985_v58 = vadd.f32 %v9436_v46, %v1763_v48 }
 0x28b   :  { %v9444_v57 = vpop.f32.mrb[75].mxu1 }
 0x28c   :  { %v9445_v7 = vadd.f32 %v9444_v57, %v9443_v52  ;;  %v13987_v13 = vadd.f32 %v9439_v62, %v1764_v4  ;;  %v9376_v28 = vpop.f32.mrb[72].mxu0 }
 0x28d   :  { %v9377_v63 = vpop.f32.mrb[73].mxu0 }
 0x28e   :  { %v9378_v35 = vadd.f32 %v9377_v63, %v9376_v28  ;;  %v9379_v0 = vpop.f32.mrb[74].mxu0 }
 0x28f   :  { %v9380_v60 = vpop.f32.mrb[75].mxu0 }
 0x290   :  { %v9446_v19 = vpop.f32.mrb[76].mxu1  ;;  %v1765_v9 = vadd.f32 %v9378_v35, %v13942_v45  ;;  %v9381_v14 = vadd.f32 %v9380_v60, %v9379_v0 }
 0x291   :  { %v9447_v6 = vpop.f32.mrb[77].mxu1 }
 0x292   :  { %v9448_v12 = vadd.f32 %v9447_v6, %v9446_v19  ;;  %v9449_v39 = vpop.f32.mrb[78].mxu1  ;;  %v1766_v55 = vadd.f32 %v9381_v14, %v13944_v34  ;;  %v13991_v50 = vadd.f32 %v9442_v24, %v1765_v9 }
 0x293   :  { %v9450_v23 = vpop.f32.mrb[79].mxu1 }
 0x294   :  { %v9451_v59 = vadd.f32 %v9450_v23, %v9449_v39  ;;  %v13993_v29 = vadd.f32 %v9445_v7, %v1766_v55  ;;  %v9382_v49 = vpop.f32.mrb[76].mxu0 }
 0x295   :  { %v9383_v20 = vpop.f32.mrb[77].mxu0 }
 0x296   :  { %v9384_v1 = vadd.f32 %v9383_v20, %v9382_v49  ;;  %v9385_v47 = vpop.f32.mrb[78].mxu0 }
 0x297   :  { %v9386_v51 = vpop.f32.mrb[79].mxu0 }
 0x298   :  { %v9452_v42 = vpop.f32.mrb[80].mxu1  ;;  %v1767_v45 = vadd.f32 %v9384_v1, %v13948_v56  ;;  %v9387_v21 = vadd.f32 %v9386_v51, %v9385_v47 }
 0x299   :  { %v9453_v18 = vpop.f32.mrb[81].mxu1 }
 0x29a   :  { %v9454_v54 = vadd.f32 %v9453_v18, %v9452_v42  ;;  %v9455_v5 = vpop.f32.mrb[82].mxu1  ;;  %v1768_v34 = vadd.f32 %v9387_v21, %v13950_v43  ;;  %v13997_v30 = vadd.f32 %v9448_v12, %v1767_v45 }
 0x29b   :  { %v9456_v31 = vpop.f32.mrb[83].mxu1 }
 0x29c   :  { %v9457_v8 = vadd.f32 %v9456_v31, %v9455_v5  ;;  %v13999_v46 = vadd.f32 %v9451_v59, %v1768_v34  ;;  %v9388_v41 = vpop.f32.mrb[80].mxu0 }
 0x29d   :  { %v9389_v32 = vpop.f32.mrb[81].mxu0 }
 0x29e   :  { %v9390_v61 = vadd.f32 %v9389_v32, %v9388_v41  ;;  %v9391_v62 = vpop.f32.mrb[82].mxu0 }
 0x29f   :  { %v9392_v25 = vpop.f32.mrb[83].mxu0 }
 0x2a0   :  { %v9458_v15 = vpop.f32.mrb[84].mxu1  ;;  %v1769_v56 = vadd.f32 %v9390_v61, %v13954_v53  ;;  %v9393_v16 = vadd.f32 %v9392_v25, %v9391_v62  ;;  %v14022_v25 = vld [vmem:[#allocation2] ss:$0 sm:$0xff] }
 0x2a1   :  { %v9459_v38 = vpop.f32.mrb[85].mxu1 }
 0x2a2   :  { %v9460_v26 = vadd.f32 %v9459_v38, %v9458_v15  ;;  %v9461_v36 = vpop.f32.mrb[86].mxu1  ;;  %v1770_v43 = vadd.f32 %v9393_v16, %v13956_v33  ;;  %v14003_v48 = vadd.f32 %v9454_v54, %v1769_v56 }
 0x2a3   :  { %v9462_v10 = vpop.f32.mrb[87].mxu1 }
 0x2a4   :  { %v9463_v27 = vadd.f32 %v9462_v10, %v9461_v36  ;;  %v14005_v24 = vadd.f32 %v9457_v8, %v1770_v43  ;;  %v9394_v52 = vpop.f32.mrb[84].mxu0 }
 0x2a5   :  { %v9395_v57 = vpop.f32.mrb[85].mxu0 }
 0x2a6   :  { %v9396_v4 = vadd.f32 %v9395_v57, %v9394_v52  ;;  %v9397_v7 = vpop.f32.mrb[86].mxu0 }
 0x2a7   :  { %v9398_v63 = vpop.f32.mrb[87].mxu0 }
 0x2a8   :  { %v9464_v28 = vpop.f32.mrb[88].mxu1  ;;  %v1771_v53 = vadd.f32 %v9396_v4, %v13960_v37  ;;  %v9399_v0 = vadd.f32 %v9398_v63, %v9397_v7 }
 0x2a9   :  { %v9465_v35 = vpop.f32.mrb[89].mxu1 }
 0x2aa   :  { %v9466_v19 = vadd.f32 %v9465_v35, %v9464_v28  ;;  %v9467_v60 = vpop.f32.mrb[90].mxu1  ;;  %v1772_v33 = vadd.f32 %v9399_v0, %v13962_v40  ;;  %v14009_v9 = vadd.f32 %v9460_v26, %v1771_v53 }
 0x2ab   :  { %v9468_v6 = vpop.f32.mrb[91].mxu1 }
 0x2ac   :  { %v9469_v14 = vadd.f32 %v9468_v6, %v9467_v60  ;;  %v14011_v12 = vadd.f32 %v9463_v27, %v1772_v33  ;;  %v9400_v39 = vpop.f32.mrb[88].mxu0 }
 0x2ad   :  { %v9401_v23 = vpop.f32.mrb[89].mxu0 }
 0x2ae   :  { %v9402_v55 = vadd.f32 %v9401_v23, %v9400_v39  ;;  %v9403_v59 = vpop.f32.mrb[90].mxu0 }
 0x2af   :  { %v9404_v20 = vpop.f32.mrb[91].mxu0 }
 0x2b0   :  { %v9470_v49 = vpop.f32.mrb[92].mxu1  ;;  %v1773_v37 = vadd.f32 %v9402_v55, %v13966_v17  ;;  %v9405_v47 = vadd.f32 %v9404_v20, %v9403_v59 }
 0x2b1   :  { %v9471_v1 = vpop.f32.mrb[93].mxu1 }
 0x2b2   :  { %v9472_v42 = vadd.f32 %v9471_v1, %v9470_v49  ;;  %v9473_v51 = vpop.f32.mrb[94].mxu1  ;;  %v1774_v40 = vadd.f32 %v9405_v47, %v13968_v22  ;;  %v14015_v45 = vadd.f32 %v9466_v19, %v1773_v37 }
 0x2b3   :  { %v9474_v18 = vpop.f32.mrb[95].mxu1 }
 0x2b4   :  { %v14017_v21 = vadd.f32 %v9469_v14, %v1774_v40  ;;  %v9406_v54 = vpop.f32.mrb[92].mxu0 }
 0x2b5   :  { %v9407_v5 = vpop.f32.mrb[93].mxu0 }
 0x2b6   :  { %v9408_v31 = vadd.f32 %v9407_v5, %v9406_v54  ;;  %v9409_v34 = vpop.f32.mrb[94].mxu0 }
 0x2b7   :  { %v9410_v8 = vpop.f32.mrb[95].mxu0 }
 0x2b8   :  { %v1775_v41 = vadd.f32 %v9408_v31, %v13971_v44 }
 0x2ba   :  { %v14020_v32 = vadd.f32 %v9472_v42, %v1775_v41 }
 0x2bc   :  { %v9492_v17 = vpop.f32.mrb[96].mxu0 }
 0x2bd   :  { %v9493_v61 = vpop.f32.mrb[97].mxu0 }
 0x2be   :  { %v9494_v62 = vadd.f32 %v9493_v61, %v9492_v17  ;;  %v9495_v15 = vpop.f32.mrb[98].mxu0 }
 0x2bf   :  { %v9496_v22 = vpop.f32.mrb[99].mxu0 }
 0x2c0   :  { %v2377_v38 = vadd.f32 %v9494_v62, %v13975_v3  ;;  %v9497_v56 = vadd.f32 %v9496_v22, %v9495_v15 }
 0x2c2   :  { %v2399_v16 = vadd.f32 %v14022_v25, %v2377_v38  ;;  %v2378_v26 = vadd.f32 %v9497_v56, %v13981_v2 }
 0x2c4   :  { %v2400_v36 = vadd.f32 %v14022_v25, %v2378_v26  ;;  %v9498_v10 = vpop.f32.mrb[100].mxu0  ;;  %v2414_v43 = vmax.f32 %v2399_v16, 0.0 }
 0x2c5   :  { %v9499_v44 = vpop.f32.mrb[101].mxu0 }
 0x2c6   :  { %v2415_v27 = vmax.f32 %v2400_v36, 0.0  ;;  %v9500_v52 = vadd.f32 %v9499_v44, %v9498_v10  ;;  %v9501_v57 = vpop.f32.mrb[102].mxu0 }
 0x2c7   :  { %v9502_v4 = vpop.f32.mrb[103].mxu0 }
 0x2c8   :  { %v2379_v7 = vadd.f32 %v9500_v52, %v13985_v58  ;;  %v9503_v28 = vadd.f32 %v9502_v4, %v9501_v57  ;;  %v14029_v63 = vpack.c.bf16 %v2415_v27, %v2414_v43 }
 0x2ca   :  { %v2401_v3 = vadd.f32 %v14022_v25, %v2379_v7  ;;  %v2380_v35 = vadd.f32 %v9503_v28, %v13987_v13  ;;  %10471 = vmatpush3.bf16.msra.mxu1 %v14029_v63  ;;  %10527 = vmatpush3.bf16.msra.mxu0 %v14029_v63 }
 0x2cb   :  { %10472 = vmatprep.subr.bf16.mxu1 %v16086_v11  ;;  %10528 = vmatprep.subr.bf16.mxu0 %v16086_v11 }
 0x2cc   :  { %v2402_v2 = vadd.f32 %v14022_v25, %v2380_v35  ;;  %v9504_v53 = vpop.f32.mrb[104].mxu0  ;;  %v2416_v58 = vmax.f32 %v2401_v3, 0.0 }
 0x2cd   :  { %v9505_v0 = vpop.f32.mrb[105].mxu0 }
 0x2ce   :  { %v2417_v19 = vmax.f32 %v2402_v2, 0.0  ;;  %v9506_v60 = vadd.f32 %v9505_v0, %v9504_v53  ;;  %v9507_v6 = vpop.f32.mrb[106].mxu0 }
 0x2cf   :  { %v9508_v33 = vpop.f32.mrb[107].mxu0 }
 0x2d0   :  { %v2381_v14 = vadd.f32 %v9506_v60, %v13991_v50  ;;  %v9509_v13 = vadd.f32 %v9508_v33, %v9507_v6  ;;  %v14039_v39 = vpack.c.bf16 %v2417_v19, %v2416_v58 }
 0x2d2   :  { %v2403_v23 = vadd.f32 %v14022_v25, %v2381_v14  ;;  %v2382_v55 = vadd.f32 %v9509_v13, %v13993_v29  ;;  %10473 = vmatpush3.bf16.msra.mxu1 %v14039_v39  ;;  %10529 = vmatpush3.bf16.msra.mxu0 %v14039_v39 }
 0x2d3   :  { %10474 = vmatprep.subr.bf16.mxu1 %v16086_v11  ;;  %10530 = vmatprep.subr.bf16.mxu0 %v16086_v11 }
 0x2d4   :  { %v2404_v59 = vadd.f32 %v14022_v25, %v2382_v55  ;;  %v9510_v49 = vpop.f32.mrb[108].mxu0  ;;  %v2418_v50 = vmax.f32 %v2403_v23, 0.0 }
 0x2d5   :  { %v9511_v20 = vpop.f32.mrb[109].mxu0 }
 0x2d6   :  { %v2419_v1 = vmax.f32 %v2404_v59, 0.0  ;;  %v9512_v37 = vadd.f32 %v9511_v20, %v9510_v49  ;;  %v9513_v47 = vpop.f32.mrb[110].mxu0 }
 0x2d7   :  { %v9514_v42 = vpop.f32.mrb[111].mxu0 }
 0x2d8   :  { %v2383_v51 = vadd.f32 %v9512_v37, %v13997_v30  ;;  %v9515_v29 = vadd.f32 %v9514_v42, %v9513_v47  ;;  %v14049_v18 = vpack.c.bf16 %v2419_v1, %v2418_v50  ;;  %v12556_v1 = vmov 65535  }
 0x2d9   :  { %v2467_v37 = vsel %vm2465_vm7, 4294967295, %v12556_v1  ;;  %v11725_v1 = vld [vmem:[#allocation5 + $0xc0] sm:$0xff]  }
 0x2da   :  { %v2405_v40 = vadd.f32 %v14022_v25, %v2383_v51  ;;  %v2384_v54 = vadd.f32 %v9515_v29, %v13999_v46  ;;  %10475 = vmatpush3.bf16.msra.mxu1 %v14049_v18  ;;  %10531 = vmatpush3.bf16.msra.mxu0 %v14049_v18  ;;  %v14093_v42 = vsel %vm2466_vm8, %v2467_v37, 0 }
 0x2db   :  { %10476 = vmatprep.subr.bf16.mxu1 %v16086_v11  ;;  %10532 = vmatprep.subr.bf16.mxu0 %v16086_v11  ;;  %16223 = vst [vmem:[#allocation40_spill] sm:$0xff] %v14093_v42 }
 0x2dc   :  { %v2406_v5 = vadd.f32 %v14022_v25, %v2384_v54  ;;  %v9516_v31 = vpop.f32.mrb[112].mxu0  ;;  %v2420_v30 = vmax.f32 %v2405_v40, 0.0  ;;  %v11704_v40 = vld [vmem:[%s16048_s13 + $0x8] sm:$0xff]   ;;  %v11708_v54 = vld [vmem:[%s16048_s13 + $0x30] sm:$0xff]  }
 0x2dd   :  { %v9517_v34 = vpop.f32.mrb[113].mxu0 }
 0x2de   :  { %v2421_v8 = vmax.f32 %v2406_v5, 0.0  ;;  %v9518_v41 = vadd.f32 %v9517_v34, %v9516_v31  ;;  %v9519_v17 = vpop.f32.mrb[114].mxu0  ;;  %v11709_v5 = vld [vmem:[%s16048_s13 + $0x1c] sm:$0xff]   ;;  %v11710_v31 = vld [vmem:[%s16048_s13 + $0x24] ss:$0 sps:$4 sm:$0xff]  }
 0x2df   :  { %v9520_v61 = vpop.f32.mrb[115].mxu0  ;;  %v11712_v34 = vld [vmem:[#allocation5] sm:$0xff]  }
 0x2e0   :  { %v2385_v62 = vadd.f32 %v9518_v41, %v14003_v48  ;;  %v9521_v46 = vadd.f32 %v9520_v61, %v9519_v17  ;;  %v14059_v15 = vpack.c.bf16 %v2421_v8, %v2420_v30  ;;  %v11713_v30 = vld [vmem:[#allocation5 + $0x8] sm:$0xff]   ;;  %v11714_v8 = vld [vmem:[#allocation5 + $0x10] sm:$0xff]   ;;  %v11715_v41 = vld [vmem:[#allocation5 + $0x18] sm:$0xff]  }
 0x2e1   :  { %v11716_v17 = vld [vmem:[#allocation5 + $0x40] sm:$0xff]  }
 0x2e2   :  { %v2407_v22 = vadd.f32 %v14022_v25, %v2385_v62  ;;  %v2386_v38 = vadd.f32 %v9521_v46, %v14005_v24  ;;  %10477 = vmatpush3.bf16.msra.mxu1 %v14059_v15  ;;  %10533 = vmatpush3.bf16.msra.mxu0 %v14059_v15  ;;  %v11717_v61 = vld [vmem:[#allocation5 + $0x20] sm:$0xff]   ;;  %v11718_v62 = vld [vmem:[#allocation5 + $0x48] sm:$0xff]  }
 0x2e3   :  { %10478 = vmatprep.subr.bf16.mxu1 %v16086_v11  ;;  %10534 = vmatprep.subr.bf16.mxu0 %v16086_v11  ;;  %v11719_v46 = vld [vmem:[#allocation5 + $0x28] sm:$0xff]  }
 0x2e4   :  { %v2408_v56 = vadd.f32 %v14022_v25, %v2386_v38  ;;  %v9522_v16 = vpop.f32.mrb[116].mxu0  ;;  %v2422_v48 = vmax.f32 %v2407_v22, 0.0  ;;  %v11721_v22 = vld [vmem:[#allocation5 + $0x30] sm:$0xff]   ;;  %v11722_v38 = vld [vmem:[#allocation5 + $0x58] sm:$0xff]  }
 0x2e5   :  { %v9523_v26 = vpop.f32.mrb[117].mxu0 }
 0x2e6   :  { %v2423_v36 = vmax.f32 %v2408_v56, 0.0  ;;  %v9524_v10 = vadd.f32 %v9523_v26, %v9522_v16  ;;  %v9525_v44 = vpop.f32.mrb[118].mxu0  ;;  %v11723_v56 = vld [vmem:[#allocation5 + $0x38] sm:$0xff]   ;;  %v11724_v16 = vld [vmem:[#allocation5 + $0x60] sm:$0xff]   ;;  %v11726_v26 = vld [vmem:[#allocation5 + $0x68] sm:$0xff]  }
 0x2e7   :  { %v9526_v43 = vpop.f32.mrb[119].mxu0 }
 0x2e8   :  { %v2387_v27 = vadd.f32 %v9524_v10, %v14009_v9  ;;  %v9527_v24 = vadd.f32 %v9526_v43, %v9525_v44  ;;  %v14069_v52 = vpack.c.bf16 %v2423_v36, %v2422_v48  ;;  %v11728_v48 = vld [vmem:[#allocation5 + $0x70] sm:$0xff]   ;;  %v11730_v36 = vld [vmem:[#allocation5 + $0x78] sm:$0xff]  }
 0x2ea   :  { %v2409_v57 = vadd.f32 %v14022_v25, %v2387_v27  ;;  %v2388_v4 = vadd.f32 %v9527_v24, %v14011_v12  ;;  %10479 = vmatpush3.bf16.msra.mxu1 %v14069_v52  ;;  %10535 = vmatpush3.bf16.msra.mxu0 %v14069_v52 }
 0x2eb   :  { %10480 = vmatprep.subr.bf16.mxu1 %v16086_v11  ;;  %10536 = vmatprep.subr.bf16.mxu0 %v16086_v11 }
 0x2ec   :  { %v2410_v7 = vadd.f32 %v14022_v25, %v2388_v4  ;;  %v9528_v28 = vpop.f32.mrb[120].mxu0  ;;  %v2424_v9 = vmax.f32 %v2409_v57, 0.0 }
 0x2ed   :  { %v9529_v3 = vpop.f32.mrb[121].mxu0 }
 0x2ee   :  { %v2425_v35 = vmax.f32 %v2410_v7, 0.0  ;;  %v9530_v2 = vadd.f32 %v9529_v3, %v9528_v28  ;;  %v9531_v53 = vpop.f32.mrb[122].mxu0 }
 0x2ef   :  { %v9532_v0 = vpop.f32.mrb[123].mxu0 }
 0x2f0   :  { %v2389_v58 = vadd.f32 %v9530_v2, %v14015_v45  ;;  %v9533_v12 = vadd.f32 %v9532_v0, %v9531_v53  ;;  %v14079_v19 = vpack.c.bf16 %v2425_v35, %v2424_v9 }
 0x2f2   :  { %v2411_v60 = vadd.f32 %v14022_v25, %v2389_v58  ;;  %v2390_v6 = vadd.f32 %v9533_v12, %v14017_v21  ;;  %10481 = vmatpush3.bf16.msra.mxu1 %v14079_v19  ;;  %10537 = vmatpush3.bf16.msra.mxu0 %v14079_v19 }
 0x2f3   :  { %10482 = vmatprep.subr.bf16.mxu1 %v16086_v11  ;;  %10538 = vmatprep.subr.bf16.mxu0 %v16086_v11 }
 0x2f4   :  { %v2412_v33 = vadd.f32 %v14022_v25, %v2390_v6  ;;  %v9534_v14 = vpop.f32.mrb[124].mxu0  ;;  %v2426_v45 = vmax.f32 %v2411_v60, 0.0 }
 0x2f5   :  { %v9535_v13 = vpop.f32.mrb[125].mxu0 }
 0x2f6   :  { %v2427_v23 = vmax.f32 %v2412_v33, 0.0  ;;  %v9536_v55 = vadd.f32 %v9535_v13, %v9534_v14  ;;  %v9537_v59 = vpop.f32.mrb[126].mxu0 }
 0x2f7   :  { %v9538_v49 = vpop.f32.mrb[127].mxu0 }
 0x2f8   :  { %v2391_v21 = vadd.f32 %v9536_v55, %v14020_v32  ;;  %v2435_v20 = vpack.c.bf16 %v2427_v23, %v2426_v45  ;;  %v11703_v32 = vld [vmem:[%s16048_s13] sm:$0xff]  }
 0x2fa   :  { %v2413_v50 = vadd.f32 %v14022_v25, %v2391_v21  ;;  %10483 = vmatpush3.bf16.msra.mxu1 %v2435_v20  ;;  %10539 = vmatpush3.bf16.msra.mxu0 %v2435_v20  ;;  %v11706_v25 = vld [vmem:[%s16048_s13 + $0x28] sm:$0xff]  }
 0x2fb   :  { %10484 = vmatprep.subr.bf16.mxu1 %v16086_v11  ;;  %10540 = vmatprep.subr.bf16.mxu0 %v16086_v11 }
 0x2fc   :  { %v2428_v47 = vmax.f32 %v2413_v50, 0.0 }
 0x2fe   :  { %v2436_v51 = vpack.c.bf16 %v2428_v47, %v2428_v47 }
 0x300   :  { %v2470_v29 = vand.u32 %v14093_v42, %v2436_v51 }
 0x302   :  { %10485 = vmatpush3.bf16.msra.mxu1 %v2470_v29  ;;  %10541 = vmatpush3.bf16.msra.mxu0 %v2470_v29 }
 0x303   :  { %10498 = vmatprep.subr.bf16.mxu1 %v16086_v11  ;;  %10582 = vmatprep.subr.bf16.mxu0 %v16086_v11 }
 0x305   :  { %10487 = vmatmul.mubr.msk.bf16.vlgmr.msra.gmra.mrb[96].mxu1 %vm2455_vm9, %v11703_v32  ;;  %10543 = vmatmul.mubr.msk.bf16.vlgmr.msra.gmra.mrb[128].mxu0 %vm2455_vm9, %v11706_v25  ;;  %v11727_v25 = vld [vmem:[#allocation5 + $0xc8] sm:$0xff]  }
 0x306   :  { %10499 = vmatpush3.bf16.msra.mxu1 %v14029_v63  ;;  %10490 = vmatprep.mubr.msk.bf16.mxu1 %vm12555_vm6, %v16086_v11  ;;  %v11705_v63 = vld [vmem:[%s16048_s13 + $0x10] ss:$0 sps:$4 sm:$0xff]  }
 0x307   :  { %10500 = vmatprep.subr.bf16.mxu1 %v16086_v11  ;;  %10546 = vmatprep.mubr.msk.bf16.mxu0 %vm12555_vm6, %v16086_v11 }
 0x308   :  { %10583 = vmatpush3.bf16.msra.mxu0 %v11712_v34 }
 0x309   :  { %10584 = vmatprep.subr.bf16.mxu0 %v16086_v11 }
 0x30a   :  { %10501 = vmatpush3.bf16.msra.mxu1 %v14039_v39  ;;  %v11711_v39 = vld [vmem:[%s16048_s13 + $0x38] ss:$0 sps:$4 sm:$0xff]  }
 0x30b   :  { %10502 = vmatprep.subr.bf16.mxu1 %v16086_v11 }
 0x30c   :  { %10585 = vmatpush3.bf16.msra.mxu0 %v11713_v30 }
 0x30d   :  { %10491 = vmatmul.mubr.msk.bf16.gmra.mrb[100].mxu1 %vm2455_vm9, %v11704_v40  ;;  %10547 = vmatmul.mubr.msk.bf16.gmra.mrb[132].mxu0 %vm2455_vm9, %v11708_v54 }
 0x30e   :  { %10503 = vmatpush3.bf16.msra.mxu1 %v14049_v18  ;;  %10494 = vmatprep.mubr.msk.bf16.mxu1 %vm12555_vm6, %v16086_v11  ;;  %v11707_v18 = vld [vmem:[%s16048_s13 + $0x14] sm:$0xff]  }
 0x30f   :  { %10504 = vmatprep.subr.bf16.mxu1 %v16086_v11  ;;  %10550 = vmatprep.mubr.msk.bf16.mxu0 %vm12555_vm6, %v16086_v11 }
 0x310   :  { %10586 = vmatprep.subr.bf16.mxu0 %v16086_v11 }
 0x311   :  { %10587 = vmatpush3.bf16.msra.mxu0 %v11714_v8 }
 0x312   :  { %10505 = vmatpush3.bf16.msra.mxu1 %v14059_v15  ;;  %10588 = vmatprep.subr.bf16.mxu0 %v16086_v11  ;;  %v11720_v15 = vld [vmem:[#allocation5 + $0x50] sm:$0xff]  }
 0x313   :  { %10506 = vmatprep.subr.bf16.mxu1 %v16086_v11 }
 0x315   :  { %10495 = vmatmul.mubr.msk.bf16.gmra.mrb[104].mxu1 %vm2455_vm9, %v11705_v63  ;;  %10551 = vmatmul.mubr.msk.bf16.gmra.mrb[136].mxu0 %vm2455_vm9, %v11711_v39 }
 0x316   :  { %10507 = vmatpush3.bf16.msra.mxu1 %v14069_v52  ;;  %10514 = vmatprep.mubr.msk.bf16.mxu1 %vm12555_vm6, %v16086_v11 }
 0x317   :  { %10508 = vmatprep.subr.bf16.mxu1 %v16086_v11  ;;  %10598 = vmatprep.mubr.msk.bf16.mxu0 %vm12555_vm6, %v16086_v11 }
 0x318   :  { %10589 = vmatpush3.bf16.msra.mxu0 %v11715_v41 }
 0x319   :  { %10590 = vmatprep.subr.bf16.mxu0 %v16086_v11 }
 0x31a   :  { %10509 = vmatpush3.bf16.msra.mxu1 %v14079_v19 }
 0x31b   :  { %10510 = vmatprep.subr.bf16.mxu1 %v16086_v11 }
 0x31c   :  { %10591 = vmatpush3.bf16.msra.mxu0 %v11717_v61 }
 0x31d   :  { %10592 = vmatprep.subr.bf16.mxu0 %v16086_v11 }
 0x31e   :  { %10511 = vmatpush3.bf16.msra.mxu1 %v2435_v20 }
 0x31f   :  { %10512 = vmatprep.subr.bf16.mxu1 %v16086_v11 }
 0x320   :  { %10593 = vmatpush3.bf16.msra.mxu0 %v11719_v46 }
 0x321   :  { %10594 = vmatprep.subr.bf16.mxu0 %v16086_v11 }
 0x322   :  { %10513 = vmatpush3.bf16.msra.mxu1 %v2470_v29 }
 0x323   :  { %10554 = vmatprep.subr.bf16.mxu1 %v16086_v11 }
 0x324   :  { %10595 = vmatpush3.bf16.msra.mxu0 %v11721_v22 }
 0x325   :  { %10515 = vmatmul.mubr.msk.bf16.vlgmr.msra.gmra.mrb[108].mxu1 %vm2455_vm9, %v11707_v18  ;;  %10596 = vmatprep.subr.bf16.mxu0 %v16086_v11 }
 0x326   :  { %10518 = vmatprep.mubr.msk.bf16.mxu1 %vm12555_vm6, %v16086_v11  ;;  %10555 = vmatpush3.bf16.msra.mxu1 %v11716_v17 }
 0x327   :  { %10556 = vmatprep.subr.bf16.mxu1 %v16086_v11 }
 0x328   :  { %10597 = vmatpush3.bf16.msra.mxu0 %v11723_v56 }
 0x329   :  { %10638 = vmatprep.subr.bf16.mxu0 %v16086_v11 }
 0x32a   :  { %10557 = vmatpush3.bf16.msra.mxu1 %v11718_v62 }
 0x32b   :  { %10558 = vmatprep.subr.bf16.mxu1 %v16086_v11 }
 0x32d   :  { %10519 = vmatmul.mubr.msk.bf16.gmra.mrb[112].mxu1 %vm2455_vm9, %v11709_v5 }
 0x32e   :  { %10522 = vmatprep.mubr.msk.bf16.mxu1 %vm12555_vm6, %v16086_v11  ;;  %10559 = vmatpush3.bf16.msra.mxu1 %v11720_v15 }
 0x32f   :  { %10560 = vmatprep.subr.bf16.mxu1 %v16086_v11 }
 0x332   :  { %10561 = vmatpush3.bf16.msra.mxu1 %v11722_v38 }
 0x333   :  { %10562 = vmatprep.subr.bf16.mxu1 %v16086_v11 }
 0x335   :  { %10523 = vmatmul.mubr.msk.bf16.gmra.mrb[116].mxu1 %vm2455_vm9, %v11710_v31  ;;  %v11729_v31 = vld [vmem:[#allocation5 + $0xd0] sm:$0xff]  }
 0x336   :  { %10570 = vmatprep.mubr.msk.bf16.mxu1 %vm12555_vm6, %v16086_v11  ;;  %10563 = vmatpush3.bf16.msra.mxu1 %v11724_v16 }
 0x337   :  { %10564 = vmatprep.subr.bf16.mxu1 %v16086_v11 }
 0x33a   :  { %10565 = vmatpush3.bf16.msra.mxu1 %v11726_v26 }
 0x33b   :  { %10566 = vmatprep.subr.bf16.mxu1 %v16086_v11 }
 0x33e   :  { %10567 = vmatpush3.bf16.msra.mxu1 %v11728_v48  ;;  %v11731_v48 = vld [vmem:[#allocation5 + $0xd8] sm:$0xff]  }
 0x33f   :  { %10568 = vmatprep.subr.bf16.mxu1 %v16086_v11 }
 0x342   :  { %10569 = vmatpush3.bf16.msra.mxu1 %v11730_v36 }
 0x343   :  { %10610 = vmatprep.subr.bf16.mxu1 %v16086_v11 }
 0x3d8   :  { %v2506_v10 = vpop.f32.mrb[96].mxu1  ;;  %v2679_v44 = vpop.f32.mrb[128].mxu0 }
 0x3d9   :  { %v10488_v43 = vpop.f32.mrb[97].mxu1  ;;  %v10544_v27 = vpop.f32.mrb[129].mxu0 }
 0x3da   :  { %v2509_v24 = vpop.f32.mrb[98].mxu1  ;;  %v2682_v52 = vpop.f32.mrb[130].mxu0 }
 0x3db   :  { %v10489_v57 = vpop.f32.mrb[99].mxu1  ;;  %v10545_v4 = vpop.f32.mrb[131].mxu0 }
 0x3dc   :  { %v11732_v57 = vld [vmem:[#allocation5 + $0x80] sm:$0xff]  }
 0x3e0   :  { %v2514_v7 = vpop.f32.mrb[100].mxu1  ;;  %v2687_v28 = vpop.f32.mrb[132].mxu0 }
 0x3e1   :  { %v10492_v3 = vpop.f32.mrb[101].mxu1  ;;  %v10548_v9 = vpop.f32.mrb[133].mxu0 }
 0x3e2   :  { %v2517_v35 = vpop.f32.mrb[102].mxu1  ;;  %v2690_v2 = vpop.f32.mrb[134].mxu0 }
 0x3e3   :  { %v10493_v53 = vpop.f32.mrb[103].mxu1  ;;  %v10549_v0 = vpop.f32.mrb[135].mxu0 }
 0x3e8   :  { %v2522_v58 = vpop.f32.mrb[104].mxu1  ;;  %v2695_v12 = vpop.f32.mrb[136].mxu0 }
 0x3e9   :  { %v10496_v19 = vpop.f32.mrb[105].mxu1  ;;  %v10552_v60 = vpop.f32.mrb[137].mxu0 }
 0x3ea   :  { %v2525_v6 = vpop.f32.mrb[106].mxu1  ;;  %v2698_v33 = vpop.f32.mrb[138].mxu0  ;;  %v11733_v19 = vld [vmem:[#allocation5 + $0xe0] sm:$0xff]  }
 0x3eb   :  { %v10497_v14 = vpop.f32.mrb[107].mxu1  ;;  %v10553_v13 = vpop.f32.mrb[139].mxu0 }
 0x3ec   :  { %v11734_v14 = vld [vmem:[#allocation5 + $0x88] sm:$0xff]  }
 0x3f8   :  { %v2590_v45 = vpop.f32.mrb[108].mxu1 }
 0x3f9   :  { %v2612_v23 = vmax.f32 %v2506_v10, %v2590_v45  ;;  %v10516_v55 = vpop.f32.mrb[109].mxu1 }
 0x3fa   :  { %v2593_v59 = vpop.f32.mrb[110].mxu1 }
 0x3fb   :  { %v2701_v49 = vmax.f32 %v2612_v23, %v2679_v44  ;;  %v2613_v21 = vmax.f32 %v2509_v24, %v2593_v59  ;;  %v10517_v20 = vpop.f32.mrb[111].mxu1 }
 0x3fd   :  { %v2702_v50 = vmax.f32 %v2613_v21, %v2682_v52 }
 0x3ff   :  { %v14182_v37 = vpack.c.bf16 %v2702_v50, %v2701_v49 }
 0x400   :  { %v2598_v47 = vpop.f32.mrb[112].mxu1 }
 0x401   :  { %v2614_v51 = vmax.f32 %v2514_v7, %v2598_v47  ;;  %v10520_v29 = vpop.f32.mrb[113].mxu1  ;;  %10599 = vmatmul.mubr.bf16.vlgmr.msra.gmra.mrb[140].mxu0 %v14182_v37  ;;  %v2745_v40 = vshll.u32 %v14182_v37, 16  ;;  %v2743_v18 = vshrl.u32 %v14182_v37, 16  ;;  %v2995_v8 = vrot.slane %v14182_v37, 1 }
 0x402   :  { %10639 = vmatpush3.bf16.msra.mxu0 %v11725_v1  ;;  %v2601_v32 = vpop.f32.mrb[114].mxu1  ;;  %10602 = vmatprep.mubr.msk.bf16.mxu0 %vm12555_vm6, %v16086_v11  ;;  %v3269_v41 = vrot.slane %v14182_v37, 2  ;;  %v3543_v15 = vrot.slane %v14182_v37, 3 }
 0x403   :  { %v2703_v54 = vmax.f32 %v2614_v51, %v2687_v28  ;;  %v2615_v63 = vmax.f32 %v2517_v35, %v2601_v32  ;;  %v10521_v39 = vpop.f32.mrb[115].mxu1  ;;  %10640 = vmatprep.subr.bf16.mxu0 %v16086_v11  ;;  %v2747_v34 = vrot.slane %v2745_v40, 1  ;;  %v3129_v61 = vrot.slane %v2743_v18, 1  ;;  %v11735_v51 = vld [vmem:[#allocation5 + $0xe8] sm:$0xff]  }
 0x404   :  { %v3130_v62 = vrot.slane %v2745_v40, 2  ;;  %v3403_v46 = vrot.slane %v2743_v18, 2  ;;  %v3404_v44 = vrot.slane %v2745_v40, 3 }
 0x405   :  { %v2704_v5 = vmax.f32 %v2615_v63, %v2690_v2  ;;  %v2748_v36 = vor.u32 %v2747_v34, %v2743_v18  ;;  %v11736_v63 = vld [vmem:[#allocation5 + $0x90] sm:$0xff]  }
 0x406   :  { %10641 = vmatpush3.bf16.msra.mxu0 %v11727_v25  ;;  %v3405_v60 = vor.u32 %v3404_v44, %v3403_v46  ;;  %v11744_v46 = vld [vmem:[#allocation5 + $0xb0] sm:$0xff]   ;;  %v11754_v44 = vld [vmem:[#allocation5 + $0x118] sm:$0xff]  }
 0x407   :  { %v14190_v30 = vpack.c.bf16 %v2704_v5, %v2703_v54  ;;  %10642 = vmatprep.subr.bf16.mxu0 %v16086_v11 }
 0x408   :  { %v2606_v17 = vpop.f32.mrb[116].mxu1 }
 0x409   :  { %v2616_v22 = vmax.f32 %v2522_v58, %v2606_v17  ;;  %10603 = vmatmul.mubr.bf16.gmra.mrb[144].mxu0 %v14190_v30  ;;  %v2750_v38 = vshll.u32 %v14190_v30, 16  ;;  %v10524_v56 = vpop.f32.mrb[117].mxu1  ;;  %v2754_v16 = vshrl.u32 %v14190_v30, 16  ;;  %v2996_v26 = vrot.slane %v14190_v30, 1  ;;  %v11741_v17 = vld [vmem:[#allocation5 + $0x140] sm:$0xff]  }
 0x40a   :  { %10643 = vmatpush3.bf16.msra.mxu0 %v11729_v31  ;;  %10606 = vmatprep.mubr.msk.bf16.mxu0 %vm12555_vm6, %v16086_v11  ;;  %v2609_v10 = vpop.f32.mrb[118].mxu1  ;;  %v3270_v43 = vrot.slane %v14190_v30, 2  ;;  %v3544_v27 = vrot.slane %v14190_v30, 3  ;;  %v3131_v58 = vor.u32 %v3130_v62, %v3129_v61  ;;  %v11737_v31 = vld [vmem:[#allocation5 + $0xf0] sm:$0xff]   ;;  %v11738_v30 = vld [vmem:[#allocation5 + $0x98] sm:$0xff]   ;;  %v11742_v61 = vld [vmem:[#allocation5 + $0xa8] sm:$0xff]  }
 0x40b   :  { %v2705_v24 = vmax.f32 %v2616_v22, %v2695_v12  ;;  %10644 = vmatprep.subr.bf16.mxu0 %v16086_v11  ;;  %v2752_v52 = vrot.slane %v2750_v38, 1  ;;  %v10525_v4 = vpop.f32.mrb[119].mxu1  ;;  %v3132_v7 = vrot.slane %v2754_v16, 1  ;;  %v3133_v28 = vrot.slane %v2750_v38, 2  ;;  %v11743_v62 = vld [vmem:[#allocation5 + $0x148] sm:$0xff]   ;;  %v11746_v22 = vld [vmem:[#allocation5 + $0xb8] sm:$0xff]  }
 0x40c   :  { %v14206_v3 = vsel %vm912_vm1, %v2995_v8, %v2996_v26  ;;  %v3406_v9 = vrot.slane %v2754_v16, 2  ;;  %v3407_v35 = vrot.slane %v2750_v38, 3  ;;  %v14209_v2 = vsel %vm1522_vm4, %v3269_v41, %v3270_v43  ;;  %v11739_v8 = vld [vmem:[#allocation5 + $0xf8] sm:$0xff]   ;;  %v11740_v41 = vld [vmem:[#allocation5 + $0xa0] sm:$0xff]   ;;  %v11753_v10 = vld [vmem:[#allocation5 + $0x170] sm:$0xff]  }
 0x40d   :  { %v14211_v53 = vpack.c.bf16 %v2705_v24, %v2705_v24  ;;  %v2753_v0 = vsel %vm336_vm0, %v2748_v36, %v2752_v52  ;;  %v3134_v12 = vor.u32 %v3133_v28, %v3132_v7  ;;  %v14215_v33 = vsel %vm2138_vm5, %v3543_v15, %v3544_v27  ;;  %v11745_v15 = vld [vmem:[#allocation5 + $0x150] sm:$0xff]   ;;  %v11747_v38 = vld [vmem:[#allocation5 + $0x158] sm:$0xff]   ;;  %v11748_v56 = vld [vmem:[#allocation5 + $0x100] sm:$0xff]  }
 0x40e   :  { %10645 = vmatpush3.bf16.msra.mxu0 %v11731_v48  ;;  %10571 = vmatmul.mubr.bf16.vlgmr.msra.gmra.mrb[120].mxu1 %v2753_v0  ;;  %v3408_v6 = vor.u32 %v3407_v35, %v3406_v9  ;;  %v2756_v59 = vor.u32 %v2754_v16, %v2752_v52  ;;  %v11749_v16 = vld [vmem:[#allocation5 + $0x160] sm:$0xff]   ;;  %v11751_v48 = vld [vmem:[#allocation5 + $0x168] sm:$0xff]   ;;  %v11752_v36 = vld [vmem:[#allocation5 + $0x110] sm:$0xff]  }
 0x40f   :  { %10611 = vmatpush3.bf16.msra.mxu1 %v11732_v57  ;;  %10646 = vmatprep.subr.bf16.mxu0 %v16086_v11  ;;  %v2758_v13 = vshll.u32 %v14211_v53, 16  ;;  %v14220_v45 = vshrl.u32 %v14211_v53, 16  ;;  %v3135_v23 = vsel %vm1199_vm2, %v3131_v58, %v3134_v12  ;;  %v2998_v55 = vrot.slane %v14211_v53, 1  ;;  %v11757_v24 = vld [vmem:[#allocation5 + $0x128] sm:$0xff]   ;;  %v11758_v52 = vld [vmem:[#allocation5 + $0x130] sm:$0xff]   ;;  %v11759_v57 = vld [vmem:[#allocation5 + $0x138] sm:$0xff]  }
 0x410   :  { %10612 = vmatprep.subr.bf16.mxu1 %v16086_v11  ;;  %10574 = vmatprep.mubr.msk.bf16.mxu1 %vm12555_vm6, %v16086_v11  ;;  %v14228_v49 = vsel %vm1809_vm3, %v3405_v60, %v3408_v6  ;;  %v3272_v21 = vrot.slane %v14211_v53, 2  ;;  %v3546_v20 = vrot.slane %v14211_v53, 3  ;;  %v11760_v4 = vld [vmem:[#allocation5 + $0x180] sm:$0xff]   ;;  %v11761_v7 = vld [vmem:[#allocation5 + $0x188] sm:$0xff]   ;;  %v11762_v28 = vld [vmem:[#allocation5 + $0x190] sm:$0xff]  }
 0x411   :  { %10607 = vmatmul.mubr.bf16.gmra.mrb[148].mxu0 %v14211_v53  ;;  %v2760_v50 = vrot.slane %v2758_v13, 1  ;;  %v3136_v1 = vrot.slane %v14220_v45, 1  ;;  %v3137_v37 = vrot.slane %v2758_v13, 2  ;;  %v14237_v47 = vsel %vm912_vm1, %v2996_v26, %v2998_v55  ;;  %v11750_v26 = vld [vmem:[#allocation5 + $0x108] sm:$0xff]   ;;  %v11764_v9 = vld [vmem:[#allocation5 + $0x1a0] sm:$0xff]   ;;  %v11767_v0 = vld [vmem:[#allocation5 + $0x1b8] sm:$0xff]  }
 0x412   :  { %10647 = vmatpush3.bf16.msra.mxu0 %v11733_v19  ;;  %10654 = vmatprep.mubr.msk.bf16.mxu0 %vm12555_vm6, %v16086_v11  ;;  %v3410_v29 = vrot.slane %v14220_v45, 2  ;;  %v3411_v32 = vrot.slane %v2758_v13, 3  ;;  %v14245_v25 = vsel %vm1522_vm4, %v3270_v43, %v3272_v21  ;;  %v14250_v40 = vsel %vm2138_vm5, %v3544_v27, %v3546_v20  ;;  %v11755_v43 = vld [vmem:[#allocation5 + $0x178] sm:$0xff]   ;;  %v11756_v27 = vld [vmem:[#allocation5 + $0x120] sm:$0xff]   ;;  %v11765_v35 = vld [vmem:[#allocation5 + $0x1a8] sm:$0xff]  }
 0x413   :  { %10613 = vmatpush3.bf16.msra.mxu1 %v11734_v14  ;;  %10648 = vmatprep.subr.bf16.mxu0 %v16086_v11  ;;  %v2761_v54 = vsel %vm336_vm0, %v2756_v59, %v2760_v50  ;;  %v3138_v39 = vor.u32 %v3137_v37, %v3136_v1 }
 0x414   :  { %10614 = vmatprep.subr.bf16.mxu1 %v16086_v11  ;;  %v3412_v18 = vor.u32 %v3411_v32, %v3410_v29 }
 0x415   :  { %v3139_v5 = vsel %vm1199_vm2, %v3134_v12, %v3138_v39 }
 0x416   :  { %10649 = vmatpush3.bf16.msra.mxu0 %v11735_v51  ;;  %10575 = vmatmul.mubr.bf16.gmra.mrb[124].mxu1 %v2761_v54  ;;  %v14261_v34 = vsel %vm1809_vm3, %v3408_v6, %v3412_v18 }
 0x417   :  { %10615 = vmatpush3.bf16.msra.mxu1 %v11736_v63  ;;  %10650 = vmatprep.subr.bf16.mxu0 %v16086_v11 }
 0x418   :  { %10616 = vmatprep.subr.bf16.mxu1 %v16086_v11  ;;  %10578 = vmatprep.mubr.msk.bf16.mxu1 %vm12555_vm6, %v16086_v11 }
 0x41a   :  { %10651 = vmatpush3.bf16.msra.mxu0 %v11737_v31 }
 0x41b   :  { %10617 = vmatpush3.bf16.msra.mxu1 %v11738_v30  ;;  %10652 = vmatprep.subr.bf16.mxu0 %v16086_v11 }
 0x41c   :  { %10618 = vmatprep.subr.bf16.mxu1 %v16086_v11 }
 0x41e   :  { %10653 = vmatpush3.bf16.msra.mxu0 %v11739_v8  ;;  %10579 = vmatmul.mubr.bf16.gmra.mrb[128].mxu1 %v14220_v45 }
 0x41f   :  { %10619 = vmatpush3.bf16.msra.mxu1 %v11740_v41  ;;  %10694 = vmatprep.subr.bf16.mxu0 %v16086_v11 }
 0x420   :  { %10620 = vmatprep.subr.bf16.mxu1 %v16086_v11  ;;  %10626 = vmatprep.mubr.msk.bf16.mxu1 %vm12555_vm6, %v16086_v11 }
 0x421   :  { %10655 = vmatmul.mubr.bf16.vlgmr.msra.gmra.mrb[152].mxu0 %v3135_v23 }
 0x422   :  { %10695 = vmatpush3.bf16.msra.mxu0 %v11741_v17  ;;  %10658 = vmatprep.mubr.msk.bf16.mxu0 %vm12555_vm6, %v16086_v11 }
 0x423   :  { %10621 = vmatpush3.bf16.msra.mxu1 %v11742_v61  ;;  %10696 = vmatprep.subr.bf16.mxu0 %v16086_v11 }
 0x424   :  { %10622 = vmatprep.subr.bf16.mxu1 %v16086_v11 }
 0x426   :  { %10697 = vmatpush3.bf16.msra.mxu0 %v11743_v62 }
 0x427   :  { %10623 = vmatpush3.bf16.msra.mxu1 %v11744_v46  ;;  %10698 = vmatprep.subr.bf16.mxu0 %v16086_v11 }
 0x428   :  { %10624 = vmatprep.subr.bf16.mxu1 %v16086_v11 }
 0x429   :  { %10659 = vmatmul.mubr.bf16.gmra.mrb[156].mxu0 %v3139_v5 }
 0x42a   :  { %10699 = vmatpush3.bf16.msra.mxu0 %v11745_v15  ;;  %10662 = vmatprep.mubr.msk.bf16.mxu0 %vm12555_vm6, %v16086_v11 }
 0x42b   :  { %10625 = vmatpush3.bf16.msra.mxu1 %v11746_v22  ;;  %10700 = vmatprep.subr.bf16.mxu0 %v16086_v11 }
 0x42c   :  { %10666 = vmatprep.subr.bf16.mxu1 %v16086_v11 }
 0x42e   :  { %10627 = vmatmul.mubr.bf16.vlgmr.msra.gmra.mrb[132].mxu1 %v14206_v3  ;;  %10701 = vmatpush3.bf16.msra.mxu0 %v11747_v38  ;;  %v11763_v3 = vld [vmem:[#allocation5 + $0x198] sm:$0xff]  }
 0x42f   :  { %10667 = vmatpush3.bf16.msra.mxu1 %v11748_v56  ;;  %10702 = vmatprep.subr.bf16.mxu0 %v16086_v11 }
 0x430   :  { %10668 = vmatprep.subr.bf16.mxu1 %v16086_v11  ;;  %10630 = vmatprep.mubr.msk.bf16.mxu1 %vm12555_vm6, %v16086_v11 }
 0x431   :  { %10663 = vmatmul.mubr.bf16.gmra.mrb[160].mxu0 %v3136_v1 }
 0x432   :  { %10703 = vmatpush3.bf16.msra.mxu0 %v11749_v16  ;;  %10710 = vmatprep.mubr.msk.bf16.mxu0 %vm12555_vm6, %v16086_v11 }
 0x433   :  { %10669 = vmatpush3.bf16.msra.mxu1 %v11750_v26  ;;  %10704 = vmatprep.subr.bf16.mxu0 %v16086_v11 }
 0x434   :  { %10670 = vmatprep.subr.bf16.mxu1 %v16086_v11 }
 0x436   :  { %10631 = vmatmul.mubr.bf16.gmra.mrb[136].mxu1 %v14237_v47  ;;  %10705 = vmatpush3.bf16.msra.mxu0 %v11751_v48 }
 0x437   :  { %10671 = vmatpush3.bf16.msra.mxu1 %v11752_v36  ;;  %10706 = vmatprep.subr.bf16.mxu0 %v16086_v11 }
 0x438   :  { %10672 = vmatprep.subr.bf16.mxu1 %v16086_v11  ;;  %10634 = vmatprep.mubr.msk.bf16.mxu1 %vm12555_vm6, %v16086_v11 }
 0x43a   :  { %10707 = vmatpush3.bf16.msra.mxu0 %v11753_v10 }
 0x43b   :  { %10673 = vmatpush3.bf16.msra.mxu1 %v11754_v44  ;;  %10708 = vmatprep.subr.bf16.mxu0 %v16086_v11 }
 0x43c   :  { %10674 = vmatprep.subr.bf16.mxu1 %v16086_v11 }
 0x43e   :  { %10635 = vmatmul.mubr.bf16.gmra.mrb[140].mxu1 %v2998_v55  ;;  %10709 = vmatpush3.bf16.msra.mxu0 %v11755_v43 }
 0x43f   :  { %10675 = vmatpush3.bf16.msra.mxu1 %v11756_v27  ;;  %10682 = vmatprep.mubr.msk.bf16.mxu1 %vm12555_vm6, %v16086_v11 }
 0x440   :  { %10676 = vmatprep.subr.bf16.mxu1 %v16086_v11  ;;  %10750 = vmatprep.subr.bf16.mxu0 %v16086_v11 }
 0x441   :  { %10711 = vmatmul.mubr.bf16.vlgmr.msra.gmra.mrb[164].mxu0 %v14228_v49 }
 0x442   :  { %10714 = vmatprep.mubr.msk.bf16.mxu0 %vm12555_vm6, %v16086_v11 }
 0x443   :  { %10677 = vmatpush3.bf16.msra.mxu1 %v11757_v24 }
 0x444   :  { %10678 = vmatprep.subr.bf16.mxu1 %v16086_v11 }
 0x447   :  { %10679 = vmatpush3.bf16.msra.mxu1 %v11758_v52 }
 0x448   :  { %10680 = vmatprep.subr.bf16.mxu1 %v16086_v11 }
 0x449   :  { %10715 = vmatmul.mubr.bf16.gmra.mrb[168].mxu0 %v14261_v34 }
 0x44a   :  { %10718 = vmatprep.mubr.msk.bf16.mxu0 %vm12555_vm6, %v16086_v11 }
 0x44b   :  { %10681 = vmatpush3.bf16.msra.mxu1 %v11759_v57 }
 0x44c   :  { %10722 = vmatprep.subr.bf16.mxu1 %v16086_v11 }
 0x44e   :  { %10683 = vmatmul.mubr.bf16.vlgmr.msra.gmra.mrb[144].mxu1 %v14209_v2  ;;  %v11766_v2 = vld [vmem:[#allocation5 + $0x1b0] sm:$0xff]  }
 0x44f   :  { %10723 = vmatpush3.bf16.msra.mxu1 %v11760_v4  ;;  %10686 = vmatprep.mubr.msk.bf16.mxu1 %vm12555_vm6, %v16086_v11 }
 0x450   :  { %10724 = vmatprep.subr.bf16.mxu1 %v16086_v11 }
 0x451   :  { %10719 = vmatmul.mubr.bf16.gmra.mrb[172].mxu0 %v3410_v29 }
 0x452   :  { %10756 = vmatprep.mubr.msk.bf16.mxu0 %vm12555_vm6, %v16086_v11 }
 0x453   :  { %10725 = vmatpush3.bf16.msra.mxu1 %v11761_v7 }
 0x454   :  { %10726 = vmatprep.subr.bf16.mxu1 %v16086_v11 }
 0x456   :  { %10687 = vmatmul.mubr.bf16.gmra.mrb[148].mxu1 %v14245_v25 }
 0x457   :  { %10727 = vmatpush3.bf16.msra.mxu1 %v11762_v28  ;;  %10690 = vmatprep.mubr.msk.bf16.mxu1 %vm12555_vm6, %v16086_v11 }
 0x458   :  { %10728 = vmatprep.subr.bf16.mxu1 %v16086_v11 }
 0x45b   :  { %10729 = vmatpush3.bf16.msra.mxu1 %v11763_v3 }
 0x45c   :  { %10730 = vmatprep.subr.bf16.mxu1 %v16086_v11 }
 0x45e   :  { %10691 = vmatmul.mubr.bf16.gmra.mrb[152].mxu1 %v3272_v21 }
 0x45f   :  { %10731 = vmatpush3.bf16.msra.mxu1 %v11764_v9  ;;  %10738 = vmatprep.mubr.msk.bf16.mxu1 %vm12555_vm6, %v16086_v11 }
 0x460   :  { %10732 = vmatprep.subr.bf16.mxu1 %v16086_v11 }
 0x463   :  { %10733 = vmatpush3.bf16.msra.mxu1 %v11765_v35 }
 0x464   :  { %10734 = vmatprep.subr.bf16.mxu1 %v16086_v11 }
 0x467   :  { %10735 = vmatpush3.bf16.msra.mxu1 %v11766_v2 }
 0x468   :  { %10736 = vmatprep.subr.bf16.mxu1 %v16086_v11 }
 0x46b   :  { %10737 = vmatpush3.bf16.msra.mxu1 %v11767_v0 }
 0x46c   :  { %10760 = vmatprep.subr.bf16.mxu1 %v16086_v11 }
 0x46e   :  { %10739 = vmatmul.mubr.bf16.vlgmr.msra.gmra.mrb[156].mxu1 %v14215_v33 }
 0x46f   :  { %10742 = vmatprep.mubr.msk.bf16.mxu1 %vm12555_vm6, %v16086_v11 }
 0x476   :  { %10743 = vmatmul.mubr.bf16.gmra.mrb[160].mxu1 %v14250_v40 }
 0x477   :  { %10746 = vmatprep.mubr.msk.bf16.mxu1 %vm12555_vm6, %v16086_v11 }
 0x47e   :  { %10747 = vmatmul.mubr.bf16.gmra.mrb[164].mxu1 %v3546_v20 }
 0x47f   :  { %10766 = vmatprep.mubr.msk.bf16.mxu1 %vm12555_vm6, %v16086_v11 }
 0x4d4   :  { %v2953_v58 = vpop.f32.mrb[140].mxu0 }
 0x4d5   :  { %v10600_v12 = vpop.f32.mrb[141].mxu0 }
 0x4d6   :  { %v2956_v19 = vpop.f32.mrb[142].mxu0 }
 0x4d7   :  { %v10601_v60 = vpop.f32.mrb[143].mxu0 }
 0x4dc   :  { %v2961_v6 = vpop.f32.mrb[144].mxu0 }
 0x4dd   :  { %v10604_v33 = vpop.f32.mrb[145].mxu0 }
 0x4de   :  { %v2964_v14 = vpop.f32.mrb[146].mxu0 }
 0x4df   :  { %v10605_v13 = vpop.f32.mrb[147].mxu0 }
 0x4e1   :  { %v2849_v45 = vpop.f32.mrb[120].mxu1 }
 0x4e2   :  { %v2954_v23 = vadd.f32 %v2953_v58, %v2849_v45  ;;  %v10572_v55 = vpop.f32.mrb[121].mxu1 }
 0x4e3   :  { %v2852_v59 = vpop.f32.mrb[122].mxu1 }
 0x4e4   :  { %v2957_v49 = vadd.f32 %v2956_v19, %v2852_v59  ;;  %v10573_v21 = vpop.f32.mrb[123].mxu1  ;;  %v2969_v50 = vpop.f32.mrb[148].mxu0 }
 0x4e5   :  { %v10608_v53 = vpop.f32.mrb[149].mxu0 }
 0x4e6   :  { %v2972_v20 = vpop.f32.mrb[150].mxu0 }
 0x4e7   :  { %v10609_v1 = vpop.f32.mrb[151].mxu0 }
 0x4e9   :  { %v2857_v37 = vpop.f32.mrb[124].mxu1 }
 0x4ea   :  { %v2962_v47 = vadd.f32 %v2961_v6, %v2857_v37  ;;  %v10576_v51 = vpop.f32.mrb[125].mxu1 }
 0x4eb   :  { %v2860_v29 = vpop.f32.mrb[126].mxu1 }
 0x4ec   :  { %v2965_v32 = vadd.f32 %v2964_v14, %v2860_v29  ;;  %v10577_v25 = vpop.f32.mrb[127].mxu1 }
 0x4f1   :  { %v2865_v40 = vpop.f32.mrb[128].mxu1 }
 0x4f2   :  { %v2970_v54 = vadd.f32 %v2969_v50, %v2865_v40  ;;  %v10580_v63 = vpop.f32.mrb[129].mxu1 }
 0x4f3   :  { %v2868_v39 = vpop.f32.mrb[130].mxu1 }
 0x4f4   :  { %v3225_v18 = vpop.f32.mrb[152].mxu0  ;;  %v10581_v5 = vpop.f32.mrb[131].mxu1 }
 0x4f5   :  { %v10656_v31 = vpop.f32.mrb[153].mxu0 }
 0x4f6   :  { %v3228_v34 = vpop.f32.mrb[154].mxu0 }
 0x4f7   :  { %v10657_v30 = vpop.f32.mrb[155].mxu0 }
 0x4fc   :  { %v3233_v8 = vpop.f32.mrb[156].mxu0 }
 0x4fd   :  { %v10660_v41 = vpop.f32.mrb[157].mxu0 }
 0x4fe   :  { %v3236_v17 = vpop.f32.mrb[158].mxu0 }
 0x4ff   :  { %v10661_v61 = vpop.f32.mrb[159].mxu0 }
 0x500   :  { %v8872_v61 = vld [vmem:[#allocation7] ss:$0 sm:$0xff] }
 0x501   :  { %v3085_v62 = vpop.f32.mrb[132].mxu1 }
 0x502   :  { %v3107_v46 = vadd.f32 %v3085_v62, %v2954_v23  ;;  %v10628_v15 = vpop.f32.mrb[133].mxu1 }
 0x503   :  { %v3088_v22 = vpop.f32.mrb[134].mxu1 }
 0x504   :  { %v3108_v38 = vadd.f32 %v3088_v22, %v2957_v49  ;;  %v10629_v56 = vpop.f32.mrb[135].mxu1  ;;  %v3241_v16 = vpop.f32.mrb[160].mxu0  ;;  %v3247_v26 = vadd.f32 %v3225_v18, %v3107_v46 }
 0x505   :  { %v10664_v48 = vpop.f32.mrb[161].mxu0 }
 0x506   :  { %v3244_v36 = vpop.f32.mrb[162].mxu0  ;;  %v3248_v10 = vadd.f32 %v3228_v34, %v3108_v38 }
 0x507   :  { %v10665_v44 = vpop.f32.mrb[163].mxu0 }
 0x509   :  { %v3093_v43 = vpop.f32.mrb[136].mxu1 }
 0x50a   :  { %v3109_v27 = vadd.f32 %v3093_v43, %v2962_v47  ;;  %v10632_v24 = vpop.f32.mrb[137].mxu1 }
 0x50b   :  { %v3096_v52 = vpop.f32.mrb[138].mxu1 }
 0x50c   :  { %v3110_v57 = vadd.f32 %v3096_v52, %v2965_v32  ;;  %v10633_v4 = vpop.f32.mrb[139].mxu1  ;;  %v3249_v7 = vadd.f32 %v3233_v8, %v3109_v27 }
 0x50e   :  { %v3250_v28 = vadd.f32 %v3236_v17, %v3110_v57 }
 0x511   :  { %v3101_v3 = vpop.f32.mrb[140].mxu1 }
 0x512   :  { %v3111_v9 = vadd.f32 %v3101_v3, %v2970_v54  ;;  %v10636_v35 = vpop.f32.mrb[141].mxu1 }
 0x513   :  { %v3104_v2 = vpop.f32.mrb[142].mxu1 }
 0x514   :  { %v10637_v0 = vpop.f32.mrb[143].mxu1  ;;  %v3499_v58 = vpop.f32.mrb[164].mxu0  ;;  %v3251_v12 = vadd.f32 %v3241_v16, %v3111_v9 }
 0x515   :  { %v10712_v19 = vpop.f32.mrb[165].mxu0 }
 0x516   :  { %v3502_v60 = vpop.f32.mrb[166].mxu0 }
 0x517   :  { %v10713_v6 = vpop.f32.mrb[167].mxu0 }
 0x51c   :  { %v3507_v33 = vpop.f32.mrb[168].mxu0 }
 0x51d   :  { %v10716_v14 = vpop.f32.mrb[169].mxu0 }
 0x51e   :  { %v3510_v13 = vpop.f32.mrb[170].mxu0 }
 0x51f   :  { %v10717_v45 = vpop.f32.mrb[171].mxu0 }
 0x520   :  { %v11769_v45 = vld [vmem:[%s16049_s14 + $0x8] sm:$0x3f]  }
 0x521   :  { %v3359_v23 = vpop.f32.mrb[144].mxu1 }
 0x522   :  { %v3381_v55 = vadd.f32 %v3359_v23, %v3247_v26  ;;  %v10684_v59 = vpop.f32.mrb[145].mxu1  ;;  %v11773_v23 = vld [vmem:[#allocation8 + $0x40] sm:$0xff]  }
 0x523   :  { %v3362_v49 = vpop.f32.mrb[146].mxu1  ;;  %v11770_v59 = vld [vmem:[%s16049_s14 + $0x10] sm:$0x3f]  }
 0x524   :  { %v3382_v21 = vadd.f32 %v3362_v49, %v3248_v10  ;;  %v10685_v50 = vpop.f32.mrb[147].mxu1  ;;  %v3515_v53 = vpop.f32.mrb[172].mxu0  ;;  %v3521_v20 = vadd.f32 %v3499_v58, %v3381_v55  ;;  %v11775_v55 = vld [vmem:[#allocation8 + $0x48] sm:$0xff]   ;;  %v11771_v49 = vld [vmem:[#allocation8] sm:$0xff]  }
 0x525   :  { %v10720_v1 = vpop.f32.mrb[173].mxu0  ;;  %v11774_v50 = vld [vmem:[#allocation8 + $0x10] sm:$0xff]  }
 0x526   :  { %v3518_v37 = vpop.f32.mrb[174].mxu0  ;;  %v3522_v47 = vadd.f32 %v3502_v60, %v3382_v21  ;;  %v16085_v60 = vmov 0   ;;  %v11772_v21 = vld [vmem:[#allocation8 + $0x8] sm:$0xff]   ;;  %v11778_v1 = vld [vmem:[#allocation8 + $0x20] sm:$0xff]  }
 0x527   :  { %v10721_v51 = vpop.f32.mrb[175].mxu0  ;;  %v14355_v6 = vsel %vm3691_vm10, 65535, %v16085_v60  ;;  %v11779_v37 = vld [vmem:[#allocation8 + $0x58] sm:$0xff]  }
 0x528   :  { %16224 = vst [vmem:[#allocation41_spill] sm:$0xff] %v14355_v6  ;;  %v11781_v51 = vld [vmem:[#allocation8 + $0x60] sm:$0xff]  }
 0x529   :  { %v3367_v29 = vpop.f32.mrb[148].mxu1 }
 0x52a   :  { %v3383_v32 = vadd.f32 %v3367_v29, %v3249_v7  ;;  %v10688_v25 = vpop.f32.mrb[149].mxu1  ;;  %v11782_v29 = vld [vmem:[#allocation8 + $0x30] sm:$0xff]  }
 0x52b   :  { %v3370_v40 = vpop.f32.mrb[150].mxu1  ;;  %v11784_v25 = vld [vmem:[#allocation8 + $0x38] sm:$0xff]  }
 0x52c   :  { %v3384_v54 = vadd.f32 %v3370_v40, %v3250_v28  ;;  %v10689_v63 = vpop.f32.mrb[151].mxu1  ;;  %v3523_v39 = vadd.f32 %v3507_v33, %v3383_v32  ;;  %v11783_v32 = vld [vmem:[#allocation8 + $0x68] sm:$0xff]   ;;  %v11785_v40 = vld [vmem:[#allocation8 + $0x70] sm:$0xff]  }
 0x52e   :  { %v3524_v18 = vadd.f32 %v3510_v13, %v3384_v54  ;;  %v11768_v13 = vld [vmem:[%s16049_s14] sm:$0x3f]  }
 0x52f   :  { %v11786_v54 = vld [vmem:[#allocation8 + $0x78] sm:$0xff]  }
 0x531   :  { %v3375_v5 = vpop.f32.mrb[152].mxu1 }
 0x532   :  { %v3385_v31 = vadd.f32 %v3375_v5, %v3251_v12  ;;  %v10692_v34 = vpop.f32.mrb[153].mxu1 }
 0x533   :  { %v3378_v30 = vpop.f32.mrb[154].mxu1 }
 0x534   :  { %v10693_v8 = vpop.f32.mrb[155].mxu1  ;;  %v3525_v41 = vadd.f32 %v3515_v53, %v3385_v31  ;;  %v11776_v53 = vld [vmem:[#allocation8 + $0x18] sm:$0xff]  }
 0x541   :  { %v3633_v17 = vpop.f32.mrb[156].mxu1 }
 0x542   :  { %v3655_v62 = vadd.f32 %v3633_v17, %v3521_v20  ;;  %v10740_v46 = vpop.f32.mrb[157].mxu1  ;;  %v11777_v20 = vld [vmem:[#allocation8 + $0x50] sm:$0xff]  }
 0x543   :  { %v3636_v15 = vpop.f32.mrb[158].mxu1 }
 0x544   :  { %v3667_v22 = vadd.f32 %v8872_v61, %v3655_v62  ;;  %v3656_v38 = vadd.f32 %v3636_v15, %v3522_v47  ;;  %v10741_v56 = vpop.f32.mrb[159].mxu1  ;;  %v11780_v47 = vld [vmem:[#allocation8 + $0x28] sm:$0xff]  }
 0x546   :  { %v3668_v16 = vadd.f32 %v8872_v61, %v3656_v38  ;;  %v3672_v26 = vmax.f32 %v3667_v22, 0.0 }
 0x548   :  { %v3673_v48 = vmax.f32 %v3668_v16, 0.0 }
 0x549   :  { %v3641_v36 = vpop.f32.mrb[160].mxu1 }
 0x54a   :  { %v3677_v10 = vpack.c.bf16 %v3673_v48, %v3672_v26  ;;  %v3657_v44 = vadd.f32 %v3641_v36, %v3523_v39  ;;  %v10744_v43 = vpop.f32.mrb[161].mxu1  ;;  %v11787_v36 = vld [vmem:[#allocation8 + $0x80] sm:$0xff]  }
 0x54b   :  { %v3644_v27 = vpop.f32.mrb[162].mxu1  ;;  %v11789_v43 = vld [vmem:[#allocation8 + $0x90] sm:$0xff]  }
 0x54c   :  { %v3669_v24 = vadd.f32 %v8872_v61, %v3657_v44  ;;  %v3658_v52 = vadd.f32 %v3644_v27, %v3524_v18  ;;  %v10745_v57 = vpop.f32.mrb[163].mxu1  ;;  %10751 = vmatpush3.bf16.msra.mxu0 %v3677_v10  ;;  %10761 = vmatpush3.bf16.msra.mxu1 %v3677_v10  ;;  %v11788_v44 = vld [vmem:[#allocation8 + $0x88] sm:$0xff]   ;;  %v11790_v27 = vld [vmem:[#allocation8 + $0x98] sm:$0xff]  }
 0x54d   :  { %10752 = vmatprep.subr.bf16.mxu0 %v16086_v11  ;;  %10762 = vmatprep.subr.bf16.mxu1 %v16086_v11  ;;  %v11793_v57 = vld [vmem:[#allocation8 + $0xb0] sm:$0xff]  }
 0x54e   :  { %v3670_v4 = vadd.f32 %v8872_v61, %v3658_v52  ;;  %v3674_v7 = vmax.f32 %v3669_v24, 0.0  ;;  %v11791_v24 = vld [vmem:[#allocation8 + $0xa0] sm:$0xff]   ;;  %v11792_v52 = vld [vmem:[#allocation8 + $0xa8] sm:$0xff]  }
 0x550   :  { %v3675_v28 = vmax.f32 %v3670_v4, 0.0  ;;  %v11794_v4 = vld [vmem:[#allocation8 + $0xb8] sm:$0xff]  }
 0x551   :  { %v3649_v3 = vpop.f32.mrb[164].mxu1 }
 0x552   :  { %v3678_v9 = vpack.c.bf16 %v3675_v28, %v3674_v7  ;;  %v3659_v35 = vadd.f32 %v3649_v3, %v3525_v41  ;;  %v10748_v2 = vpop.f32.mrb[165].mxu1  ;;  %v11795_v28 = vld [vmem:[#allocation11] sm:$0xff]  }
 0x553   :  { %v3652_v0 = vpop.f32.mrb[166].mxu1  ;;  %v11797_v3 = vld [vmem:[#allocation11 + $0x40] sm:$0xff]   ;;  %v11798_v2 = vld [vmem:[#allocation11 + $0x10] sm:$0xff]  }
 0x554   :  { %v3671_v58 = vadd.f32 %v8872_v61, %v3659_v35  ;;  %v10749_v12 = vpop.f32.mrb[167].mxu1  ;;  %10753 = vmatpush3.bf16.msra.mxu0 %v3678_v9  ;;  %10763 = vmatpush3.bf16.msra.mxu1 %v3678_v9  ;;  %v11799_v35 = vld [vmem:[#allocation11 + $0x48] sm:$0xff]   ;;  %v11801_v0 = vld [vmem:[#allocation11 + $0x50] sm:$0xff]  }
 0x555   :  { %10754 = vmatprep.subr.bf16.mxu0 %v16086_v11  ;;  %10764 = vmatprep.subr.bf16.mxu1 %v16086_v11  ;;  %v11803_v12 = vld [vmem:[#allocation11 + $0x58] sm:$0xff]  }
 0x556   :  { %v3676_v19 = vmax.f32 %v3671_v58, 0.0  ;;  %v11800_v58 = vld [vmem:[#allocation11 + $0x18] sm:$0xff]  }
 0x558   :  { %v3679_v33 = vpack.c.bf16 %v3676_v19, %v3676_v19  ;;  %v11802_v19 = vld [vmem:[#allocation11 + $0x20] sm:$0xff]  }
 0x55a   :  { %v3695_v14 = vand.u32 %v14355_v6, %v3679_v33  ;;  %v11805_v33 = vld [vmem:[#allocation11 + $0x60] sm:$0xff]  }
 0x55c   :  { %10755 = vmatpush3.bf16.msra.mxu0 %v3695_v14  ;;  %10765 = vmatpush3.bf16.msra.mxu1 %v3695_v14 }
 0x55d   :  { %10770 = vmatprep.subr.bf16.mxu0 %v16086_v11  ;;  %10780 = vmatprep.subr.bf16.mxu1 %v16086_v11 }
 0x55f   :  { %10757 = vmatmul.mubr.msk.bf16.vlgmr.msra.gmra.mrb[176].mxu0 %vm3687_vm11, %v11768_v13  ;;  %10767 = vmatmul.mubr.msk.bf16.vlgmr.msra.gmra.mrb[168].mxu1 %vm3687_vm11, %v11769_v45  ;;  %v11806_v13 = vld [vmem:[#allocation11 + $0x30] sm:$0xff]   ;;  %v11807_v45 = vld [vmem:[#allocation11 + $0x68] sm:$0xff]  }
 0x560   :  { %10771 = vmatpush3.bf16.msra.mxu0 %v3677_v10  ;;  %10776 = vmatprep.mubr.msk.bf16.mxu0 %vm12555_vm6, %v16086_v11 }
 0x561   :  { %10772 = vmatprep.subr.bf16.mxu0 %v16086_v11  ;;  %10781 = vmatpush3.bf16.msra.mxu1 %v11773_v23  ;;  %v11808_v23 = vld [vmem:[#allocation11 + $0x38] sm:$0xff]  }
 0x562   :  { %10782 = vmatprep.subr.bf16.mxu1 %v16086_v11  ;;  %10796 = vmatprep.mubr.msk.bf16.mxu1 %vm12555_vm6, %v16086_v11 }
 0x564   :  { %10773 = vmatpush3.bf16.msra.mxu0 %v3678_v9  ;;  %v11796_v9 = vld [vmem:[#allocation11 + $0x8] sm:$0xff]  }
 0x565   :  { %10774 = vmatprep.subr.bf16.mxu0 %v16086_v11  ;;  %10783 = vmatpush3.bf16.msra.mxu1 %v11775_v55  ;;  %v11809_v55 = vld [vmem:[#allocation11 + $0x70] sm:$0xff]  }
 0x566   :  { %10784 = vmatprep.subr.bf16.mxu1 %v16086_v11 }
 0x568   :  { %10775 = vmatpush3.bf16.msra.mxu0 %v3695_v14  ;;  %v11804_v14 = vld [vmem:[#allocation11 + $0x28] sm:$0xff]  }
 0x569   :  { %10800 = vmatprep.subr.bf16.mxu0 %v16086_v11  ;;  %10785 = vmatpush3.bf16.msra.mxu1 %v11777_v20 }
 0x56a   :  { %10786 = vmatprep.subr.bf16.mxu1 %v16086_v11 }
 0x56b   :  { %10777 = vmatmul.mubr.msk.bf16.vlgmr.msra.gmra.mrb[180].mxu0 %vm3687_vm11, %v11770_v59  ;;  %v11810_v59 = vld [vmem:[#allocation11 + $0x78] sm:$0xff]  }
 0x56c   :  { %10801 = vmatpush3.bf16.msra.mxu0 %v11771_v49  ;;  %10816 = vmatprep.mubr.msk.bf16.mxu0 %vm12555_vm6, %v16086_v11 }
 0x56d   :  { %10802 = vmatprep.subr.bf16.mxu0 %v16086_v11  ;;  %10787 = vmatpush3.bf16.msra.mxu1 %v11779_v37 }
 0x56e   :  { %10788 = vmatprep.subr.bf16.mxu1 %v16086_v11 }
 0x570   :  { %10803 = vmatpush3.bf16.msra.mxu0 %v11772_v21 }
 0x571   :  { %10804 = vmatprep.subr.bf16.mxu0 %v16086_v11  ;;  %10789 = vmatpush3.bf16.msra.mxu1 %v11781_v51 }
 0x572   :  { %10790 = vmatprep.subr.bf16.mxu1 %v16086_v11 }
 0x574   :  { %10805 = vmatpush3.bf16.msra.mxu0 %v11774_v50 }
 0x575   :  { %10806 = vmatprep.subr.bf16.mxu0 %v16086_v11  ;;  %10791 = vmatpush3.bf16.msra.mxu1 %v11783_v32 }
 0x576   :  { %10792 = vmatprep.subr.bf16.mxu1 %v16086_v11 }
 0x578   :  { %10807 = vmatpush3.bf16.msra.mxu0 %v11776_v53 }
 0x579   :  { %10808 = vmatprep.subr.bf16.mxu0 %v16086_v11  ;;  %10793 = vmatpush3.bf16.msra.mxu1 %v11785_v40 }
 0x57a   :  { %10794 = vmatprep.subr.bf16.mxu1 %v16086_v11 }
 0x57c   :  { %10809 = vmatpush3.bf16.msra.mxu0 %v11778_v1 }
 0x57d   :  { %10810 = vmatprep.subr.bf16.mxu0 %v16086_v11  ;;  %10795 = vmatpush3.bf16.msra.mxu1 %v11786_v54 }
 0x57e   :  { %10820 = vmatprep.subr.bf16.mxu1 %v16086_v11 }
 0x580   :  { %10811 = vmatpush3.bf16.msra.mxu0 %v11780_v47 }
 0x581   :  { %10812 = vmatprep.subr.bf16.mxu0 %v16086_v11 }
 0x584   :  { %10813 = vmatpush3.bf16.msra.mxu0 %v11782_v29 }
 0x585   :  { %10814 = vmatprep.subr.bf16.mxu0 %v16086_v11 }
 0x588   :  { %10815 = vmatpush3.bf16.msra.mxu0 %v11784_v25  ;;  %v8907_v25 = vld [vmem:[#allocation10] ss:$0 sm:$0xff] }
 0x589   :  { %10840 = vmatprep.subr.bf16.mxu0 %v16086_v11 }
 0x632   :  { %v3731_v63 = vpop.f32.mrb[176].mxu0  ;;  %v3783_v39 = vpop.f32.mrb[168].mxu1 }
 0x633   :  { %v3790_v18 = vmax.f32 %v3731_v63, %v3783_v39  ;;  %v10758_v5 = vpop.f32.mrb[177].mxu0  ;;  %v10768_v31 = vpop.f32.mrb[169].mxu1 }
 0x634   :  { %v3734_v34 = vpop.f32.mrb[178].mxu0  ;;  %v3786_v30 = vpop.f32.mrb[170].mxu1 }
 0x635   :  { %v3791_v8 = vmax.f32 %v3734_v34, %v3786_v30  ;;  %v10759_v41 = vpop.f32.mrb[179].mxu0  ;;  %v10769_v17 = vpop.f32.mrb[171].mxu1 }
 0x63e   :  { %v3837_v61 = vpop.f32.mrb[180].mxu0 }
 0x63f   :  { %v3844_v62 = vmax.f32 %v3790_v18, %v3837_v61  ;;  %v10778_v46 = vpop.f32.mrb[181].mxu0 }
 0x640   :  { %v3840_v15 = vpop.f32.mrb[182].mxu0  ;;  %v11811_v46 = vld [vmem:[#allocation11 + $0x80] sm:$0xff]  }
 0x641   :  { %v3845_v22 = vmax.f32 %v3791_v8, %v3840_v15  ;;  %v10779_v38 = vpop.f32.mrb[183].mxu0 }
 0x642   :  { %v11813_v38 = vld [vmem:[#allocation11 + $0x90] sm:$0xff]  }
 0x643   :  { %v3846_v56 = vpack.c.bf16 %v3845_v22, %v3844_v62  ;;  %v11812_v22 = vld [vmem:[#allocation11 + $0x88] sm:$0xff]  }
 0x645   :  { %10817 = vmatmul.mubr.bf16.vlgmr.msra.gmra.mrb[184].mxu0 %v3846_v56  ;;  %v3883_v16 = vshll.u32 %v3846_v56, 16  ;;  %v3881_v26 = vshrl.u32 %v3846_v56, 16  ;;  %v4084_v7 = vrot.slane %v3846_v56, 1  ;;  %v11814_v56 = vld [vmem:[#allocation11 + $0x98] sm:$0xff]  }
 0x646   :  { %10856 = vmatprep.mubr.msk.bf16.mxu0 %vm12555_vm6, %v16086_v11  ;;  %10841 = vmatpush3.bf16.msra.mxu0 %v11797_v3  ;;  %v11829_v3 = vld [vmem:[#allocation14 + $0x60] sm:$0xff]  }
 0x647   :  { %v3885_v48 = vrot.slane %v3883_v16, 1  ;;  %10842 = vmatprep.subr.bf16.mxu0 %v16086_v11  ;;  %v11815_v16 = vld [vmem:[#allocation11 + $0xa0] sm:$0xff]  }
 0x649   :  { %v3886_v10 = vor.u32 %v3885_v48, %v3881_v26  ;;  %v11816_v26 = vld [vmem:[#allocation11 + $0xa8] sm:$0xff]   ;;  %v11817_v48 = vld [vmem:[#allocation11 + $0xb0] sm:$0xff]  }
 0x64a   :  { %10843 = vmatpush3.bf16.msra.mxu0 %v11799_v35  ;;  %v11830_v35 = vld [vmem:[#allocation14 + $0x30] sm:$0xff]  }
 0x64b   :  { %10797 = vmatmul.mubr.bf16.vlgmr.msra.gmra.mrb[172].mxu1 %v3886_v10  ;;  %10844 = vmatprep.subr.bf16.mxu0 %v16086_v11 }
 0x64c   :  { %10821 = vmatpush3.bf16.msra.mxu1 %v11787_v36  ;;  %10836 = vmatprep.mubr.msk.bf16.mxu1 %vm12555_vm6, %v16086_v11  ;;  %v11818_v36 = vld [vmem:[#allocation11 + $0xb8] sm:$0xff]  }
 0x64d   :  { %10822 = vmatprep.subr.bf16.mxu1 %v16086_v11 }
 0x64e   :  { %10845 = vmatpush3.bf16.msra.mxu0 %v11801_v0  ;;  %v11832_v0 = vld [vmem:[#allocation14 + $0x38] sm:$0xff]  }
 0x64f   :  { %10846 = vmatprep.subr.bf16.mxu0 %v16086_v11 }
 0x650   :  { %10823 = vmatpush3.bf16.msra.mxu1 %v11788_v44  ;;  %v11819_v44 = vld [vmem:[#allocation14] sm:$0xff]  }
 0x651   :  { %10824 = vmatprep.subr.bf16.mxu1 %v16086_v11 }
 0x652   :  { %10847 = vmatpush3.bf16.msra.mxu0 %v11803_v12  ;;  %v11834_v12 = vld [vmem:[#allocation14 + $0x78] sm:$0xff]  }
 0x653   :  { %10848 = vmatprep.subr.bf16.mxu0 %v16086_v11 }
 0x654   :  { %10825 = vmatpush3.bf16.msra.mxu1 %v11789_v43  ;;  %v11821_v43 = vld [vmem:[#allocation14 + $0x40] sm:$0xff]  }
 0x655   :  { %10826 = vmatprep.subr.bf16.mxu1 %v16086_v11 }
 0x656   :  { %10849 = vmatpush3.bf16.msra.mxu0 %v11805_v33 }
 0x657   :  { %10850 = vmatprep.subr.bf16.mxu0 %v16086_v11 }
 0x658   :  { %10827 = vmatpush3.bf16.msra.mxu1 %v11790_v27  ;;  %v11820_v27 = vld [vmem:[#allocation14 + $0x8] sm:$0xff]  }
 0x659   :  { %10828 = vmatprep.subr.bf16.mxu1 %v16086_v11 }
 0x65a   :  { %10851 = vmatpush3.bf16.msra.mxu0 %v11807_v45 }
 0x65b   :  { %10852 = vmatprep.subr.bf16.mxu0 %v16086_v11 }
 0x65c   :  { %10829 = vmatpush3.bf16.msra.mxu1 %v11791_v24  ;;  %v11823_v24 = vld [vmem:[#allocation14 + $0x48] sm:$0xff]  }
 0x65d   :  { %10830 = vmatprep.subr.bf16.mxu1 %v16086_v11 }
 0x65e   :  { %10853 = vmatpush3.bf16.msra.mxu0 %v11809_v55 }
 0x65f   :  { %10854 = vmatprep.subr.bf16.mxu0 %v16086_v11 }
 0x660   :  { %10831 = vmatpush3.bf16.msra.mxu1 %v11792_v52  ;;  %v11822_v52 = vld [vmem:[#allocation14 + $0x10] sm:$0xff]  }
 0x661   :  { %10832 = vmatprep.subr.bf16.mxu1 %v16086_v11 }
 0x662   :  { %10855 = vmatpush3.bf16.msra.mxu0 %v11810_v59 }
 0x663   :  { %10880 = vmatprep.subr.bf16.mxu0 %v16086_v11 }
 0x664   :  { %10833 = vmatpush3.bf16.msra.mxu1 %v11793_v57  ;;  %v11825_v57 = vld [vmem:[#allocation14 + $0x50] sm:$0xff]  }
 0x665   :  { %10834 = vmatprep.subr.bf16.mxu1 %v16086_v11 }
 0x668   :  { %10835 = vmatpush3.bf16.msra.mxu1 %v11794_v4  ;;  %v11824_v4 = vld [vmem:[#allocation14 + $0x18] sm:$0xff]  }
 0x669   :  { %10860 = vmatprep.subr.bf16.mxu1 %v16086_v11 }
 0x66b   :  { %10837 = vmatmul.mubr.bf16.vlgmr.msra.gmra.mrb[176].mxu1 %v4084_v7  ;;  %v11827_v7 = vld [vmem:[#allocation14 + $0x58] sm:$0xff]  }
 0x66c   :  { %10876 = vmatprep.mubr.msk.bf16.mxu1 %vm12555_vm6, %v16086_v11  ;;  %10861 = vmatpush3.bf16.msra.mxu1 %v11795_v28  ;;  %v11826_v28 = vld [vmem:[#allocation14 + $0x20] sm:$0xff]  }
 0x66d   :  { %10862 = vmatprep.subr.bf16.mxu1 %v16086_v11 }
 0x670   :  { %10863 = vmatpush3.bf16.msra.mxu1 %v11796_v9  ;;  %v11828_v9 = vld [vmem:[#allocation14 + $0x28] sm:$0xff]  }
 0x671   :  { %10864 = vmatprep.subr.bf16.mxu1 %v16086_v11 }
 0x674   :  { %10865 = vmatpush3.bf16.msra.mxu1 %v11798_v2  ;;  %v11831_v2 = vld [vmem:[#allocation14 + $0x68] sm:$0xff]  }
 0x675   :  { %10866 = vmatprep.subr.bf16.mxu1 %v16086_v11 }
 0x678   :  { %10867 = vmatpush3.bf16.msra.mxu1 %v11800_v58  ;;  %v11833_v58 = vld [vmem:[#allocation14 + $0x70] sm:$0xff]  }
 0x679   :  { %10868 = vmatprep.subr.bf16.mxu1 %v16086_v11 }
 0x67c   :  { %10869 = vmatpush3.bf16.msra.mxu1 %v11802_v19 }
 0x67d   :  { %10870 = vmatprep.subr.bf16.mxu1 %v16086_v11 }
 0x680   :  { %10871 = vmatpush3.bf16.msra.mxu1 %v11804_v14 }
 0x681   :  { %10872 = vmatprep.subr.bf16.mxu1 %v16086_v11 }
 0x684   :  { %10873 = vmatpush3.bf16.msra.mxu1 %v11806_v13 }
 0x685   :  { %10874 = vmatprep.subr.bf16.mxu1 %v16086_v11 }
 0x688   :  { %10875 = vmatpush3.bf16.msra.mxu1 %v11808_v23 }
 0x689   :  { %10900 = vmatprep.subr.bf16.mxu1 %v16086_v11 }
 0x718   :  { %v4059_v49 = vpop.f32.mrb[184].mxu0 }
 0x719   :  { %v10818_v21 = vpop.f32.mrb[185].mxu0 }
 0x71a   :  { %v4062_v50 = vpop.f32.mrb[186].mxu0 }
 0x71b   :  { %v10819_v53 = vpop.f32.mrb[187].mxu0 }
 0x71e   :  { %v3970_v20 = vpop.f32.mrb[172].mxu1 }
 0x71f   :  { %v4060_v1 = vadd.f32 %v4059_v49, %v3970_v20  ;;  %v10798_v37 = vpop.f32.mrb[173].mxu1 }
 0x720   :  { %v3973_v47 = vpop.f32.mrb[174].mxu1 }
 0x721   :  { %v4063_v51 = vadd.f32 %v4062_v50, %v3973_v47  ;;  %v10799_v29 = vpop.f32.mrb[175].mxu1  ;;  %v8932_v50 = vld [vmem:[#allocation13] ss:$0 sm:$0xff] }
 0x73e   :  { %v4168_v32 = vpop.f32.mrb[176].mxu1 }
 0x73f   :  { %v4175_v40 = vadd.f32 %v4168_v32, %v4060_v1  ;;  %v10838_v54 = vpop.f32.mrb[177].mxu1 }
 0x740   :  { %v4171_v63 = vpop.f32.mrb[178].mxu1  ;;  %v11835_v54 = vld [vmem:[#allocation14 + $0x80] sm:$0xff]  }
 0x741   :  { %v4184_v39 = vadd.f32 %v8907_v25, %v4175_v40  ;;  %v4176_v18 = vadd.f32 %v4171_v63, %v4063_v51  ;;  %v10839_v5 = vpop.f32.mrb[179].mxu1 }
 0x742   :  { %v11838_v5 = vld [vmem:[#allocation14 + $0x98] sm:$0xff]  }
 0x743   :  { %v4186_v31 = vmax.f32 %v4184_v39, 0.0  ;;  %v4185_v34 = vadd.f32 %v8907_v25, %v4176_v18  ;;  %v11836_v39 = vld [vmem:[#allocation14 + $0x88] sm:$0xff]   ;;  %v11837_v18 = vld [vmem:[#allocation14 + $0x90] sm:$0xff]  }
 0x745   :  { %v4188_v30 = vpack.c.bf16 %v4186_v31, %v4186_v31  ;;  %v4187_v8 = vmax.f32 %v4185_v34, 0.0  ;;  %v11840_v34 = vld [vmem:[#allocation14 + $0xa8] sm:$0xff]  }
 0x747   :  { %v4225_v41 = vshll.u32 %v4188_v30, 16  ;;  %v4406_v17 = vpack.c.bf16 %v4187_v8, %v4186_v31  ;;  %10877 = vmatmul.mubr.bf16.vlgmr.msra.gmra.mrb[180].mxu1 %v4188_v30  ;;  %v4223_v61 = vshrl.u32 %v4188_v30, 16  ;;  %v11839_v31 = vld [vmem:[#allocation14 + $0xa0] sm:$0xff]   ;;  %v11841_v30 = vld [vmem:[#allocation14 + $0xb0] sm:$0xff]   ;;  %v11842_v8 = vld [vmem:[#allocation14 + $0xb8] sm:$0xff]  }
 0x748   :  { %10916 = vmatprep.mubr.msk.bf16.mxu1 %vm12555_vm6, %v16086_v11  ;;  %10901 = vmatpush3.bf16.msra.mxu1 %v11821_v43  ;;  %v11857_v43 = vld [vmem:[#allocation17 + $0x70] sm:$0xff]  }
 0x749   :  { %v4227_v62 = vrot.slane %v4225_v41, 1  ;;  %v4425_v10 = vrot.slane %v4406_v17, 1  ;;  %10902 = vmatprep.subr.bf16.mxu1 %v16086_v11  ;;  %v11843_v17 = vld [vmem:[#allocation17] sm:$0xff]  }
 0x74b   :  { %v4228_v15 = vor.u32 %v4227_v62, %v4223_v61  ;;  %v11845_v61 = vld [vmem:[#allocation17 + $0x40] sm:$0xff]   ;;  %v11844_v62 = vld [vmem:[#allocation17 + $0x8] sm:$0xff]  }
 0x74c   :  { %10903 = vmatpush3.bf16.msra.mxu1 %v11823_v24  ;;  %v11858_v24 = vld [vmem:[#allocation17 + $0x78] sm:$0xff]  }
 0x74d   :  { %10857 = vmatmul.mubr.bf16.vlgmr.msra.gmra.mrb[188].mxu0 %v4228_v15  ;;  %10904 = vmatprep.subr.bf16.mxu1 %v16086_v11  ;;  %v11846_v15 = vld [vmem:[#allocation17 + $0x10] sm:$0xff]  }
 0x74e   :  { %10881 = vmatpush3.bf16.msra.mxu0 %v11811_v46  ;;  %10896 = vmatprep.mubr.msk.bf16.mxu0 %vm12555_vm6, %v16086_v11  ;;  %v11847_v46 = vld [vmem:[#allocation17 + $0x48] sm:$0xff]  }
 0x74f   :  { %10882 = vmatprep.subr.bf16.mxu0 %v16086_v11 }
 0x750   :  { %10905 = vmatpush3.bf16.msra.mxu1 %v11825_v57 }
 0x751   :  { %10906 = vmatprep.subr.bf16.mxu1 %v16086_v11 }
 0x752   :  { %10883 = vmatpush3.bf16.msra.mxu0 %v11812_v22  ;;  %v11849_v22 = vld [vmem:[#allocation17 + $0x50] sm:$0xff]  }
 0x753   :  { %10884 = vmatprep.subr.bf16.mxu0 %v16086_v11 }
 0x754   :  { %10907 = vmatpush3.bf16.msra.mxu1 %v11827_v7 }
 0x755   :  { %10908 = vmatprep.subr.bf16.mxu1 %v16086_v11 }
 0x756   :  { %10885 = vmatpush3.bf16.msra.mxu0 %v11813_v38  ;;  %v11848_v38 = vld [vmem:[#allocation17 + $0x18] sm:$0xff]  }
 0x757   :  { %10886 = vmatprep.subr.bf16.mxu0 %v16086_v11 }
 0x758   :  { %10909 = vmatpush3.bf16.msra.mxu1 %v11829_v3 }
 0x759   :  { %10910 = vmatprep.subr.bf16.mxu1 %v16086_v11 }
 0x75a   :  { %10887 = vmatpush3.bf16.msra.mxu0 %v11814_v56  ;;  %v11851_v56 = vld [vmem:[#allocation17 + $0x58] sm:$0xff]  }
 0x75b   :  { %10888 = vmatprep.subr.bf16.mxu0 %v16086_v11 }
 0x75c   :  { %10911 = vmatpush3.bf16.msra.mxu1 %v11831_v2 }
 0x75d   :  { %10912 = vmatprep.subr.bf16.mxu1 %v16086_v11 }
 0x75e   :  { %10889 = vmatpush3.bf16.msra.mxu0 %v11815_v16  ;;  %v11850_v16 = vld [vmem:[#allocation17 + $0x20] sm:$0xff]  }
 0x75f   :  { %10890 = vmatprep.subr.bf16.mxu0 %v16086_v11 }
 0x760   :  { %10913 = vmatpush3.bf16.msra.mxu1 %v11833_v58 }
 0x761   :  { %10914 = vmatprep.subr.bf16.mxu1 %v16086_v11 }
 0x762   :  { %10891 = vmatpush3.bf16.msra.mxu0 %v11816_v26  ;;  %v11853_v26 = vld [vmem:[#allocation17 + $0x60] sm:$0xff]  }
 0x763   :  { %10892 = vmatprep.subr.bf16.mxu0 %v16086_v11 }
 0x764   :  { %10915 = vmatpush3.bf16.msra.mxu1 %v11834_v12 }
 0x765   :  { %10940 = vmatprep.subr.bf16.mxu1 %v16086_v11 }
 0x766   :  { %10893 = vmatpush3.bf16.msra.mxu0 %v11817_v48  ;;  %v11852_v48 = vld [vmem:[#allocation17 + $0x28] sm:$0xff]  }
 0x767   :  { %10894 = vmatprep.subr.bf16.mxu0 %v16086_v11 }
 0x76a   :  { %10895 = vmatpush3.bf16.msra.mxu0 %v11818_v36  ;;  %v11854_v36 = vld [vmem:[#allocation17 + $0x30] sm:$0xff]  }
 0x76b   :  { %10920 = vmatprep.subr.bf16.mxu0 %v16086_v11 }
 0x76d   :  { %10897 = vmatmul.mubr.bf16.vlgmr.msra.gmra.mrb[192].mxu0 %v4425_v10  ;;  %v11855_v10 = vld [vmem:[#allocation17 + $0x68] sm:$0xff]  }
 0x76e   :  { %10936 = vmatprep.mubr.msk.bf16.mxu0 %vm12555_vm6, %v16086_v11  ;;  %10921 = vmatpush3.bf16.msra.mxu0 %v11819_v44  ;;  %v11856_v44 = vld [vmem:[#allocation17 + $0x38] sm:$0xff]  }
 0x76f   :  { %10922 = vmatprep.subr.bf16.mxu0 %v16086_v11 }
 0x772   :  { %10923 = vmatpush3.bf16.msra.mxu0 %v11820_v27  ;;  %v11955_v27 = vld [vmem:[%s16113_s18 + $0xc0] sm:$0xff]  }
 0x773   :  { %10924 = vmatprep.subr.bf16.mxu0 %v16086_v11 }
 0x776   :  { %10925 = vmatpush3.bf16.msra.mxu0 %v11822_v52  ;;  %v14492_v52 = vld [vmem:[%s16114_s4 + $0x1e0] sm:$0xff] }
 0x777   :  { %10926 = vmatprep.subr.bf16.mxu0 %v16086_v11  ;;  %v14496_v57 = vpack.c.bf16 %v14492_v52, %v14492_v52 }
 0x779   :  { %v16088_v2 = vshrl.u32 %v14496_v57, 16 }
 0x77a   :  { %10927 = vmatpush3.bf16.msra.mxu0 %v11824_v4 }
 0x77b   :  { %10928 = vmatprep.subr.bf16.mxu0 %v16086_v11 }
 0x77e   :  { %10929 = vmatpush3.bf16.msra.mxu0 %v11826_v28 }
 0x77f   :  { %10930 = vmatprep.subr.bf16.mxu0 %v16086_v11 }
 0x782   :  { %10931 = vmatpush3.bf16.msra.mxu0 %v11828_v9  ;;  %v5361_v9 = vshll.u32 %v14496_v57, 16 }
 0x783   :  { %10932 = vmatprep.subr.bf16.mxu0 %v16086_v11 }
 0x786   :  { %10933 = vmatpush3.bf16.msra.mxu0 %v11830_v35  ;;  %v5815_v35 = vrot.slane %v5361_v9, 2 }
 0x787   :  { %10934 = vmatprep.subr.bf16.mxu0 %v16086_v11 }
 0x78a   :  { %10935 = vmatpush3.bf16.msra.mxu0 %v11832_v0 }
 0x78b   :  { %10960 = vmatprep.subr.bf16.mxu0 %v16086_v11 }
 0x81a   :  { %v4400_v19 = vpop.f32.mrb[180].mxu1 }
 0x81b   :  { %v10878_v33 = vpop.f32.mrb[181].mxu1 }
 0x81c   :  { %v4403_v14 = vpop.f32.mrb[182].mxu1 }
 0x81d   :  { %v10879_v13 = vpop.f32.mrb[183].mxu1 }
 0x820   :  { %v4312_v45 = vpop.f32.mrb[188].mxu0 }
 0x821   :  { %v4401_v23 = vadd.f32 %v4400_v19, %v4312_v45  ;;  %v10858_v55 = vpop.f32.mrb[189].mxu0  ;;  %v5814_v19 = vrot.slane %v16088_v2, 1  ;;  %v8984_v45 = vld [vmem:[%s16114_s4 + $0x108] sm:$0xff] }
 0x822   :  { %v4315_v59 = vpop.f32.mrb[190].mxu0 }
 0x823   :  { %v10859_v49 = vpop.f32.mrb[191].mxu0  ;;  %v14504_v13 = vor.u32 %v5815_v35, %v5814_v19  ;;  %v8988_v59 = vld [vmem:[%s16114_s4 + $0x128] sm:$0xff]  ;;  %v11964_v35 = vld [vmem:[%s16113_s18 + $0xa0] sm:$0xff]  }
 0x824   :  { %v8990_v49 = vld [vmem:[%s16114_s4 + $0x138] sm:$0xff] }
 0x825   :  { %16225 = vst [vmem:[#allocation42_spill] sm:$0xff] %v14504_v13 }
 0x840   :  { %v4509_v21 = vpop.f32.mrb[192].mxu0 }
 0x841   :  { %v4515_v53 = vadd.f32 %v4509_v21, %v4401_v23  ;;  %v10898_v20 = vpop.f32.mrb[193].mxu0  ;;  %v8986_v23 = vld [vmem:[%s16114_s4 + $0x118] sm:$0xff]  ;;  %v14520_v21 = vpack.c.bf16 %v8990_v49, %v8988_v59  ;;  %v11966_v59 = vld [vmem:[%s16113_s18 + $0xa8] sm:$0xff]  }
 0x842   :  { %v4512_v1 = vpop.f32.mrb[194].mxu0  ;;  %v14512_v55 = vpack.c.bf16 %v8986_v23, %v8984_v45 }
 0x843   :  { %v4523_v37 = vadd.f32 %v8932_v50, %v4515_v53  ;;  %v10899_v47 = vpop.f32.mrb[195].mxu0  ;;  %v14530_v1 = vshll.u32 %v14520_v21, 16 }
 0x844   :  { %v14523_v50 = vshll.u32 %v14512_v55, 16  ;;  %v14526_v53 = vshrl.u32 %v14512_v55, 16  ;;  %v8957_v47 = vld [vmem:[#allocation16] ss:$0 sm:$0xff] }
 0x845   :  { %v4524_v51 = vmax.f32 %v4523_v37, 0.0  ;;  %v5771_v42 = vrot.slane %v14530_v1, 2 }
 0x846   :  { %v5270_v20 = vrot.slane %v14523_v50, 1 }
 0x847   :  { %v4525_v29 = vpack.c.bf16 %v4524_v51, %v4524_v51 }
 0x849   :  { %10937 = vmatmul.mubr.bf16.vlgmr.msra.gmra.mrb[196].mxu0 %v4525_v29  ;;  %v4562_v32 = vshll.u32 %v4525_v29, 16  ;;  %v4560_v25 = vshrl.u32 %v4525_v29, 16  ;;  %v4761_v41 = vrot.slane %v4525_v29, 1 }
 0x84a   :  { %10976 = vmatprep.mubr.msk.bf16.mxu0 %vm12555_vm6, %v16086_v11  ;;  %10961 = vmatpush3.bf16.msra.mxu0 %v11845_v61 }
 0x84b   :  { %v4564_v40 = vrot.slane %v4562_v32, 1  ;;  %10962 = vmatprep.subr.bf16.mxu0 %v16086_v11 }
 0x84d   :  { %v4565_v63 = vor.u32 %v4564_v40, %v4560_v25 }
 0x84e   :  { %10963 = vmatpush3.bf16.msra.mxu0 %v11847_v46  ;;  %v11959_v46 = vld [vmem:[%s16113_s18 + $0xd0] sm:$0xff]  }
 0x84f   :  { %10917 = vmatmul.mubr.bf16.vlgmr.msra.gmra.mrb[184].mxu1 %v4565_v63  ;;  %10964 = vmatprep.subr.bf16.mxu0 %v16086_v11  ;;  %v5275_v63 = vrot.slane %v14530_v1, 1 }
 0x850   :  { %10941 = vmatpush3.bf16.msra.mxu1 %v11835_v54  ;;  %10956 = vmatprep.mubr.msk.bf16.mxu1 %vm12555_vm6, %v16086_v11  ;;  %v5271_v54 = vor.u32 %v5270_v20, %v14526_v53 }
 0x851   :  { %10942 = vmatprep.subr.bf16.mxu1 %v16086_v11 }
 0x852   :  { %10965 = vmatpush3.bf16.msra.mxu0 %v11849_v22  ;;  %v11960_v22 = vld [vmem:[%s16113_s18 + $0x90] sm:$0xff]  }
 0x853   :  { %10966 = vmatprep.subr.bf16.mxu0 %v16086_v11 }
 0x854   :  { %10943 = vmatpush3.bf16.msra.mxu1 %v11836_v39 }
 0x855   :  { %10944 = vmatprep.subr.bf16.mxu1 %v16086_v11 }
 0x856   :  { %10967 = vmatpush3.bf16.msra.mxu0 %v11851_v56  ;;  %v8983_v56 = vld [vmem:[%s16114_s4 + $0x100] sm:$0xff] }
 0x857   :  { %10968 = vmatprep.subr.bf16.mxu0 %v16086_v11 }
 0x858   :  { %10945 = vmatpush3.bf16.msra.mxu1 %v11837_v18 }
 0x859   :  { %10946 = vmatprep.subr.bf16.mxu1 %v16086_v11 }
 0x85a   :  { %10969 = vmatpush3.bf16.msra.mxu0 %v11853_v26  ;;  %v11861_v26 = vld [vmem:[#allocation17 + $0x90] sm:$0xff]  }
 0x85b   :  { %10970 = vmatprep.subr.bf16.mxu0 %v16086_v11 }
 0x85c   :  { %10947 = vmatpush3.bf16.msra.mxu1 %v11838_v5  ;;  %v5276_v5 = vsel %vm336_vm0, %v5271_v54, %v5275_v63  ;;  %v11864_v54 = vld [vmem:[#allocation17 + $0xa8] sm:$0xff]  }
 0x85d   :  { %10948 = vmatprep.subr.bf16.mxu1 %v16086_v11 }
 0x85e   :  { %10971 = vmatpush3.bf16.msra.mxu0 %v11855_v10  ;;  %v11962_v10 = vld [vmem:[%s16113_s18 + $0x98] sm:$0xff]  }
 0x85f   :  { %10972 = vmatprep.subr.bf16.mxu0 %v16086_v11 }
 0x860   :  { %10949 = vmatpush3.bf16.msra.mxu1 %v11839_v31 }
 0x861   :  { %10950 = vmatprep.subr.bf16.mxu1 %v16086_v11 }
 0x862   :  { %10973 = vmatpush3.bf16.msra.mxu0 %v11857_v43  ;;  %v11963_v43 = vld [vmem:[%s16113_s18 + $0xe0] sm:$0xff]  }
 0x863   :  { %10974 = vmatprep.subr.bf16.mxu0 %v16086_v11 }
 0x864   :  { %10951 = vmatpush3.bf16.msra.mxu1 %v11840_v34  ;;  %v11956_v34 = vld [vmem:[%s16113_s18 + $0x80] sm:$0xff]  }
 0x865   :  { %10952 = vmatprep.subr.bf16.mxu1 %v16086_v11 }
 0x866   :  { %10975 = vmatpush3.bf16.msra.mxu0 %v11858_v24  ;;  %v8989_v24 = vld [vmem:[%s16114_s4 + $0x130] sm:$0xff] }
 0x867   :  { %11000 = vmatprep.subr.bf16.mxu0 %v16086_v11 }
 0x868   :  { %10953 = vmatpush3.bf16.msra.mxu1 %v11841_v30  ;;  %v11957_v30 = vld [vmem:[%s16113_s18 + $0xc8] sm:$0xff]  }
 0x869   :  { %10954 = vmatprep.subr.bf16.mxu1 %v16086_v11 }
 0x86c   :  { %10955 = vmatpush3.bf16.msra.mxu1 %v11842_v8 }
 0x86d   :  { %10980 = vmatprep.subr.bf16.mxu1 %v16086_v11 }
 0x86f   :  { %10957 = vmatmul.mubr.bf16.vlgmr.msra.gmra.mrb[188].mxu1 %v4761_v41 }
 0x870   :  { %10996 = vmatprep.mubr.msk.bf16.mxu1 %vm12555_vm6, %v16086_v11  ;;  %10981 = vmatpush3.bf16.msra.mxu1 %v11843_v17  ;;  %v11859_v17 = vld [vmem:[#allocation17 + $0x80] sm:$0xff]  }
 0x871   :  { %10982 = vmatprep.subr.bf16.mxu1 %v16086_v11 }
 0x874   :  { %10983 = vmatpush3.bf16.msra.mxu1 %v11844_v62  ;;  %v11958_v62 = vld [vmem:[%s16113_s18 + $0x88] sm:$0xff]  }
 0x875   :  { %10984 = vmatprep.subr.bf16.mxu1 %v16086_v11 }
 0x878   :  { %10985 = vmatpush3.bf16.msra.mxu1 %v11846_v15  ;;  %v11860_v15 = vld [vmem:[#allocation17 + $0x88] sm:$0xff]  }
 0x879   :  { %10986 = vmatprep.subr.bf16.mxu1 %v16086_v11 }
 0x87c   :  { %10987 = vmatpush3.bf16.msra.mxu1 %v11848_v38  ;;  %v11961_v38 = vld [vmem:[%s16113_s18 + $0xd8] sm:$0xff]  }
 0x87d   :  { %10988 = vmatprep.subr.bf16.mxu1 %v16086_v11 }
 0x880   :  { %10989 = vmatpush3.bf16.msra.mxu1 %v11850_v16  ;;  %v8985_v16 = vld [vmem:[%s16114_s4 + $0x110] sm:$0xff] }
 0x881   :  { %10990 = vmatprep.subr.bf16.mxu1 %v16086_v11 }
 0x884   :  { %10991 = vmatpush3.bf16.msra.mxu1 %v11852_v48  ;;  %v9003_v48 = vld [vmem:[%s16114_s4 + $0x1a0] sm:$0xff] }
 0x885   :  { %10992 = vmatprep.subr.bf16.mxu1 %v16086_v11 }
 0x888   :  { %10993 = vmatpush3.bf16.msra.mxu1 %v11854_v36  ;;  %v9005_v36 = vld [vmem:[%s16114_s4 + $0x1b0] sm:$0xff] }
 0x889   :  { %10994 = vmatprep.subr.bf16.mxu1 %v16086_v11 }
 0x88c   :  { %10995 = vmatpush3.bf16.msra.mxu1 %v11856_v44  ;;  %v14579_v44 = vpack.c.bf16 %v8985_v16, %v8983_v56 }
 0x88d   :  { %9770 = vmatprep.subr.bf16.mxu1 %v11955_v27  ;;  %v8987_v27 = vld [vmem:[%s16114_s4 + $0x120] sm:$0xff] }
 0x88e   :  { %v14620_v23 = vshrl.u32 %v14579_v44, 16 }
 0x91c   :  { %v4737_v4 = vpop.f32.mrb[196].mxu0 }
 0x91d   :  { %v10938_v7 = vpop.f32.mrb[197].mxu0 }
 0x91e   :  { %v4740_v28 = vpop.f32.mrb[198].mxu0  ;;  %v8992_v7 = vld [vmem:[%s16114_s4 + $0x148] sm:$0xff] }
 0x91f   :  { %v10939_v3 = vpop.f32.mrb[199].mxu0  ;;  %v8994_v28 = vld [vmem:[%s16114_s4 + $0x158] sm:$0xff] }
 0x920   :  { %v14596_v3 = vpack.c.bf16 %v9005_v36, %v9003_v48  ;;  %v14610_v19 = vpack.c.bf16 %v8994_v28, %v8992_v7  ;;  %v11971_v36 = vld [vmem:[%s16113_s18 + $0x140] sm:$0xff]   ;;  %v9000_v28 = vld [vmem:[%s16114_s4 + $0x188] sm:$0xff] }
 0x921   :  { %v11866_v7 = vld [vmem:[#allocation17 + $0xb8] sm:$0xff]  }
 0x922   :  { %v4649_v0 = vpop.f32.mrb[184].mxu1  ;;  %v14616_v45 = vshrl.u32 %v14596_v3, 16  ;;  %v14689_v48 = vshrl.u32 %v14610_v19, 16 }
 0x923   :  { %v4738_v58 = vadd.f32 %v4737_v4, %v4649_v0  ;;  %v10918_v12 = vpop.f32.mrb[185].mxu1  ;;  %v11862_v4 = vld [vmem:[#allocation17 + $0x98] sm:$0xff]   ;;  %v14602_v0 = vpack.c.bf16 %v8989_v24, %v8987_v27  ;;  %v8997_v24 = vld [vmem:[%s16114_s4 + $0x170] sm:$0xff] }
 0x924   :  { %v4652_v33 = vpop.f32.mrb[186].mxu1  ;;  %v11965_v12 = vld [vmem:[%s16113_s18 + $0xe8] sm:$0xff]   ;;  %v8995_v27 = vld [vmem:[%s16114_s4 + $0x160] sm:$0xff] }
 0x925   :  { %v10919_v14 = vpop.f32.mrb[187].mxu1  ;;  %v11863_v33 = vld [vmem:[#allocation17 + $0xa0] sm:$0xff]   ;;  %v14627_v20 = vshll.u32 %v14602_v0, 16  ;;  %v14683_v16 = vshrl.u32 %v14602_v0, 16 }
 0x926   :  { %v14613_v14 = vshll.u32 %v14596_v3, 16 }
 0x942   :  { %v4845_v37 = vpop.f32.mrb[188].mxu1 }
 0x943   :  { %v4851_v51 = vadd.f32 %v4845_v37, %v4738_v58  ;;  %v10958_v29 = vpop.f32.mrb[189].mxu1  ;;  %v14605_v58 = vshll.u32 %v14579_v44, 16  ;;  %v5799_v37 = vrot.slane %v14613_v14, 2 }
 0x944   :  { %v4848_v32 = vpop.f32.mrb[190].mxu1  ;;  %v14635_v29 = vshrl.u32 %v14520_v21, 16 }
 0x945   :  { %v4859_v25 = vadd.f32 %v8957_v47, %v4851_v51  ;;  %v10959_v40 = vpop.f32.mrb[191].mxu1  ;;  %v5258_v49 = vrot.slane %v14605_v58, 1  ;;  %v5798_v47 = vrot.slane %v14616_v45, 1  ;;  %v11967_v51 = vld [vmem:[%s16113_s18 + $0xf0] sm:$0xff]   ;;  %v14638_v32 = vshll.u32 %v14610_v19, 16 }
 0x946   :  { %v8993_v40 = vld [vmem:[%s16114_s4 + $0x150] sm:$0xff]  ;;  %v5770_v6 = vrot.slane %v14635_v29, 1 }
 0x947   :  { %v4860_v39 = vmax.f32 %v4859_v25, 0.0  ;;  %16226 = vst [vmem:[#allocation31_spill] sm:$0xff] %v14638_v32  ;;  %v8991_v25 = vld [vmem:[%s16114_s4 + $0x140] sm:$0xff] }
 0x949   :  { %v14534_v18 = vpack.c.bf16 %v4860_v39, %v4860_v39  ;;  %v8996_v39 = vld [vmem:[%s16114_s4 + $0x168] sm:$0xff] }
 0x94b   :  { %10997 = vmatmul.mubr.bf16.vlgmr.msra.gmra.mrb[192].mxu1 %v14534_v18  ;;  %v4898_v31 = vshll.u32 %v14534_v18, 16  ;;  %v4896_v8 = vshrl.u32 %v14534_v18, 16 }
 0x94c   :  { %9771 = vmatpush3.bf16.msra.mxu1 %v11956_v34  ;;  %5427 = vmatprep.mubr.bf16.mxu1 %v5276_v5  ;;  %v8998_v5 = vld [vmem:[%s16114_s4 + $0x178] sm:$0xff]  ;;  %v5259_v34 = vor.u32 %v5258_v49, %v14620_v23 }
 0x94d   :  { %9772 = vmatprep.subr.bf16.mxu1 %v11957_v30  ;;  %v4900_v41 = vrot.slane %v4898_v31, 1  ;;  %v11968_v31 = vld [vmem:[%s16113_s18 + $0xb0] sm:$0xff]   ;;  %v5263_v30 = vrot.slane %v14627_v20, 1 }
 0x94f   :  { %v4901_v61 = vor.u32 %v4900_v41, %v4896_v8  ;;  %v14658_v8 = vpack.c.bf16 %v8993_v40, %v8991_v25  ;;  %v14660_v41 = vor.u32 %v5799_v37, %v5798_v47  ;;  %v5264_v56 = vsel %vm336_vm0, %v5259_v34, %v5263_v30  ;;  %v11973_v47 = vld [vmem:[%s16113_s18 + $0x148] sm:$0xff]  }
 0x950   :  { %9773 = vmatpush3.bf16.msra.mxu1 %v11958_v62  ;;  %v5291_v62 = vrot.slane %v14638_v32, 1  ;;  %v14719_v37 = vpack.c.bf16 %v8997_v24, %v8995_v27  ;;  %v9006_v27 = vld [vmem:[%s16114_s4 + $0x1b8] sm:$0xff]  ;;  %v11978_v24 = vld [vmem:[%s16113_s18 + $0x48] sm:$0xff]  }
 0x951   :  { %10977 = vmatmul.mubr.bf16.vlgmr.msra.gmra.mrb[200].mxu0 %v4901_v61  ;;  %9774 = vmatprep.subr.bf16.mxu1 %v11959_v46  ;;  %v5287_v61 = vor.u32 %v14635_v29, %v5275_v63  ;;  %v14669_v46 = vpack.c.bf16 %v8998_v5, %v8996_v39  ;;  %v11970_v63 = vld [vmem:[%s16113_s18 + $0xb8] sm:$0xff]   ;;  %v5097_v39 = vrot.slane %v14534_v18, 1  ;;  %v11974_v5 = vld [vmem:[%s16113_s18 + $0x40] sm:$0xff]  }
 0x952   :  { %11001 = vmatpush3.bf16.msra.mxu0 %v11859_v17  ;;  %11016 = vmatprep.mubr.msk.bf16.mxu0 %vm12555_vm6, %v16086_v11  ;;  %v11969_v17 = vld [vmem:[%s16113_s18 + $0xf8] sm:$0xff]   ;;  %v5303_v49 = vor.u32 %v14689_v48, %v5291_v62  ;;  %v14747_v18 = vshll.u32 %v14719_v37, 16 }
 0x953   :  { %11002 = vmatprep.subr.bf16.mxu0 %v16086_v11 }
 0x954   :  { %9775 = vmatpush3.bf16.msra.mxu1 %v11960_v22  ;;  %v9007_v22 = vld [vmem:[%s16114_s4 + $0x1c0] sm:$0xff] }
 0x955   :  { %9776 = vmatprep.subr.bf16.mxu1 %v11961_v38  ;;  %v9009_v38 = vld [vmem:[%s16114_s4 + $0x1d0] sm:$0xff] }
 0x956   :  { %11003 = vmatpush3.bf16.msra.mxu0 %v11860_v15  ;;  %v11865_v15 = vld [vmem:[#allocation17 + $0xb0] sm:$0xff]  }
 0x957   :  { %11004 = vmatprep.subr.bf16.mxu0 %v16086_v11 }
 0x958   :  { %9777 = vmatpush3.bf16.msra.mxu1 %v11962_v10  ;;  %v5292_v10 = vsel %vm336_vm0, %v5287_v61, %v5291_v62  ;;  %v14744_v61 = vshrl.u32 %v14658_v8, 16 }
 0x959   :  { %9778 = vmatprep.subr.bf16.mxu1 %v11963_v43  ;;  %v14696_v43 = vshll.u32 %v14669_v46, 16 }
 0x95a   :  { %11005 = vmatpush3.bf16.msra.mxu0 %v11861_v26  ;;  %v14686_v26 = vshll.u32 %v14658_v8, 16 }
 0x95b   :  { %11006 = vmatprep.subr.bf16.mxu0 %v16086_v11 }
 0x95c   :  { %9779 = vmatpush3.bf16.msra.mxu1 %v11964_v35  ;;  %v9002_v35 = vld [vmem:[%s16114_s4 + $0x198] sm:$0xff] }
 0x95d   :  { %9780 = vmatprep.subr.bf16.mxu1 %v11965_v12  ;;  %v11972_v12 = vld [vmem:[%s16113_s18 + $0x100] sm:$0xff]   ;;  %v14725_v25 = vpack.c.bf16 %v9002_v35, %v9000_v28  ;;  %v5299_v35 = vrot.slane %v14747_v18, 1 }
 0x95e   :  { %11007 = vmatpush3.bf16.msra.mxu0 %v11862_v4  ;;  %v14704_v4 = vpack.c.bf16 %v9009_v38, %v9007_v22  ;;  %v14754_v22 = vshrl.u32 %v14669_v46, 16 }
 0x95f   :  { %11008 = vmatprep.subr.bf16.mxu0 %v16086_v11  ;;  %v14757_v38 = vshll.u32 %v14725_v25, 16 }
 0x960   :  { %9781 = vmatpush3.bf16.msra.mxu1 %v11966_v59  ;;  %v5283_v59 = vrot.slane %v14686_v26, 1  ;;  %v14728_v40 = vshll.u32 %v14704_v4, 16 }
 0x961   :  { %9782 = vmatprep.subr.bf16.mxu1 %v11967_v51  ;;  %v5307_v51 = vrot.slane %v14696_v43, 1 }
 0x962   :  { %11009 = vmatpush3.bf16.msra.mxu0 %v11863_v33  ;;  %v5279_v33 = vor.u32 %v14683_v16, %v5263_v30  ;;  %v5295_v28 = vor.u32 %v14744_v61, %v5283_v59 }
 0x963   :  { %11010 = vmatprep.subr.bf16.mxu0 %v16086_v11  ;;  %v5308_v62 = vsel %vm336_vm0, %v5303_v49, %v5307_v51  ;;  %v5319_v49 = vor.u32 %v14754_v22, %v5307_v51  ;;  %v11982_v51 = vld [vmem:[%s16113_s18 + $0x50] sm:$0xff]  }
 0x964   :  { %9783 = vmatpush3.bf16.msra.mxu1 %v11968_v31  ;;  %v5807_v31 = vrot.slane %v14728_v40, 2  ;;  %v5284_v30 = vsel %vm336_vm0, %v5279_v33, %v5283_v59 }
 0x965   :  { %9784 = vmatprep.subr.bf16.mxu1 %v11969_v17  ;;  %v11975_v17 = vld [vmem:[%s16113_s18 + $0x108] sm:$0xff]  }
 0x966   :  { %11011 = vmatpush3.bf16.msra.mxu0 %v11864_v54  ;;  %v14731_v54 = vshrl.u32 %v14704_v4, 16 }
 0x967   :  { %11012 = vmatprep.subr.bf16.mxu0 %v16086_v11 }
 0x968   :  { %9785 = vmatpush3.bf16.msra.mxu1 %v11970_v63  ;;  %v5806_v34 = vrot.slane %v14731_v54, 1  ;;  %v8999_v63 = vld [vmem:[%s16114_s4 + $0x180] sm:$0xff] }
 0x969   :  { %9898 = vmatprep.subr.bf16.mxu1 %v11971_v36  ;;  %v11977_v36 = vld [vmem:[%s16113_s18] sm:$0xff]  }
 0x96a   :  { %11013 = vmatpush3.bf16.msra.mxu0 %v11865_v15  ;;  %v11976_v15 = vld [vmem:[%s16113_s18 + $0x150] sm:$0xff]  }
 0x96b   :  { %5428 = vmatmul.mubr.bf16.vlgmr.msra.gmra.mrb[196].mxu1 %v5264_v56  ;;  %11014 = vmatprep.subr.bf16.mxu0 %v16086_v11  ;;  %v9001_v56 = vld [vmem:[%s16114_s4 + $0x190] sm:$0xff] }
 0x96c   :  { %9899 = vmatpush3.bf16.msra.mxu1 %v11972_v12  ;;  %5435 = vmatprep.mubr.bf16.mxu1 %v5292_v10  ;;  %v9004_v10 = vld [vmem:[%s16114_s4 + $0x1a8] sm:$0xff]  ;;  %v11979_v12 = vld [vmem:[%s16113_s18 + $0x110] sm:$0xff]   ;;  %v14783_v33 = vpack.c.bf16 %v9001_v56, %v8999_v63  ;;  %v14814_v63 = vshrl.u32 %v14725_v25, 16 }
 0x96d   :  { %9900 = vmatprep.subr.bf16.mxu1 %v11973_v47  ;;  %v5323_v47 = vrot.slane %v14757_v38, 1 }
 0x96e   :  { %11015 = vmatpush3.bf16.msra.mxu0 %v11866_v7  ;;  %v5808_v7 = vor.u32 %v5807_v31, %v5806_v34  ;;  %v11981_v31 = vld [vmem:[%s16113_s18 + $0x8] sm:$0xff]   ;;  %v5300_v34 = vsel %vm336_vm0, %v5295_v28, %v5299_v35  ;;  %v11986_v28 = vld [vmem:[%s16113_s18 + $0x58] sm:$0xff]  }
 0x96f   :  { %9834 = vmatprep.subr.bf16.mxu0 %v11974_v5  ;;  %v14790_v5 = vpack.c.bf16 %v9006_v27, %v9004_v10  ;;  %v11985_v10 = vld [vmem:[%s16113_s18 + $0x10] sm:$0xff]   ;;  %v9008_v27 = vld [vmem:[%s16114_s4 + $0x1c8] sm:$0xff] }
 0x970   :  { %9901 = vmatpush3.bf16.msra.mxu1 %v11975_v17  ;;  %v14794_v59 = vsel %vm1199_vm2, %v14660_v41, %v5808_v7  ;;  %v14807_v17 = vshll.u32 %v14783_v33, 16 }
 0x971   :  { %11017 = vmatmul.mubr.bf16.vlgmr.msra.gmra.mrb[204].mxu0 %v5097_v39  ;;  %9902 = vmatprep.subr.bf16.mxu1 %v11976_v15  ;;  %v11980_v39 = vld [vmem:[%s16113_s18 + $0x158] sm:$0xff]   ;;  %v5324_v15 = vsel %vm336_vm0, %v5319_v49, %v5323_v47  ;;  %v14817_v56 = vshll.u32 %v14790_v5, 16 }
 0x972   :  { %9835 = vmatpush3.bf16.msra.mxu0 %v11977_v36  ;;  %5523 = vmatprep.mubr.bf16.mxu0 %v14512_v55  ;;  %v11984_v36 = vld [vmem:[%s16113_s18 + $0x160] sm:$0xff]  }
 0x973   :  { %5436 = vmatmul.mubr.bf16.gmra.mrb[200].mxu1 %v5284_v30  ;;  %9836 = vmatprep.subr.bf16.mxu0 %v11978_v24  ;;  %v14804_v30 = vshrl.u32 %v14719_v37, 16  ;;  %v9010_v24 = vld [vmem:[%s16114_s4 + $0x1d8] sm:$0xff] }
 0x974   :  { %5443 = vmatprep.mubr.bf16.mxu1 %v5308_v62  ;;  %9903 = vmatpush3.bf16.msra.mxu1 %v11979_v12  ;;  %v11983_v62 = vld [vmem:[%s16113_s18 + $0x118] sm:$0xff]   ;;  %v14836_v12 = vsel %vm1199_vm2, %v5808_v7, %v14504_v13  ;;  %v11988_v7 = vld [vmem:[%s16113_s18 + $0x168] sm:$0xff]   ;;  %v5774_v13 = vrot.slane %v14744_v61, 1 }
 0x975   :  { %9904 = vmatprep.subr.bf16.mxu1 %v11980_v39  ;;  %v5311_v49 = vor.u32 %v14804_v30, %v5299_v35  ;;  %v5315_v39 = vrot.slane %v14807_v17, 1  ;;  %v11989_v35 = vld [vmem:[%s16113_s18 + $0x18] sm:$0xff]  }
 0x976   :  { %9837 = vmatpush3.bf16.msra.mxu0 %v11981_v31  ;;  %v11987_v31 = vld [vmem:[%s16113_s18 + $0x120] sm:$0xff]  }
 0x977   :  { %9838 = vmatprep.subr.bf16.mxu0 %v11982_v51  ;;  %v5335_v51 = vor.u32 %v14814_v63, %v5323_v47  ;;  %v5316_v47 = vsel %vm336_vm0, %v5311_v49, %v5315_v39  ;;  %v11992_v49 = vld [vmem:[%s16113_s18 + $0x170] sm:$0xff]  }
 0x978   :  { %9905 = vmatpush3.bf16.msra.mxu1 %v11983_v62  ;;  %v14845_v62 = vpack.c.bf16 %v9010_v24, %v9008_v27  ;;  %v14865_v24 = vshrl.u32 %v14790_v5, 16 }
 0x979   :  { %9906 = vmatprep.subr.bf16.mxu1 %v11984_v36  ;;  %v14858_v36 = vshrl.u32 %v14783_v33, 16 }
 0x97a   :  { %9839 = vmatpush3.bf16.msra.mxu0 %v11985_v10  ;;  %v11991_v10 = vld [vmem:[%s16113_s18 + $0x128] sm:$0xff]  }
 0x97b   :  { %5444 = vmatmul.mubr.bf16.gmra.mrb[204].mxu1 %v5300_v34  ;;  %9840 = vmatprep.subr.bf16.mxu0 %v11986_v28  ;;  %v5339_v34 = vrot.slane %v14817_v56, 1  ;;  %v14868_v28 = vshll.u32 %v14845_v62, 16 }
 0x97c   :  { %5451 = vmatprep.mubr.bf16.mxu1 %v5324_v15  ;;  %9907 = vmatpush3.bf16.msra.mxu1 %v11987_v31  ;;  %v11990_v15 = vld [vmem:[%s16113_s18 + $0x60] sm:$0xff]  }
 0x97d   :  { %9908 = vmatprep.subr.bf16.mxu1 %v11988_v7  ;;  %v5340_v27 = vsel %vm336_vm0, %v5335_v51, %v5339_v34  ;;  %v11993_v31 = vld [vmem:[%s16113_s18 + $0x20] sm:$0xff]   ;;  %v14879_v51 = vld [vmem:[%s16114_s4 + $0x1e8] sm:$0xff] }
 0x97e   :  { %9841 = vmatpush3.bf16.msra.mxu0 %v11989_v35  ;;  %16227 = vst [vmem:[#allocation32_spill] sm:$0xff] %v14879_v51  ;;  %v11994_v7 = vld [vmem:[%s16113_s18 + $0x68] sm:$0xff]   ;;  %v5327_v35 = vor.u32 %v14858_v36, %v5315_v39 }
 0x97f   :  { %9842 = vmatprep.subr.bf16.mxu0 %v11990_v15  ;;  %v5331_v15 = vrot.slane %v14613_v14, 1  ;;  %v11997_v39 = vld [vmem:[%s16113_s18 + $0x28] sm:$0xff]  }
 0x980   :  { %9909 = vmatpush3.bf16.msra.mxu1 %v11991_v10  ;;  %v11995_v10 = vld [vmem:[%s16113_s18 + $0x130] sm:$0xff]  }
 0x981   :  { %9910 = vmatprep.subr.bf16.mxu1 %v11992_v49  ;;  %v5351_v49 = vor.u32 %v14865_v24, %v5339_v34  ;;  %v11998_v34 = vld [vmem:[%s16113_s18 + $0x70] sm:$0xff]  }
 0x982   :  { %9843 = vmatpush3.bf16.msra.mxu0 %v11993_v31  ;;  %v5355_v31 = vrot.slane %v14868_v28, 1 }
 0x983   :  { %5452 = vmatmul.mubr.bf16.gmra.mrb[208].mxu1 %v5316_v47  ;;  %9844 = vmatprep.subr.bf16.mxu0 %v11994_v7  ;;  %v14893_v47 = vpack.c.bf16 %v14879_v51, %v14879_v51  ;;  %v5332_v7 = vsel %vm336_vm0, %v5327_v35, %v5331_v15  ;;  %v12001_v35 = vld [vmem:[%s16113_s18 + $0x30] sm:$0xff]  }
 0x984   :  { %5459 = vmatprep.mubr.bf16.mxu1 %v5340_v27  ;;  %9911 = vmatpush3.bf16.msra.mxu1 %v11995_v10  ;;  %v11996_v27 = vld [vmem:[%s16113_s18 + $0x178] sm:$0xff]   ;;  %v5356_v60 = vsel %vm336_vm0, %v5351_v49, %v5355_v31 }
 0x985   :  { %9912 = vmatprep.subr.bf16.mxu1 %v11996_v27  ;;  %v11999_v10 = vld [vmem:[%s16113_s18 + $0x138] sm:$0xff]   ;;  %v14910_v27 = vshrl.u32 %v14845_v62, 16  ;;  %v16089_v11 = vshll.u32 %v14893_v47, 16  ;;  %v5631_v51 = vrot.slane %v14893_v47, 1 }
 0x986   :  { %9845 = vmatpush3.bf16.msra.mxu0 %v11997_v39  ;;  %v12000_v39 = vld [vmem:[%s16113_s18 + $0x240] sm:$0xff]   ;;  %v12002_v49 = vld [vmem:[%s16113_s18 + $0x78] sm:$0xff]  }
 0x987   :  { %9846 = vmatprep.subr.bf16.mxu0 %v11998_v34  ;;  %v5343_v34 = vor.u32 %v14616_v45, %v5331_v15  ;;  %v5367_v2 = vor.u32 %v14910_v27, %v5355_v31  ;;  %v12005_v31 = vld [vmem:[%s16113_s18 + $0x180] sm:$0xff]  }
 0x988   :  { %9913 = vmatpush3.bf16.msra.mxu1 %v11999_v10  ;;  %v5347_v10 = vrot.slane %v14728_v40, 1 }
 0x989   :  { %10026 = vmatprep.subr.bf16.mxu1 %v12000_v39  ;;  %v5371_v39 = vrot.slane %v16089_v11, 1  ;;  %v5623_v11 = vrot.slane %v14790_v5, 1 }
 0x98a   :  { %9847 = vmatpush3.bf16.msra.mxu0 %v12001_v35  ;;  %v12003_v35 = vld [vmem:[%s16113_s18 + $0x38] sm:$0xff]  }
 0x98b   :  { %5460 = vmatmul.mubr.bf16.gmra.mrb[212].mxu1 %v5332_v7  ;;  %9848 = vmatprep.subr.bf16.mxu0 %v12002_v49  ;;  %v12004_v7 = vld [vmem:[%s16113_s18 + $0x1c0] sm:$0xff]   ;;  %v5372_v15 = vsel %vm336_vm0, %v5367_v2, %v5371_v39  ;;  %v12006_v49 = vld [vmem:[%s16113_s18 + $0x1c8] sm:$0xff]   ;;  %v16090_v2 = vshrl.u32 %v14893_v47, 16 }
 0x98c   :  { %5467 = vmatprep.mubr.bf16.mxu1 %v5356_v60  ;;  %v5348_v60 = vsel %vm336_vm0, %v5343_v34, %v5347_v10  ;;  %v5359_v34 = vor.u32 %v14731_v54, %v5347_v10 }
 0x98d   :  { %v5378_v10 = vor.u32 %v16090_v2, %v5371_v39  ;;  %v5607_v39 = vrot.slane %v14520_v21, 1 }
 0x98e   :  { %9849 = vmatpush3.bf16.msra.mxu0 %v12003_v35  ;;  %v5363_v35 = vrot.slane %v5361_v9, 1  ;;  %v12009_v9 = vld [vmem:[%s16113_s18 + $0x190] sm:$0xff]  }
 0x98f   :  { %9962 = vmatprep.subr.bf16.mxu0 %v12004_v7  ;;  %v12007_v7 = vld [vmem:[%s16113_s18 + $0x188] sm:$0xff]  }
 0x991   :  { %5524 = vmatmul.mubr.bf16.vlgmr.msra.gmra.mrb[208].mxu0 %v14579_v44 }
 0x992   :  { %5531 = vmatprep.mubr.bf16.mxu0 %v14520_v21  ;;  %9963 = vmatpush3.bf16.msra.mxu0 %v12005_v31  ;;  %v5364_v31 = vsel %vm336_vm0, %v5359_v34, %v5363_v35  ;;  %v12011_v34 = vld [vmem:[%s16113_s18 + $0x198] sm:$0xff]  }
 0x993   :  { %5468 = vmatmul.mubr.bf16.gmra.mrb[216].mxu1 %v5348_v60  ;;  %9964 = vmatprep.subr.bf16.mxu0 %v12006_v49  ;;  %v12008_v60 = vld [vmem:[%s16113_s18 + $0x1d0] sm:$0xff]   ;;  %v5606_v49 = vrot.slane %v14512_v55, 1 }
 0x994   :  { %5475 = vmatprep.mubr.bf16.mxu1 %v5372_v15  ;;  %v12010_v15 = vld [vmem:[%s16113_s18 + $0x1d8] sm:$0xff]  }
 0x996   :  { %9965 = vmatpush3.bf16.msra.mxu0 %v12007_v7  ;;  %v16228_v7 = vshrl.u32 %v14496_v57, 16 }
 0x997   :  { %9966 = vmatprep.subr.bf16.mxu0 %v12008_v60 }
 0x998   :  { %v5375_v60 = vor.u32 %v16228_v7, %v5363_v35  ;;  %v12014_v35 = vld [vmem:[%s16113_s18 + $0x1e8] sm:$0xff]  }
 0x999   :  { %5532 = vmatmul.mubr.bf16.gmra.mrb[212].mxu0 %v14602_v0  ;;  %v12015_v7 = vld [vmem:[%s16113_s18 + $0x1a8] sm:$0xff]  }
 0x99a   :  { %5539 = vmatprep.mubr.bf16.mxu0 %v14610_v19  ;;  %9967 = vmatpush3.bf16.msra.mxu0 %v12009_v9  ;;  %v12013_v9 = vld [vmem:[%s16113_s18 + $0x1a0] sm:$0xff]  }
 0x99b   :  { %5476 = vmatmul.mubr.bf16.gmra.mrb[220].mxu1 %v5364_v31  ;;  %9968 = vmatprep.subr.bf16.mxu0 %v12010_v15  ;;  %v12012_v31 = vld [vmem:[%s16113_s18 + $0x1e0] sm:$0xff]   ;;  %v5603_v15 = vrot.slane %v14579_v44, 1 }
 0x99c   :  { %5483 = vmatprep.mubr.bf16.mxu1 %v5378_v10  ;;  %v5608_v10 = vsel %vm912_vm1, %v5606_v49, %v5607_v39  ;;  %v5611_v49 = vrot.slane %v14610_v19, 1 }
 0x99e   :  { %9969 = vmatpush3.bf16.msra.mxu0 %v12011_v34  ;;  %v5604_v34 = vrot.slane %v14602_v0, 1 }
 0x99f   :  { %9970 = vmatprep.subr.bf16.mxu0 %v12012_v31  ;;  %v6149_v31 = vrot.slane %v14613_v14, 3  ;;  %v12018_v14 = vld [vmem:[%s16113_s18 + $0x1f8] sm:$0xff]  }
 0x9a1   :  { %5540 = vmatmul.mubr.bf16.gmra.mrb[216].mxu0 %v14658_v8 }
 0x9a2   :  { %5547 = vmatprep.mubr.bf16.mxu0 %v14669_v46  ;;  %9971 = vmatpush3.bf16.msra.mxu0 %v12013_v9  ;;  %v12016_v9 = vld [vmem:[%s16113_s18 + $0x1f0] sm:$0xff]  }
 0x9a3   :  { %5484 = vmatmul.mubr.bf16.gmra.mrb[224].mxu1 %v5375_v60  ;;  %9972 = vmatprep.subr.bf16.mxu0 %v12014_v35  ;;  %v6148_v60 = vrot.slane %v14616_v45, 2  ;;  %v5612_v35 = vsel %vm912_vm1, %v5607_v39, %v5611_v49  ;;  %v5609_v39 = vrot.slane %v14658_v8, 1 }
 0x9a4   :  { %5681 = vmatprep.mubr.bf16.mxu1 %v5608_v10  ;;  %v5605_v10 = vsel %vm912_vm1, %v5603_v15, %v5604_v34  ;;  %v12019_v15 = vld [vmem:[%s16113_s18 + $0x200] sm:$0xff]  }
 0x9a5   :  { %v15004_v45 = vor.u32 %v6149_v31, %v6148_v60  ;;  %v12021_v31 = vld [vmem:[%s16113_s18 + $0x1b8] sm:$0xff]   ;;  %v6157_v60 = vrot.slane %v14728_v40, 3  ;;  %v12024_v40 = vld [vmem:[%s16113_s18 + $0x250] sm:$0xff]  }
 0x9a6   :  { %9973 = vmatpush3.bf16.msra.mxu0 %v12015_v7  ;;  %v12017_v7 = vld [vmem:[%s16113_s18 + $0x1b0] sm:$0xff]  }
 0x9a7   :  { %9974 = vmatprep.subr.bf16.mxu0 %v12016_v9  ;;  %16229 = vst [vmem:[#allocation34_spill] sm:$0xff] %v15004_v45  ;;  %v12020_v9 = vld [vmem:[%s16113_s18 + $0x248] sm:$0xff]  }
 0x9a9   :  { %5548 = vmatmul.mubr.bf16.gmra.mrb[220].mxu0 %v14719_v37 }
 0x9aa   :  { %5555 = vmatprep.mubr.bf16.mxu0 %v14725_v25  ;;  %9975 = vmatpush3.bf16.msra.mxu0 %v12017_v7  ;;  %v6156_v7 = vrot.slane %v14731_v54, 2 }
 0x9ab   :  { %5682 = vmatmul.mubr.bf16.vlgmr.msra.gmra.mrb[228].mxu1 %v5605_v10  ;;  %9976 = vmatprep.subr.bf16.mxu0 %v12018_v14  ;;  %v5615_v10 = vrot.slane %v14669_v46, 1  ;;  %v5610_v14 = vsel %vm912_vm1, %v5604_v34, %v5609_v39  ;;  %v5613_v34 = vrot.slane %v14719_v37, 1 }
 0x9ac   :  { %10027 = vmatpush3.bf16.msra.mxu1 %v12019_v15  ;;  %5689 = vmatprep.mubr.bf16.mxu1 %v5612_v35  ;;  %v12022_v35 = vld [vmem:[%s16113_s18 + $0x2c0] sm:$0xff]   ;;  %v12023_v15 = vld [vmem:[%s16113_s18 + $0x208] sm:$0xff]   ;;  %v6158_v54 = vor.u32 %v6157_v60, %v6156_v7 }
 0x9ad   :  { %10028 = vmatprep.subr.bf16.mxu1 %v12020_v9  ;;  %v5616_v9 = vsel %vm912_vm1, %v5611_v49, %v5615_v10  ;;  %v9013_v49 = vld [vmem:[%s16114_s4 + $0x1f0] sm:$0x7] }
 0x9ae   :  { %9977 = vmatpush3.bf16.msra.mxu0 %v12021_v31  ;;  %v12025_v31 = vld [vmem:[%s16113_s18 + $0x210] sm:$0xff]   ;;  %v15045_v60 = vsel %vm1809_vm3, %v15004_v45, %v6158_v54  ;;  %v15048_v7 = vpack.c.bf16 %v9013_v49, %v14492_v52  ;;  %v5617_v49 = vrot.slane %v14783_v33, 1 }
 0x9af   :  { %10090 = vmatprep.subr.bf16.mxu0 %v12022_v35  ;;  %v5619_v35 = vrot.slane %v14725_v25, 1  ;;  %16230 = vst [vmem:[#allocation37_spill] sm:$0xff] %v15045_v60  ;;  %v12036_v60 = vld [vmem:[%s16113_s18 + $0x340] sm:$0xff]  }
 0x9b0   :  { %10029 = vmatpush3.bf16.msra.mxu1 %v12023_v15  ;;  %v12026_v15 = vld [vmem:[%s16113_s18 + $0x258] sm:$0xff]   ;;  %16231 = vst [vmem:[#allocation38_spill] sm:$0xff] %v15048_v7  ;;  %v6165_v52 = vshrl.u32 %v15048_v7, 16 }
 0x9b1   :  { %5556 = vmatmul.mubr.bf16.gmra.mrb[224].mxu0 %v14783_v33  ;;  %10030 = vmatprep.subr.bf16.mxu1 %v12024_v40  ;;  %v5620_v40 = vsel %vm912_vm1, %v5615_v10, %v5619_v35 }
 0x9b2   :  { %5563 = vmatprep.mubr.bf16.mxu0 %v14790_v5  ;;  %v6167_v10 = vrot.slane %v6165_v52, 2  ;;  %v5618_v52 = vsel %vm912_vm1, %v5613_v34, %v5617_v49 }
 0x9b3   :  { %5690 = vmatmul.mubr.bf16.gmra.mrb[232].mxu1 %v5610_v14  ;;  %v5614_v14 = vsel %vm912_vm1, %v5609_v39, %v5613_v34  ;;  %v6168_v39 = vshll.u32 %v15048_v7, 16 }
 0x9b4   :  { %5697 = vmatprep.mubr.bf16.mxu1 %v5616_v9  ;;  %10031 = vmatpush3.bf16.msra.mxu1 %v12025_v31  ;;  %v12027_v9 = vld [vmem:[%s16113_s18 + $0x218] sm:$0xff]   ;;  %v12028_v31 = vld [vmem:[%s16113_s18 + $0x260] sm:$0xff]  }
 0x9b5   :  { %10032 = vmatprep.subr.bf16.mxu1 %v12026_v15  ;;  %v12029_v15 = vld [vmem:[%s16113_s18 + $0x220] sm:$0xff]  }
 0x9b8   :  { %10033 = vmatpush3.bf16.msra.mxu1 %v12027_v9  ;;  %v6170_v9 = vrot.slane %v6168_v39, 3  ;;  %v12031_v39 = vld [vmem:[%s16113_s18 + $0x228] sm:$0xff]  }
 0x9b9   :  { %5564 = vmatmul.mubr.bf16.gmra.mrb[228].mxu0 %v14596_v3  ;;  %10034 = vmatprep.subr.bf16.mxu1 %v12028_v31  ;;  %v12030_v31 = vld [vmem:[%s16113_s18 + $0x268] sm:$0xff]  }
 0x9ba   :  { %5571 = vmatprep.mubr.bf16.mxu0 %v14845_v62  ;;  %v15070_v2 = vor.u32 %v6170_v9, %v6167_v10  ;;  %v5624_v10 = vsel %vm912_vm1, %v5619_v35, %v5623_v11  ;;  %v12032_v9 = vld [vmem:[%s16113_s18 + $0x270] sm:$0xff]   ;;  %v5627_v35 = vrot.slane %v14845_v62, 1 }
 0x9bb   :  { %5698 = vmatmul.mubr.bf16.gmra.mrb[236].mxu1 %v5614_v14  ;;  %v5767_v14 = vrot.slane %v14526_v53, 1 }
 0x9bc   :  { %5705 = vmatprep.mubr.bf16.mxu1 %v5620_v40  ;;  %10035 = vmatpush3.bf16.msra.mxu1 %v12029_v15  ;;  %16232 = vst [vmem:[#allocation39_spill] sm:$0xff] %v15070_v2  ;;  %v5768_v40 = vrot.slane %v14523_v50, 2  ;;  %v15082_v15 = vsel %vm1809_vm3, %v6158_v54, %v15070_v2  ;;  %v12033_v54 = vld [vmem:[%s16113_s18 + $0x230] sm:$0xff]   ;;  %v12034_v2 = vld [vmem:[%s16113_s18 + $0x278] sm:$0xff]  }
 0x9bd   :  { %10036 = vmatprep.subr.bf16.mxu1 %v12030_v31  ;;  %16233 = vst [vmem:[#allocation36_spill] sm:$0xff] %v15082_v15  ;;  %v5772_v31 = vor.u32 %v5771_v42, %v5770_v6  ;;  %v5763_v42 = vrot.slane %v14683_v16, 1  ;;  %v5764_v6 = vrot.slane %v14627_v20, 2  ;;  %v5628_v15 = vsel %vm912_vm1, %v5623_v11, %v5627_v35 }
 0x9be   :  { %v5769_v34 = vor.u32 %v5768_v40, %v5767_v14  ;;  %v5761_v14 = vrot.slane %v14605_v58, 2  ;;  %v5775_v11 = vrot.slane %v14686_v26, 2 }
 0x9bf   :  { %v5765_v45 = vor.u32 %v5764_v6, %v5763_v42  ;;  %v12037_v6 = vld [vmem:[%s16113_s18 + $0x280] sm:$0xff]  }
 0x9c0   :  { %10037 = vmatpush3.bf16.msra.mxu1 %v12031_v39  ;;  %v5621_v39 = vrot.slane %v14596_v3, 1  ;;  %v5773_v40 = vsel %vm1199_vm2, %v5769_v34, %v5772_v31  ;;  %v5776_v42 = vor.u32 %v5775_v11, %v5774_v13  ;;  %v5783_v13 = vrot.slane %v14747_v18, 2  ;;  %v12041_v11 = vld [vmem:[%s16113_s18 + $0x290] sm:$0xff]  }
 0x9c1   :  { %5572 = vmatmul.mubr.bf16.gmra.mrb[232].mxu0 %v14704_v4  ;;  %10038 = vmatprep.subr.bf16.mxu1 %v12032_v9  ;;  %v5760_v9 = vrot.slane %v14620_v23, 1 }
 0x9c2   :  { %5579 = vmatprep.mubr.bf16.mxu0 %v14893_v47 }
 0x9c3   :  { %5706 = vmatmul.mubr.bf16.gmra.mrb[240].mxu1 %v5618_v52  ;;  %v5778_v52 = vrot.slane %v14689_v48, 1  ;;  %v5762_v34 = vor.u32 %v5761_v14, %v5760_v9  ;;  %v5787_v9 = vrot.slane %v14696_v43, 2 }
 0x9c4   :  { %5713 = vmatprep.mubr.bf16.mxu1 %v5624_v10  ;;  %10039 = vmatpush3.bf16.msra.mxu1 %v12033_v54  ;;  %v5779_v10 = vrot.slane %v14638_v32, 2  ;;  %v5622_v54 = vsel %vm912_vm1, %v5617_v49, %v5621_v39  ;;  %v5625_v49 = vrot.slane %v14704_v4, 1 }
 0x9c5   :  { %10040 = vmatprep.subr.bf16.mxu1 %v12034_v2  ;;  %v12035_v2 = vld [vmem:[%s16113_s18 + $0x238] sm:$0xff]  }
 0x9c6   :  { %v5780_v7 = vor.u32 %v5779_v10, %v5778_v52  ;;  %v5626_v14 = vsel %vm912_vm1, %v5621_v39, %v5625_v49  ;;  %v5629_v39 = vrot.slane %v14496_v57, 1  ;;  %v5777_v52 = vsel %vm1199_vm2, %v5765_v45, %v5776_v42 }
 0x9c8   :  { %10041 = vmatpush3.bf16.msra.mxu1 %v12035_v2  ;;  %v5766_v2 = vsel %vm1199_vm2, %v5762_v34, %v5765_v45  ;;  %v5781_v32 = vsel %vm1199_vm2, %v5772_v31, %v5780_v7  ;;  %v12038_v31 = vld [vmem:[%s16113_s18 + $0x2c8] sm:$0xff]   ;;  %v5795_v34 = vrot.slane %v14757_v38, 2  ;;  %v5630_v45 = vsel %vm912_vm1, %v5625_v49, %v5629_v39 }
 0x9c9   :  { %5580 = vmatmul.mubr.bf16.gmra.mrb[236].mxu0 %v14496_v57  ;;  %10154 = vmatprep.subr.bf16.mxu1 %v12036_v60  ;;  %v5786_v60 = vrot.slane %v14754_v22, 1  ;;  %v12040_v57 = vld [vmem:[%s16113_s18 + $0x2d0] sm:$0xff]   ;;  %v5957_v49 = vrot.slane %v14520_v21, 2 }
 0x9ca   :  { %5870 = vmatprep.mubr.bf16.mxu0 %v5773_v40 }
 0x9cb   :  { %5714 = vmatmul.mubr.bf16.gmra.mrb[244].mxu1 %v5622_v54  ;;  %v5788_v40 = vor.u32 %v5787_v9, %v5786_v60  ;;  %v5794_v54 = vrot.slane %v14814_v63, 1  ;;  %v12042_v60 = vld [vmem:[%s16113_s18 + $0x2d8] sm:$0xff]   ;;  %v5956_v9 = vrot.slane %v14512_v55, 2 }
 0x9cc   :  { %5721 = vmatprep.mubr.bf16.mxu1 %v5628_v15  ;;  %v5632_v15 = vsel %vm912_vm1, %v5627_v35, %v5631_v51  ;;  %v12039_v35 = vld [vmem:[%s16113_s18 + $0x288] sm:$0xff]  }
 0x9cd   :  { %v5789_v10 = vsel %vm1199_vm2, %v5780_v7, %v5788_v40  ;;  %v5796_v7 = vor.u32 %v5795_v34, %v5794_v54  ;;  %v12046_v54 = vld [vmem:[%s16113_s18 + $0x2e8] sm:$0xff]   ;;  %v5953_v34 = vrot.slane %v14579_v44, 2 }
 0x9d1   :  { %5871 = vmatmul.mubr.bf16.vlgmr.msra.gmra.mrb[240].mxu0 %v5766_v2 }
 0x9d2   :  { %5878 = vmatprep.mubr.bf16.mxu0 %v5781_v32  ;;  %10091 = vmatpush3.bf16.msra.mxu0 %v12037_v6  ;;  %v5782_v32 = vrot.slane %v14804_v30, 1  ;;  %v5791_v6 = vrot.slane %v14807_v17, 2 }
 0x9d3   :  { %5722 = vmatmul.mubr.bf16.gmra.mrb[248].mxu1 %v5626_v14  ;;  %10092 = vmatprep.subr.bf16.mxu0 %v12038_v31  ;;  %v12043_v31 = vld [vmem:[%s16113_s18 + $0x298] sm:$0xff]  }
 0x9d4   :  { %5729 = vmatprep.mubr.bf16.mxu1 %v5632_v15  ;;  %v5784_v2 = vor.u32 %v5783_v13, %v5782_v32  ;;  %v5790_v15 = vrot.slane %v14858_v36, 1  ;;  %v5802_v32 = vrot.slane %v14865_v24, 1  ;;  %v12044_v13 = vld [vmem:[%s16113_s18 + $0x2e0] sm:$0xff]  }
 0x9d6   :  { %10093 = vmatpush3.bf16.msra.mxu0 %v12039_v35  ;;  %v5785_v14 = vsel %vm1199_vm2, %v5776_v42, %v5784_v2  ;;  %v5958_v42 = vsel %vm1522_vm4, %v5956_v9, %v5957_v49  ;;  %v5792_v35 = vor.u32 %v5791_v6, %v5790_v15  ;;  %v5810_v9 = vrot.slane %v14910_v27, 1  ;;  %v12048_v15 = vld [vmem:[%s16113_s18 + $0x2f0] sm:$0xff]  }
 0x9d7   :  { %10094 = vmatprep.subr.bf16.mxu0 %v12040_v57  ;;  %v5954_v57 = vrot.slane %v14602_v0, 2 }
 0x9d9   :  { %5879 = vmatmul.mubr.bf16.gmra.mrb[244].mxu0 %v5777_v52  ;;  %v5797_v52 = vsel %vm1199_vm2, %v5788_v40, %v5796_v7  ;;  %v5955_v6 = vsel %vm1522_vm4, %v5953_v34, %v5954_v57 }
 0x9da   :  { %5886 = vmatprep.mubr.bf16.mxu0 %v5789_v10  ;;  %10095 = vmatpush3.bf16.msra.mxu0 %v12041_v11  ;;  %v12045_v10 = vld [vmem:[%s16113_s18 + $0x2a0] sm:$0xff]   ;;  %v5793_v11 = vsel %vm1199_vm2, %v5784_v2, %v5792_v35 }
 0x9db   :  { %5730 = vmatmul.mubr.bf16.gmra.mrb[252].mxu1 %v5630_v45  ;;  %10096 = vmatprep.subr.bf16.mxu0 %v12042_v60  ;;  %v5961_v45 = vrot.slane %v14610_v19, 2  ;;  %v12047_v60 = vld [vmem:[%s16113_s18 + $0x2a8] sm:$0xff]  }
 0x9dc   :  { %5737 = vmatprep.mubr.bf16.mxu1 %v5631_v51  ;;  %v5803_v51 = vrot.slane %v14817_v56, 2 }
 0x9dd   :  { %v5962_v2 = vsel %vm1522_vm4, %v5957_v49, %v5961_v45  ;;  %v5959_v49 = vrot.slane %v14658_v8, 2 }
 0x9de   :  { %10097 = vmatpush3.bf16.msra.mxu0 %v12043_v31  ;;  %v5804_v40 = vor.u32 %v5803_v51, %v5802_v32  ;;  %v12049_v31 = vld [vmem:[%s16113_s18 + $0x2b0] sm:$0xff]   ;;  %v12051_v32 = vld [vmem:[%s16113_s18 + $0x300] sm:$0xff]   ;;  %v12052_v51 = vld [vmem:[%s16113_s18 + $0x348] sm:$0xff]  }
 0x9df   :  { %10098 = vmatprep.subr.bf16.mxu0 %v12044_v13  ;;  %v5965_v13 = vrot.slane %v14669_v46, 2 }
 0x9e1   :  { %5887 = vmatmul.mubr.bf16.gmra.mrb[248].mxu0 %v5785_v14  ;;  %v5811_v14 = vrot.slane %v14868_v28, 2 }
 0x9e2   :  { %5894 = vmatprep.mubr.bf16.mxu0 %v5797_v52  ;;  %10099 = vmatpush3.bf16.msra.mxu0 %v12045_v10  ;;  %v12050_v52 = vld [vmem:[%s16113_s18 + $0x2f8] sm:$0xff]  }
 0x9e3   :  { %5738 = vmatmul.mubr.bf16.gmra.mrb[0].mxu1 %v5629_v39  ;;  %10100 = vmatprep.subr.bf16.mxu0 %v12046_v54  ;;  %v5805_v39 = vsel %vm1199_vm2, %v5796_v7, %v5804_v40  ;;  %v5812_v7 = vor.u32 %v5811_v14, %v5810_v9  ;;  %v12053_v10 = vld [vmem:[%s16113_s18 + $0x2b8] sm:$0xff]   ;;  %v16234_v54 = vshrl.u32 %v14893_v47, 16  ;;  %v16236_v9 = vmov 0.0  }
 0x9e4   :  { %6031 = vmatprep.mubr.bf16.mxu1 %v5958_v42  ;;  %v5801_v42 = vsel %vm1199_vm2, %v5792_v35, %v14660_v41  ;;  %v5960_v14 = vsel %vm1522_vm4, %v5954_v57, %v5959_v49  ;;  %v12054_v41 = vld [vmem:[%s16113_s18 + $0x308] sm:$0xff]   ;;  %v5966_v35 = vsel %vm1522_vm4, %v5961_v45, %v5965_v13  ;;  %v12056_v57 = vld [vmem:[%s16113_s18 + $0x310] sm:$0xff]   ;;  %v12057_v45 = vld [vmem:[%s16113_s18 + $0x358] sm:$0xff]  }
 0x9e5   :  { %v5818_v34 = vrot.slane %v16234_v54, 1  ;;  %v6120_v54 = vrot.slane %v14635_v29, 2  ;;  %v5971_v29 = vrot.slane %v14596_v3, 2 }
 0x9e6   :  { %10101 = vmatpush3.bf16.msra.mxu0 %v12047_v60  ;;  %v16235_v60 = vshll.u32 %v14893_v47, 16 }
 0x9e7   :  { %10102 = vmatprep.subr.bf16.mxu0 %v12048_v15  ;;  %v12055_v15 = vld [vmem:[%s16113_s18 + $0x350] sm:$0xff]  }
 0x9e9   :  { %5895 = vmatmul.mubr.bf16.gmra.mrb[252].mxu0 %v5793_v11  ;;  %v5813_v11 = vsel %vm1199_vm2, %v5804_v40, %v5812_v7  ;;  %v5963_v40 = vrot.slane %v14719_v37, 2 }
 0x9ea   :  { %5902 = vmatprep.mubr.bf16.mxu0 %v5805_v39  ;;  %10103 = vmatpush3.bf16.msra.mxu0 %v12049_v31  ;;  %v5819_v39 = vrot.slane %v16235_v60, 2  ;;  %v12062_v60 = vld [vmem:[%s16113_s18 + $0x328] sm:$0xff]  }
 0x9eb   :  { %6032 = vmatmul.mubr.bf16.vlgmr.msra.gmra.mrb[4].mxu1 %v5955_v6  ;;  %10104 = vmatprep.subr.bf16.mxu0 %v12050_v52  ;;  %v5969_v6 = vrot.slane %v14725_v25, 2  ;;  %v5964_v31 = vsel %vm1522_vm4, %v5959_v49, %v5963_v40  ;;  %v12058_v52 = vld [vmem:[%s16113_s18 + $0x318] sm:$0xff]   ;;  %v12060_v49 = vld [vmem:[%s16113_s18 + $0x320] sm:$0xff]  }
 0x9ec   :  { %10155 = vmatpush3.bf16.msra.mxu1 %v12051_v32  ;;  %6039 = vmatprep.mubr.bf16.mxu1 %v5962_v2  ;;  %v5820_v47 = vor.u32 %v5819_v39, %v5818_v34  ;;  %v6121_v34 = vrot.slane %v14530_v1, 3 }
 0x9ed   :  { %10156 = vmatprep.subr.bf16.mxu1 %v12052_v51  ;;  %v5970_v32 = vsel %vm1522_vm4, %v5965_v13, %v5969_v6  ;;  %v12059_v51 = vld [vmem:[%s16113_s18 + $0x360] sm:$0xff]   ;;  %v6117_v13 = vrot.slane %v14526_v53, 2  ;;  %v12063_v53 = vld [vmem:[%s16113_s18 + $0x370] sm:$0xff]  }
 0x9ee   :  { %10105 = vmatpush3.bf16.msra.mxu0 %v12053_v10  ;;  %v5821_v2 = vsel %vm1199_vm2, %v5812_v7, %v5820_v47  ;;  %v5967_v7 = vrot.slane %v14783_v33, 2  ;;  %v6118_v10 = vrot.slane %v14523_v50, 3  ;;  %v6122_v1 = vor.u32 %v6121_v34, %v6120_v54 }
 0x9ef   :  { %11020 = vmatprep.subr.bf16.mxu0 %v16236_v9  ;;  %v6136_v34 = vrot.slane %v14754_v22, 2 }
 0x9f0   :  { %10157 = vmatpush3.bf16.msra.mxu1 %v12054_v41  ;;  %v6119_v50 = vor.u32 %v6118_v10, %v6117_v13  ;;  %v12065_v41 = vld [vmem:[%s16113_s18 + $0x378] sm:$0xff]   ;;  %v6125_v13 = vrot.slane %v14686_v26, 3  ;;  %v6124_v10 = vrot.slane %v14744_v61, 2  ;;  %v16240_v26 = vld [vmem:[#allocation38_spill] sm:$0xff] }
 0x9f1   :  { %5903 = vmatmul.mubr.bf16.gmra.mrb[0].mxu0 %v5801_v42  ;;  %10158 = vmatprep.subr.bf16.mxu1 %v12055_v15  ;;  %v5973_v42 = vrot.slane %v14790_v5, 2  ;;  %v6111_v15 = vrot.slane %v14605_v58, 3  ;;  %v12066_v58 = vld [vmem:[%s16113_s18 + $0x338] sm:$0xff]   ;;  %v5979_v61 = vrot.slane %v16240_v26, 2 }
 0x9f2   :  { %5910 = vmatprep.mubr.bf16.mxu0 %v5813_v11  ;;  %v5968_v11 = vsel %vm1522_vm4, %v5963_v40, %v5967_v7  ;;  %v6113_v40 = vrot.slane %v14683_v16, 2  ;;  %v16239_v16 = vld [vmem:[#allocation32_spill] sm:$0xff] }
 0x9f3   :  { %6040 = vmatmul.mubr.bf16.gmra.mrb[8].mxu1 %v5960_v14  ;;  %v5974_v39 = vsel %vm1522_vm4, %v5969_v6, %v5973_v42  ;;  %v12064_v14 = vld [vmem:[%s16113_s18 + $0x330] sm:$0xff]   ;;  %v6123_v6 = vsel %vm1809_vm3, %v6119_v50, %v6122_v1 }
 0x9f4   :  { %6047 = vmatprep.mubr.bf16.mxu1 %v5966_v35  ;;  %10159 = vmatpush3.bf16.msra.mxu1 %v12056_v57  ;;  %v6110_v35 = vrot.slane %v14620_v23, 2  ;;  %v9014_v57 = vld [vmem:[%s16114_s4 + $0x1f8] sm:$0x7]  ;;  %v16238_v23 = vld [vmem:[#allocation42_spill] sm:$0xff] }
 0x9f5   :  { %10160 = vmatprep.subr.bf16.mxu1 %v12057_v45  ;;  %v6128_v45 = vrot.slane %v14689_v48, 2 }
 0x9f8   :  { %10161 = vmatpush3.bf16.msra.mxu1 %v12058_v52  ;;  %v5972_v52 = vsel %vm1522_vm4, %v5967_v7, %v5971_v29  ;;  %v5975_v7 = vrot.slane %v14704_v4, 2 }
 0x9f9   :  { %5911 = vmatmul.mubr.bf16.gmra.mrb[4].mxu0 %v14794_v59  ;;  %10162 = vmatprep.subr.bf16.mxu1 %v12059_v51  ;;  %v12061_v59 = vld [vmem:[%s16113_s18 + $0x368] sm:$0xff]   ;;  %v6112_v51 = vor.u32 %v6111_v15, %v6110_v35 }
 0x9fa   :  { %5918 = vmatprep.mubr.bf16.mxu0 %v5821_v2  ;;  %v16237_v2 = vld [vmem:[#allocation31_spill] sm:$0xff] }
 0x9fb   :  { %6048 = vmatmul.mubr.bf16.gmra.mrb[12].mxu1 %v5964_v31  ;;  %v6129_v31 = vrot.slane %v16237_v2, 3  ;;  %v6153_v2 = vrot.slane %v14817_v56, 3 }
 0x9fc   :  { %6055 = vmatprep.mubr.bf16.mxu1 %v5970_v32  ;;  %10163 = vmatpush3.bf16.msra.mxu1 %v12060_v49  ;;  %v15283_v32 = vpack.c.bf16 %v9014_v57, %v16239_v16 }
 0x9fd   :  { %10164 = vmatprep.subr.bf16.mxu1 %v12061_v59  ;;  %v6130_v49 = vor.u32 %v6129_v31, %v6128_v45  ;;  %v6152_v45 = vrot.slane %v14865_v24, 2  ;;  %v6317_v24 = vrot.slane %v14610_v19, 3 }
 0x9fe   :  { %v5981_v59 = vrot.slane %v15283_v32, 2  ;;  %v6174_v19 = vshrl.u32 %v15283_v32, 16 }
 0x9ff   :  { %v6131_v54 = vsel %vm1809_vm3, %v6122_v1, %v6130_v49  ;;  %v6132_v1 = vrot.slane %v14804_v30, 2  ;;  %v6313_v30 = vrot.slane %v14520_v21, 3 }
 0xa00   :  { %10165 = vmatpush3.bf16.msra.mxu1 %v12062_v60  ;;  %v5976_v60 = vsel %vm1522_vm4, %v5971_v29, %v5975_v7  ;;  %v6144_v29 = vrot.slane %v14814_v63, 2 }
 0xa01   :  { %5919 = vmatmul.mubr.bf16.gmra.mrb[8].mxu0 %v14836_v12  ;;  %10166 = vmatprep.subr.bf16.mxu1 %v12063_v53  ;;  %v5977_v12 = vrot.slane %v14845_v62, 2  ;;  %v6126_v53 = vor.u32 %v6125_v13, %v6124_v10  ;;  %v6177_v10 = vshll.u32 %v15283_v32, 16 }
 0xa02   :  { %5926 = vmatprep.mubr.bf16.mxu0 %v5820_v47  ;;  %v6114_v47 = vrot.slane %v14627_v20, 3 }
 0xa03   :  { %6056 = vmatmul.mubr.bf16.gmra.mrb[16].mxu1 %v5968_v11  ;;  %v5978_v20 = vsel %vm1522_vm4, %v5973_v42, %v5977_v12  ;;  %v6137_v11 = vrot.slane %v14696_v43, 3 }
 0xa04   :  { %6063 = vmatprep.mubr.bf16.mxu1 %v5974_v39  ;;  %10167 = vmatpush3.bf16.msra.mxu1 %v12064_v14  ;;  %v6115_v48 = vor.u32 %v6114_v47, %v6113_v40  ;;  %v5982_v39 = vsel %vm1522_vm4, %v5977_v12, %v5981_v59  ;;  %v6133_v14 = vrot.slane %v14747_v18, 3  ;;  %v5980_v12 = vsel %vm1522_vm4, %v5975_v7, %v5979_v61 }
 0xa05   :  { %10168 = vmatprep.subr.bf16.mxu1 %v12065_v41  ;;  %v6138_v50 = vor.u32 %v6137_v11, %v6136_v34  ;;  %v6145_v41 = vrot.slane %v14757_v38, 3  ;;  %v6312_v18 = vrot.slane %v14512_v55, 3  ;;  %v6141_v47 = vrot.slane %v14807_v17, 3 }
 0xa06   :  { %v6116_v42 = vsel %vm1809_vm3, %v6112_v51, %v6115_v48  ;;  %v6127_v22 = vsel %vm1809_vm3, %v6115_v48, %v6126_v53  ;;  %v6134_v35 = vor.u32 %v6133_v14, %v6132_v1  ;;  %v6140_v40 = vrot.slane %v14858_v36, 2  ;;  %v16242_v1 = vld [vmem:[#allocation37_spill] sm:$0xff] }
 0xa07   :  { %v6139_v43 = vsel %vm1809_vm3, %v6130_v49, %v6138_v50  ;;  %v6146_v15 = vor.u32 %v6145_v41, %v6144_v29  ;;  %v6314_v55 = vsel %vm2138_vm5, %v6312_v18, %v6313_v30  ;;  %v6154_v17 = vor.u32 %v6153_v2, %v6152_v45  ;;  %v16243_v18 = vld [vmem:[#allocation36_spill] sm:$0xff] }
 0xa08   :  { %10169 = vmatpush3.bf16.msra.mxu1 %v12066_v58  ;;  %v6135_v63 = vsel %vm1809_vm3, %v6126_v53, %v6134_v35  ;;  %v6142_v21 = vor.u32 %v6141_v47, %v6140_v40  ;;  %v6309_v58 = vrot.slane %v14579_v44, 3  ;;  %v6160_v7 = vrot.slane %v14910_v27, 2  ;;  %v16241_v27 = vld [vmem:[#allocation34_spill] sm:$0xff] }
 0xa09   :  { %5927 = vmatmul.mubr.bf16.gmra.mrb[12].mxu0 %v16238_v23  ;;  %11076 = vmatprep.subr.bf16.mxu1 %v16236_v9  ;;  %v6310_v23 = vrot.slane %v14602_v0, 3  ;;  %v6155_v49 = vsel %vm1809_vm3, %v6146_v15, %v6154_v17  ;;  %v6318_v44 = vsel %vm2138_vm5, %v6313_v30, %v6317_v24  ;;  %v6176_v11 = vrot.slane %v6174_v19, 2 }
 0xa0a   :  { %6230 = vmatprep.mubr.bf16.mxu0 %v6123_v6  ;;  %v6147_v6 = vsel %vm1809_vm3, %v6138_v50, %v6146_v15  ;;  %v6143_v51 = vsel %vm1809_vm3, %v6134_v35, %v6142_v21  ;;  %v6329_v29 = vrot.slane %v14790_v5, 3 }
 0xa0b   :  { %6064 = vmatmul.mubr.bf16.gmra.mrb[20].mxu1 %v5972_v52  ;;  %v6311_v13 = vsel %vm2138_vm5, %v6309_v58, %v6310_v23 }
 0xa0c   :  { %6071 = vmatprep.mubr.bf16.mxu1 %v5978_v20 }
 0xa11   :  { %6231 = vmatmul.mubr.bf16.vlgmr.msra.gmra.mrb[16].mxu0 %v6116_v42  ;;  %v6315_v42 = vrot.slane %v14658_v8, 3  ;;  %v6319_v8 = vrot.slane %v14719_v37, 3 }
 0xa12   :  { %6238 = vmatprep.mubr.bf16.mxu0 %v6131_v54  ;;  %v6321_v54 = vrot.slane %v14669_v46, 3  ;;  %v6325_v46 = vrot.slane %v14725_v25, 3 }
 0xa13   :  { %6072 = vmatmul.mubr.bf16.gmra.mrb[24].mxu1 %v5976_v60  ;;  %v6179_v60 = vrot.slane %v6177_v10, 3  ;;  %v6320_v14 = vsel %vm2138_vm5, %v6315_v42, %v6319_v8 }
 0xa14   :  { %6079 = vmatprep.mubr.bf16.mxu1 %v5982_v39  ;;  %v6316_v39 = vsel %vm2138_vm5, %v6310_v23, %v6315_v42  ;;  %v6322_v53 = vsel %vm2138_vm5, %v6317_v24, %v6321_v54  ;;  %v6330_v30 = vsel %vm2138_vm5, %v6325_v46, %v6329_v29 }
 0xa15   :  { %v6180_v50 = vor.u32 %v6179_v60, %v6176_v11 }
 0xa19   :  { %6239 = vmatmul.mubr.bf16.gmra.mrb[20].mxu0 %v6127_v22  ;;  %v6326_v22 = vsel %vm2138_vm5, %v6321_v54, %v6325_v46 }
 0xa1a   :  { %6246 = vmatprep.mubr.bf16.mxu0 %v6139_v43  ;;  %v6323_v43 = vrot.slane %v14783_v33, 3  ;;  %v6327_v33 = vrot.slane %v14596_v3, 3  ;;  %v6331_v3 = vrot.slane %v14704_v4, 3 }
 0xa1b   :  { %6080 = vmatmul.mubr.bf16.gmra.mrb[28].mxu1 %v5980_v12 }
 0xa1c   :  { %6087 = vmatprep.mubr.bf16.mxu1 %v5981_v59  ;;  %v6161_v59 = vrot.slane %v14868_v28, 3  ;;  %v6151_v28 = vsel %vm1809_vm3, %v6142_v21, %v16241_v27  ;;  %v6324_v35 = vsel %vm2138_vm5, %v6319_v8, %v6323_v43 }
 0xa1e   :  { %v5073_v57 = vpop.f32.mrb[192].mxu1  ;;  %v6162_v0 = vor.u32 %v6161_v59, %v6160_v7  ;;  %v6335_v7 = vrot.slane %v16240_v26, 3 }
 0xa1f   :  { %v10998_v38 = vpop.f32.mrb[193].mxu1 }
 0xa20   :  { %v5076_v31 = vpop.f32.mrb[194].mxu1  ;;  %v6163_v34 = vsel %vm1809_vm3, %v6154_v17, %v6162_v0  ;;  %v16244_v17 = vld [vmem:[#allocation39_spill] sm:$0xff] }
 0xa21   :  { %6247 = vmatmul.mubr.bf16.gmra.mrb[24].mxu0 %v6135_v63  ;;  %v10999_v52 = vpop.f32.mrb[195].mxu1  ;;  %v6333_v63 = vrot.slane %v14845_v62, 3  ;;  %v6337_v62 = vrot.slane %v15283_v32, 3  ;;  %v6336_v32 = vsel %vm2138_vm5, %v6331_v3, %v6335_v7 }
 0xa22   :  { %6254 = vmatprep.mubr.bf16.mxu0 %v6147_v6 }
 0xa23   :  { %6088 = vmatmul.mubr.bf16.gmra.mrb[32].mxu1 %v5979_v61  ;;  %v6181_v61 = vsel %vm1809_vm3, %v6162_v0, %v6180_v50 }
 0xa24   :  { %v4985_v36 = vpop.f32.mrb[200].mxu0  ;;  %6387 = vmatprep.mubr.bf16.mxu1 %v6314_v55  ;;  %v6328_v55 = vsel %vm2138_vm5, %v6323_v43, %v6327_v33 }
 0xa25   :  { %v5074_v20 = vadd.f32 %v5073_v57, %v4985_v36  ;;  %v10978_v16 = vpop.f32.mrb[201].mxu0  ;;  %v6334_v36 = vsel %vm2138_vm5, %v6329_v29, %v6333_v63 }
 0xa26   :  { %v4988_v56 = vpop.f32.mrb[202].mxu0 }
 0xa27   :  { %v10979_v48 = vpop.f32.mrb[203].mxu0  ;;  %v6332_v56 = vsel %vm2138_vm5, %v6327_v33, %v6331_v3 }
 0xa28   :  { %v6338_v48 = vsel %vm2138_vm5, %v6333_v63, %v6337_v62 }
 0xa29   :  { %6255 = vmatmul.mubr.bf16.gmra.mrb[28].mxu0 %v6143_v51 }
 0xa2a   :  { %6262 = vmatprep.mubr.bf16.mxu0 %v6155_v49 }
 0xa2b   :  { %6388 = vmatmul.mubr.bf16.vlgmr.msra.gmra.mrb[36].mxu1 %v6311_v13 }
 0xa2c   :  { %6395 = vmatprep.mubr.bf16.mxu1 %v6318_v44 }
 0xa31   :  { %6263 = vmatmul.mubr.bf16.gmra.mrb[32].mxu0 %v6151_v28 }
 0xa32   :  { %6270 = vmatprep.mubr.bf16.mxu0 %v6163_v34 }
 0xa33   :  { %6396 = vmatmul.mubr.bf16.gmra.mrb[40].mxu1 %v6316_v39 }
 0xa34   :  { %6403 = vmatprep.mubr.bf16.mxu1 %v6322_v53 }
 0xa39   :  { %6271 = vmatmul.mubr.bf16.gmra.mrb[36].mxu0 %v16242_v1 }
 0xa3a   :  { %6278 = vmatprep.mubr.bf16.mxu0 %v6181_v61 }
 0xa3b   :  { %6404 = vmatmul.mubr.bf16.gmra.mrb[44].mxu1 %v6320_v14 }
 0xa3c   :  { %6411 = vmatprep.mubr.bf16.mxu1 %v6326_v22 }
 0xa3e   :  { %v9786_v41 = vpop.f32.mrb[196].mxu1 }
 0xa3f   :  { %v9787_v12 = vpop.f32.mrb[197].mxu1 }
 0xa40   :  { %v15339_v37 = vadd.f32 %v9787_v12, %v9786_v41  ;;  %v9789_v25 = vpop.f32.mrb[198].mxu1 }
 0xa41   :  { %v9790_v15 = vpop.f32.mrb[199].mxu1  ;;  %6279 = vmatmul.mubr.bf16.gmra.mrb[40].mxu0 %v16243_v18 }
 0xa42   :  { %v15344_v47 = vadd.f32 %v9790_v15, %v9789_v25  ;;  %6286 = vmatprep.mubr.bf16.mxu0 %v6180_v50 }
 0xa43   :  { %6412 = vmatmul.mubr.bf16.gmra.mrb[48].mxu1 %v6324_v35 }
 0xa44   :  { %v5181_v40 = vpop.f32.mrb[204].mxu0  ;;  %6419 = vmatprep.mubr.bf16.mxu1 %v6330_v30 }
 0xa45   :  { %v15347_v5 = vadd.f32 %v5181_v40, %v5074_v20  ;;  %v11018_v57 = vpop.f32.mrb[205].mxu0 }
 0xa46   :  { %v5184_v38 = vpop.f32.mrb[206].mxu0  ;;  %v9792_v6 = vpop.f32.mrb[200].mxu1 }
 0xa47   :  { %v11019_v45 = vpop.f32.mrb[207].mxu0  ;;  %v9793_v2 = vpop.f32.mrb[201].mxu1 }
 0xa48   :  { %v9794_v31 = vadd.f32 %v9793_v2, %v9792_v6  ;;  %v9795_v52 = vpop.f32.mrb[202].mxu1 }
 0xa49   :  { %v9796_v21 = vpop.f32.mrb[203].mxu1  ;;  %6287 = vmatmul.mubr.bf16.gmra.mrb[44].mxu0 %v16244_v17 }
 0xa4a   :  { %v9797_v58 = vadd.f32 %v9796_v21, %v9795_v52  ;;  %11036 = vmatprep.mubr.msk.bf16.mxu0 %vm12555_vm6, %v16236_v9 }
 0xa4b   :  { %6420 = vmatmul.mubr.bf16.gmra.mrb[52].mxu1 %v6328_v55 }
 0xa4c   :  { %6427 = vmatprep.mubr.bf16.mxu1 %v6334_v36 }
 0xa4e   :  { %v9798_v23 = vpop.f32.mrb[204].mxu1 }
 0xa4f   :  { %v9799_v20 = vpop.f32.mrb[205].mxu1 }
 0xa50   :  { %v9800_v16 = vadd.f32 %v9799_v20, %v9798_v23  ;;  %v9801_v24 = vpop.f32.mrb[206].mxu1 }
 0xa51   :  { %v9802_v51 = vpop.f32.mrb[207].mxu1 }
 0xa52   :  { %v9803_v49 = vadd.f32 %v9802_v51, %v9801_v24 }
 0xa53   :  { %6428 = vmatmul.mubr.bf16.gmra.mrb[56].mxu1 %v6332_v56 }
 0xa54   :  { %6435 = vmatprep.mubr.bf16.mxu1 %v6338_v48 }
 0xa56   :  { %v9804_v59 = vpop.f32.mrb[208].mxu1 }
 0xa57   :  { %v9805_v13 = vpop.f32.mrb[209].mxu1 }
 0xa58   :  { %v15360_v44 = vadd.f32 %v9805_v13, %v9804_v59  ;;  %v9807_v4 = vpop.f32.mrb[210].mxu1 }
 0xa59   :  { %v9808_v0 = vpop.f32.mrb[211].mxu1 }
 0xa5a   :  { %v15363_v19 = vadd.f32 %v9808_v0, %v9807_v4 }
 0xa5b   :  { %6436 = vmatmul.mubr.bf16.gmra.mrb[60].mxu1 %v6336_v32 }
 0xa5c   :  { %6443 = vmatprep.mubr.bf16.mxu1 %v6337_v62 }
 0xa5e   :  { %v9810_v10 = vpop.f32.mrb[212].mxu1 }
 0xa5f   :  { %v9811_v42 = vpop.f32.mrb[213].mxu1 }
 0xa60   :  { %v15365_v54 = vadd.f32 %v9811_v42, %v9810_v10  ;;  %v9813_v27 = vpop.f32.mrb[214].mxu1 }
 0xa61   :  { %v9814_v28 = vpop.f32.mrb[215].mxu1 }
 0xa62   :  { %v15367_v34 = vadd.f32 %v9814_v28, %v9813_v27 }
 0xa63   :  { %6444 = vmatmul.mubr.bf16.gmra.mrb[64].mxu1 %v6335_v7 }
 0xa64   :  { %v9850_v26 = vpop.f32.mrb[208].mxu0  ;;  %11092 = vmatprep.mubr.msk.bf16.mxu1 %vm12555_vm6, %v16236_v9 }
 0xa65   :  { %v9851_v11 = vpop.f32.mrb[209].mxu0 }
 0xa66   :  { %v9852_v60 = vadd.f32 %v9851_v11, %v9850_v26  ;;  %v9816_v39 = vpop.f32.mrb[216].mxu1  ;;  %v9853_v53 = vpop.f32.mrb[210].mxu0 }
 0xa67   :  { %v9817_v50 = vpop.f32.mrb[217].mxu1  ;;  %v9854_v8 = vpop.f32.mrb[211].mxu0 }
 0xa68   :  { %v5526_v46 = vadd.f32 %v9852_v60, %v15339_v37  ;;  %v15372_v61 = vadd.f32 %v9817_v50, %v9816_v39  ;;  %v9855_v14 = vadd.f32 %v9854_v8, %v9853_v53  ;;  %v9819_v1 = vpop.f32.mrb[218].mxu1 }
 0xa69   :  { %v9820_v22 = vpop.f32.mrb[219].mxu1 }
 0xa6a   :  { %v5529_v43 = vadd.f32 %v9855_v14, %v15344_v47  ;;  %v15375_v29 = vadd.f32 %v9820_v22, %v9819_v1 }
 0xa6c   :  { %v9856_v41 = vpop.f32.mrb[212].mxu0 }
 0xa6d   :  { %v9857_v12 = vpop.f32.mrb[213].mxu0 }
 0xa6e   :  { %v9858_v25 = vadd.f32 %v9857_v12, %v9856_v41  ;;  %v9822_v35 = vpop.f32.mrb[220].mxu1  ;;  %v9859_v15 = vpop.f32.mrb[214].mxu0 }
 0xa6f   :  { %v9823_v18 = vpop.f32.mrb[221].mxu1  ;;  %v9860_v30 = vpop.f32.mrb[215].mxu0 }
 0xa70   :  { %v5534_v40 = vadd.f32 %v9858_v25, %v9794_v31  ;;  %v15377_v33 = vadd.f32 %v9823_v18, %v9822_v35  ;;  %v9861_v37 = vadd.f32 %v9860_v30, %v9859_v15  ;;  %v9825_v57 = vpop.f32.mrb[222].mxu1 }
 0xa71   :  { %v9826_v63 = vpop.f32.mrb[223].mxu1 }
 0xa72   :  { %v5537_v38 = vadd.f32 %v9861_v37, %v9797_v58  ;;  %v15379_v6 = vadd.f32 %v9826_v63, %v9825_v57 }
 0xa74   :  { %v9862_v45 = vpop.f32.mrb[216].mxu0 }
 0xa75   :  { %v9863_v47 = vpop.f32.mrb[217].mxu0 }
 0xa76   :  { %v9864_v2 = vadd.f32 %v9863_v47, %v9862_v45  ;;  %v9828_v52 = vpop.f32.mrb[224].mxu1  ;;  %v9865_v55 = vpop.f32.mrb[218].mxu0 }
 0xa77   :  { %v9829_v21 = vpop.f32.mrb[225].mxu1  ;;  %v9866_v17 = vpop.f32.mrb[219].mxu0 }
 0xa78   :  { %v5542_v36 = vadd.f32 %v9864_v2, %v9800_v16  ;;  %v15381_v3 = vadd.f32 %v9829_v21, %v9828_v52  ;;  %v9867_v62 = vadd.f32 %v9866_v17, %v9865_v55  ;;  %v9831_v31 = vpop.f32.mrb[226].mxu1 }
 0xa79   :  { %v9832_v23 = vpop.f32.mrb[227].mxu1 }
 0xa7a   :  { %v5545_v20 = vadd.f32 %v9867_v62, %v9803_v49 }
 0xa7c   :  { %v9868_v24 = vpop.f32.mrb[220].mxu0 }
 0xa7d   :  { %v9869_v56 = vpop.f32.mrb[221].mxu0 }
 0xa7e   :  { %v9870_v51 = vadd.f32 %v9869_v56, %v9868_v24  ;;  %v9871_v58 = vpop.f32.mrb[222].mxu0  ;;  %v9914_v48 = vpop.f32.mrb[228].mxu1 }
 0xa7f   :  { %v9872_v7 = vpop.f32.mrb[223].mxu0  ;;  %v9915_v59 = vpop.f32.mrb[229].mxu1 }
 0xa80   :  { %v5550_v13 = vadd.f32 %v9870_v51, %v15360_v44  ;;  %v9873_v4 = vadd.f32 %v9872_v7, %v9871_v58  ;;  %v9916_v32 = vadd.f32 %v9915_v59, %v9914_v48  ;;  %v9917_v0 = vpop.f32.mrb[230].mxu1 }
 0xa81   :  { %v9918_v10 = vpop.f32.mrb[231].mxu1 }
 0xa82   :  { %v5553_v16 = vadd.f32 %v9873_v4, %v15363_v19  ;;  %v15385_v42 = vadd.f32 %v9916_v32, %v5526_v46  ;;  %v9919_v27 = vadd.f32 %v9918_v10, %v9917_v0 }
 0xa84   :  { %v15387_v28 = vadd.f32 %v9919_v27, %v5529_v43  ;;  %v9874_v49 = vpop.f32.mrb[224].mxu0 }
 0xa85   :  { %v9875_v26 = vpop.f32.mrb[225].mxu0 }
 0xa86   :  { %v9876_v11 = vadd.f32 %v9875_v26, %v9874_v49  ;;  %v9877_v60 = vpop.f32.mrb[226].mxu0  ;;  %v9920_v39 = vpop.f32.mrb[232].mxu1 }
 0xa87   :  { %v9878_v53 = vpop.f32.mrb[227].mxu0  ;;  %v9921_v50 = vpop.f32.mrb[233].mxu1 }
 0xa88   :  { %v5558_v44 = vadd.f32 %v9876_v11, %v15365_v54  ;;  %v9879_v8 = vadd.f32 %v9878_v53, %v9877_v60  ;;  %v9922_v14 = vadd.f32 %v9921_v50, %v9920_v39  ;;  %v9923_v1 = vpop.f32.mrb[234].mxu1 }
 0xa89   :  { %v9924_v22 = vpop.f32.mrb[235].mxu1 }
 0xa8a   :  { %v5561_v19 = vadd.f32 %v9879_v8, %v15367_v34  ;;  %v15391_v46 = vadd.f32 %v9922_v14, %v5534_v40  ;;  %v9925_v41 = vadd.f32 %v9924_v22, %v9923_v1 }
 0xa8c   :  { %v15393_v43 = vadd.f32 %v9925_v41, %v5537_v38  ;;  %v9880_v12 = vpop.f32.mrb[228].mxu0 }
 0xa8d   :  { %v9881_v25 = vpop.f32.mrb[229].mxu0 }
 0xa8e   :  { %v9882_v35 = vadd.f32 %v9881_v25, %v9880_v12  ;;  %v9883_v15 = vpop.f32.mrb[230].mxu0  ;;  %v9926_v18 = vpop.f32.mrb[236].mxu1 }
 0xa8f   :  { %v9884_v30 = vpop.f32.mrb[231].mxu0  ;;  %v9927_v37 = vpop.f32.mrb[237].mxu1 }
 0xa90   :  { %v5566_v54 = vadd.f32 %v9882_v35, %v15372_v61  ;;  %v9885_v57 = vadd.f32 %v9884_v30, %v9883_v15  ;;  %v9928_v63 = vadd.f32 %v9927_v37, %v9926_v18  ;;  %v9929_v45 = vpop.f32.mrb[238].mxu1 }
 0xa91   :  { %v9930_v47 = vpop.f32.mrb[239].mxu1 }
 0xa92   :  { %v5569_v34 = vadd.f32 %v9885_v57, %v15375_v29  ;;  %v15397_v40 = vadd.f32 %v9928_v63, %v5542_v36  ;;  %v9931_v2 = vadd.f32 %v9930_v47, %v9929_v45 }
 0xa94   :  { %v15399_v38 = vadd.f32 %v9931_v2, %v5545_v20  ;;  %v9886_v52 = vpop.f32.mrb[232].mxu0 }
 0xa95   :  { %v9887_v55 = vpop.f32.mrb[233].mxu0 }
 0xa96   :  { %v9888_v21 = vadd.f32 %v9887_v55, %v9886_v52  ;;  %v9889_v17 = vpop.f32.mrb[234].mxu0  ;;  %v9932_v62 = vpop.f32.mrb[240].mxu1 }
 0xa97   :  { %v9890_v31 = vpop.f32.mrb[235].mxu0  ;;  %v9933_v23 = vpop.f32.mrb[241].mxu1 }
 0xa98   :  { %v5574_v61 = vadd.f32 %v9888_v21, %v15377_v33  ;;  %v9891_v24 = vadd.f32 %v9890_v31, %v9889_v17  ;;  %v9934_v56 = vadd.f32 %v9933_v23, %v9932_v62  ;;  %v9935_v51 = vpop.f32.mrb[242].mxu1 }
 0xa99   :  { %v9936_v58 = vpop.f32.mrb[243].mxu1 }
 0xa9a   :  { %v5577_v29 = vadd.f32 %v9891_v24, %v15379_v6  ;;  %v15403_v36 = vadd.f32 %v9934_v56, %v5550_v13  ;;  %v9937_v48 = vadd.f32 %v9936_v58, %v9935_v51 }
 0xa9c   :  { %v15405_v20 = vadd.f32 %v9937_v48, %v5553_v16  ;;  %v9892_v7 = vpop.f32.mrb[236].mxu0 }
 0xa9d   :  { %v9893_v59 = vpop.f32.mrb[237].mxu0 }
 0xa9e   :  { %v9894_v4 = vadd.f32 %v9893_v59, %v9892_v7  ;;  %v9938_v32 = vpop.f32.mrb[244].mxu1  ;;  %v9895_v0 = vpop.f32.mrb[238].mxu0 }
 0xa9f   :  { %v9939_v10 = vpop.f32.mrb[245].mxu1  ;;  %v9896_v27 = vpop.f32.mrb[239].mxu0 }
 0xaa0   :  { %v5582_v33 = vadd.f32 %v9894_v4, %v15381_v3  ;;  %v9940_v49 = vadd.f32 %v9939_v10, %v9938_v32  ;;  %v9941_v26 = vpop.f32.mrb[246].mxu1 }
 0xaa1   :  { %v9942_v11 = vpop.f32.mrb[247].mxu1 }
 0xaa2   :  { %v15408_v60 = vadd.f32 %v9940_v49, %v5558_v44  ;;  %v9943_v6 = vadd.f32 %v9942_v11, %v9941_v26 }
 0xaa4   :  { %v15410_v13 = vadd.f32 %v9943_v6, %v5561_v19  ;;  %v9978_v39 = vpop.f32.mrb[240].mxu0 }
 0xaa5   :  { %v9979_v16 = vpop.f32.mrb[241].mxu0 }
 0xaa6   :  { %v9980_v53 = vadd.f32 %v9979_v16, %v9978_v39  ;;  %v9944_v50 = vpop.f32.mrb[248].mxu1  ;;  %v9981_v8 = vpop.f32.mrb[242].mxu0 }
 0xaa7   :  { %v9945_v14 = vpop.f32.mrb[249].mxu1  ;;  %v9982_v1 = vpop.f32.mrb[243].mxu0 }
 0xaa8   :  { %v5934_v22 = vadd.f32 %v9980_v53, %v15385_v42  ;;  %v9946_v41 = vadd.f32 %v9945_v14, %v9944_v50  ;;  %v9983_v12 = vadd.f32 %v9982_v1, %v9981_v8  ;;  %v9947_v3 = vpop.f32.mrb[250].mxu1 }
 0xaa9   :  { %v9948_v25 = vpop.f32.mrb[251].mxu1 }
 0xaaa   :  { %v15413_v35 = vadd.f32 %v9946_v41, %v5566_v54  ;;  %v5935_v44 = vadd.f32 %v9983_v12, %v15387_v28  ;;  %v9949_v15 = vadd.f32 %v9948_v25, %v9947_v3 }
 0xaac   :  { %v15416_v19 = vadd.f32 %v9949_v15, %v5569_v34  ;;  %v9984_v18 = vpop.f32.mrb[244].mxu0 }
 0xaad   :  { %v9985_v30 = vpop.f32.mrb[245].mxu0 }
 0xaae   :  { %v9986_v37 = vadd.f32 %v9985_v30, %v9984_v18  ;;  %v9950_v57 = vpop.f32.mrb[252].mxu1  ;;  %v9987_v63 = vpop.f32.mrb[246].mxu0 }
 0xaaf   :  { %v9951_v45 = vpop.f32.mrb[253].mxu1  ;;  %v9988_v47 = vpop.f32.mrb[247].mxu0 }
 0xab0   :  { %v5936_v42 = vadd.f32 %v9986_v37, %v15391_v46  ;;  %v9952_v2 = vadd.f32 %v9951_v45, %v9950_v57  ;;  %v9989_v52 = vadd.f32 %v9988_v47, %v9987_v63  ;;  %v9953_v55 = vpop.f32.mrb[254].mxu1 }
 0xab1   :  { %v9954_v21 = vpop.f32.mrb[255].mxu1 }
 0xab2   :  { %v15419_v54 = vadd.f32 %v9952_v2, %v5574_v61  ;;  %v5937_v28 = vadd.f32 %v9989_v52, %v15393_v43  ;;  %v9955_v17 = vadd.f32 %v9954_v21, %v9953_v55 }
 0xab4   :  { %v15422_v34 = vadd.f32 %v9955_v17, %v5577_v29  ;;  %v9990_v62 = vpop.f32.mrb[248].mxu0 }
 0xab5   :  { %v9991_v31 = vpop.f32.mrb[249].mxu0 }
 0xab6   :  { %v9992_v23 = vadd.f32 %v9991_v31, %v9990_v62  ;;  %v9956_v24 = vpop.f32.mrb[0].mxu1  ;;  %v9993_v56 = vpop.f32.mrb[250].mxu0 }
 0xab7   :  { %v9957_v51 = vpop.f32.mrb[1].mxu1  ;;  %v9994_v58 = vpop.f32.mrb[251].mxu0 }
 0xab8   :  { %v5938_v46 = vadd.f32 %v9992_v23, %v15397_v40  ;;  %v9958_v48 = vadd.f32 %v9957_v51, %v9956_v24  ;;  %v9995_v7 = vadd.f32 %v9994_v58, %v9993_v56  ;;  %v9959_v59 = vpop.f32.mrb[2].mxu1 }
 0xab9   :  { %v9960_v4 = vpop.f32.mrb[3].mxu1 }
 0xaba   :  { %v15425_v61 = vadd.f32 %v9958_v48, %v5582_v33  ;;  %v5939_v43 = vadd.f32 %v9995_v7, %v15399_v38 }
 0xabc   :  { %v9996_v32 = vpop.f32.mrb[252].mxu0 }
 0xabd   :  { %v9997_v29 = vpop.f32.mrb[253].mxu0 }
 0xabe   :  { %v9998_v0 = vadd.f32 %v9997_v29, %v9996_v32  ;;  %v9999_v10 = vpop.f32.mrb[254].mxu0  ;;  %v10042_v27 = vpop.f32.mrb[4].mxu1 }
 0xabf   :  { %v10000_v49 = vpop.f32.mrb[255].mxu0  ;;  %v10043_v26 = vpop.f32.mrb[5].mxu1 }
 0xac0   :  { %v5940_v11 = vadd.f32 %v9998_v0, %v15403_v36  ;;  %v10001_v6 = vadd.f32 %v10000_v49, %v9999_v10  ;;  %v10044_v39 = vadd.f32 %v10043_v26, %v10042_v27  ;;  %v10045_v40 = vpop.f32.mrb[6].mxu1 }
 0xac1   :  { %v10046_v16 = vpop.f32.mrb[7].mxu1 }
 0xac2   :  { %v5941_v53 = vadd.f32 %v10001_v6, %v15405_v20  ;;  %v15430_v50 = vadd.f32 %v10044_v39, %v5934_v22  ;;  %v10047_v33 = vadd.f32 %v10046_v16, %v10045_v40 }
 0xac4   :  { %v15432_v8 = vadd.f32 %v10047_v33, %v5935_v44  ;;  %v10002_v38 = vpop.f32.mrb[0].mxu0 }
 0xac5   :  { %v10003_v14 = vpop.f32.mrb[1].mxu0 }
 0xac6   :  { %v10004_v1 = vadd.f32 %v10003_v14, %v10002_v38  ;;  %v10005_v41 = vpop.f32.mrb[2].mxu0  ;;  %v10048_v12 = vpop.f32.mrb[8].mxu1 }
 0xac7   :  { %v10006_v3 = vpop.f32.mrb[3].mxu0  ;;  %v10049_v25 = vpop.f32.mrb[9].mxu1 }
 0xac8   :  { %v5942_v36 = vadd.f32 %v10004_v1, %v15408_v60  ;;  %v10007_v15 = vadd.f32 %v10006_v3, %v10005_v41  ;;  %v10050_v18 = vadd.f32 %v10049_v25, %v10048_v12  ;;  %v10051_v30 = vpop.f32.mrb[10].mxu1 }
 0xac9   :  { %v10052_v37 = vpop.f32.mrb[11].mxu1 }
 0xaca   :  { %v5943_v20 = vadd.f32 %v10007_v15, %v15410_v13  ;;  %v15436_v22 = vadd.f32 %v10050_v18, %v5936_v42  ;;  %v10053_v57 = vadd.f32 %v10052_v37, %v10051_v30 }
 0xacc   :  { %v15438_v44 = vadd.f32 %v10053_v57, %v5937_v28  ;;  %v10008_v63 = vpop.f32.mrb[4].mxu0 }
 0xacd   :  { %v10009_v45 = vpop.f32.mrb[5].mxu0 }
 0xace   :  { %v10010_v47 = vadd.f32 %v10009_v45, %v10008_v63  ;;  %v10011_v2 = vpop.f32.mrb[6].mxu0  ;;  %v10054_v52 = vpop.f32.mrb[12].mxu1 }
 0xacf   :  { %v10012_v55 = vpop.f32.mrb[7].mxu0  ;;  %v10055_v21 = vpop.f32.mrb[13].mxu1 }
 0xad0   :  { %v5944_v60 = vadd.f32 %v10010_v47, %v15413_v35  ;;  %v10013_v17 = vadd.f32 %v10012_v55, %v10011_v2  ;;  %v10056_v62 = vadd.f32 %v10055_v21, %v10054_v52  ;;  %v10057_v31 = vpop.f32.mrb[14].mxu1 }
 0xad1   :  { %v10058_v23 = vpop.f32.mrb[15].mxu1 }
 0xad2   :  { %v5945_v13 = vadd.f32 %v10013_v17, %v15416_v19  ;;  %v15442_v42 = vadd.f32 %v10056_v62, %v5938_v46  ;;  %v10059_v24 = vadd.f32 %v10058_v23, %v10057_v31 }
 0xad4   :  { %v15444_v28 = vadd.f32 %v10059_v24, %v5939_v43  ;;  %v10014_v56 = vpop.f32.mrb[8].mxu0 }
 0xad5   :  { %v10015_v51 = vpop.f32.mrb[9].mxu0 }
 0xad6   :  { %v10016_v58 = vadd.f32 %v10015_v51, %v10014_v56  ;;  %v10017_v48 = vpop.f32.mrb[10].mxu0  ;;  %v10060_v7 = vpop.f32.mrb[16].mxu1 }
 0xad7   :  { %v10018_v59 = vpop.f32.mrb[11].mxu0  ;;  %v10061_v4 = vpop.f32.mrb[17].mxu1 }
 0xad8   :  { %v5946_v35 = vadd.f32 %v10016_v58, %v15419_v54  ;;  %v10019_v32 = vadd.f32 %v10018_v59, %v10017_v48  ;;  %v10062_v29 = vadd.f32 %v10061_v4, %v10060_v7  ;;  %v10063_v0 = vpop.f32.mrb[18].mxu1 }
 0xad9   :  { %v10064_v10 = vpop.f32.mrb[19].mxu1 }
 0xada   :  { %v5947_v19 = vadd.f32 %v10019_v32, %v15422_v34  ;;  %v15448_v46 = vadd.f32 %v10062_v29, %v5940_v11  ;;  %v10065_v27 = vadd.f32 %v10064_v10, %v10063_v0 }
 0xadc   :  { %v15450_v43 = vadd.f32 %v10065_v27, %v5941_v53  ;;  %v10020_v49 = vpop.f32.mrb[12].mxu0 }
 0xadd   :  { %v10021_v26 = vpop.f32.mrb[13].mxu0 }
 0xade   :  { %v10022_v6 = vadd.f32 %v10021_v26, %v10020_v49  ;;  %v10066_v39 = vpop.f32.mrb[20].mxu1  ;;  %v10023_v40 = vpop.f32.mrb[14].mxu0 }
 0xadf   :  { %v10067_v16 = vpop.f32.mrb[21].mxu1  ;;  %v10024_v33 = vpop.f32.mrb[15].mxu0 }
 0xae0   :  { %v5948_v54 = vadd.f32 %v10022_v6, %v15425_v61  ;;  %v10068_v38 = vadd.f32 %v10067_v16, %v10066_v39  ;;  %v10069_v14 = vpop.f32.mrb[22].mxu1 }
 0xae1   :  { %v10070_v1 = vpop.f32.mrb[23].mxu1 }
 0xae2   :  { %v15453_v41 = vadd.f32 %v10068_v38, %v5942_v36  ;;  %v10071_v34 = vadd.f32 %v10070_v1, %v10069_v14 }
 0xae4   :  { %v15455_v11 = vadd.f32 %v10071_v34, %v5943_v20  ;;  %v10106_v12 = vpop.f32.mrb[16].mxu0 }
 0xae5   :  { %v10107_v53 = vpop.f32.mrb[17].mxu0 }
 0xae6   :  { %v10108_v3 = vadd.f32 %v10107_v53, %v10106_v12  ;;  %v10072_v25 = vpop.f32.mrb[24].mxu1  ;;  %v10109_v15 = vpop.f32.mrb[18].mxu0 }
 0xae7   :  { %v10073_v18 = vpop.f32.mrb[25].mxu1  ;;  %v10110_v30 = vpop.f32.mrb[19].mxu0 }
 0xae8   :  { %v6294_v37 = vadd.f32 %v10108_v3, %v15430_v50  ;;  %v10074_v57 = vadd.f32 %v10073_v18, %v10072_v25  ;;  %v10111_v63 = vadd.f32 %v10110_v30, %v10109_v15  ;;  %v10075_v61 = vpop.f32.mrb[26].mxu1  ;;  %v15483_v25 = vld [vmem:[#allocation2] ss:$0 sm:$0xff] }
 0xae9   :  { %v10076_v45 = vpop.f32.mrb[27].mxu1 }
 0xaea   :  { %v15458_v47 = vadd.f32 %v10074_v57, %v5944_v60  ;;  %v6295_v36 = vadd.f32 %v10111_v63, %v15432_v8  ;;  %v10077_v2 = vadd.f32 %v10076_v45, %v10075_v61 }
 0xaec   :  { %v15461_v20 = vadd.f32 %v10077_v2, %v5945_v13  ;;  %v10112_v52 = vpop.f32.mrb[20].mxu0 }
 0xaed   :  { %v10113_v55 = vpop.f32.mrb[21].mxu0 }
 0xaee   :  { %v10114_v21 = vadd.f32 %v10113_v55, %v10112_v52  ;;  %v10078_v17 = vpop.f32.mrb[28].mxu1  ;;  %v10115_v62 = vpop.f32.mrb[22].mxu0 }
 0xaef   :  { %v10079_v31 = vpop.f32.mrb[29].mxu1  ;;  %v10116_v23 = vpop.f32.mrb[23].mxu0 }
 0xaf0   :  { %v6296_v50 = vadd.f32 %v10114_v21, %v15436_v22  ;;  %v10080_v24 = vadd.f32 %v10079_v31, %v10078_v17  ;;  %v10117_v56 = vadd.f32 %v10116_v23, %v10115_v62  ;;  %v10081_v51 = vpop.f32.mrb[30].mxu1 }
 0xaf1   :  { %v10082_v58 = vpop.f32.mrb[31].mxu1 }
 0xaf2   :  { %v15464_v60 = vadd.f32 %v10080_v24, %v5946_v35  ;;  %v6297_v8 = vadd.f32 %v10117_v56, %v15438_v44  ;;  %v10083_v48 = vadd.f32 %v10082_v58, %v10081_v51 }
 0xaf4   :  { %v15467_v13 = vadd.f32 %v10083_v48, %v5947_v19  ;;  %v10118_v7 = vpop.f32.mrb[24].mxu0 }
 0xaf5   :  { %v10119_v59 = vpop.f32.mrb[25].mxu0 }
 0xaf6   :  { %v10120_v4 = vadd.f32 %v10119_v59, %v10118_v7  ;;  %v10084_v32 = vpop.f32.mrb[32].mxu1  ;;  %v10121_v29 = vpop.f32.mrb[26].mxu0 }
 0xaf7   :  { %v10085_v0 = vpop.f32.mrb[33].mxu1  ;;  %v10122_v10 = vpop.f32.mrb[27].mxu0 }
 0xaf8   :  { %v15470_v22 = vadd.f32 %v10120_v4, %v15442_v42  ;;  %v10086_v27 = vadd.f32 %v10085_v0, %v10084_v32  ;;  %v10123_v49 = vadd.f32 %v10122_v10, %v10121_v29  ;;  %v10087_v26 = vpop.f32.mrb[34].mxu1 }
 0xaf9   :  { %v10088_v35 = vpop.f32.mrb[35].mxu1 }
 0xafa   :  { %v15472_v6 = vadd.f32 %v10086_v27, %v5948_v54  ;;  %v15475_v44 = vadd.f32 %v10123_v49, %v15444_v28 }
 0xafc   :  { %v10124_v19 = vpop.f32.mrb[28].mxu0 }
 0xafd   :  { %v10125_v39 = vpop.f32.mrb[29].mxu0 }
 0xafe   :  { %v10126_v40 = vadd.f32 %v10125_v39, %v10124_v19  ;;  %v10127_v16 = vpop.f32.mrb[30].mxu0  ;;  %v10170_v33 = vpop.f32.mrb[36].mxu1 }
 0xaff   :  { %v10128_v38 = vpop.f32.mrb[31].mxu0  ;;  %v10171_v14 = vpop.f32.mrb[37].mxu1 }
 0xb00   :  { %v15478_v1 = vadd.f32 %v10126_v40, %v15448_v46  ;;  %v10129_v42 = vadd.f32 %v10128_v38, %v10127_v16  ;;  %v10172_v34 = vadd.f32 %v10171_v14, %v10170_v33  ;;  %v10173_v12 = vpop.f32.mrb[38].mxu1 }
 0xb01   :  { %v10174_v53 = vpop.f32.mrb[39].mxu1 }
 0xb02   :  { %v15481_v54 = vadd.f32 %v10129_v42, %v15450_v43  ;;  %v6451_v3 = vadd.f32 %v10172_v34, %v6294_v37  ;;  %v10175_v28 = vadd.f32 %v10174_v53, %v10173_v12 }
 0xb04   :  { %v6466_v15 = vadd.f32 %v15483_v25, %v6451_v3  ;;  %v6452_v18 = vadd.f32 %v10175_v28, %v6295_v36  ;;  %v10130_v30 = vpop.f32.mrb[32].mxu0 }
 0xb05   :  { %v10131_v57 = vpop.f32.mrb[33].mxu0 }
 0xb06   :  { %v6467_v63 = vadd.f32 %v15483_v25, %v6452_v18  ;;  %v10132_v46 = vadd.f32 %v10131_v57, %v10130_v30  ;;  %v10133_v61 = vpop.f32.mrb[34].mxu0  ;;  %v10176_v45 = vpop.f32.mrb[40].mxu1  ;;  %v6481_v2 = vmax.f32 %v6466_v15, 0.0 }
 0xb07   :  { %v10134_v52 = vpop.f32.mrb[35].mxu0  ;;  %v10177_v55 = vpop.f32.mrb[41].mxu1 }
 0xb08   :  { %v6482_v21 = vmax.f32 %v6467_v63, 0.0  ;;  %v15488_v43 = vadd.f32 %v10132_v46, %v15453_v41  ;;  %v10135_v37 = vadd.f32 %v10134_v52, %v10133_v61  ;;  %v10178_v17 = vadd.f32 %v10177_v55, %v10176_v45  ;;  %v10179_v62 = vpop.f32.mrb[42].mxu1 }
 0xb09   :  { %v10180_v31 = vpop.f32.mrb[43].mxu1 }
 0xb0a   :  { %v15490_v23 = vpack.c.bf16 %v6482_v21, %v6481_v2  ;;  %v15493_v36 = vadd.f32 %v10135_v37, %v15455_v11  ;;  %v6453_v24 = vadd.f32 %v10178_v17, %v6296_v50  ;;  %v10181_v56 = vadd.f32 %v10180_v31, %v10179_v62 }
 0xb0c   :  { %v6468_v51 = vadd.f32 %v15483_v25, %v6453_v24  ;;  %v6454_v58 = vadd.f32 %v10181_v56, %v6297_v8  ;;  %v10136_v48 = vpop.f32.mrb[36].mxu0  ;;  %11021 = vmatpush3.bf16.msra.mxu0 %v15490_v23  ;;  %11077 = vmatpush3.bf16.msra.mxu1 %v15490_v23 }
 0xb0d   :  { %v10137_v41 = vpop.f32.mrb[37].mxu0  ;;  %11022 = vmatprep.subr.bf16.mxu0 %v16236_v9  ;;  %11078 = vmatprep.subr.bf16.mxu1 %v16236_v9 }
 0xb0e   :  { %v6469_v7 = vadd.f32 %v15483_v25, %v6454_v58  ;;  %v10138_v59 = vadd.f32 %v10137_v41, %v10136_v48  ;;  %v10139_v11 = vpop.f32.mrb[38].mxu0  ;;  %v10182_v4 = vpop.f32.mrb[44].mxu1  ;;  %v6483_v50 = vmax.f32 %v6468_v51, 0.0 }
 0xb0f   :  { %v10140_v32 = vpop.f32.mrb[39].mxu0  ;;  %v10183_v29 = vpop.f32.mrb[45].mxu1 }
 0xb10   :  { %v6484_v0 = vmax.f32 %v6469_v7, 0.0  ;;  %v15502_v8 = vadd.f32 %v10138_v59, %v15458_v47  ;;  %v10141_v10 = vadd.f32 %v10140_v32, %v10139_v11  ;;  %v10184_v27 = vadd.f32 %v10183_v29, %v10182_v4  ;;  %v10185_v49 = vpop.f32.mrb[46].mxu1 }
 0xb11   :  { %v10186_v26 = vpop.f32.mrb[47].mxu1 }
 0xb12   :  { %v15504_v35 = vpack.c.bf16 %v6484_v0, %v6483_v50  ;;  %v15507_v19 = vadd.f32 %v10141_v10, %v15461_v20  ;;  %v6455_v39 = vadd.f32 %v10184_v27, %v15470_v22  ;;  %v10187_v40 = vadd.f32 %v10186_v26, %v10185_v49 }
 0xb14   :  { %v6470_v16 = vadd.f32 %v15483_v25, %v6455_v39  ;;  %v6456_v33 = vadd.f32 %v10187_v40, %v15475_v44  ;;  %v10142_v38 = vpop.f32.mrb[40].mxu0  ;;  %11023 = vmatpush3.bf16.msra.mxu0 %v15504_v35  ;;  %11079 = vmatpush3.bf16.msra.mxu1 %v15504_v35 }
 0xb15   :  { %v10143_v47 = vpop.f32.mrb[41].mxu0  ;;  %11024 = vmatprep.subr.bf16.mxu0 %v16236_v9  ;;  %11080 = vmatprep.subr.bf16.mxu1 %v16236_v9 }
 0xb16   :  { %v6471_v20 = vadd.f32 %v15483_v25, %v6456_v33  ;;  %v10144_v14 = vadd.f32 %v10143_v47, %v10142_v38  ;;  %v10145_v42 = vpop.f32.mrb[42].mxu0  ;;  %v10188_v22 = vpop.f32.mrb[48].mxu1  ;;  %v6485_v34 = vmax.f32 %v6470_v16, 0.0 }
 0xb17   :  { %v10146_v12 = vpop.f32.mrb[43].mxu0  ;;  %v10189_v53 = vpop.f32.mrb[49].mxu1 }
 0xb18   :  { %v6486_v3 = vmax.f32 %v6471_v20, 0.0  ;;  %v15518_v44 = vadd.f32 %v10144_v14, %v15464_v60  ;;  %v10147_v28 = vadd.f32 %v10146_v12, %v10145_v42  ;;  %v10190_v15 = vadd.f32 %v10189_v53, %v10188_v22  ;;  %v10191_v18 = vpop.f32.mrb[50].mxu1 }
 0xb19   :  { %v10192_v30 = vpop.f32.mrb[51].mxu1 }
 0xb1a   :  { %v15520_v57 = vpack.c.bf16 %v6486_v3, %v6485_v34  ;;  %v6307_v63 = vadd.f32 %v10147_v28, %v15467_v13  ;;  %v6457_v46 = vadd.f32 %v10190_v15, %v15478_v1  ;;  %v10193_v61 = vadd.f32 %v10192_v30, %v10191_v18 }
 0xb1c   :  { %v6472_v45 = vadd.f32 %v15483_v25, %v6457_v46  ;;  %v6458_v2 = vadd.f32 %v10193_v61, %v15481_v54  ;;  %v10148_v52 = vpop.f32.mrb[44].mxu0  ;;  %11025 = vmatpush3.bf16.msra.mxu0 %v15520_v57  ;;  %11081 = vmatpush3.bf16.msra.mxu1 %v15520_v57 }
 0xb1d   :  { %v10149_v60 = vpop.f32.mrb[45].mxu0  ;;  %11026 = vmatprep.subr.bf16.mxu0 %v16236_v9  ;;  %11082 = vmatprep.subr.bf16.mxu1 %v16236_v9 }
 0xb1e   :  { %v6473_v55 = vadd.f32 %v15483_v25, %v6458_v2  ;;  %v10150_v13 = vadd.f32 %v10149_v60, %v10148_v52  ;;  %v10194_v21 = vpop.f32.mrb[52].mxu1  ;;  %v10151_v1 = vpop.f32.mrb[46].mxu0  ;;  %v6487_v62 = vmax.f32 %v6472_v45, 0.0  ;;  %v16245_v52 = vld [vmem:[#allocation40_spill] sm:$0xff] }
 0xb1f   :  { %v10195_v37 = vpop.f32.mrb[53].mxu1  ;;  %v10152_v17 = vpop.f32.mrb[47].mxu0  ;;  %v12073_v1 = vld [vmem:[%s16048_s13 + $0x30] sm:$0xff]  }
 0xb20   :  { %v6488_v31 = vmax.f32 %v6473_v55, 0.0  ;;  %v6308_v54 = vadd.f32 %v10150_v13, %v15472_v6  ;;  %v10196_v24 = vadd.f32 %v10195_v37, %v10194_v21  ;;  %v10197_v56 = vpop.f32.mrb[54].mxu1  ;;  %v12069_v55 = vld [vmem:[%s16048_s13 + $0x28] sm:$0xff]   ;;  %v12076_v37 = vld [vmem:[%s16048_s13 + $0x38] ss:$0 sps:$4 sm:$0xff]   ;;  %v12077_v17 = vld [vmem:[#allocation5 + $0x18] sm:$0xff]  }
 0xb21   :  { %v10198_v51 = vpop.f32.mrb[55].mxu1  ;;  %v12070_v13 = vld [vmem:[#allocation5] sm:$0xff]   ;;  %v12071_v21 = vld [vmem:[#allocation5 + $0x8] sm:$0xff]  }
 0xb22   :  { %v15532_v58 = vpack.c.bf16 %v6488_v31, %v6487_v62  ;;  %v6459_v48 = vadd.f32 %v10196_v24, %v15488_v43  ;;  %v10199_v41 = vadd.f32 %v10198_v51, %v10197_v56  ;;  %v12078_v62 = vld [vmem:[#allocation5 + $0x20] sm:$0xff]   ;;  %v12079_v31 = vld [vmem:[#allocation5 + $0x28] sm:$0xff]   ;;  %v12081_v24 = vld [vmem:[%s16048_s13 + $0x14] sm:$0xff]  }
 0xb23   :  { %v12082_v56 = vld [vmem:[#allocation5 + $0x40] sm:$0xff]   ;;  %v12083_v51 = vld [vmem:[#allocation5 + $0x38] sm:$0xff]  }
 0xb24   :  { %v6474_v7 = vadd.f32 %v15483_v25, %v6459_v48  ;;  %v6460_v59 = vadd.f32 %v10199_v41, %v15493_v36  ;;  %11027 = vmatpush3.bf16.msra.mxu0 %v15532_v58  ;;  %11083 = vmatpush3.bf16.msra.mxu1 %v15532_v58  ;;  %v12085_v48 = vld [vmem:[%s16048_s13 + $0x1c] sm:$0xff]   ;;  %v12086_v41 = vld [vmem:[#allocation5 + $0x50] sm:$0xff]  }
 0xb25   :  { %11028 = vmatprep.subr.bf16.mxu0 %v16236_v9  ;;  %11084 = vmatprep.subr.bf16.mxu1 %v16236_v9 }
 0xb26   :  { %v6475_v6 = vadd.f32 %v15483_v25, %v6460_v59  ;;  %v10200_v11 = vpop.f32.mrb[56].mxu1  ;;  %v6489_v50 = vmax.f32 %v6474_v7, 0.0  ;;  %v12087_v7 = vld [vmem:[#allocation5 + $0x58] sm:$0xff]   ;;  %v12088_v59 = vld [vmem:[%s16048_s13 + $0x24] ss:$0 sps:$4 sm:$0xff]  }
 0xb27   :  { %v10201_v4 = vpop.f32.mrb[57].mxu1 }
 0xb28   :  { %v6490_v32 = vmax.f32 %v6475_v6, 0.0  ;;  %v10202_v43 = vadd.f32 %v10201_v4, %v10200_v11  ;;  %v10203_v29 = vpop.f32.mrb[58].mxu1  ;;  %v12089_v6 = vld [vmem:[#allocation5 + $0x60] sm:$0xff]   ;;  %v12090_v11 = vld [vmem:[#allocation5 + $0x68] sm:$0xff]   ;;  %v12091_v4 = vld [vmem:[#allocation5 + $0x70] sm:$0xff]  }
 0xb29   :  { %v10204_v0 = vpop.f32.mrb[59].mxu1 }
 0xb2a   :  { %v15542_v10 = vpack.c.bf16 %v6490_v32, %v6489_v50  ;;  %v6461_v36 = vadd.f32 %v10202_v43, %v15502_v8  ;;  %v10205_v27 = vadd.f32 %v10204_v0, %v10203_v29  ;;  %v12092_v50 = vld [vmem:[#allocation5 + $0x78] sm:$0xff]  }
 0xb2c   :  { %v6476_v49 = vadd.f32 %v15483_v25, %v6461_v36  ;;  %v6462_v26 = vadd.f32 %v10205_v27, %v15507_v19  ;;  %11029 = vmatpush3.bf16.msra.mxu0 %v15542_v10  ;;  %11085 = vmatpush3.bf16.msra.mxu1 %v15542_v10 }
 0xb2d   :  { %11030 = vmatprep.subr.bf16.mxu0 %v16236_v9  ;;  %11086 = vmatprep.subr.bf16.mxu1 %v16236_v9 }
 0xb2e   :  { %v6477_v39 = vadd.f32 %v15483_v25, %v6462_v26  ;;  %v10206_v40 = vpop.f32.mrb[60].mxu1  ;;  %v6491_v33 = vmax.f32 %v6476_v49, 0.0 }
 0xb2f   :  { %v10207_v16 = vpop.f32.mrb[61].mxu1 }
 0xb30   :  { %v6492_v38 = vmax.f32 %v6477_v39, 0.0  ;;  %v10208_v8 = vadd.f32 %v10207_v16, %v10206_v40  ;;  %v10209_v47 = vpop.f32.mrb[62].mxu1 }
 0xb31   :  { %v10210_v20 = vpop.f32.mrb[63].mxu1 }
 0xb32   :  { %v15552_v14 = vpack.c.bf16 %v6492_v38, %v6491_v33  ;;  %v6463_v19 = vadd.f32 %v10208_v8, %v15518_v44  ;;  %v10211_v42 = vadd.f32 %v10210_v20, %v10209_v47 }
 0xb34   :  { %v6478_v22 = vadd.f32 %v15483_v25, %v6463_v19  ;;  %v6464_v34 = vadd.f32 %v10211_v42, %v6307_v63  ;;  %11031 = vmatpush3.bf16.msra.mxu0 %v15552_v14  ;;  %11087 = vmatpush3.bf16.msra.mxu1 %v15552_v14 }
 0xb35   :  { %11032 = vmatprep.subr.bf16.mxu0 %v16236_v9  ;;  %11088 = vmatprep.subr.bf16.mxu1 %v16236_v9 }
 0xb36   :  { %v6479_v12 = vadd.f32 %v15483_v25, %v6464_v34  ;;  %v10212_v53 = vpop.f32.mrb[64].mxu1  ;;  %v6493_v28 = vmax.f32 %v6478_v22, 0.0 }
 0xb37   :  { %v10213_v3 = vpop.f32.mrb[65].mxu1 }
 0xb38   :  { %v6494_v15 = vmax.f32 %v6479_v12, 0.0  ;;  %v10214_v18 = vadd.f32 %v10213_v3, %v10212_v53  ;;  %v10215_v44 = vpop.f32.mrb[66].mxu1 }
 0xb39   :  { %v10216_v30 = vpop.f32.mrb[67].mxu1 }
 0xb3a   :  { %v6502_v46 = vpack.c.bf16 %v6494_v15, %v6493_v28  ;;  %v6465_v61 = vadd.f32 %v10214_v18, %v6308_v54  ;;  %v12080_v54 = vld [vmem:[#allocation5 + $0x30] sm:$0xff]  }
 0xb3c   :  { %v6480_v63 = vadd.f32 %v15483_v25, %v6465_v61  ;;  %11033 = vmatpush3.bf16.msra.mxu0 %v6502_v46  ;;  %11089 = vmatpush3.bf16.msra.mxu1 %v6502_v46  ;;  %v12068_v25 = vld [vmem:[%s16048_s13] sm:$0xff]  }
 0xb3d   :  { %11034 = vmatprep.subr.bf16.mxu0 %v16236_v9  ;;  %11090 = vmatprep.subr.bf16.mxu1 %v16236_v9 }
 0xb3e   :  { %v6495_v45 = vmax.f32 %v6480_v63, 0.0 }
 0xb40   :  { %v6503_v2 = vpack.c.bf16 %v6495_v45, %v6495_v45 }
 0xb42   :  { %v6505_v60 = vand.u32 %v6503_v2, %v16245_v52 }
 0xb44   :  { %11035 = vmatpush3.bf16.msra.mxu0 %v6505_v60  ;;  %11091 = vmatpush3.bf16.msra.mxu1 %v6505_v60 }
 0xb45   :  { %11048 = vmatprep.subr.bf16.mxu0 %v16236_v9  ;;  %11132 = vmatprep.subr.bf16.mxu1 %v16236_v9 }
 0xb47   :  { %11037 = vmatmul.mubr.msk.bf16.vlgmr.msra.gmra.mrb[48].mxu0 %vm2455_vm9, %v12068_v25  ;;  %11093 = vmatmul.mubr.msk.bf16.vlgmr.msra.gmra.mrb[68].mxu1 %vm2455_vm9, %v12069_v55  ;;  %v12093_v25 = vld [vmem:[#allocation5 + $0xc0] sm:$0xff]  }
 0xb48   :  { %11049 = vmatpush3.bf16.msra.mxu0 %v15490_v23  ;;  %11040 = vmatprep.mubr.msk.bf16.mxu0 %vm12555_vm6, %v16236_v9  ;;  %v12072_v23 = vld [vmem:[%s16048_s13 + $0x8] sm:$0xff]  }
 0xb49   :  { %11050 = vmatprep.subr.bf16.mxu0 %v16236_v9  ;;  %11096 = vmatprep.mubr.msk.bf16.mxu1 %vm12555_vm6, %v16236_v9 }
 0xb4a   :  { %11133 = vmatpush3.bf16.msra.mxu1 %v12070_v13 }
 0xb4b   :  { %11134 = vmatprep.subr.bf16.mxu1 %v16236_v9 }
 0xb4c   :  { %11051 = vmatpush3.bf16.msra.mxu0 %v15504_v35  ;;  %v12074_v35 = vld [vmem:[#allocation5 + $0x10] sm:$0xff]  }
 0xb4d   :  { %11052 = vmatprep.subr.bf16.mxu0 %v16236_v9 }
 0xb4e   :  { %11135 = vmatpush3.bf16.msra.mxu1 %v12071_v21 }
 0xb4f   :  { %11041 = vmatmul.mubr.msk.bf16.gmra.mrb[52].mxu0 %vm2455_vm9, %v12072_v23  ;;  %11097 = vmatmul.mubr.msk.bf16.gmra.mrb[72].mxu1 %vm2455_vm9, %v12073_v1 }
 0xb50   :  { %11053 = vmatpush3.bf16.msra.mxu0 %v15520_v57  ;;  %11044 = vmatprep.mubr.msk.bf16.mxu0 %vm12555_vm6, %v16236_v9  ;;  %v12075_v57 = vld [vmem:[%s16048_s13 + $0x10] ss:$0 sps:$4 sm:$0xff]  }
 0xb51   :  { %11054 = vmatprep.subr.bf16.mxu0 %v16236_v9  ;;  %11100 = vmatprep.mubr.msk.bf16.mxu1 %vm12555_vm6, %v16236_v9 }
 0xb52   :  { %11136 = vmatprep.subr.bf16.mxu1 %v16236_v9 }
 0xb53   :  { %11137 = vmatpush3.bf16.msra.mxu1 %v12074_v35 }
 0xb54   :  { %11055 = vmatpush3.bf16.msra.mxu0 %v15532_v58  ;;  %11138 = vmatprep.subr.bf16.mxu1 %v16236_v9  ;;  %v12084_v58 = vld [vmem:[#allocation5 + $0x48] sm:$0xff]  }
 0xb55   :  { %11056 = vmatprep.subr.bf16.mxu0 %v16236_v9 }
 0xb57   :  { %11045 = vmatmul.mubr.msk.bf16.gmra.mrb[56].mxu0 %vm2455_vm9, %v12075_v57  ;;  %11101 = vmatmul.mubr.msk.bf16.gmra.mrb[76].mxu1 %vm2455_vm9, %v12076_v37  ;;  %v12094_v57 = vld [vmem:[#allocation5 + $0xc8] sm:$0xff]  }
 0xb58   :  { %11057 = vmatpush3.bf16.msra.mxu0 %v15542_v10  ;;  %11064 = vmatprep.mubr.msk.bf16.mxu0 %vm12555_vm6, %v16236_v9 }
 0xb59   :  { %11058 = vmatprep.subr.bf16.mxu0 %v16236_v9  ;;  %11139 = vmatpush3.bf16.msra.mxu1 %v12077_v17 }
 0xb5a   :  { %11140 = vmatprep.subr.bf16.mxu1 %v16236_v9  ;;  %11148 = vmatprep.mubr.msk.bf16.mxu1 %vm12555_vm6, %v16236_v9 }
 0xb5c   :  { %11059 = vmatpush3.bf16.msra.mxu0 %v15552_v14 }
 0xb5d   :  { %11060 = vmatprep.subr.bf16.mxu0 %v16236_v9  ;;  %11141 = vmatpush3.bf16.msra.mxu1 %v12078_v62 }
 0xb5e   :  { %11142 = vmatprep.subr.bf16.mxu1 %v16236_v9 }
 0xb60   :  { %11061 = vmatpush3.bf16.msra.mxu0 %v6502_v46 }
 0xb61   :  { %11062 = vmatprep.subr.bf16.mxu0 %v16236_v9  ;;  %11143 = vmatpush3.bf16.msra.mxu1 %v12079_v31 }
 0xb62   :  { %11144 = vmatprep.subr.bf16.mxu1 %v16236_v9 }
 0xb64   :  { %11063 = vmatpush3.bf16.msra.mxu0 %v6505_v60 }
 0xb65   :  { %11104 = vmatprep.subr.bf16.mxu0 %v16236_v9  ;;  %11145 = vmatpush3.bf16.msra.mxu1 %v12080_v54 }
 0xb66   :  { %11146 = vmatprep.subr.bf16.mxu1 %v16236_v9 }
 0xb67   :  { %11065 = vmatmul.mubr.msk.bf16.vlgmr.msra.gmra.mrb[60].mxu0 %vm2455_vm9, %v12081_v24 }
 0xb68   :  { %11068 = vmatprep.mubr.msk.bf16.mxu0 %vm12555_vm6, %v16236_v9  ;;  %11105 = vmatpush3.bf16.msra.mxu0 %v12082_v56 }
 0xb69   :  { %11106 = vmatprep.subr.bf16.mxu0 %v16236_v9  ;;  %11147 = vmatpush3.bf16.msra.mxu1 %v12083_v51 }
 0xb6a   :  { %11188 = vmatprep.subr.bf16.mxu1 %v16236_v9 }
 0xb6c   :  { %11107 = vmatpush3.bf16.msra.mxu0 %v12084_v58 }
 0xb6d   :  { %11108 = vmatprep.subr.bf16.mxu0 %v16236_v9 }
 0xb6f   :  { %11069 = vmatmul.mubr.msk.bf16.gmra.mrb[64].mxu0 %vm2455_vm9, %v12085_v48 }
 0xb70   :  { %11072 = vmatprep.mubr.msk.bf16.mxu0 %vm12555_vm6, %v16236_v9  ;;  %11109 = vmatpush3.bf16.msra.mxu0 %v12086_v41 }
 0xb71   :  { %11110 = vmatprep.subr.bf16.mxu0 %v16236_v9 }
 0xb74   :  { %11111 = vmatpush3.bf16.msra.mxu0 %v12087_v7 }
 0xb75   :  { %11112 = vmatprep.subr.bf16.mxu0 %v16236_v9 }
 0xb77   :  { %11073 = vmatmul.mubr.msk.bf16.gmra.mrb[68].mxu0 %vm2455_vm9, %v12088_v59 }
 0xb78   :  { %11113 = vmatpush3.bf16.msra.mxu0 %v12089_v6  ;;  %11120 = vmatprep.mubr.msk.bf16.mxu0 %vm12555_vm6, %v16236_v9 }
 0xb79   :  { %11114 = vmatprep.subr.bf16.mxu0 %v16236_v9 }
 0xb7c   :  { %11115 = vmatpush3.bf16.msra.mxu0 %v12090_v11 }
 0xb7d   :  { %11116 = vmatprep.subr.bf16.mxu0 %v16236_v9 }
 0xb80   :  { %11117 = vmatpush3.bf16.msra.mxu0 %v12091_v4  ;;  %v12095_v4 = vld [vmem:[#allocation5 + $0xd0] sm:$0xff]  }
 0xb81   :  { %11118 = vmatprep.subr.bf16.mxu0 %v16236_v9 }
 0xb84   :  { %11119 = vmatpush3.bf16.msra.mxu0 %v12092_v50 }
 0xb85   :  { %11160 = vmatprep.subr.bf16.mxu0 %v16236_v9 }
 0xc1a   :  { %v6541_v32 = vpop.f32.mrb[48].mxu0  ;;  %v6658_v43 = vpop.f32.mrb[68].mxu1 }
 0xc1b   :  { %v11038_v29 = vpop.f32.mrb[49].mxu0  ;;  %v11094_v0 = vpop.f32.mrb[69].mxu1 }
 0xc1c   :  { %v6544_v10 = vpop.f32.mrb[50].mxu0  ;;  %v6661_v36 = vpop.f32.mrb[70].mxu1 }
 0xc1d   :  { %v11039_v27 = vpop.f32.mrb[51].mxu0  ;;  %v11095_v49 = vpop.f32.mrb[71].mxu1 }
 0xc22   :  { %v6549_v26 = vpop.f32.mrb[52].mxu0  ;;  %v6666_v39 = vpop.f32.mrb[72].mxu1 }
 0xc23   :  { %v11042_v40 = vpop.f32.mrb[53].mxu0  ;;  %v11098_v16 = vpop.f32.mrb[73].mxu1 }
 0xc24   :  { %v6552_v33 = vpop.f32.mrb[54].mxu0  ;;  %v6669_v38 = vpop.f32.mrb[74].mxu1 }
 0xc25   :  { %v11043_v8 = vpop.f32.mrb[55].mxu0  ;;  %v11099_v47 = vpop.f32.mrb[75].mxu1 }
 0xc2a   :  { %v15651_v20 = vpop.f32.mrb[56].mxu0  ;;  %v15653_v14 = vpop.f32.mrb[76].mxu1 }
 0xc2b   :  { %v11046_v19 = vpop.f32.mrb[57].mxu0  ;;  %v11102_v42 = vpop.f32.mrb[77].mxu1 }
 0xc2c   :  { %v6560_v22 = vpop.f32.mrb[58].mxu0  ;;  %v6677_v34 = vpop.f32.mrb[78].mxu1 }
 0xc2d   :  { %v11047_v12 = vpop.f32.mrb[59].mxu0  ;;  %v11103_v53 = vpop.f32.mrb[79].mxu1  ;;  %v12097_v22 = vld [vmem:[#allocation5 + $0x80] sm:$0xff]  }
 0xc3a   :  { %v6597_v3 = vpop.f32.mrb[60].mxu0 }
 0xc3b   :  { %v6619_v28 = vmax.f32 %v6541_v32, %v6597_v3  ;;  %v11066_v15 = vpop.f32.mrb[61].mxu0 }
 0xc3c   :  { %v6600_v18 = vpop.f32.mrb[62].mxu0 }
 0xc3d   :  { %v6680_v44 = vmax.f32 %v6619_v28, %v6658_v43  ;;  %v6620_v30 = vmax.f32 %v6544_v10, %v6600_v18  ;;  %v11067_v46 = vpop.f32.mrb[63].mxu0 }
 0xc3f   :  { %v6681_v61 = vmax.f32 %v6620_v30, %v6661_v36  ;;  %v12098_v30 = vld [vmem:[#allocation5 + $0xe0] sm:$0xff]  }
 0xc41   :  { %v6685_v63 = vpack.c.bf16 %v6681_v61, %v6680_v44 }
 0xc42   :  { %v6605_v45 = vpop.f32.mrb[64].mxu0 }
 0xc43   :  { %v11070_v2 = vpop.f32.mrb[65].mxu0  ;;  %11149 = vmatmul.mubr.bf16.vlgmr.msra.gmra.mrb[80].mxu1 %v6685_v63  ;;  %v6691_v52 = vshll.u32 %v6685_v63, 16  ;;  %v6621_v60 = vmax.f32 %v6549_v26, %v6605_v45  ;;  %v6689_v23 = vshrl.u32 %v6685_v63, 16  ;;  %v6828_v17 = vrot.slane %v6685_v63, 1 }
 0xc44   :  { %11189 = vmatpush3.bf16.msra.mxu1 %v12093_v25  ;;  %v6608_v55 = vpop.f32.mrb[66].mxu0  ;;  %11152 = vmatprep.mubr.msk.bf16.mxu1 %vm12555_vm6, %v16236_v9  ;;  %v6972_v62 = vrot.slane %v6685_v63, 2  ;;  %v7116_v54 = vrot.slane %v6685_v63, 3  ;;  %v12099_v2 = vld [vmem:[#allocation5 + $0x88] sm:$0xff]  }
 0xc45   :  { %v6622_v13 = vmax.f32 %v6552_v33, %v6608_v55  ;;  %v11071_v21 = vpop.f32.mrb[67].mxu0  ;;  %11190 = vmatprep.subr.bf16.mxu1 %v16236_v9  ;;  %v6682_v1 = vmax.f32 %v6621_v60, %v6666_v39  ;;  %v6693_v37 = vrot.slane %v6691_v52, 1  ;;  %v6897_v56 = vrot.slane %v6689_v23, 1 }
 0xc46   :  { %v6898_v51 = vrot.slane %v6691_v52, 2  ;;  %v7041_v58 = vrot.slane %v6689_v23, 2  ;;  %v7042_v29 = vrot.slane %v6691_v52, 3 }
 0xc47   :  { %v6683_v35 = vmax.f32 %v6622_v13, %v6669_v38  ;;  %v6694_v50 = vor.u32 %v6693_v37, %v6689_v23 }
 0xc48   :  { %11191 = vmatpush3.bf16.msra.mxu1 %v12094_v57  ;;  %v6899_v38 = vor.u32 %v6898_v51, %v6897_v56  ;;  %v12101_v57 = vld [vmem:[#allocation5 + $0x90] sm:$0xff]   ;;  %v12107_v56 = vld [vmem:[#allocation5 + $0xa8] sm:$0xff]  }
 0xc49   :  { %v15658_v31 = vpack.c.bf16 %v6683_v35, %v6682_v1  ;;  %11192 = vmatprep.subr.bf16.mxu1 %v16236_v9  ;;  %v12100_v1 = vld [vmem:[#allocation5 + $0xe8] sm:$0xff]  }
 0xc4a   :  { %v6613_v24 = vpop.f32.mrb[68].mxu0  ;;  %v12108_v51 = vld [vmem:[#allocation5 + $0x148] sm:$0xff]  }
 0xc4b   :  { %v6696_v48 = vshll.u32 %v15658_v31, 16  ;;  %v6829_v41 = vrot.slane %v15658_v31, 1  ;;  %v6973_v7 = vrot.slane %v15658_v31, 2  ;;  %v7117_v59 = vrot.slane %v15658_v31, 3  ;;  %11153 = vmatmul.mubr.bf16.gmra.mrb[84].mxu1 %v15658_v31  ;;  %v11074_v6 = vpop.f32.mrb[69].mxu0 }
 0xc4c   :  { %v6623_v11 = vmax.f32 %v15651_v20, %v6613_v24  ;;  %11193 = vmatpush3.bf16.msra.mxu1 %v12095_v4  ;;  %11156 = vmatprep.mubr.msk.bf16.mxu1 %vm12555_vm6, %v16236_v9  ;;  %v6616_v32 = vpop.f32.mrb[70].mxu0  ;;  %v6700_v43 = vshrl.u32 %v15658_v31, 16  ;;  %v12096_v20 = vld [vmem:[#allocation5 + $0xd8] sm:$0xff]   ;;  %v12106_v24 = vld [vmem:[#allocation5 + $0x140] sm:$0xff]   ;;  %v12116_v4 = vld [vmem:[#allocation5 + $0x168] sm:$0xff]  }
 0xc4d   :  { %11194 = vmatprep.subr.bf16.mxu1 %v16236_v9  ;;  %v6698_v0 = vrot.slane %v6696_v48, 1  ;;  %v11075_v10 = vpop.f32.mrb[71].mxu0  ;;  %v6901_v36 = vrot.slane %v6696_v48, 2  ;;  %v15672_v27 = vsel %vm912_vm1, %v6828_v17, %v6829_v41  ;;  %v7045_v49 = vrot.slane %v6696_v48, 3  ;;  %v12102_v17 = vld [vmem:[#allocation5 + $0xf0] sm:$0xff]   ;;  %v12104_v31 = vld [vmem:[#allocation5 + $0xf8] sm:$0xff]  }
 0xc4e   :  { %v6684_v26 = vmax.f32 %v6623_v11, %v15653_v14  ;;  %v6900_v39 = vrot.slane %v6700_v43, 1  ;;  %v7044_v40 = vrot.slane %v6700_v43, 2  ;;  %v15676_v16 = vsel %vm1522_vm4, %v6972_v62, %v6973_v7  ;;  %v12103_v62 = vld [vmem:[#allocation5 + $0x98] sm:$0xff]   ;;  %v12110_v48 = vld [vmem:[#allocation5 + $0x150] sm:$0xff]   ;;  %v12114_v6 = vld [vmem:[#allocation5 + $0x160] sm:$0xff]  }
 0xc4f   :  { %v6699_v33 = vsel %vm336_vm0, %v6694_v50, %v6698_v0  ;;  %v15680_v8 = vsel %vm2138_vm5, %v7116_v54, %v7117_v59  ;;  %v7043_v14 = vor.u32 %v7042_v29, %v7041_v58  ;;  %v6702_v28 = vor.u32 %v6700_v43, %v6698_v0  ;;  %v12105_v54 = vld [vmem:[#allocation5 + $0xa0] sm:$0xff]   ;;  %v12109_v58 = vld [vmem:[#allocation5 + $0xb0] sm:$0xff]   ;;  %v12115_v11 = vld [vmem:[#allocation5 + $0x108] sm:$0xff]  }
 0xc50   :  { %v15682_v47 = vpack.c.bf16 %v6684_v26, %v6684_v26  ;;  %11195 = vmatpush3.bf16.msra.mxu1 %v12096_v20  ;;  %11121 = vmatmul.mubr.bf16.vlgmr.msra.gmra.mrb[72].mxu0 %v6699_v33  ;;  %v6902_v19 = vor.u32 %v6901_v36, %v6900_v39  ;;  %v7046_v42 = vor.u32 %v7045_v49, %v7044_v40  ;;  %v12117_v50 = vld [vmem:[#allocation5 + $0x110] sm:$0xff]   ;;  %v12119_v43 = vld [vmem:[#allocation5 + $0x118] sm:$0xff]   ;;  %v12121_v0 = vld [vmem:[#allocation5 + $0x120] sm:$0xff]  }
 0xc51   :  { %11161 = vmatpush3.bf16.msra.mxu0 %v12097_v22  ;;  %11196 = vmatprep.subr.bf16.mxu1 %v16236_v9  ;;  %v12118_v32 = vld [vmem:[#allocation5 + $0x170] sm:$0xff]   ;;  %v12120_v29 = vld [vmem:[#allocation5 + $0x178] sm:$0xff]   ;;  %v12122_v10 = vld [vmem:[#allocation5 + $0x128] sm:$0xff]  }
 0xc52   :  { %v6704_v34 = vshll.u32 %v15682_v47, 16  ;;  %v15687_v12 = vshrl.u32 %v15682_v47, 16  ;;  %11162 = vmatprep.subr.bf16.mxu0 %v16236_v9  ;;  %11124 = vmatprep.mubr.msk.bf16.mxu0 %vm12555_vm6, %v16236_v9  ;;  %v6903_v53 = vsel %vm1199_vm2, %v6899_v38, %v6902_v19  ;;  %v6831_v3 = vrot.slane %v15682_v47, 1  ;;  %v12123_v36 = vld [vmem:[#allocation5 + $0x130] sm:$0xff]   ;;  %v12125_v49 = vld [vmem:[#allocation5 + $0x180] sm:$0xff]   ;;  %v12126_v26 = vld [vmem:[#allocation5 + $0x188] sm:$0xff]  }
 0xc53   :  { %11157 = vmatmul.mubr.bf16.gmra.mrb[88].mxu1 %v15682_v47  ;;  %v15696_v15 = vsel %vm1809_vm3, %v7043_v14, %v7046_v42  ;;  %v6975_v18 = vrot.slane %v15682_v47, 2  ;;  %v7119_v44 = vrot.slane %v15682_v47, 3  ;;  %v12127_v39 = vld [vmem:[#allocation5 + $0x190] sm:$0xff]   ;;  %v12128_v40 = vld [vmem:[#allocation5 + $0x198] sm:$0xff]   ;;  %v12130_v33 = vld [vmem:[#allocation5 + $0x1a8] sm:$0xff]  }
 0xc54   :  { %11197 = vmatpush3.bf16.msra.mxu1 %v12098_v30  ;;  %v6706_v46 = vrot.slane %v6704_v34, 1  ;;  %11204 = vmatprep.mubr.msk.bf16.mxu1 %vm12555_vm6, %v16236_v9  ;;  %v6904_v61 = vrot.slane %v15687_v12, 1  ;;  %v6905_v63 = vrot.slane %v6704_v34, 2  ;;  %v15706_v45 = vsel %vm912_vm1, %v6829_v41, %v6831_v3  ;;  %v12111_v41 = vld [vmem:[#allocation5 + $0xb8] sm:$0xff]   ;;  %v12131_v38 = vld [vmem:[#allocation5 + $0x1b0] sm:$0xff]  }
 0xc55   :  { %11163 = vmatpush3.bf16.msra.mxu0 %v12099_v2  ;;  %11198 = vmatprep.subr.bf16.mxu1 %v16236_v9  ;;  %v7048_v52 = vrot.slane %v15687_v12, 2  ;;  %v7049_v60 = vrot.slane %v6704_v34, 3  ;;  %v15713_v25 = vsel %vm1522_vm4, %v6973_v7, %v6975_v18  ;;  %v15718_v55 = vsel %vm2138_vm5, %v7117_v59, %v7119_v44  ;;  %v12112_v7 = vld [vmem:[#allocation5 + $0x158] sm:$0xff]   ;;  %v12113_v59 = vld [vmem:[#allocation5 + $0x100] sm:$0xff]  }
 0xc56   :  { %11164 = vmatprep.subr.bf16.mxu0 %v16236_v9  ;;  %v6707_v13 = vsel %vm336_vm0, %v6702_v28, %v6706_v46  ;;  %v6906_v21 = vor.u32 %v6905_v63, %v6904_v61  ;;  %v12132_v20 = vld [vmem:[#allocation5 + $0x1b8] sm:$0xff]  }
 0xc57   :  { %v7050_v23 = vor.u32 %v7049_v60, %v7048_v52 }
 0xc58   :  { %11199 = vmatpush3.bf16.msra.mxu1 %v12100_v1  ;;  %11125 = vmatmul.mubr.bf16.gmra.mrb[76].mxu0 %v6707_v13  ;;  %v6907_v35 = vsel %vm1199_vm2, %v6902_v19, %v6906_v21 }
 0xc59   :  { %11165 = vmatpush3.bf16.msra.mxu0 %v12101_v57  ;;  %11200 = vmatprep.subr.bf16.mxu1 %v16236_v9  ;;  %v15729_v37 = vsel %vm1809_vm3, %v7046_v42, %v7050_v23 }
 0xc5a   :  { %11166 = vmatprep.subr.bf16.mxu0 %v16236_v9  ;;  %11128 = vmatprep.mubr.msk.bf16.mxu0 %vm12555_vm6, %v16236_v9 }
 0xc5c   :  { %11201 = vmatpush3.bf16.msra.mxu1 %v12102_v17 }
 0xc5d   :  { %11167 = vmatpush3.bf16.msra.mxu0 %v12103_v62  ;;  %11202 = vmatprep.subr.bf16.mxu1 %v16236_v9 }
 0xc5e   :  { %11168 = vmatprep.subr.bf16.mxu0 %v16236_v9 }
 0xc60   :  { %11203 = vmatpush3.bf16.msra.mxu1 %v12104_v31  ;;  %11129 = vmatmul.mubr.bf16.gmra.mrb[80].mxu0 %v15687_v12 }
 0xc61   :  { %11169 = vmatpush3.bf16.msra.mxu0 %v12105_v54  ;;  %11244 = vmatprep.subr.bf16.mxu1 %v16236_v9 }
 0xc62   :  { %11170 = vmatprep.subr.bf16.mxu0 %v16236_v9  ;;  %11176 = vmatprep.mubr.msk.bf16.mxu0 %vm12555_vm6, %v16236_v9 }
 0xc63   :  { %11205 = vmatmul.mubr.bf16.vlgmr.msra.gmra.mrb[92].mxu1 %v6903_v53 }
 0xc64   :  { %11245 = vmatpush3.bf16.msra.mxu1 %v12106_v24  ;;  %11208 = vmatprep.mubr.msk.bf16.mxu1 %vm12555_vm6, %v16236_v9 }
 0xc65   :  { %11171 = vmatpush3.bf16.msra.mxu0 %v12107_v56  ;;  %11246 = vmatprep.subr.bf16.mxu1 %v16236_v9 }
 0xc66   :  { %11172 = vmatprep.subr.bf16.mxu0 %v16236_v9 }
 0xc68   :  { %11247 = vmatpush3.bf16.msra.mxu1 %v12108_v51 }
 0xc69   :  { %11173 = vmatpush3.bf16.msra.mxu0 %v12109_v58  ;;  %11248 = vmatprep.subr.bf16.mxu1 %v16236_v9 }
 0xc6a   :  { %11174 = vmatprep.subr.bf16.mxu0 %v16236_v9 }
 0xc6b   :  { %11209 = vmatmul.mubr.bf16.gmra.mrb[96].mxu1 %v6907_v35 }
 0xc6c   :  { %11249 = vmatpush3.bf16.msra.mxu1 %v12110_v48  ;;  %11212 = vmatprep.mubr.msk.bf16.mxu1 %vm12555_vm6, %v16236_v9 }
 0xc6d   :  { %11175 = vmatpush3.bf16.msra.mxu0 %v12111_v41  ;;  %11250 = vmatprep.subr.bf16.mxu1 %v16236_v9 }
 0xc6e   :  { %11216 = vmatprep.subr.bf16.mxu0 %v16236_v9 }
 0xc70   :  { %11177 = vmatmul.mubr.bf16.vlgmr.msra.gmra.mrb[84].mxu0 %v15672_v27  ;;  %11251 = vmatpush3.bf16.msra.mxu1 %v12112_v7  ;;  %v12124_v27 = vld [vmem:[#allocation5 + $0x138] sm:$0xff]  }
 0xc71   :  { %11217 = vmatpush3.bf16.msra.mxu0 %v12113_v59  ;;  %11252 = vmatprep.subr.bf16.mxu1 %v16236_v9 }
 0xc72   :  { %11218 = vmatprep.subr.bf16.mxu0 %v16236_v9  ;;  %11180 = vmatprep.mubr.msk.bf16.mxu0 %vm12555_vm6, %v16236_v9 }
 0xc73   :  { %11213 = vmatmul.mubr.bf16.gmra.mrb[100].mxu1 %v6904_v61 }
 0xc74   :  { %11253 = vmatpush3.bf16.msra.mxu1 %v12114_v6  ;;  %11260 = vmatprep.mubr.msk.bf16.mxu1 %vm12555_vm6, %v16236_v9 }
 0xc75   :  { %11219 = vmatpush3.bf16.msra.mxu0 %v12115_v11  ;;  %11254 = vmatprep.subr.bf16.mxu1 %v16236_v9 }
 0xc76   :  { %11220 = vmatprep.subr.bf16.mxu0 %v16236_v9 }
 0xc78   :  { %11181 = vmatmul.mubr.bf16.gmra.mrb[88].mxu0 %v15706_v45  ;;  %11255 = vmatpush3.bf16.msra.mxu1 %v12116_v4 }
 0xc79   :  { %11221 = vmatpush3.bf16.msra.mxu0 %v12117_v50  ;;  %11256 = vmatprep.subr.bf16.mxu1 %v16236_v9 }
 0xc7a   :  { %11222 = vmatprep.subr.bf16.mxu0 %v16236_v9  ;;  %11184 = vmatprep.mubr.msk.bf16.mxu0 %vm12555_vm6, %v16236_v9 }
 0xc7c   :  { %11257 = vmatpush3.bf16.msra.mxu1 %v12118_v32 }
 0xc7d   :  { %11223 = vmatpush3.bf16.msra.mxu0 %v12119_v43  ;;  %11258 = vmatprep.subr.bf16.mxu1 %v16236_v9 }
 0xc7e   :  { %11224 = vmatprep.subr.bf16.mxu0 %v16236_v9 }
 0xc80   :  { %11185 = vmatmul.mubr.bf16.gmra.mrb[92].mxu0 %v6831_v3  ;;  %11259 = vmatpush3.bf16.msra.mxu1 %v12120_v29 }
 0xc81   :  { %11225 = vmatpush3.bf16.msra.mxu0 %v12121_v0  ;;  %11232 = vmatprep.mubr.msk.bf16.mxu0 %vm12555_vm6, %v16236_v9 }
 0xc82   :  { %11226 = vmatprep.subr.bf16.mxu0 %v16236_v9  ;;  %11300 = vmatprep.subr.bf16.mxu1 %v16236_v9 }
 0xc83   :  { %11261 = vmatmul.mubr.bf16.vlgmr.msra.gmra.mrb[104].mxu1 %v15696_v15 }
 0xc84   :  { %11264 = vmatprep.mubr.msk.bf16.mxu1 %vm12555_vm6, %v16236_v9 }
 0xc85   :  { %11227 = vmatpush3.bf16.msra.mxu0 %v12122_v10 }
 0xc86   :  { %11228 = vmatprep.subr.bf16.mxu0 %v16236_v9 }
 0xc89   :  { %11229 = vmatpush3.bf16.msra.mxu0 %v12123_v36 }
 0xc8a   :  { %11230 = vmatprep.subr.bf16.mxu0 %v16236_v9 }
 0xc8b   :  { %11265 = vmatmul.mubr.bf16.gmra.mrb[108].mxu1 %v15729_v37 }
 0xc8c   :  { %11268 = vmatprep.mubr.msk.bf16.mxu1 %vm12555_vm6, %v16236_v9 }
 0xc8d   :  { %11231 = vmatpush3.bf16.msra.mxu0 %v12124_v27 }
 0xc8e   :  { %11272 = vmatprep.subr.bf16.mxu0 %v16236_v9 }
 0xc90   :  { %11233 = vmatmul.mubr.bf16.vlgmr.msra.gmra.mrb[96].mxu0 %v15676_v16  ;;  %v12129_v16 = vld [vmem:[#allocation5 + $0x1a0] sm:$0xff]  }
 0xc91   :  { %11273 = vmatpush3.bf16.msra.mxu0 %v12125_v49  ;;  %11236 = vmatprep.mubr.msk.bf16.mxu0 %vm12555_vm6, %v16236_v9 }
 0xc92   :  { %11274 = vmatprep.subr.bf16.mxu0 %v16236_v9 }
 0xc93   :  { %11269 = vmatmul.mubr.bf16.gmra.mrb[112].mxu1 %v7048_v52 }
 0xc94   :  { %11306 = vmatprep.mubr.msk.bf16.mxu1 %vm12555_vm6, %v16236_v9 }
 0xc95   :  { %11275 = vmatpush3.bf16.msra.mxu0 %v12126_v26 }
 0xc96   :  { %11276 = vmatprep.subr.bf16.mxu0 %v16236_v9 }
 0xc98   :  { %11237 = vmatmul.mubr.bf16.gmra.mrb[100].mxu0 %v15713_v25 }
 0xc99   :  { %11277 = vmatpush3.bf16.msra.mxu0 %v12127_v39  ;;  %11240 = vmatprep.mubr.msk.bf16.mxu0 %vm12555_vm6, %v16236_v9 }
 0xc9a   :  { %11278 = vmatprep.subr.bf16.mxu0 %v16236_v9 }
 0xc9d   :  { %11279 = vmatpush3.bf16.msra.mxu0 %v12128_v40 }
 0xc9e   :  { %11280 = vmatprep.subr.bf16.mxu0 %v16236_v9 }
 0xca0   :  { %11241 = vmatmul.mubr.bf16.gmra.mrb[104].mxu0 %v6975_v18 }
 0xca1   :  { %11281 = vmatpush3.bf16.msra.mxu0 %v12129_v16  ;;  %11288 = vmatprep.mubr.msk.bf16.mxu0 %vm12555_vm6, %v16236_v9 }
 0xca2   :  { %11282 = vmatprep.subr.bf16.mxu0 %v16236_v9 }
 0xca5   :  { %11283 = vmatpush3.bf16.msra.mxu0 %v12130_v33 }
 0xca6   :  { %11284 = vmatprep.subr.bf16.mxu0 %v16236_v9 }
 0xca9   :  { %11285 = vmatpush3.bf16.msra.mxu0 %v12131_v38 }
 0xcaa   :  { %11286 = vmatprep.subr.bf16.mxu0 %v16236_v9 }
 0xcad   :  { %11287 = vmatpush3.bf16.msra.mxu0 %v12132_v20 }
 0xcae   :  { %11310 = vmatprep.subr.bf16.mxu0 %v16236_v9 }
 0xcb0   :  { %11289 = vmatmul.mubr.bf16.vlgmr.msra.gmra.mrb[108].mxu0 %v15680_v8 }
 0xcb1   :  { %11292 = vmatprep.mubr.msk.bf16.mxu0 %vm12555_vm6, %v16236_v9 }
 0xcb8   :  { %11293 = vmatmul.mubr.bf16.gmra.mrb[112].mxu0 %v15718_v55 }
 0xcb9   :  { %11296 = vmatprep.mubr.msk.bf16.mxu0 %vm12555_vm6, %v16236_v9 }
 0xcc0   :  { %11297 = vmatmul.mubr.bf16.gmra.mrb[116].mxu0 %v7119_v44 }
 0xcc1   :  { %11316 = vmatprep.mubr.msk.bf16.mxu0 %vm12555_vm6, %v16236_v9 }
 0xd16   :  { %v6803_v19 = vpop.f32.mrb[80].mxu1 }
 0xd17   :  { %v11150_v42 = vpop.f32.mrb[81].mxu1 }
 0xd18   :  { %v6806_v22 = vpop.f32.mrb[82].mxu1 }
 0xd19   :  { %v11151_v14 = vpop.f32.mrb[83].mxu1 }
 0xd1e   :  { %v6811_v34 = vpop.f32.mrb[84].mxu1 }
 0xd1f   :  { %v11154_v8 = vpop.f32.mrb[85].mxu1 }
 0xd20   :  { %v6814_v12 = vpop.f32.mrb[86].mxu1 }
 0xd21   :  { %v11155_v53 = vpop.f32.mrb[87].mxu1 }
 0xd23   :  { %v6747_v3 = vpop.f32.mrb[72].mxu0 }
 0xd24   :  { %v6804_v28 = vadd.f32 %v6803_v19, %v6747_v3  ;;  %v11122_v15 = vpop.f32.mrb[73].mxu0 }
 0xd25   :  { %v6750_v18 = vpop.f32.mrb[74].mxu0 }
 0xd26   :  { %v6807_v30 = vadd.f32 %v6806_v22, %v6750_v18  ;;  %v11123_v46 = vpop.f32.mrb[75].mxu0  ;;  %v6819_v61 = vpop.f32.mrb[88].mxu1 }
 0xd27   :  { %v11158_v47 = vpop.f32.mrb[89].mxu1 }
 0xd28   :  { %v6822_v44 = vpop.f32.mrb[90].mxu1 }
 0xd29   :  { %v11159_v63 = vpop.f32.mrb[91].mxu1 }
 0xd2b   :  { %v6755_v45 = vpop.f32.mrb[76].mxu0 }
 0xd2c   :  { %v6812_v2 = vadd.f32 %v6811_v34, %v6755_v45  ;;  %v11126_v52 = vpop.f32.mrb[77].mxu0 }
 0xd2d   :  { %v6758_v60 = vpop.f32.mrb[78].mxu0 }
 0xd2e   :  { %v6815_v25 = vadd.f32 %v6814_v12, %v6758_v60  ;;  %v11127_v55 = vpop.f32.mrb[79].mxu0 }
 0xd33   :  { %v6763_v13 = vpop.f32.mrb[80].mxu0 }
 0xd34   :  { %v6820_v21 = vadd.f32 %v6819_v61, %v6763_v13  ;;  %v11130_v23 = vpop.f32.mrb[81].mxu0 }
 0xd35   :  { %v6766_v1 = vpop.f32.mrb[82].mxu0 }
 0xd36   :  { %v6945_v35 = vpop.f32.mrb[92].mxu1  ;;  %v11131_v57 = vpop.f32.mrb[83].mxu0 }
 0xd37   :  { %v11206_v37 = vpop.f32.mrb[93].mxu1 }
 0xd38   :  { %v6948_v17 = vpop.f32.mrb[94].mxu1 }
 0xd39   :  { %v11207_v62 = vpop.f32.mrb[95].mxu1 }
 0xd3e   :  { %v6953_v31 = vpop.f32.mrb[96].mxu1 }
 0xd3f   :  { %v11210_v54 = vpop.f32.mrb[97].mxu1 }
 0xd40   :  { %v6956_v24 = vpop.f32.mrb[98].mxu1 }
 0xd41   :  { %v11211_v56 = vpop.f32.mrb[99].mxu1 }
 0xd43   :  { %v6870_v51 = vpop.f32.mrb[84].mxu0 }
 0xd44   :  { %v6892_v58 = vadd.f32 %v6870_v51, %v6804_v28  ;;  %v11178_v48 = vpop.f32.mrb[85].mxu0 }
 0xd45   :  { %v6873_v41 = vpop.f32.mrb[86].mxu0  ;;  %v12133_v48 = vld [vmem:[#allocation7] ss:$0 sm:$0xff] }
 0xd46   :  { %v6893_v7 = vadd.f32 %v6873_v41, %v6807_v30  ;;  %v11179_v59 = vpop.f32.mrb[87].mxu0  ;;  %v6961_v6 = vpop.f32.mrb[100].mxu1  ;;  %v6967_v11 = vadd.f32 %v6945_v35, %v6892_v58 }
 0xd47   :  { %v11214_v4 = vpop.f32.mrb[101].mxu1 }
 0xd48   :  { %v6964_v50 = vpop.f32.mrb[102].mxu1  ;;  %v6968_v32 = vadd.f32 %v6948_v17, %v6893_v7 }
 0xd49   :  { %v11215_v43 = vpop.f32.mrb[103].mxu1 }
 0xd4b   :  { %v6878_v29 = vpop.f32.mrb[88].mxu0 }
 0xd4c   :  { %v6894_v0 = vadd.f32 %v6878_v29, %v6812_v2  ;;  %v11182_v10 = vpop.f32.mrb[89].mxu0 }
 0xd4d   :  { %v6881_v36 = vpop.f32.mrb[90].mxu0 }
 0xd4e   :  { %v6895_v27 = vadd.f32 %v6881_v36, %v6815_v25  ;;  %v11183_v49 = vpop.f32.mrb[91].mxu0  ;;  %v6969_v26 = vadd.f32 %v6953_v31, %v6894_v0 }
 0xd50   :  { %v6970_v39 = vadd.f32 %v6956_v24, %v6895_v27 }
 0xd53   :  { %v6886_v40 = vpop.f32.mrb[92].mxu0 }
 0xd54   :  { %v6896_v16 = vadd.f32 %v6886_v40, %v6820_v21  ;;  %v11186_v33 = vpop.f32.mrb[93].mxu0 }
 0xd55   :  { %v6889_v38 = vpop.f32.mrb[94].mxu0 }
 0xd56   :  { %v11187_v20 = vpop.f32.mrb[95].mxu0  ;;  %v7089_v19 = vpop.f32.mrb[104].mxu1  ;;  %v6971_v42 = vadd.f32 %v6961_v6, %v6896_v16 }
 0xd57   :  { %v11262_v22 = vpop.f32.mrb[105].mxu1 }
 0xd58   :  { %v7092_v14 = vpop.f32.mrb[106].mxu1 }
 0xd59   :  { %v11263_v34 = vpop.f32.mrb[107].mxu1 }
 0xd5a   :  { %v16246_v34 = vld [vmem:[#allocation41_spill] sm:$0xff] }
 0xd5e   :  { %v7097_v8 = vpop.f32.mrb[108].mxu1 }
 0xd5f   :  { %v11266_v12 = vpop.f32.mrb[109].mxu1 }
 0xd60   :  { %v7100_v53 = vpop.f32.mrb[110].mxu1  ;;  %v12134_v12 = vld [vmem:[%s16049_s14] sm:$0x3f]  }
 0xd61   :  { %v11267_v3 = vpop.f32.mrb[111].mxu1 }
 0xd62   :  { %v12136_v3 = vld [vmem:[#allocation8 + $0x40] sm:$0xff]  }
 0xd63   :  { %v7014_v28 = vpop.f32.mrb[96].mxu0 }
 0xd64   :  { %v7036_v15 = vadd.f32 %v7014_v28, %v6967_v11  ;;  %v11234_v18 = vpop.f32.mrb[97].mxu0  ;;  %v12137_v28 = vld [vmem:[#allocation8 + $0x48] sm:$0xff]  }
 0xd65   :  { %v7017_v30 = vpop.f32.mrb[98].mxu0  ;;  %v12139_v18 = vld [vmem:[%s16049_s14 + $0x10] sm:$0x3f]  }
 0xd66   :  { %v7037_v46 = vadd.f32 %v7017_v30, %v6968_v32  ;;  %v11235_v61 = vpop.f32.mrb[99].mxu0  ;;  %v7105_v47 = vpop.f32.mrb[112].mxu1  ;;  %v7111_v44 = vadd.f32 %v7089_v19, %v7036_v15  ;;  %v12138_v15 = vld [vmem:[#allocation8 + $0x50] sm:$0xff]   ;;  %v12140_v30 = vld [vmem:[#allocation8] sm:$0xff]  }
 0xd67   :  { %v11270_v63 = vpop.f32.mrb[113].mxu1  ;;  %v12142_v61 = vld [vmem:[#allocation8 + $0x8] sm:$0xff]  }
 0xd68   :  { %v7108_v45 = vpop.f32.mrb[114].mxu1  ;;  %v7112_v2 = vadd.f32 %v7092_v14, %v7037_v46  ;;  %v12141_v46 = vld [vmem:[#allocation8 + $0x58] sm:$0xff]   ;;  %v12145_v63 = vld [vmem:[#allocation8 + $0x68] sm:$0xff]  }
 0xd69   :  { %v11271_v52 = vpop.f32.mrb[115].mxu1  ;;  %v12146_v45 = vld [vmem:[#allocation8 + $0x18] sm:$0xff]  }
 0xd6a   :  { %v12148_v52 = vld [vmem:[#allocation8 + $0x20] sm:$0xff]  }
 0xd6b   :  { %v7022_v60 = vpop.f32.mrb[100].mxu0 }
 0xd6c   :  { %v7038_v25 = vadd.f32 %v7022_v60, %v6969_v26  ;;  %v11238_v55 = vpop.f32.mrb[101].mxu0  ;;  %v12149_v60 = vld [vmem:[#allocation8 + $0x78] sm:$0xff]  }
 0xd6d   :  { %v7025_v13 = vpop.f32.mrb[102].mxu0  ;;  %v12151_v55 = vld [vmem:[#allocation8 + $0x30] sm:$0xff]  }
 0xd6e   :  { %v7039_v21 = vadd.f32 %v7025_v13, %v6970_v39  ;;  %v11239_v23 = vpop.f32.mrb[103].mxu0  ;;  %v7113_v1 = vadd.f32 %v7097_v8, %v7038_v25  ;;  %v12150_v25 = vld [vmem:[#allocation8 + $0x28] sm:$0xff]   ;;  %v12152_v13 = vld [vmem:[#allocation8 + $0x38] sm:$0xff]  }
 0xd70   :  { %v7114_v35 = vadd.f32 %v7100_v53, %v7039_v21  ;;  %v12135_v53 = vld [vmem:[%s16049_s14 + $0x8] sm:$0x3f]  }
 0xd73   :  { %v7030_v57 = vpop.f32.mrb[104].mxu0 }
 0xd74   :  { %v7040_v37 = vadd.f32 %v7030_v57, %v6971_v42  ;;  %v11242_v17 = vpop.f32.mrb[105].mxu0 }
 0xd75   :  { %v7033_v62 = vpop.f32.mrb[106].mxu0 }
 0xd76   :  { %v11243_v31 = vpop.f32.mrb[107].mxu0  ;;  %v7115_v54 = vadd.f32 %v7105_v47, %v7040_v37  ;;  %v12143_v47 = vld [vmem:[#allocation8 + $0x60] sm:$0xff]  }
 0xd83   :  { %v7158_v24 = vpop.f32.mrb[108].mxu0 }
 0xd84   :  { %v7180_v56 = vadd.f32 %v7158_v24, %v7111_v44  ;;  %v11290_v51 = vpop.f32.mrb[109].mxu0  ;;  %v12144_v44 = vld [vmem:[#allocation8 + $0x10] sm:$0xff]  }
 0xd85   :  { %v7161_v58 = vpop.f32.mrb[110].mxu0 }
 0xd86   :  { %v7185_v41 = vadd.f32 %v12133_v48, %v7180_v56  ;;  %v7181_v7 = vadd.f32 %v7161_v58, %v7112_v2  ;;  %v11291_v59 = vpop.f32.mrb[111].mxu0  ;;  %v12147_v2 = vld [vmem:[#allocation8 + $0x70] sm:$0xff]  }
 0xd88   :  { %v7186_v6 = vadd.f32 %v12133_v48, %v7181_v7  ;;  %v7190_v11 = vmax.f32 %v7185_v41, 0.0 }
 0xd8a   :  { %v7191_v4 = vmax.f32 %v7186_v6, 0.0  ;;  %v12153_v6 = vld [vmem:[#allocation11 + $0x40] sm:$0xff]  }
 0xd8b   :  { %v7166_v50 = vpop.f32.mrb[112].mxu0 }
 0xd8c   :  { %v7195_v32 = vpack.c.bf16 %v7191_v4, %v7190_v11  ;;  %v7182_v43 = vadd.f32 %v7166_v50, %v7113_v1  ;;  %v11294_v29 = vpop.f32.mrb[113].mxu0 }
 0xd8d   :  { %v7169_v0 = vpop.f32.mrb[114].mxu0  ;;  %v12156_v29 = vld [vmem:[#allocation11 + $0x50] sm:$0xff]  }
 0xd8e   :  { %v7187_v10 = vadd.f32 %v12133_v48, %v7182_v43  ;;  %v7183_v36 = vadd.f32 %v7169_v0, %v7114_v35  ;;  %v11295_v27 = vpop.f32.mrb[115].mxu0  ;;  %11301 = vmatpush3.bf16.msra.mxu1 %v7195_v32  ;;  %11311 = vmatpush3.bf16.msra.mxu0 %v7195_v32  ;;  %v12155_v43 = vld [vmem:[#allocation8 + $0x80] sm:$0xff]   ;;  %v12157_v0 = vld [vmem:[#allocation8 + $0x88] sm:$0xff]  }
 0xd8f   :  { %11302 = vmatprep.subr.bf16.mxu1 %v16236_v9  ;;  %11312 = vmatprep.subr.bf16.mxu0 %v16236_v9  ;;  %v12160_v27 = vld [vmem:[#allocation11 + $0x60] sm:$0xff]  }
 0xd90   :  { %v7188_v49 = vadd.f32 %v12133_v48, %v7183_v36  ;;  %v7192_v26 = vmax.f32 %v7187_v10, 0.0  ;;  %v12158_v10 = vld [vmem:[#allocation11 + $0x58] sm:$0xff]   ;;  %v12159_v36 = vld [vmem:[#allocation8 + $0x90] sm:$0xff]  }
 0xd92   :  { %v7193_v39 = vmax.f32 %v7188_v49, 0.0  ;;  %v12161_v49 = vld [vmem:[#allocation8 + $0x98] sm:$0xff]  }
 0xd93   :  { %v7174_v40 = vpop.f32.mrb[116].mxu0 }
 0xd94   :  { %v7196_v16 = vpack.c.bf16 %v7193_v39, %v7192_v26  ;;  %v7184_v33 = vadd.f32 %v7174_v40, %v7115_v54  ;;  %v11298_v38 = vpop.f32.mrb[117].mxu0  ;;  %v12162_v26 = vld [vmem:[#allocation11 + $0x68] sm:$0xff]   ;;  %v12163_v39 = vld [vmem:[#allocation8 + $0xa0] sm:$0xff]   ;;  %v12164_v40 = vld [vmem:[#allocation11 + $0x70] sm:$0xff]  }
 0xd95   :  { %v7177_v20 = vpop.f32.mrb[118].mxu0  ;;  %v12167_v38 = vld [vmem:[#allocation8 + $0xb0] sm:$0xff]  }
 0xd96   :  { %v7189_v19 = vadd.f32 %v12133_v48, %v7184_v33  ;;  %v11299_v42 = vpop.f32.mrb[119].mxu0  ;;  %11303 = vmatpush3.bf16.msra.mxu1 %v7196_v16  ;;  %11313 = vmatpush3.bf16.msra.mxu0 %v7196_v16  ;;  %v12166_v33 = vld [vmem:[#allocation11 + $0x78] sm:$0xff]  }
 0xd97   :  { %11304 = vmatprep.subr.bf16.mxu1 %v16236_v9  ;;  %11314 = vmatprep.subr.bf16.mxu0 %v16236_v9  ;;  %v12168_v20 = vld [vmem:[#allocation8 + $0xb8] sm:$0xff]   ;;  %v12169_v42 = vld [vmem:[#allocation11] sm:$0xff]  }
 0xd98   :  { %v7194_v22 = vmax.f32 %v7189_v19, 0.0 }
 0xd9a   :  { %v7197_v14 = vpack.c.bf16 %v7194_v22, %v7194_v22  ;;  %v12170_v22 = vld [vmem:[#allocation11 + $0x8] sm:$0xff]  }
 0xd9c   :  { %v7199_v8 = vand.u32 %v7197_v14, %v16246_v34  ;;  %v12171_v14 = vld [vmem:[#allocation11 + $0x10] sm:$0xff]   ;;  %v12172_v34 = vld [vmem:[#allocation11 + $0x18] sm:$0xff]  }
 0xd9e   :  { %11305 = vmatpush3.bf16.msra.mxu1 %v7199_v8  ;;  %11315 = vmatpush3.bf16.msra.mxu0 %v7199_v8 }
 0xd9f   :  { %11320 = vmatprep.subr.bf16.mxu1 %v16236_v9  ;;  %11330 = vmatprep.subr.bf16.mxu0 %v16236_v9 }
 0xda1   :  { %11307 = vmatmul.mubr.msk.bf16.vlgmr.msra.gmra.mrb[116].mxu1 %vm3687_vm11, %v12134_v12  ;;  %11317 = vmatmul.mubr.msk.bf16.vlgmr.msra.gmra.mrb[120].mxu0 %vm3687_vm11, %v12135_v53  ;;  %v12174_v12 = vld [vmem:[#allocation11 + $0x28] sm:$0xff]   ;;  %v12175_v53 = vld [vmem:[#allocation11 + $0x30] sm:$0xff]  }
 0xda2   :  { %11321 = vmatpush3.bf16.msra.mxu1 %v7195_v32  ;;  %11326 = vmatprep.mubr.msk.bf16.mxu1 %vm12555_vm6, %v16236_v9  ;;  %v12154_v32 = vld [vmem:[#allocation11 + $0x48] sm:$0xff]  }
 0xda3   :  { %11322 = vmatprep.subr.bf16.mxu1 %v16236_v9  ;;  %11331 = vmatpush3.bf16.msra.mxu0 %v12136_v3  ;;  %v12176_v3 = vld [vmem:[#allocation11 + $0x38] sm:$0xff]  }
 0xda4   :  { %11332 = vmatprep.subr.bf16.mxu0 %v16236_v9  ;;  %11346 = vmatprep.mubr.msk.bf16.mxu0 %vm12555_vm6, %v16236_v9 }
 0xda6   :  { %11323 = vmatpush3.bf16.msra.mxu1 %v7196_v16  ;;  %v12165_v16 = vld [vmem:[#allocation8 + $0xa8] sm:$0xff]  }
 0xda7   :  { %11324 = vmatprep.subr.bf16.mxu1 %v16236_v9  ;;  %11333 = vmatpush3.bf16.msra.mxu0 %v12137_v28 }
 0xda8   :  { %11334 = vmatprep.subr.bf16.mxu0 %v16236_v9 }
 0xdaa   :  { %11325 = vmatpush3.bf16.msra.mxu1 %v7199_v8  ;;  %v12173_v8 = vld [vmem:[#allocation11 + $0x20] sm:$0xff]  }
 0xdab   :  { %11350 = vmatprep.subr.bf16.mxu1 %v16236_v9  ;;  %11335 = vmatpush3.bf16.msra.mxu0 %v12138_v15 }
 0xdac   :  { %11336 = vmatprep.subr.bf16.mxu0 %v16236_v9 }
 0xdad   :  { %11327 = vmatmul.mubr.msk.bf16.vlgmr.msra.gmra.mrb[120].mxu1 %vm3687_vm11, %v12139_v18 }
 0xdae   :  { %11351 = vmatpush3.bf16.msra.mxu1 %v12140_v30  ;;  %11366 = vmatprep.mubr.msk.bf16.mxu1 %vm12555_vm6, %v16236_v9 }
 0xdaf   :  { %11352 = vmatprep.subr.bf16.mxu1 %v16236_v9  ;;  %11337 = vmatpush3.bf16.msra.mxu0 %v12141_v46 }
 0xdb0   :  { %11338 = vmatprep.subr.bf16.mxu0 %v16236_v9 }
 0xdb2   :  { %11353 = vmatpush3.bf16.msra.mxu1 %v12142_v61 }
 0xdb3   :  { %11354 = vmatprep.subr.bf16.mxu1 %v16236_v9  ;;  %11339 = vmatpush3.bf16.msra.mxu0 %v12143_v47 }
 0xdb4   :  { %11340 = vmatprep.subr.bf16.mxu0 %v16236_v9 }
 0xdb6   :  { %11355 = vmatpush3.bf16.msra.mxu1 %v12144_v44 }
 0xdb7   :  { %11356 = vmatprep.subr.bf16.mxu1 %v16236_v9  ;;  %11341 = vmatpush3.bf16.msra.mxu0 %v12145_v63 }
 0xdb8   :  { %11342 = vmatprep.subr.bf16.mxu0 %v16236_v9 }
 0xdba   :  { %11357 = vmatpush3.bf16.msra.mxu1 %v12146_v45 }
 0xdbb   :  { %11358 = vmatprep.subr.bf16.mxu1 %v16236_v9  ;;  %11343 = vmatpush3.bf16.msra.mxu0 %v12147_v2 }
 0xdbc   :  { %11344 = vmatprep.subr.bf16.mxu0 %v16236_v9 }
 0xdbe   :  { %11359 = vmatpush3.bf16.msra.mxu1 %v12148_v52 }
 0xdbf   :  { %11360 = vmatprep.subr.bf16.mxu1 %v16236_v9  ;;  %11345 = vmatpush3.bf16.msra.mxu0 %v12149_v60 }
 0xdc0   :  { %11370 = vmatprep.subr.bf16.mxu0 %v16236_v9 }
 0xdc2   :  { %11361 = vmatpush3.bf16.msra.mxu1 %v12150_v25 }
 0xdc3   :  { %11362 = vmatprep.subr.bf16.mxu1 %v16236_v9 }
 0xdc6   :  { %11363 = vmatpush3.bf16.msra.mxu1 %v12151_v55  ;;  %v12177_v55 = vld [vmem:[#allocation10] ss:$0 sm:$0xff] }
 0xdc7   :  { %11364 = vmatprep.subr.bf16.mxu1 %v16236_v9 }
 0xdca   :  { %11365 = vmatpush3.bf16.msra.mxu1 %v12152_v13 }
 0xdcb   :  { %11390 = vmatprep.subr.bf16.mxu1 %v16236_v9 }
 0xe74   :  { %v7235_v21 = vpop.f32.mrb[116].mxu1  ;;  %v7276_v23 = vpop.f32.mrb[120].mxu0 }
 0xe75   :  { %v11308_v1 = vpop.f32.mrb[117].mxu1  ;;  %v7283_v35 = vmax.f32 %v7235_v21, %v7276_v23  ;;  %v11318_v57 = vpop.f32.mrb[121].mxu0 }
 0xe76   :  { %v7238_v37 = vpop.f32.mrb[118].mxu1  ;;  %v7279_v17 = vpop.f32.mrb[122].mxu0 }
 0xe77   :  { %v11309_v62 = vpop.f32.mrb[119].mxu1  ;;  %v7284_v31 = vmax.f32 %v7238_v37, %v7279_v17  ;;  %v11319_v54 = vpop.f32.mrb[123].mxu0 }
 0xe80   :  { %v7319_v24 = vpop.f32.mrb[120].mxu1 }
 0xe81   :  { %v7326_v56 = vmax.f32 %v7283_v35, %v7319_v24  ;;  %v11328_v51 = vpop.f32.mrb[121].mxu1 }
 0xe82   :  { %v7322_v58 = vpop.f32.mrb[122].mxu1  ;;  %v12179_v51 = vld [vmem:[#allocation14 + $0x48] sm:$0xff]  }
 0xe83   :  { %v7327_v48 = vmax.f32 %v7284_v31, %v7322_v58  ;;  %v11329_v41 = vpop.f32.mrb[123].mxu1  ;;  %v12178_v31 = vld [vmem:[#allocation14 + $0x40] sm:$0xff]  }
 0xe84   :  { %v12180_v58 = vld [vmem:[#allocation11 + $0x80] sm:$0xff]   ;;  %v12182_v41 = vld [vmem:[#allocation11 + $0x88] sm:$0xff]  }
 0xe85   :  { %v7328_v7 = vpack.c.bf16 %v7327_v48, %v7326_v56  ;;  %v12181_v48 = vld [vmem:[#allocation14 + $0x50] sm:$0xff]  }
 0xe87   :  { %v7332_v59 = vshll.u32 %v7328_v7, 16  ;;  %11367 = vmatmul.mubr.bf16.vlgmr.msra.gmra.mrb[124].mxu1 %v7328_v7  ;;  %v7330_v11 = vshrl.u32 %v7328_v7, 16  ;;  %v7420_v19 = vrot.slane %v7328_v7, 1  ;;  %v12183_v7 = vld [vmem:[#allocation14 + $0x58] sm:$0xff]  }
 0xe88   :  { %11391 = vmatpush3.bf16.msra.mxu1 %v12153_v6  ;;  %11406 = vmatprep.mubr.msk.bf16.mxu1 %vm12555_vm6, %v16236_v9  ;;  %v12185_v6 = vld [vmem:[#allocation14 + $0x60] sm:$0xff]  }
 0xe89   :  { %v7334_v4 = vrot.slane %v7332_v59, 1  ;;  %11392 = vmatprep.subr.bf16.mxu1 %v16236_v9  ;;  %v12184_v59 = vld [vmem:[#allocation11 + $0x90] sm:$0xff]  }
 0xe8b   :  { %v7335_v50 = vor.u32 %v7334_v4, %v7330_v11  ;;  %v12186_v11 = vld [vmem:[#allocation11 + $0x98] sm:$0xff]   ;;  %v12187_v4 = vld [vmem:[#allocation14 + $0x68] sm:$0xff]  }
 0xe8c   :  { %11393 = vmatpush3.bf16.msra.mxu1 %v12154_v32  ;;  %v12189_v32 = vld [vmem:[#allocation14 + $0x70] sm:$0xff]  }
 0xe8d   :  { %11347 = vmatmul.mubr.bf16.vlgmr.msra.gmra.mrb[124].mxu0 %v7335_v50  ;;  %11394 = vmatprep.subr.bf16.mxu1 %v16236_v9  ;;  %v12188_v50 = vld [vmem:[#allocation11 + $0xa0] sm:$0xff]  }
 0xe8e   :  { %11371 = vmatpush3.bf16.msra.mxu0 %v12155_v43  ;;  %11386 = vmatprep.mubr.msk.bf16.mxu0 %vm12555_vm6, %v16236_v9  ;;  %v12190_v43 = vld [vmem:[#allocation11 + $0xa8] sm:$0xff]  }
 0xe8f   :  { %11372 = vmatprep.subr.bf16.mxu0 %v16236_v9 }
 0xe90   :  { %11395 = vmatpush3.bf16.msra.mxu1 %v12156_v29  ;;  %v12191_v29 = vld [vmem:[#allocation14 + $0x78] sm:$0xff]  }
 0xe91   :  { %11396 = vmatprep.subr.bf16.mxu1 %v16236_v9 }
 0xe92   :  { %11373 = vmatpush3.bf16.msra.mxu0 %v12157_v0  ;;  %v12192_v0 = vld [vmem:[#allocation11 + $0xb0] sm:$0xff]  }
 0xe93   :  { %11374 = vmatprep.subr.bf16.mxu0 %v16236_v9 }
 0xe94   :  { %11397 = vmatpush3.bf16.msra.mxu1 %v12158_v10  ;;  %v12193_v10 = vld [vmem:[#allocation11 + $0xb8] sm:$0xff]  }
 0xe95   :  { %11398 = vmatprep.subr.bf16.mxu1 %v16236_v9 }
 0xe96   :  { %11375 = vmatpush3.bf16.msra.mxu0 %v12159_v36 }
 0xe97   :  { %11376 = vmatprep.subr.bf16.mxu0 %v16236_v9 }
 0xe98   :  { %11399 = vmatpush3.bf16.msra.mxu1 %v12160_v27  ;;  %v12194_v27 = vld [vmem:[#allocation14] sm:$0xff]  }
 0xe99   :  { %11400 = vmatprep.subr.bf16.mxu1 %v16236_v9 }
 0xe9a   :  { %11377 = vmatpush3.bf16.msra.mxu0 %v12161_v49  ;;  %v12195_v49 = vld [vmem:[#allocation14 + $0x8] sm:$0xff]  }
 0xe9b   :  { %11378 = vmatprep.subr.bf16.mxu0 %v16236_v9 }
 0xe9c   :  { %11401 = vmatpush3.bf16.msra.mxu1 %v12162_v26  ;;  %v12196_v26 = vld [vmem:[#allocation14 + $0x10] sm:$0xff]  }
 0xe9d   :  { %11402 = vmatprep.subr.bf16.mxu1 %v16236_v9 }
 0xe9e   :  { %11379 = vmatpush3.bf16.msra.mxu0 %v12163_v39  ;;  %v12197_v39 = vld [vmem:[#allocation14 + $0x18] sm:$0xff]  }
 0xe9f   :  { %11380 = vmatprep.subr.bf16.mxu0 %v16236_v9 }
 0xea0   :  { %11403 = vmatpush3.bf16.msra.mxu1 %v12164_v40  ;;  %v12198_v40 = vld [vmem:[#allocation14 + $0x20] sm:$0xff]  }
 0xea1   :  { %11404 = vmatprep.subr.bf16.mxu1 %v16236_v9 }
 0xea2   :  { %11381 = vmatpush3.bf16.msra.mxu0 %v12165_v16  ;;  %v12199_v16 = vld [vmem:[#allocation14 + $0x28] sm:$0xff]  }
 0xea3   :  { %11382 = vmatprep.subr.bf16.mxu0 %v16236_v9 }
 0xea4   :  { %11405 = vmatpush3.bf16.msra.mxu1 %v12166_v33  ;;  %v12200_v33 = vld [vmem:[#allocation14 + $0x30] sm:$0xff]  }
 0xea5   :  { %11430 = vmatprep.subr.bf16.mxu1 %v16236_v9 }
 0xea6   :  { %11383 = vmatpush3.bf16.msra.mxu0 %v12167_v38  ;;  %v12201_v38 = vld [vmem:[#allocation14 + $0x38] sm:$0xff]  }
 0xea7   :  { %11384 = vmatprep.subr.bf16.mxu0 %v16236_v9 }
 0xeaa   :  { %11385 = vmatpush3.bf16.msra.mxu0 %v12168_v20 }
 0xeab   :  { %11410 = vmatprep.subr.bf16.mxu0 %v16236_v9 }
 0xead   :  { %11387 = vmatmul.mubr.bf16.vlgmr.msra.gmra.mrb[128].mxu0 %v7420_v19 }
 0xeae   :  { %11411 = vmatpush3.bf16.msra.mxu0 %v12169_v42  ;;  %11426 = vmatprep.mubr.msk.bf16.mxu0 %vm12555_vm6, %v16236_v9 }
 0xeaf   :  { %11412 = vmatprep.subr.bf16.mxu0 %v16236_v9 }
 0xeb2   :  { %11413 = vmatpush3.bf16.msra.mxu0 %v12170_v22 }
 0xeb3   :  { %11414 = vmatprep.subr.bf16.mxu0 %v16236_v9 }
 0xeb6   :  { %11415 = vmatpush3.bf16.msra.mxu0 %v12171_v14 }
 0xeb7   :  { %11416 = vmatprep.subr.bf16.mxu0 %v16236_v9 }
 0xeba   :  { %11417 = vmatpush3.bf16.msra.mxu0 %v12172_v34 }
 0xebb   :  { %11418 = vmatprep.subr.bf16.mxu0 %v16236_v9 }
 0xebe   :  { %11419 = vmatpush3.bf16.msra.mxu0 %v12173_v8 }
 0xebf   :  { %11420 = vmatprep.subr.bf16.mxu0 %v16236_v9 }
 0xec2   :  { %11421 = vmatpush3.bf16.msra.mxu0 %v12174_v12 }
 0xec3   :  { %11422 = vmatprep.subr.bf16.mxu0 %v16236_v9 }
 0xec6   :  { %11423 = vmatpush3.bf16.msra.mxu0 %v12175_v53 }
 0xec7   :  { %11424 = vmatprep.subr.bf16.mxu0 %v16236_v9 }
 0xeca   :  { %11425 = vmatpush3.bf16.msra.mxu0 %v12176_v3 }
 0xecb   :  { %11450 = vmatprep.subr.bf16.mxu0 %v16236_v9 }
 0xf5a   :  { %v7412_v28 = vpop.f32.mrb[124].mxu1 }
 0xf5b   :  { %v11368_v15 = vpop.f32.mrb[125].mxu1 }
 0xf5c   :  { %v7415_v18 = vpop.f32.mrb[126].mxu1 }
 0xf5d   :  { %v11369_v30 = vpop.f32.mrb[127].mxu1 }
 0xf5e   :  { %v12202_v30 = vld [vmem:[#allocation13] ss:$0 sm:$0xff] }
 0xf60   :  { %v7371_v46 = vpop.f32.mrb[124].mxu0 }
 0xf61   :  { %v7413_v61 = vadd.f32 %v7412_v28, %v7371_v46  ;;  %v11348_v47 = vpop.f32.mrb[125].mxu0 }
 0xf62   :  { %v7374_v44 = vpop.f32.mrb[126].mxu0 }
 0xf63   :  { %v7416_v63 = vadd.f32 %v7415_v18, %v7374_v44  ;;  %v11349_v45 = vpop.f32.mrb[127].mxu0 }
 0xf64   :  { %v12203_v45 = vld [vmem:[#allocation17 + $0x40] sm:$0xff]  }
 0xf80   :  { %v7456_v2 = vpop.f32.mrb[128].mxu0 }
 0xf81   :  { %v7463_v52 = vadd.f32 %v7456_v2, %v7413_v61  ;;  %v11388_v60 = vpop.f32.mrb[129].mxu0 }
 0xf82   :  { %v7459_v25 = vpop.f32.mrb[130].mxu0 }
 0xf83   :  { %v7465_v13 = vadd.f32 %v12177_v55, %v7463_v52  ;;  %v7464_v21 = vadd.f32 %v7459_v25, %v7416_v63  ;;  %v11389_v23 = vpop.f32.mrb[131].mxu0  ;;  %v12204_v25 = vld [vmem:[#allocation17 + $0x48] sm:$0xff]  }
 0xf84   :  { %v12208_v23 = vld [vmem:[#allocation17 + $0x58] sm:$0xff]  }
 0xf85   :  { %v7467_v1 = vmax.f32 %v7465_v13, 0.0  ;;  %v7466_v35 = vadd.f32 %v12177_v55, %v7464_v21  ;;  %v12205_v55 = vld [vmem:[#allocation14 + $0x80] sm:$0xff]   ;;  %v12206_v13 = vld [vmem:[#allocation17 + $0x50] sm:$0xff]   ;;  %v12207_v21 = vld [vmem:[#allocation14 + $0x88] sm:$0xff]  }
 0xf87   :  { %v7469_v57 = vpack.c.bf16 %v7467_v1, %v7467_v1  ;;  %v7468_v37 = vmax.f32 %v7466_v35, 0.0  ;;  %v12210_v35 = vld [vmem:[#allocation17 + $0x60] sm:$0xff]  }
 0xf89   :  { %v7473_v17 = vshll.u32 %v7469_v57, 16  ;;  %v7558_v62 = vpack.c.bf16 %v7468_v37, %v7467_v1  ;;  %11427 = vmatmul.mubr.bf16.vlgmr.msra.gmra.mrb[132].mxu0 %v7469_v57  ;;  %v7471_v54 = vshrl.u32 %v7469_v57, 16  ;;  %v12209_v1 = vld [vmem:[#allocation14 + $0x90] sm:$0xff]   ;;  %v12211_v57 = vld [vmem:[#allocation14 + $0x98] sm:$0xff]  }
 0xf8a   :  { %11451 = vmatpush3.bf16.msra.mxu0 %v12178_v31  ;;  %11466 = vmatprep.mubr.msk.bf16.mxu0 %vm12555_vm6, %v16236_v9  ;;  %v12212_v37 = vld [vmem:[#allocation17 + $0x68] sm:$0xff]  }
 0xf8b   :  { %v7475_v24 = vrot.slane %v7473_v17, 1  ;;  %11452 = vmatprep.subr.bf16.mxu0 %v16236_v9  ;;  %v7560_v36 = vrot.slane %v7558_v62, 1  ;;  %v12213_v17 = vld [vmem:[#allocation14 + $0xa0] sm:$0xff]   ;;  %v12214_v62 = vld [vmem:[#allocation17 + $0x70] sm:$0xff]   ;;  %v12215_v31 = vld [vmem:[#allocation14 + $0xa8] sm:$0xff]  }
 0xf8d   :  { %v7476_v56 = vor.u32 %v7475_v24, %v7471_v54  ;;  %v12216_v54 = vld [vmem:[#allocation17 + $0x78] sm:$0xff]   ;;  %v12217_v24 = vld [vmem:[#allocation14 + $0xb0] sm:$0xff]  }
 0xf8e   :  { %11453 = vmatpush3.bf16.msra.mxu0 %v12179_v51 }
 0xf8f   :  { %11407 = vmatmul.mubr.bf16.vlgmr.msra.gmra.mrb[128].mxu1 %v7476_v56  ;;  %11454 = vmatprep.subr.bf16.mxu0 %v16236_v9  ;;  %v12218_v56 = vld [vmem:[#allocation14 + $0xb8] sm:$0xff]  }
 0xf90   :  { %11431 = vmatpush3.bf16.msra.mxu1 %v12180_v58  ;;  %11446 = vmatprep.mubr.msk.bf16.mxu1 %vm12555_vm6, %v16236_v9  ;;  %v12219_v58 = vld [vmem:[#allocation17] sm:$0xff]  }
 0xf91   :  { %11432 = vmatprep.subr.bf16.mxu1 %v16236_v9 }
 0xf92   :  { %11455 = vmatpush3.bf16.msra.mxu0 %v12181_v48  ;;  %v12220_v48 = vld [vmem:[#allocation17 + $0x8] sm:$0xff]  }
 0xf93   :  { %11456 = vmatprep.subr.bf16.mxu0 %v16236_v9 }
 0xf94   :  { %11433 = vmatpush3.bf16.msra.mxu1 %v12182_v41  ;;  %v12221_v41 = vld [vmem:[#allocation17 + $0x10] sm:$0xff]  }
 0xf95   :  { %11434 = vmatprep.subr.bf16.mxu1 %v16236_v9 }
 0xf96   :  { %11457 = vmatpush3.bf16.msra.mxu0 %v12183_v7  ;;  %v12222_v7 = vld [vmem:[#allocation17 + $0x18] sm:$0xff]  }
 0xf97   :  { %11458 = vmatprep.subr.bf16.mxu0 %v16236_v9 }
 0xf98   :  { %11435 = vmatpush3.bf16.msra.mxu1 %v12184_v59  ;;  %v12223_v59 = vld [vmem:[#allocation17 + $0x20] sm:$0xff]  }
 0xf99   :  { %11436 = vmatprep.subr.bf16.mxu1 %v16236_v9 }
 0xf9a   :  { %11459 = vmatpush3.bf16.msra.mxu0 %v12185_v6  ;;  %v12224_v6 = vld [vmem:[#allocation17 + $0x28] sm:$0xff]  }
 0xf9b   :  { %11460 = vmatprep.subr.bf16.mxu0 %v16236_v9 }
 0xf9c   :  { %11437 = vmatpush3.bf16.msra.mxu1 %v12186_v11  ;;  %v12225_v11 = vld [vmem:[#allocation17 + $0x30] sm:$0xff]  }
 0xf9d   :  { %11438 = vmatprep.subr.bf16.mxu1 %v16236_v9 }
 0xf9e   :  { %11461 = vmatpush3.bf16.msra.mxu0 %v12187_v4  ;;  %v12226_v4 = vld [vmem:[#allocation17 + $0x38] sm:$0xff]  }
 0xf9f   :  { %11462 = vmatprep.subr.bf16.mxu0 %v16236_v9 }
 0xfa0   :  { %11439 = vmatpush3.bf16.msra.mxu1 %v12188_v50 }
 0xfa1   :  { %11440 = vmatprep.subr.bf16.mxu1 %v16236_v9 }
 0xfa2   :  { %11463 = vmatpush3.bf16.msra.mxu0 %v12189_v32 }
 0xfa3   :  { %11464 = vmatprep.subr.bf16.mxu0 %v16236_v9 }
 0xfa4   :  { %11441 = vmatpush3.bf16.msra.mxu1 %v12190_v43 }
 0xfa5   :  { %11442 = vmatprep.subr.bf16.mxu1 %v16236_v9 }
 0xfa6   :  { %11465 = vmatpush3.bf16.msra.mxu0 %v12191_v29 }
 0xfa7   :  { %11490 = vmatprep.subr.bf16.mxu0 %v16236_v9 }
 0xfa8   :  { %11443 = vmatpush3.bf16.msra.mxu1 %v12192_v0 }
 0xfa9   :  { %11444 = vmatprep.subr.bf16.mxu1 %v16236_v9 }
 0xfac   :  { %11445 = vmatpush3.bf16.msra.mxu1 %v12193_v10 }
 0xfad   :  { %11470 = vmatprep.subr.bf16.mxu1 %v16236_v9 }
 0xfaf   :  { %11447 = vmatmul.mubr.bf16.vlgmr.msra.gmra.mrb[132].mxu1 %v7560_v36 }
 0xfb0   :  { %11471 = vmatpush3.bf16.msra.mxu1 %v12194_v27  ;;  %11486 = vmatprep.mubr.msk.bf16.mxu1 %vm12555_vm6, %v16236_v9 }
 0xfb1   :  { %11472 = vmatprep.subr.bf16.mxu1 %v16236_v9 }
 0xfb4   :  { %11473 = vmatpush3.bf16.msra.mxu1 %v12195_v49 }
 0xfb5   :  { %11474 = vmatprep.subr.bf16.mxu1 %v16236_v9 }
 0xfb8   :  { %11475 = vmatpush3.bf16.msra.mxu1 %v12196_v26 }
 0xfb9   :  { %11476 = vmatprep.subr.bf16.mxu1 %v16236_v9 }
 0xfbc   :  { %11477 = vmatpush3.bf16.msra.mxu1 %v12197_v39 }
 0xfbd   :  { %11478 = vmatprep.subr.bf16.mxu1 %v16236_v9 }
 0xfc0   :  { %11479 = vmatpush3.bf16.msra.mxu1 %v12198_v40 }
 0xfc1   :  { %11480 = vmatprep.subr.bf16.mxu1 %v16236_v9 }
 0xfc4   :  { %11481 = vmatpush3.bf16.msra.mxu1 %v12199_v16 }
 0xfc5   :  { %11482 = vmatprep.subr.bf16.mxu1 %v16236_v9 }
 0xfc8   :  { %11483 = vmatpush3.bf16.msra.mxu1 %v12200_v33  ;;  %v12227_v33 = vld [vmem:[#allocation16] ss:$0 sm:$0xff] }
 0xfc9   :  { %11484 = vmatprep.subr.bf16.mxu1 %v16236_v9 }
 0xfcc   :  { %11485 = vmatpush3.bf16.msra.mxu1 %v12201_v38 }
 0xfcd   :  { %11510 = vmatprep.subr.bf16.mxu1 %v16236_v9 }
0x105c   :  { %v7552_v20 = vpop.f32.mrb[132].mxu0 }
0x105d   :  { %v11428_v19 = vpop.f32.mrb[133].mxu0 }
0x105e   :  { %v7555_v42 = vpop.f32.mrb[134].mxu0 }
0x105f   :  { %v11429_v22 = vpop.f32.mrb[135].mxu0 }
0x1062   :  { %v7512_v14 = vpop.f32.mrb[128].mxu1 }
0x1063   :  { %v7553_v34 = vadd.f32 %v7552_v20, %v7512_v14  ;;  %v11408_v8 = vpop.f32.mrb[129].mxu1  ;;  %v16247_v14 = vmov 0  }
0x1064   :  { %v7515_v12 = vpop.f32.mrb[130].mxu1 }
0x1065   :  { %v11409_v53 = vpop.f32.mrb[131].mxu1 }
0x1066   :  { %v12228_v53 = vld [vmem:[#allocation17 + $0x80] sm:$0xff]  }
0x1082   :  { %v7596_v3 = vpop.f32.mrb[132].mxu1 }
0x1083   :  { %v7602_v28 = vadd.f32 %v7596_v3, %v7553_v34  ;;  %v11448_v15 = vpop.f32.mrb[133].mxu1  ;;  %v12229_v3 = vld [vmem:[#allocation17 + $0x88] sm:$0xff]  }
0x1084   :  { %v7599_v18 = vpop.f32.mrb[134].mxu1  ;;  %v12231_v15 = vld [vmem:[#allocation17 + $0x98] sm:$0xff]  }
0x1085   :  { %v7603_v46 = vadd.f32 %v12202_v30, %v7602_v28  ;;  %v11449_v61 = vpop.f32.mrb[135].mxu1  ;;  %v12230_v28 = vld [vmem:[#allocation17 + $0x90] sm:$0xff]   ;;  %v12232_v18 = vld [vmem:[#allocation17 + $0xa0] sm:$0xff]   ;;  %v12233_v30 = vld [vmem:[#allocation17 + $0xa8] sm:$0xff]  }
0x1086   :  { %v12235_v61 = vld [vmem:[#allocation17 + $0xb8] sm:$0xff]  }
0x1087   :  { %v7604_v47 = vmax.f32 %v7603_v46, 0.0  ;;  %v12234_v46 = vld [vmem:[#allocation17 + $0xb0] sm:$0xff]  }
0x1089   :  { %v7605_v44 = vpack.c.bf16 %v7604_v47, %v7604_v47 }
0x108b   :  { %v7609_v63 = vshll.u32 %v7605_v44, 16  ;;  %11487 = vmatmul.mubr.bf16.vlgmr.msra.gmra.mrb[136].mxu1 %v7605_v44  ;;  %v7607_v2 = vshrl.u32 %v7605_v44, 16  ;;  %v7695_v51 = vrot.slane %v7605_v44, 1  ;;  %v11867_v44 = vld [vmem:[%s16050_s15] ss:$8 sps:$4 sm:$0xff]  }
0x108c   :  { %11511 = vmatpush3.bf16.msra.mxu1 %v12203_v45  ;;  %11526 = vmatprep.mubr.msk.bf16.mxu1 %vm12555_vm6, %v16236_v9  ;;  %v11872_v45 = vld [vmem:[%s16050_s15 + $0x14] ss:$8 sps:$4 sm:$0xff]  }
0x108d   :  { %v7611_v52 = vrot.slane %v7609_v63, 1  ;;  %11512 = vmatprep.subr.bf16.mxu1 %v16236_v9  ;;  %v11869_v63 = vld [vmem:[%s16050_s15 + $0x4] ss:$8 sps:$4 sm:$0xff]  }
0x108f   :  { %v7612_v60 = vor.u32 %v7611_v52, %v7607_v2  ;;  %v11875_v2 = vld [vmem:[%s16050_s15 + $0x24] ss:$8 sps:$4 sm:$0xff]   ;;  %v11873_v52 = vld [vmem:[%s16050_s15 + $0x20] ss:$8 sps:$4 sm:$0xff]  }
0x1090   :  { %11513 = vmatpush3.bf16.msra.mxu1 %v12204_v25  ;;  %v11876_v25 = vld [vmem:[%s16050_s15 + $0x30] ss:$8 sps:$4 sm:$0xff]  }
0x1091   :  { %11467 = vmatmul.mubr.bf16.vlgmr.msra.gmra.mrb[136].mxu0 %v7612_v60  ;;  %11514 = vmatprep.subr.bf16.mxu1 %v16236_v9  ;;  %v11878_v60 = vld [vmem:[%s16050_s15 + $0x34] ss:$8 sps:$4 sm:$0xff]  }
0x1092   :  { %11491 = vmatpush3.bf16.msra.mxu0 %v12205_v55  ;;  %11506 = vmatprep.mubr.msk.bf16.mxu0 %vm12555_vm6, %v16236_v9  ;;  %v11881_v55 = vld [vmem:[%s16050_s15 + $0x44] ss:$8 sps:$4 sm:$0xff]  }
0x1093   :  { %11492 = vmatprep.subr.bf16.mxu0 %v16236_v9 }
0x1094   :  { %11515 = vmatpush3.bf16.msra.mxu1 %v12206_v13  ;;  %v11879_v13 = vld [vmem:[%s16050_s15 + $0x40] ss:$8 sps:$4 sm:$0xff]  }
0x1095   :  { %11516 = vmatprep.subr.bf16.mxu1 %v16236_v9 }
0x1096   :  { %11493 = vmatpush3.bf16.msra.mxu0 %v12207_v21  ;;  %v11884_v21 = vld [vmem:[%s16050_s15 + $0x54] ss:$8 sps:$4 sm:$0xff]  }
0x1097   :  { %11494 = vmatprep.subr.bf16.mxu0 %v16236_v9 }
0x1098   :  { %11517 = vmatpush3.bf16.msra.mxu1 %v12208_v23  ;;  %v11882_v23 = vld [vmem:[%s16050_s15 + $0x50] ss:$8 sps:$4 sm:$0xff]  }
0x1099   :  { %11518 = vmatprep.subr.bf16.mxu1 %v16236_v9 }
0x109a   :  { %11495 = vmatpush3.bf16.msra.mxu0 %v12209_v1  ;;  %v11887_v1 = vld [vmem:[%s16050_s15 + $0x64] ss:$8 sps:$4 sm:$0xff]  }
0x109b   :  { %11496 = vmatprep.subr.bf16.mxu0 %v16236_v9 }
0x109c   :  { %11519 = vmatpush3.bf16.msra.mxu1 %v12210_v35  ;;  %v11885_v35 = vld [vmem:[%s16050_s15 + $0x60] ss:$8 sps:$4 sm:$0xff]  }
0x109d   :  { %11520 = vmatprep.subr.bf16.mxu1 %v16236_v9 }
0x109e   :  { %11497 = vmatpush3.bf16.msra.mxu0 %v12211_v57  ;;  %v11890_v57 = vld [vmem:[%s16050_s15 + $0x74] ss:$8 sps:$4 sm:$0xff]  }
0x109f   :  { %11498 = vmatprep.subr.bf16.mxu0 %v16236_v9 }
0x10a0   :  { %11521 = vmatpush3.bf16.msra.mxu1 %v12212_v37  ;;  %v11888_v37 = vld [vmem:[%s16050_s15 + $0x70] ss:$8 sps:$4 sm:$0xff]  }
0x10a1   :  { %11522 = vmatprep.subr.bf16.mxu1 %v16236_v9 }
0x10a2   :  { %11499 = vmatpush3.bf16.msra.mxu0 %v12213_v17  ;;  %v11891_v17 = vld [vmem:[#allocation19] ss:$8 sps:$4 sm:$0xff]  }
0x10a3   :  { %11500 = vmatprep.subr.bf16.mxu0 %v16236_v9 }
0x10a4   :  { %11523 = vmatpush3.bf16.msra.mxu1 %v12214_v62  ;;  %v11893_v62 = vld [vmem:[#allocation19 + $0x4] ss:$8 sps:$4 sm:$0xff]  }
0x10a5   :  { %11524 = vmatprep.subr.bf16.mxu1 %v16236_v9 }
0x10a6   :  { %11501 = vmatpush3.bf16.msra.mxu0 %v12215_v31  ;;  %v11896_v31 = vld [vmem:[#allocation19 + $0x14] ss:$8 sps:$4 sm:$0xff]  }
0x10a7   :  { %11502 = vmatprep.subr.bf16.mxu0 %v16236_v9 }
0x10a8   :  { %11525 = vmatpush3.bf16.msra.mxu1 %v12216_v54  ;;  %v11894_v54 = vld [vmem:[#allocation19 + $0x10] ss:$8 sps:$4 sm:$0xff]  }
0x10a9   :  { %11550 = vmatprep.subr.bf16.mxu1 %v16236_v9 }
0x10aa   :  { %11503 = vmatpush3.bf16.msra.mxu0 %v12217_v24  ;;  %v11899_v24 = vld [vmem:[#allocation19 + $0x24] ss:$8 sps:$4 sm:$0xff]  }
0x10ab   :  { %11504 = vmatprep.subr.bf16.mxu0 %v16236_v9 }
0x10ae   :  { %11505 = vmatpush3.bf16.msra.mxu0 %v12218_v56  ;;  %v11897_v56 = vld [vmem:[#allocation19 + $0x20] ss:$8 sps:$4 sm:$0xff]  }
0x10af   :  { %11530 = vmatprep.subr.bf16.mxu0 %v16236_v9 }
0x10b1   :  { %11507 = vmatmul.mubr.bf16.vlgmr.msra.gmra.mrb[140].mxu0 %v7695_v51  ;;  %v11902_v51 = vld [vmem:[#allocation19 + $0x34] ss:$8 sps:$4 sm:$0xff]  }
0x10b2   :  { %11531 = vmatpush3.bf16.msra.mxu0 %v12219_v58  ;;  %11546 = vmatprep.mubr.msk.bf16.mxu0 %vm12555_vm6, %v16236_v9  ;;  %v11900_v58 = vld [vmem:[#allocation19 + $0x30] ss:$8 sps:$4 sm:$0xff]  }
0x10b3   :  { %11532 = vmatprep.subr.bf16.mxu0 %v16236_v9 }
0x10b6   :  { %11533 = vmatpush3.bf16.msra.mxu0 %v12220_v48  ;;  %v11905_v48 = vld [vmem:[#allocation19 + $0x44] ss:$8 sps:$4 sm:$0xff]  }
0x10b7   :  { %11534 = vmatprep.subr.bf16.mxu0 %v16236_v9 }
0x10ba   :  { %11535 = vmatpush3.bf16.msra.mxu0 %v12221_v41  ;;  %v11903_v41 = vld [vmem:[#allocation19 + $0x40] ss:$8 sps:$4 sm:$0xff]  }
0x10bb   :  { %11536 = vmatprep.subr.bf16.mxu0 %v16236_v9 }
0x10be   :  { %11537 = vmatpush3.bf16.msra.mxu0 %v12222_v7  ;;  %v11908_v7 = vld [vmem:[#allocation19 + $0x54] ss:$8 sps:$4 sm:$0xff]  }
0x10bf   :  { %11538 = vmatprep.subr.bf16.mxu0 %v16236_v9 }
0x10c2   :  { %11539 = vmatpush3.bf16.msra.mxu0 %v12223_v59  ;;  %v11906_v59 = vld [vmem:[#allocation19 + $0x50] ss:$8 sps:$4 sm:$0xff]  }
0x10c3   :  { %11540 = vmatprep.subr.bf16.mxu0 %v16236_v9 }
0x10c6   :  { %11541 = vmatpush3.bf16.msra.mxu0 %v12224_v6  ;;  %v11911_v6 = vld [vmem:[#allocation19 + $0x64] ss:$8 sps:$4 sm:$0xff]  }
0x10c7   :  { %11542 = vmatprep.subr.bf16.mxu0 %v16236_v9 }
0x10ca   :  { %11543 = vmatpush3.bf16.msra.mxu0 %v12225_v11  ;;  %v11909_v11 = vld [vmem:[#allocation19 + $0x60] ss:$8 sps:$4 sm:$0xff]  }
0x10cb   :  { %11544 = vmatprep.subr.bf16.mxu0 %v16236_v9 }
0x10ce   :  { %11545 = vmatpush3.bf16.msra.mxu0 %v12226_v4  ;;  %v11914_v4 = vld [vmem:[#allocation19 + $0x74] ss:$8 sps:$4 sm:$0xff]  }
0x10cf   :  { %7992 = vmatprep.subr.bf16.mxu0 %v11869_v63 }
0x115e   :  { %v7688_v50 = vpop.f32.mrb[136].mxu1 }
0x115f   :  { %v11488_v32 = vpop.f32.mrb[137].mxu1 }
0x1160   :  { %v7691_v43 = vpop.f32.mrb[138].mxu1  ;;  %v11917_v32 = vld [vmem:[#allocation19 + $0x84] ss:$8 sps:$4 sm:$0xff]  }
0x1161   :  { %v11489_v29 = vpop.f32.mrb[139].mxu1  ;;  %v11915_v43 = vld [vmem:[#allocation19 + $0x80] ss:$8 sps:$4 sm:$0xff]  }
0x1162   :  { %v11920_v29 = vld [vmem:[#allocation19 + $0x94] ss:$8 sps:$4 sm:$0xff]  }
0x1164   :  { %v7648_v0 = vpop.f32.mrb[136].mxu0 }
0x1165   :  { %v7689_v10 = vadd.f32 %v7688_v50, %v7648_v0  ;;  %v11468_v36 = vpop.f32.mrb[137].mxu0  ;;  %v11912_v50 = vld [vmem:[#allocation19 + $0x70] ss:$8 sps:$4 sm:$0xff]  }
0x1166   :  { %v7651_v27 = vpop.f32.mrb[138].mxu0  ;;  %v11918_v0 = vld [vmem:[#allocation19 + $0x90] ss:$8 sps:$4 sm:$0xff]   ;;  %v11921_v36 = vld [vmem:[#allocation19 + $0xa0] ss:$8 sps:$4 sm:$0xff]  }
0x1167   :  { %v11469_v49 = vpop.f32.mrb[139].mxu0  ;;  %v11926_v27 = vld [vmem:[#allocation19 + $0xb4] ss:$8 sps:$4 sm:$0xff]  }
0x1168   :  { %v11924_v49 = vld [vmem:[#allocation19 + $0xb0] ss:$8 sps:$4 sm:$0xff]  }
0x1184   :  { %v7731_v26 = vpop.f32.mrb[140].mxu0 }
0x1185   :  { %v7737_v39 = vadd.f32 %v7731_v26, %v7689_v10  ;;  %v11508_v40 = vpop.f32.mrb[141].mxu0  ;;  %v11923_v10 = vld [vmem:[#allocation19 + $0xa4] ss:$8 sps:$4 sm:$0xff]  }
0x1186   :  { %v7734_v16 = vpop.f32.mrb[142].mxu0  ;;  %v11929_v26 = vld [vmem:[#allocation19 + $0xc4] ss:$8 sps:$4 sm:$0xff]   ;;  %v11932_v40 = vld [vmem:[#allocation19 + $0xd4] ss:$8 sps:$4 sm:$0xff]  }
0x1187   :  { %v7738_v38 = vadd.f32 %v12227_v33, %v7737_v39  ;;  %v11509_v20 = vpop.f32.mrb[143].mxu0  ;;  %v11927_v39 = vld [vmem:[#allocation19 + $0xc0] ss:$8 sps:$4 sm:$0xff]   ;;  %v11930_v16 = vld [vmem:[#allocation19 + $0xd0] ss:$8 sps:$4 sm:$0xff]  }
0x1189   :  { %v7739_v19 = vmax.f32 %v7738_v38, 0.0 }
0x118b   :  { %v7740_v42 = vpack.c.bf16 %v7739_v19, %v7739_v19 }
0x118d   :  { %v7744_v22 = vshll.u32 %v7740_v42, 16  ;;  %11547 = vmatmul.mubr.bf16.vlgmr.msra.gmra.mrb[144].mxu0 %v7740_v42  ;;  %v7742_v34 = vshrl.u32 %v7740_v42, 16  ;;  %v7830_v47 = vrot.slane %v7740_v42, 1 }
0x118e   :  { %8024 = vmatprep.mubr.bf16.mxu0 %v16247_v14  ;;  %7993 = vmatpush1.bf16.msra.mxu0 %v11867_v44 }
0x118f   :  { %v7746_v8 = vrot.slane %v7744_v22, 1  ;;  %7994 = vmatprep.subr.bf16.mxu0 %v11872_v45 }
0x1191   :  { %v7747_v12 = vor.u32 %v7746_v8, %v7742_v34 }
0x1193   :  { %11527 = vmatmul.mubr.bf16.vlgmr.msra.gmra.mrb[140].mxu1 %v7747_v12  ;;  %v8982_v12 = vld [vmem:[%s16047_s12] ss:$0 sm:$0xff] }
0x1194   :  { %11551 = vmatpush3.bf16.msra.mxu1 %v12228_v53  ;;  %11566 = vmatprep.mubr.msk.bf16.mxu1 %vm12555_vm6, %v16236_v9  ;;  %v5195_v53 = vadd.f32 %v8982_v12, %v15347_v5 }
0x1195   :  { %11552 = vmatprep.subr.bf16.mxu1 %v16236_v9 }
0x1198   :  { %11553 = vmatpush3.bf16.msra.mxu1 %v12229_v3  ;;  %v5196_v3 = vmax.f32 %v5195_v53, 0.0 }
0x1199   :  { %11554 = vmatprep.subr.bf16.mxu1 %v16236_v9 }
0x119c   :  { %11555 = vmatpush3.bf16.msra.mxu1 %v12230_v28  ;;  %v5197_v28 = vsel %vm2466_vm8, %v5196_v3, -inf }
0x119d   :  { %11556 = vmatprep.subr.bf16.mxu1 %v16236_v9 }
0x11a0   :  { %11557 = vmatpush3.bf16.msra.mxu1 %v12231_v15  ;;  %v5198_v15 = vrot.slane %v5197_v28, 4 }
0x11a1   :  { %11558 = vmatprep.subr.bf16.mxu1 %v16236_v9 }
0x11a4   :  { %11559 = vmatpush3.bf16.msra.mxu1 %v12232_v18 }
0x11a5   :  { %11560 = vmatprep.subr.bf16.mxu1 %v16236_v9 }
0x11a8   :  { %11561 = vmatpush3.bf16.msra.mxu1 %v12233_v30 }
0x11a9   :  { %11562 = vmatprep.subr.bf16.mxu1 %v16236_v9 }
0x11ac   :  { %11563 = vmatpush3.bf16.msra.mxu1 %v12234_v46 }
0x11ad   :  { %11564 = vmatprep.subr.bf16.mxu1 %v16236_v9  ;;  %v11870_v9 = vld [vmem:[%s16050_s15 + $0x10] ss:$8 sps:$4 sm:$0xff]  }
0x11ae   :  { %7995 = vmatpush1.bf16.msra.mxu0 %v11870_v9 }
0x11af   :  { %7996 = vmatprep.subr.bf16.mxu0 %v11875_v2 }
0x11b0   :  { %11565 = vmatpush3.bf16.msra.mxu1 %v12235_v61  ;;  %v5199_v61 = vmax.f32 %v5197_v28, %v5198_v15 }
0x11b1   :  { %8241 = vmatprep.subr.bf16.mxu1 %v11893_v62  ;;  %v11938_v62 = vld [vmem:[#allocation19 + $0xf4] ss:$8 sps:$4 sm:$0xff]  }
0x11b2   :  { %7997 = vmatpush1.bf16.msra.mxu0 %v11873_v52  ;;  %v5200_v9 = vrot.slane %v5199_v61, 2 }
0x11b3   :  { %11567 = vmatmul.mubr.bf16.vlgmr.msra.gmra.mrb[144].mxu1 %v7830_v47  ;;  %7998 = vmatprep.subr.bf16.mxu0 %v11878_v60 }
0x11b4   :  { %8242 = vmatpush1.bf16.msra.mxu1 %v11891_v17  ;;  %v5201_v60 = vmax.f32 %v5199_v61, %v5200_v9  ;;  %v11933_v17 = vld [vmem:[#allocation19 + $0xe0] ss:$8 sps:$4 sm:$0xff]   ;;  %v9075_v9 = vld [vmem:[%s16249_s6] ss:$0 sm:$0xff] }
0x11b5   :  { %8243 = vmatprep.subr.bf16.mxu1 %v11896_v31  ;;  %v11936_v31 = vld [vmem:[#allocation19 + $0xf0] ss:$8 sps:$4 sm:$0xff]  }
0x11b6   :  { %7999 = vmatpush1.bf16.msra.mxu0 %v11876_v25  ;;  %v5202_v5 = vrot.slane %v5201_v60, 1 }
0x11b7   :  { %8000 = vmatprep.subr.bf16.mxu0 %v11881_v55 }
0x11b8   :  { %8244 = vmatpush1.bf16.msra.mxu1 %v11894_v54  ;;  %v11939_v54 = vld [vmem:[#allocation20 + $0x40] sm:$0xff]  }
0x11b9   :  { %8245 = vmatprep.subr.bf16.mxu1 %v11899_v24  ;;  %v11940_v24 = vld [vmem:[#allocation20] sm:$0xff]  }
0x11ba   :  { %8001 = vmatpush1.bf16.msra.mxu0 %v11879_v13 }
0x11bb   :  { %8002 = vmatprep.subr.bf16.mxu0 %v11884_v21 }
0x11bc   :  { %8246 = vmatpush1.bf16.msra.mxu1 %v11897_v56  ;;  %v11941_v56 = vld [vmem:[#allocation20 + $0x48] sm:$0xff]  }
0x11bd   :  { %8247 = vmatprep.subr.bf16.mxu1 %v11902_v51  ;;  %v11942_v51 = vld [vmem:[#allocation20 + $0x8] sm:$0xff]  }
0x11be   :  { %8003 = vmatpush1.bf16.msra.mxu0 %v11882_v23  ;;  %v5203_v23 = vmax.f32 %v5201_v60, %v5202_v5 }
0x11bf   :  { %8004 = vmatprep.subr.bf16.mxu0 %v11887_v1 }
0x11c0   :  { %8248 = vmatpush1.bf16.msra.mxu1 %v11900_v58  ;;  %v11943_v58 = vld [vmem:[#allocation20 + $0x50] sm:$0xff]  }
0x11c1   :  { %8249 = vmatprep.subr.bf16.mxu1 %v11905_v48  ;;  %v11944_v48 = vld [vmem:[#allocation20 + $0x10] sm:$0xff]  }
0x11c2   :  { %8005 = vmatpush1.bf16.msra.mxu0 %v11885_v35 }
0x11c3   :  { %8006 = vmatprep.subr.bf16.mxu0 %v11890_v57 }
0x11c4   :  { %8250 = vmatpush1.bf16.msra.mxu1 %v11903_v41  ;;  %v11945_v41 = vld [vmem:[#allocation20 + $0x58] sm:$0xff]  }
0x11c5   :  { %8251 = vmatprep.subr.bf16.mxu1 %v11908_v7  ;;  %v11946_v7 = vld [vmem:[#allocation20 + $0x18] sm:$0xff]  }
0x11c6   :  { %8007 = vmatpush1.bf16.msra.mxu0 %v11888_v37  ;;  %v11935_v37 = vld [vmem:[#allocation19 + $0xe4] ss:$8 sps:$4 sm:$0xff]  }
0x11c7   :  { %10448 = vmatprep.subr.bf16.mxu0 %v11939_v54 }
0x11c8   :  { %8252 = vmatpush1.bf16.msra.mxu1 %v11906_v59  ;;  %v11947_v59 = vld [vmem:[#allocation20 + $0x60] sm:$0xff]  }
0x11c9   :  { %8253 = vmatprep.subr.bf16.mxu1 %v11911_v6  ;;  %v11948_v6 = vld [vmem:[#allocation20 + $0x20] sm:$0xff]  }
0x11cc   :  { %8254 = vmatpush1.bf16.msra.mxu1 %v11909_v11  ;;  %v11949_v11 = vld [vmem:[#allocation20 + $0x68] sm:$0xff]  }
0x11cd   :  { %8255 = vmatprep.subr.bf16.mxu1 %v11914_v4  ;;  %v11950_v4 = vld [vmem:[#allocation20 + $0x28] sm:$0xff]  }
0x11d0   :  { %8256 = vmatpush1.bf16.msra.mxu1 %v11912_v50  ;;  %v7902_v50 = vlaneseq }
0x11d1   :  { %8257 = vmatprep.subr.bf16.mxu1 %v11917_v32 }
0x11d2   :  { %v7903_v32 = vshrl.u32 %v7902_v50, 7 }
0x11d4   :  { %8258 = vmatpush1.bf16.msra.mxu1 %v11915_v43  ;;  %v7904_v43 = vsub.s32 0, %v7903_v32 }
0x11d5   :  { %8259 = vmatprep.subr.bf16.mxu1 %v11920_v29  ;;  %v7900_v29 = vld [vmem:[%s16051_s16] sm:$0x3] }
0x11d8   :  { %8260 = vmatpush1.bf16.msra.mxu1 %v11918_v0  ;;  %v7908_v0 = vsub.s32 1, %v7903_v32 }
0x11d9   :  { %8261 = vmatprep.subr.bf16.mxu1 %v11923_v10  ;;  %v7905_v10 = vrot.slane %v7900_v29, %v7904_v43 }
0x11dc   :  { %8262 = vmatpush1.bf16.msra.mxu1 %v11921_v36  ;;  %v7909_v36 = vrot.slane %v7900_v29, %v7908_v0 }
0x11dd   :  { %8263 = vmatprep.subr.bf16.mxu1 %v11926_v27 }
0x11e0   :  { %8264 = vmatpush1.bf16.msra.mxu1 %v11924_v49 }
0x11e1   :  { %8265 = vmatprep.subr.bf16.mxu1 %v11929_v26 }
0x11e4   :  { %8266 = vmatpush1.bf16.msra.mxu1 %v11927_v39 }
0x11e5   :  { %8267 = vmatprep.subr.bf16.mxu1 %v11932_v40 }
0x11e8   :  { %8268 = vmatpush1.bf16.msra.mxu1 %v11930_v16 }
0x11e9   :  { %8269 = vmatprep.subr.bf16.mxu1 %v11935_v37 }
0x11ec   :  { %8270 = vmatpush1.bf16.msra.mxu1 %v11933_v17 }
0x11ed   :  { %8271 = vmatprep.subr.bf16.mxu1 %v11938_v62 }
0x11f0   :  { %8272 = vmatpush1.bf16.msra.mxu1 %v11936_v31 }
0x1260   :  { %v7823_v33 = vpop.f32.mrb[144].mxu0 }
0x1261   :  { %v11548_v38 = vpop.f32.mrb[145].mxu0 }
0x1262   :  { %v7826_v20 = vpop.f32.mrb[146].mxu0 }
0x1263   :  { %v11549_v19 = vpop.f32.mrb[147].mxu0 }
0x1266   :  { %v7783_v42 = vpop.f32.mrb[140].mxu1 }
0x1267   :  { %v7824_v22 = vadd.f32 %v7823_v33, %v7783_v42  ;;  %v11528_v14 = vpop.f32.mrb[141].mxu1  ;;  %v11951_v42 = vld [vmem:[#allocation20 + $0x70] sm:$0xff]  }
0x1268   :  { %v7786_v34 = vpop.f32.mrb[142].mxu1  ;;  %v11953_v14 = vld [vmem:[#allocation20 + $0x78] sm:$0xff]  }
0x1269   :  { %v11529_v8 = vpop.f32.mrb[143].mxu1  ;;  %v11954_v34 = vld [vmem:[#allocation20 + $0x38] sm:$0xff]  }
0x126a   :  { %v8069_v8 = vld [vmem:[%s16248_s7] sm:$0x3] }
0x126b   :  { %v8078_v53 = vrot.slane %v8069_v8, %v7908_v0 }
0x1286   :  { %v7866_v18 = vpop.f32.mrb[144].mxu1 }
0x1287   :  { %v7872_v30 = vadd.f32 %v7866_v18, %v7824_v22  ;;  %v11568_v46 = vpop.f32.mrb[145].mxu1  ;;  %v11952_v22 = vld [vmem:[#allocation20 + $0x30] sm:$0xff]  }
0x1288   :  { %v7869_v47 = vpop.f32.mrb[146].mxu1 }
0x1289   :  { %v7873_v44 = vadd.f32 %v8982_v12, %v7872_v30  ;;  %v11569_v63 = vpop.f32.mrb[147].mxu1  ;;  %v8074_v12 = vrot.slane %v8069_v8, %v7904_v43 }
0x128b   :  { %v7874_v45 = vmax.f32 %v7873_v44, 0.0 }
0x128d   :  { %v7875_v2 = vsel %vm2466_vm8, %v7874_v45, -inf }
0x128e   :  { %v7876_v52 = vrot.slane %v7875_v2, 4 }
0x1290   :  { %v7877_v25 = vmax.f32 %v7875_v2, %v7876_v52 }
0x1292   :  { %v7878_v55 = vrot.slane %v7877_v25, 2 }
0x1294   :  { %v7879_v13 = vmax.f32 %v7877_v25, %v7878_v55 }
0x1296   :  { %v7880_v21 = vrot.slane %v7879_v13, 1 }
0x1298   :  { %v7881_v1 = vmax.f32 %v7879_v13, %v7880_v21 }
0x129a   :  { %v7882_v35 = vsel %vm3691_vm10, %v5203_v23, %v7881_v1 }
0x129b   :  { %v7883_v57 = vpack.c.bf16 %v7882_v35, %v7882_v35 }
0x129d   :  { %8025 = vmatmul.mubr.bf16.vlgmr.msra.gmra.mrb[148].mxu0 %v7883_v57 }
0x129e   :  { %10449 = vmatpush3.bf16.msra.mxu0 %v11940_v24 }
0x129f   :  { %10450 = vmatprep.subr.bf16.mxu0 %v11941_v56 }
0x12a2   :  { %10451 = vmatpush3.bf16.msra.mxu0 %v11942_v51 }
0x12a3   :  { %10452 = vmatprep.subr.bf16.mxu0 %v11943_v58 }
0x12a6   :  { %10453 = vmatpush3.bf16.msra.mxu0 %v11944_v48 }
0x12a7   :  { %10454 = vmatprep.subr.bf16.mxu0 %v11945_v41 }
0x12aa   :  { %10455 = vmatpush3.bf16.msra.mxu0 %v11946_v7 }
0x12ab   :  { %10456 = vmatprep.subr.bf16.mxu0 %v11947_v59 }
0x12ae   :  { %10457 = vmatpush3.bf16.msra.mxu0 %v11948_v6 }
0x12af   :  { %10458 = vmatprep.subr.bf16.mxu0 %v11949_v11 }
0x12b2   :  { %10459 = vmatpush3.bf16.msra.mxu0 %v11950_v4 }
0x12b3   :  { %10460 = vmatprep.subr.bf16.mxu0 %v11951_v42 }
0x12b6   :  { %10461 = vmatpush3.bf16.msra.mxu0 %v11952_v22 }
0x12b7   :  { %10462 = vmatprep.subr.bf16.mxu0 %v11953_v14 }
0x12ba   :  { %10463 = vmatpush3.bf16.msra.mxu0 %v11954_v34 }
0x1370   :  { %v8026_v27 = vpop.f32.mrb[148].mxu0 }
0x1371   :  { %v8027_v49 = vadd.f32 %v8026_v27, %v7905_v10  ;;  %v8028_v26 = vpop.f32.mrb[149].mxu0 }
0x1372   :  { %v8029_v39 = vadd.f32 %v8028_v26, %v7909_v36  ;;  %v8030_v40 = vpop.f32.mrb[150].mxu0 }
0x1373   :  { %v8033_v16 = vmax.f32 %v8027_v49, 0.0  ;;  %v8031_v33 = vpop.f32.mrb[151].mxu0 }
0x1374   :  { %v8034_v38 = vmax.f32 %v8029_v39, 0.0 }
0x1375   :  { %v8035_v19 = vpack.c.bf16 %v8033_v16, %v8033_v16 }
0x1376   :  { %v8036_v20 = vpack.c.bf16 %v8034_v38, %v8034_v38 }
0x1378   :  { %8273 = vmatprep.mubr.bf16.mxu1 %v8036_v20 }
0x1379   :  { %8274 = vmatmul.mubr.bf16.vlgmr.msra.gmra.mrb[148].mxu1 %v8035_v19 }
0x144c   :  { %v8275_v3 = vpop.f32.mrb[148].mxu1 }
0x144d   :  { %v8276_v28 = vadd.f32 %v8275_v3, %v8074_v12  ;;  %v8277_v15 = vpop.f32.mrb[149].mxu1 }
0x144e   :  { %v8278_v18 = vadd.f32 %v8277_v15, %v8078_v53  ;;  %v8279_v30 = vpop.f32.mrb[150].mxu1 }
0x144f   :  { %v8282_v46 = vmax.f32 %v8276_v28, 0.0  ;;  %v8280_v61 = vpop.f32.mrb[151].mxu1 }
0x1450   :  { %v8283_v47 = vmax.f32 %v8278_v18, 0.0 }
0x1451   :  { %v8284_v63 = vpack.c.bf16 %v8282_v46, %v8282_v46 }
0x1452   :  { %v8285_v44 = vpack.c.bf16 %v8283_v47, %v8283_v47 }
0x1454   :  { %8453 = vmatprep.mubr.bf16.mxu0 %v8285_v44 }
0x1455   :  { %8454 = vmatmul.mubr.bf16.vlgmr.msra.gmra.mrb[152].mxu0 %v8284_v63 }
0x1528   :  { %v10464_v45 = vpop.f32.mrb[152].mxu0 }
0x1529   :  { %v10465_v2 = vpop.f32.mrb[153].mxu0 }
0x152a   :  { %v10466_v52 = vadd.f32 %v10465_v2, %v10464_v45  ;;  %v10467_v60 = vpop.f32.mrb[154].mxu0 }
0x152b   :  { %v10468_v25 = vpop.f32.mrb[155].mxu0 }
0x152c   :  { %v8456_v55 = vadd.f32 %v10466_v52, %v9075_v9 }
0x152e   :  { %8461 = vst [vmem:[#allocation22] sm:$0x3] %v8456_v55 }
0x152f   :  { %12511 = shalt.err (!%p12508_p2)
}
0x1530   :  { %s16250_s2 = sld [smem:[#allocation51_spill]] }
0x1536   :  { %s12512_s10 = scalar_lea.hbm %s16250_s2, 32 }
0x1537   :  { %p12513_p3 = scmp.ne.s32.totalorder %s16250_s2, %s12512_s10  ;;  %p12516_p4 = scmp.lt.u32.totalorder %s12512_s10, %s16250_s2 }
0x1539   :  { %p12518_p5 = pnand %p12516_p4, %p12513_p3 }
0x153b   :  { %12521 = shalt.err (!%p12518_p5)
}
0x153c   :  { %8471 = dma.vmem_to_hbm [thread:$0]  %s8469_s22, 32, %s16250_s2, [#allocation4]  }
0x153d   :  { %12536 = dma.done.wait [#allocation4], 32  }
0x153e   :  { %12537 = vsyncadd [#allocation4], 4294967264 }
0x153f   :  { %8475 = vsyncpa [#allocation3], 1 }
0x1540   :  { %8476 = vsyncpa [#allocation6], 1 }
0x1541   :  { %8477 = vsyncpa [#allocation9], 1 }
0x1542   :  { %8478 = vsyncpa [#allocation12], 1 }
0x1543   :  { %8479 = vsyncpa [#allocation15], 1 }
0x1544   :  { %8480 = vsyncpa [#allocation18], 1 }
0x1545   :  { %8481 = vsyncpa [#allocation21], 1 }
0x1546   :  { %8482 = vsyncpa [#allocation4], 1 }

</bundles_post_ra>
